<compile_context>
chip_gen: v7x
topology: tpu7x:2x2x1
jax: 0.10.0
libtpu: 0.0.40
codegen_flags: <defaults>
</compile_context>

<pallas_src>
import jax
import jax.numpy as jnp
from jax.experimental import pallas as pl
from jax.experimental.pallas import tpu as pltpu

IN_DIM = 100
HID = 3 * 10 * 10           # 300
OUT = 3 * 218 * 178         # 116412
EPS = 1e-5                  # nn.LayerNorm default eps


def generator_kernel(x_ref, w1_ref, b1_ref, g_ref, beta_ref,
                     w2_ref, b2_ref, o_ref):
    """Fused head (Linear+LeakyReLU+LayerNorm) + one N-tile of the output
    projection (Linear(bf16 weights) -> Sigmoid)."""
    # --- small head, recomputed per tile (free under the weight DMA) ---
    x = x_ref[...]                                            # (B, 100) f32
    z = jnp.dot(x, w1_ref[...],
                preferred_element_type=jnp.float32) + b1_ref[...]
    z = jnp.where(z >= 0, z, 0.2 * z)                         # LeakyReLU(0.2)
    mean = jnp.mean(z, axis=-1, keepdims=True)
    var = jnp.mean((z - mean) ** 2, axis=-1, keepdims=True)   # biased, like torch
    h = (z - mean) * jax.lax.rsqrt(var + EPS) * g_ref[...] + beta_ref[...]

    # --- output projection tile: bf16 x bf16 MXU dot, f32 accumulate ---
    y = jnp.dot(h.astype(jnp.bfloat16), w2_ref[...],
                preferred_element_type=jnp.float32) + b2_ref[...]

    # Sigmoid epilogue: exp and approximate reciprocal both run on the EUP
    # slot, keeping the (already hidden) tail off the VPU divide path.
    e = jnp.exp(-y)
    o_ref[...] = pl.reciprocal(1.0 + e, approx=True)


def generator_forward(x, params, tn=14592):
    """tn = 14592 = 114*128 -> 8 tiles over OUT=116412 (7 full + 97.8% full),
    even megacore split on v7x.  Last tile is partial; OOB lanes masked."""
    w1, b1, gamma, beta, w2, b2 = params
    # Stream the dominant weight in bf16 (for repeated generation, pre-cast
    # once outside this function; astype is a no-op if already bf16).
    w2 = w2.astype(jnp.bfloat16)
    B = x.shape[0]
    n_tiles = pl.cdiv(OUT, tn)

    out = pl.pallas_call(
        generator_kernel,
        out_shape=jax.ShapeDtypeStruct((B, OUT), jnp.float32),
        grid_spec=pltpu.PrefetchScalarGridSpec(
            num_scalar_prefetch=0,
            grid=(n_tiles,),
            in_specs=[
                pl.BlockSpec((B, IN_DIM), lambda j: (0, 0)),    # x (resident)
                pl.BlockSpec((IN_DIM, HID), lambda j: (0, 0)),  # w1 (resident)
                pl.BlockSpec((1, HID), lambda j: (0, 0)),       # b1
                pl.BlockSpec((1, HID), lambda j: (0, 0)),       # gamma
                pl.BlockSpec((1, HID), lambda j: (0, 0)),       # beta
                pl.BlockSpec((HID, tn), lambda j: (0, j)),      # w2 N-tile (bf16)
                pl.BlockSpec((1, tn), lambda j: (0, j)),        # b2 N-tile (f32)
            ],
            out_specs=pl.BlockSpec((B, tn), lambda j: (0, j)),
        ),
        compiler_params=pltpu.CompilerParams(
            dimension_semantics=("parallel",),                  # megacore split
            vmem_limit_bytes=40 * 1024 * 1024,
        ),
    )(x, w1, b1.reshape(1, HID), gamma.reshape(1, HID), beta.reshape(1, HID),
      w2, b2.reshape(1, OUT))

    # Pure metadata reshape (no copy), same layout as torch .view(-1,3,218,178)
    return out.reshape(B, 3, 218, 178)


def generator_reference(x, params, bf16_w2=False):
    """Pure-JAX reference.  bf16_w2=True mirrors the kernel's intentional
    weight quantization so the kernel itself can be checked tightly."""
    w1, b1, gamma, beta, w2, b2 = params
    hp = jax.lax.Precision.HIGHEST
    z = jnp.dot(x, w1, precision=hp) + b1
    z = jnp.where(z >= 0, z, 0.2 * z)
    mean = jnp.mean(z, axis=-1, keepdims=True)
    var = jnp.mean((z - mean) ** 2, axis=-1, keepdims=True)
    h = (z - mean) * jax.lax.rsqrt(var + EPS) * gamma + beta
    if bf16_w2:
        y = jnp.dot(h.astype(jnp.bfloat16), w2.astype(jnp.bfloat16),
                    precision=hp, preferred_element_type=jnp.float32) + b2
    else:
        y = jnp.dot(h, w2, precision=hp) + b2
    return jax.nn.sigmoid(y).reshape(x.shape[0], 3, 218, 178)


def init_params(key):
    """Deterministic synthetic parameters (shapes from Generator.__init__)."""
    k1, k2, k3, k4 = jax.random.split(key, 4)
    w1 = jax.random.normal(k1, (IN_DIM, HID), jnp.float32) * 0.05
    b1 = jax.random.normal(k2, (HID,), jnp.float32) * 0.05
    gamma = jnp.ones((HID,), jnp.float32)          # LayerNorm weight
    beta = jnp.zeros((HID,), jnp.float32)          # LayerNorm bias
    w2 = jax.random.normal(k3, (HID, OUT), jnp.float32) * 0.02
    b2 = jax.random.normal(k4, (OUT,), jnp.float32) * 0.02
    return (w1, b1, gamma, beta, w2, b2)


if __name__ == "__main__":
    key = jax.random.PRNGKey(0)
    pkey, xkey = jax.random.split(key)
    params = init_params(pkey)

    B = 4
    x = jax.random.normal(xkey, (B, IN_DIM), jnp.float32)  # latent vectors

    y = jax.block_until_ready(generator_forward(x, params))

    assert y.shape == (B, 3, 218, 178), y.shape
    assert y.dtype == jnp.float32
    assert bool(jnp.all(jnp.isfinite(y)))
    # sigmoid output range sanity check
    assert bool(jnp.all(y >= 0.0)) and bool(jnp.all(y <= 1.0))

    # Tight check vs a reference that also uses bf16 w2 (isolates kernel
    # correctness -- tiling, partial-last-tile masking, LayerNorm head,
    # approx-reciprocal sigmoid -- from the intentional quantization).
    y_q = generator_reference(x, params, bf16_w2=True)
    err_q = float(jnp.max(jnp.abs(y - y_q)))
    assert err_q < 5e-3, err_q

    # Looser check vs the exact-f32 PyTorch-equivalent reference (includes the
    # bf16 weight-streaming delta on pre-sigmoid logits).
    y_f = generator_reference(x, params, bf16_w2=False)
    err_f = float(jnp.max(jnp.abs(y - y_f)))
    assert err_f < 1.5e-2, err_f

    print("KERNEL_OK")
</pallas_src>

<mosaic_0001>
module attributes {stable_mosaic.version = 11 : i64} {
  func.func @generator_kernel(%arg0: i32, %arg1: memref<4x100xf32, #tpu.memory_space<vmem>>, %arg2: memref<100x300xf32, #tpu.memory_space<vmem>>, %arg3: memref<1x300xf32, #tpu.memory_space<vmem>>, %arg4: memref<1x300xf32, #tpu.memory_space<vmem>>, %arg5: memref<1x300xf32, #tpu.memory_space<vmem>>, %arg6: memref<300x14592xbf16, #tpu.memory_space<vmem>>, %arg7: memref<1x14592xf32, #tpu.memory_space<vmem>>, %arg8: memref<4x14592xf32, #tpu.memory_space<vmem>>) attributes {dimension_semantics = [#tpu.dimension_semantics<parallel>], iteration_bounds = array<i64: 8>, scalar_prefetch = 0 : i64, scratch_operands = 0 : i64, tpu.core_type = #tpu.core_type<tc>, window_params = [{pipeline_mode = #tpu.pipeline_mode<synchronous>, transform_indices = @transform_0, window_bounds = array<i64: 4, 100>}, {pipeline_mode = #tpu.pipeline_mode<synchronous>, transform_indices = @transform_1, window_bounds = array<i64: 100, 300>}, {pipeline_mode = #tpu.pipeline_mode<synchronous>, transform_indices = @transform_2, window_bounds = array<i64: 1, 300>}, {pipeline_mode = #tpu.pipeline_mode<synchronous>, transform_indices = @transform_3, window_bounds = array<i64: 1, 300>}, {pipeline_mode = #tpu.pipeline_mode<synchronous>, transform_indices = @transform_4, window_bounds = array<i64: 1, 300>}, {transform_indices = @transform_5, window_bounds = array<i64: 300, 14592>}, {transform_indices = @transform_6, window_bounds = array<i64: 1, 14592>}, {transform_indices = @transform_7, window_bounds = array<i64: 4, 14592>}]} {
    %c0 = arith.constant 0 : index
    %c0_0 = arith.constant 0 : index
    %0 = vector.load %arg1[%c0, %c0_0] : memref<4x100xf32, #tpu.memory_space<vmem>>, vector<4x100xf32>
    %c0_1 = arith.constant 0 : index
    %c0_2 = arith.constant 0 : index
    %1 = vector.load %arg2[%c0_1, %c0_2] : memref<100x300xf32, #tpu.memory_space<vmem>>, vector<100x300xf32>
    %cst = arith.constant dense<0.000000e+00> : vector<4x300xf32>
    %2 = tpu.matmul %0, %1, %cst {dimension_numbers = #tpu.dot_dimension_numbers<[1], [0], [0], [1], [0, 0, 1, 1], [], []>} : vector<4x100xf32>, vector<100x300xf32>, vector<4x300xf32> -> vector<4x300xf32>
    %c0_3 = arith.constant 0 : index
    %c0_4 = arith.constant 0 : index
    %3 = vector.load %arg3[%c0_3, %c0_4] : memref<1x300xf32, #tpu.memory_space<vmem>>, vector<1x300xf32>
    %4 = vector.broadcast %3 : vector<1x300xf32> to vector<4x300xf32>
    %5 = arith.addf %2, %4 : vector<4x300xf32>
    %cst_5 = arith.constant 0.000000e+00 : f32
    %6 = vector.broadcast %cst_5 : f32 to vector<4x300xf32>
    %7 = arith.cmpf oge, %5, %6 : vector<4x300xf32>
    %cst_6 = arith.constant 2.000000e-01 : f32
    %8 = vector.broadcast %cst_6 : f32 to vector<4x300xf32>
    %9 = arith.mulf %8, %5 : vector<4x300xf32>
    %10 = arith.select %7, %5, %9 : vector<4x300xi1>, vector<4x300xf32>
    %cst_7 = arith.constant dense<0.000000e+00> : vector<4xf32>
    %11 = vector.multi_reduction <add>, %10, %cst_7 [1] : vector<4x300xf32> to vector<4xf32>
    %12 = vector.shape_cast %11 : vector<4xf32> to vector<4x1xf32>
    %cst_8 = arith.constant 3.000000e+02 : f32
    %13 = vector.broadcast %cst_8 : f32 to vector<4x1xf32>
    %14 = arith.divf %12, %13 : vector<4x1xf32>
    %15 = vector.broadcast %14 : vector<4x1xf32> to vector<4x300xf32>
    %16 = arith.subf %10, %15 : vector<4x300xf32>
    %17 = arith.mulf %16, %16 : vector<4x300xf32>
    %cst_9 = arith.constant dense<0.000000e+00> : vector<4xf32>
    %18 = vector.multi_reduction <add>, %17, %cst_9 [1] : vector<4x300xf32> to vector<4xf32>
    %19 = vector.shape_cast %18 : vector<4xf32> to vector<4x1xf32>
    %cst_10 = arith.constant 3.000000e+02 : f32
    %20 = vector.broadcast %cst_10 : f32 to vector<4x1xf32>
    %21 = arith.divf %19, %20 : vector<4x1xf32>
    %22 = vector.broadcast %14 : vector<4x1xf32> to vector<4x300xf32>
    %23 = arith.subf %10, %22 : vector<4x300xf32>
    %cst_11 = arith.constant 9.99999974E-6 : f32
    %24 = vector.broadcast %cst_11 : f32 to vector<4x1xf32>
    %25 = arith.addf %21, %24 : vector<4x1xf32>
    %26 = math.rsqrt %25 : vector<4x1xf32>
    %27 = vector.broadcast %26 : vector<4x1xf32> to vector<4x300xf32>
    %28 = arith.mulf %23, %27 : vector<4x300xf32>
    %c0_12 = arith.constant 0 : index
    %c0_13 = arith.constant 0 : index
    %29 = vector.load %arg4[%c0_12, %c0_13] : memref<1x300xf32, #tpu.memory_space<vmem>>, vector<1x300xf32>
    %30 = vector.broadcast %29 : vector<1x300xf32> to vector<4x300xf32>
    %31 = arith.mulf %28, %30 : vector<4x300xf32>
    %c0_14 = arith.constant 0 : index
    %c0_15 = arith.constant 0 : index
    %32 = vector.load %arg5[%c0_14, %c0_15] : memref<1x300xf32, #tpu.memory_space<vmem>>, vector<1x300xf32>
    %33 = vector.broadcast %32 : vector<1x300xf32> to vector<4x300xf32>
    %34 = arith.addf %31, %33 : vector<4x300xf32>
    %35 = arith.truncf %34 : vector<4x300xf32> to vector<4x300xbf16>
    %c0_16 = arith.constant 0 : index
    %c0_17 = arith.constant 0 : index
    %36 = vector.load %arg6[%c0_16, %c0_17] : memref<300x14592xbf16, #tpu.memory_space<vmem>>, vector<300x14592xbf16>
    %cst_18 = arith.constant dense<0.000000e+00> : vector<4x14592xf32>
    %37 = tpu.matmul %35, %36, %cst_18 {dimension_numbers = #tpu.dot_dimension_numbers<[1], [0], [0], [1], [0, 0, 1, 1], [], []>} : vector<4x300xbf16>, vector<300x14592xbf16>, vector<4x14592xf32> -> vector<4x14592xf32>
    %c0_19 = arith.constant 0 : index
    %c0_20 = arith.constant 0 : index
    %38 = vector.load %arg7[%c0_19, %c0_20] : memref<1x14592xf32, #tpu.memory_space<vmem>>, vector<1x14592xf32>
    %39 = vector.broadcast %38 : vector<1x14592xf32> to vector<4x14592xf32>
    %40 = arith.addf %37, %39 : vector<4x14592xf32>
    %cst_21 = arith.constant 0.000000e+00 : f32
    %41 = vector.broadcast %cst_21 : f32 to vector<4x14592xf32>
    %42 = arith.subf %41, %40 : vector<4x14592xf32>
    %43 = math.exp %42 : vector<4x14592xf32>
    %cst_22 = arith.constant 1.000000e+00 : f32
    %44 = vector.broadcast %cst_22 : f32 to vector<4x14592xf32>
    %45 = arith.addf %44, %43 : vector<4x14592xf32>
    %46 = tpu.reciprocal %45 {approx = true} : vector<4x14592xf32> -> vector<4x14592xf32>
    %c0_23 = arith.constant 0 : index
    %c0_24 = arith.constant 0 : index
    %47 = vector.load %arg8[%c0_23, %c0_24] : memref<4x14592xf32, #tpu.memory_space<vmem>>, vector<4x14592xf32>
    tpu.vector_store %arg8[%c0_23, %c0_24], %46 {strides = array<i32>} : memref<4x14592xf32, #tpu.memory_space<vmem>>, vector<4x14592xf32>,
    return
  }
  func.func @transform_0(%arg0: i32) -> (i32, i32) {
    %c0_i32 = arith.constant 0 : i32
    %c0_i32_0 = arith.constant 0 : i32
    %c0_i32_1 = arith.constant 0 : i32
    return %c0_i32, %c0_i32_0 : i32, i32
  }
  func.func @transform_1(%arg0: i32) -> (i32, i32) {
    %c0_i32 = arith.constant 0 : i32
    %c0_i32_0 = arith.constant 0 : i32
    %c0_i32_1 = arith.constant 0 : i32
    return %c0_i32, %c0_i32_0 : i32, i32
  }
  func.func @transform_2(%arg0: i32) -> (i32, i32) {
    %c0_i32 = arith.constant 0 : i32
    %c0_i32_0 = arith.constant 0 : i32
    %c0_i32_1 = arith.constant 0 : i32
    return %c0_i32, %c0_i32_0 : i32, i32
  }
  func.func @transform_3(%arg0: i32) -> (i32, i32) {
    %c0_i32 = arith.constant 0 : i32
    %c0_i32_0 = arith.constant 0 : i32
    %c0_i32_1 = arith.constant 0 : i32
    return %c0_i32, %c0_i32_0 : i32, i32
  }
  func.func @transform_4(%arg0: i32) -> (i32, i32) {
    %c0_i32 = arith.constant 0 : i32
    %c0_i32_0 = arith.constant 0 : i32
    %c0_i32_1 = arith.constant 0 : i32
    return %c0_i32, %c0_i32_0 : i32, i32
  }
  func.func @transform_5(%arg0: i32) -> (i32, i32) {
    %c0_i32 = arith.constant 0 : i32
    %c0_i32_0 = arith.constant 0 : i32
    return %c0_i32, %arg0 : i32, i32
  }
  func.func @transform_6(%arg0: i32) -> (i32, i32) {
    %c0_i32 = arith.constant 0 : i32
    %c0_i32_0 = arith.constant 0 : i32
    return %c0_i32, %arg0 : i32, i32
  }
  func.func @transform_7(%arg0: i32) -> (i32, i32) {
    %c0_i32 = arith.constant 0 : i32
    %c0_i32_0 = arith.constant 0 : i32
    return %c0_i32, %arg0 : i32, i32
  }
}

</mosaic_0001>

<bundles_post_ra>
// kernel: tpu_custom_call.1
= control target key start
LH: loop header
LB: loop body
LE: loop exit
PB: predicated region body
PF: predicated region fallthrough
CT: control target
= control target key end

     0   :  { %s30464_s0 = inlined_call_operand.hbm [shape: f32[4,100], index: 0, kind: input, shape index: {}]   ;;  %s30465_s1 = inlined_call_operand.vmem [shape: f32[100,300], index: 1, kind: input, shape index: {}]   ;;  %s30466_s2 = inlined_call_operand.hbm [shape: f32[1,300], index: 2, kind: input, shape index: {}]   ;;  %s30467_s3 = inlined_call_operand.hbm [shape: f32[1,300], index: 3, kind: input, shape index: {}]   ;;  %s30468_s4 = inlined_call_operand.hbm [shape: f32[1,300], index: 4, kind: input, shape index: {}]   ;;  %s30469_s5 = inlined_call_operand.hbm [shape: bf16[300,116412], index: 5, kind: input, shape index: {}]   ;;  %s30470_s6 = inlined_call_operand.hbm [shape: f32[1,116412], index: 6, kind: input, shape index: {}]   ;;  %s30471_s7 = inlined_call_operand.hbm [shape: f32[4,116412], index: 7, kind: output, shape index: {}]  }
   0x1   :  { %30478 = sst [smem:[#allocation21_spill]] %s30466_s2 }
   0x2   :  { %12 = vsyncpa [#allocation3], 0 }
   0x3   :  { %13 = vsyncpa [#allocation6], 0 }
   0x4   :  { %14 = vsyncpa [#allocation9], 0 }
   0x5   :  { %15 = vsyncpa [#allocation4], 0 }
   0x6   :  { %17 = vsyncpa [#allocation4 + $0x1], 0  ;;  %s27049_s24 = smov 0   ;;  %s27051_s25 = smov 0  }
   0x7   :  { %s27053_s26 = smov 0   ;;  %s27055_s27 = smov 0  }
   0x8 LB: > { %s27070_s28 = sadd.s32 4294967295, %s26994_s27   ;;  %s20208_s29 = sadd.s32 4294967294, %s26994_s27   ;;  %s26994_s27 = sphi %s27055_s27, %s30503_s27   ;;  %s26990_s26 = sphi %s27053_s26, %s30507_s26   ;;  %s26986_s25 = sphi %s27051_s25, %s30506_s25   ;;  %s26982_s24 = sphi %s27049_s24, %s30505_s24  }
   0x9   : > { %s27074_s30 = sadd.s32 1, %s26994_s27   ;;  %s135_s8 = sadd.s32 1, %s26990_s26 }
   0xa   : > { %30479 = sst [smem:[#allocation18_spill]] %s27074_s30  ;;  %s132_s9 = ssub.s32 %s26994_s27, %s27074_s30 }
   0xb   : > { %p142_p0 = scmp.ne.s32.totalorder %s26990_s26, %s26986_s25  ;;  %p133_p1 = scmp.eq.s32.totalorder %s132_s9, 0 }
   0xc   : > { %p143_p2 = scmp.eq.s32.totalorder %s26994_s27, 0  ;;  %p148_p3 = scmp.ne.s32.totalorder %s26986_s25, %s26982_s24 }
   0xd   : > { %p30472_p4 = scmp.eq.s32.totalorder %s27070_s28, 0  ;;  %p198_p7 = scmp.eq.s32.totalorder %s27070_s28, 7 }
   0xe   : > { %s27086_s10 = scalar_select %p133_p1, %s26990_s26, %s135_s8  }
   0xf   : > { %p27088_p5 = por %p143_p2, %p142_p0  ;;  %p27094_p6 = por %p30472_p4, %p148_p3 }
  0x10   : > { %30480 = sst [smem:[#allocation19_spill]] %s27086_s10  ;;  %p204_p8 = scmp.eq.s32.totalorder %s20208_s29, 7 }
  0x11   : > { %s30481_s11 = scalar_select %p27088_p5, 1, 0 }
  0x12   : > { %s30482_s12 = scalar_select %p27094_p6, 1, 0 }
  0x13   : > { %p20209_p9 = scmp.ge.s32.totalorder %s26994_s27, 1  ;;  %p211_p10 = scmp.lt.s32.totalorder %s26994_s27, 9 }
  0x14   : > { %p27101_p11 = por %p198_p7, %p142_p0  ;;  %p27105_p12 = por %p204_p8, %p148_p3 }
  0x15   : > { %p27109_p13 = pnand %p20209_p9, %p211_p10  ;;  %s26996_s16 = smov [#allocation5]  }
  0x16   : > { %s30483_s13 = scalar_select %p27101_p11, 1, 0 }
  0x17   : > { %s30484_s14 = scalar_select %p27105_p12, 1, 0 }
  0x18   : > { %s30486_s15 = scalar_select %p27109_p13, 1, 0 }
  0x19   : > { %30485 = sst [smem:[#allocation20_spill]] %s30484_s14  ;;  %p22972_p1 = pneg %p27109_p13 }
  0x1a   : > { %s238_s17 = sshll.u32 %s26996_s16, 4  ;;  %s26997_s18 = smov [#allocation2]   ;;  %s239_s17 = int_to_ptr.vmem [resolvable:$true] %s238_s17 }
  0x1b   : > { %s224_s19 = sshll.u32 %s26997_s18, 4  ;;  %p27117_p0 = pnand %p22972_p1, %p30472_p4  ;;  %s27121_s19 = int_to_ptr.vmem [resolvable:$true] %s224_s19 }
  0x1c   : > { %s26998_s21 = smov [#allocation7]   ;;  %s30488_s2 = sld [smem:[#allocation21_spill]] }
  0x1d   : > { %s27123_s22 = sshll.u32 %s26998_s21, 4  ;;  %p27133_p3 = pneg %p27117_p0  ;;  %s250_s22 = int_to_ptr.vmem [resolvable:$true] %s27123_s22 }
  0x22   : > { %s26748_s8 = scalar_lea.hbm %s30488_s2, 48 }
  0x23   : > { %p26749_p2 = scmp.ne.s32.totalorder %s30488_s2, %s26748_s8  ;;  %p26755_p9 = scmp.lt.u32.totalorder %s26748_s8, %s30488_s2 }
  0x25   : > { %p26751_p7 = pnand %p27133_p3, %p26749_p2 }
  0x27   : > { %p26752_p8 = pneg %p26751_p7 }
  0x29   : > { %p26757_p10 = pnand %p26755_p9, %p26752_p8 }
  0x2b   : > { %26760 = shalt.err (!%p26757_p10)
}
  0x2c   : > { %s26761_s23 = scalar_lea.vmem %s239_s17, 48  ;;  %s26768_s29 = scalar_lea.vmem %s239_s17, 64 }
  0x2d   : > { %p26762_p1 = scmp.ne.s32.totalorder %s239_s17, %s26761_s23  ;;  %p26769_p11 = scmp.lt.s32.totalorder %s239_s17, %s239_s17 }
  0x2e   : > { %p26770_p6 = scmp.lt.s32.totalorder %s26768_s29, %s26761_s23 }
  0x2f   : > { %p26764_p4 = pnand %p26762_p1, %p27133_p3 }
  0x30   : > { %p26771_p13 = por %p26770_p6, %p26769_p11 }
  0x31   : > { %p26765_p12 = pneg %p26764_p4 }
  0x33   : > { %p26772_p5 = pnand %p26771_p13, %p26765_p12 }
  0x35   : > { %26775 = shalt.err (!%p26772_p5)
}
  0x36   : > { %22978 = dma.hbm_to_vmem [thread:$0]  (!%p27117_p0), %s30488_s2, 48, %s239_s17, [#allocation6]  }
  0x37   : > { %s26776_s21 = scalar_lea.hbm %s30464_s0, 64 }
  0x38   : > { %p26777_p4 = scmp.ne.s32.totalorder %s30464_s0, %s26776_s21  ;;  %p26783_p5 = scmp.lt.u32.totalorder %s26776_s21, %s30464_s0 }
  0x3a   : > { %p26779_p2 = pnand %p26777_p4, %p27133_p3 }
  0x3c   : > { %p26780_p6 = pneg %p26779_p2 }
  0x3e   : > { %p26785_p11 = pnand %p26783_p5, %p26780_p6 }
  0x40   : > { %26788 = shalt.err (!%p26785_p11)
}
  0x41   : > { %s26789_s17 = scalar_lea.vmem %s27121_s19, 64  ;;  %p26797_p8 = scmp.lt.s32.totalorder %s27121_s19, %s27121_s19 }
  0x42   : > { %p26790_p12 = scmp.ne.s32.totalorder %s27121_s19, %s26789_s17  ;;  %p26798_p9 = scmp.lt.s32.totalorder %s26789_s17, %s26789_s17 }
  0x44   : > { %p26792_p13 = pnand %p26790_p12, %p27133_p3  ;;  %p26799_p10 = por %p26798_p9, %p26797_p8 }
  0x46   : > { %p26793_p7 = pneg %p26792_p13 }
  0x48   : > { %p26800_p1 = pnand %p26799_p10, %p26793_p7 }
  0x4a   : > { %26803 = shalt.err (!%p26800_p1)
}
  0x4b   : > { %22975 = dma.hbm_to_vmem [thread:$0]  (!%p27117_p0), %s30464_s0, 64, %s27121_s19, [#allocation3]  }
  0x4c   : > { %s26999_s9 = smov [#allocation8]   ;;  %s26804_s21 = scalar_lea.hbm %s30467_s3, 48 }
  0x4d   : > { %s260_s16 = sshll.u32 %s26999_s9, 4  ;;  %p26805_p4 = scmp.ne.s32.totalorder %s30467_s3, %s26804_s21  ;;  %s261_s16 = int_to_ptr.vmem [resolvable:$true] %s260_s16 }
  0x4e   : > { %p26811_p5 = scmp.lt.u32.totalorder %s26804_s21, %s30467_s3 }
  0x4f   : > { %p26807_p2 = pnand %p26805_p4, %p27133_p3 }
  0x51   : > { %p26808_p6 = pneg %p26807_p2 }
  0x53   : > { %p26813_p11 = pnand %p26811_p5, %p26808_p6 }
  0x55   : > { %26816 = shalt.err (!%p26813_p11)
}
  0x56   : > { %s26817_s19 = scalar_lea.vmem %s250_s22, 48  ;;  %s26824_s30 = scalar_lea.vmem %s250_s22, 64 }
  0x57   : > { %p26818_p12 = scmp.ne.s32.totalorder %s250_s22, %s26817_s19  ;;  %p26825_p8 = scmp.lt.s32.totalorder %s250_s22, %s250_s22 }
  0x58   : > { %p26826_p9 = scmp.lt.s32.totalorder %s26824_s30, %s26817_s19 }
  0x59   : > { %p26820_p13 = pnand %p26818_p12, %p27133_p3 }
  0x5a   : > { %p26827_p10 = por %p26826_p9, %p26825_p8 }
  0x5b   : > { %p26821_p7 = pneg %p26820_p13 }
  0x5d   : > { %p26828_p1 = pnand %p26827_p10, %p26821_p7 }
  0x5f   : > { %26831 = shalt.err (!%p26828_p1)
}
  0x60   : > { %22981 = dma.hbm_to_vmem [thread:$0]  (!%p27117_p0), %s30467_s3, 48, %s250_s22, [#allocation6]  }
  0x61   : > { %s26832_s8 = scalar_lea.hbm %s30468_s4, 48 }
  0x62   : > { %p26833_p4 = scmp.ne.s32.totalorder %s30468_s4, %s26832_s8  ;;  %p26839_p5 = scmp.lt.u32.totalorder %s26832_s8, %s30468_s4 }
  0x64   : > { %p26835_p2 = pnand %p26833_p4, %p27133_p3 }
  0x66   : > { %p26836_p6 = pneg %p26835_p2 }
  0x68   : > { %p26841_p11 = pnand %p26839_p5, %p26836_p6 }
  0x6a   : > { %26844 = shalt.err (!%p26841_p11)
}
  0x6b   : > { %s26845_s19 = scalar_lea.vmem %s261_s16, 48  ;;  %s26852_s22 = scalar_lea.vmem %s261_s16, 64 }
  0x6c   : > { %p26846_p12 = scmp.ne.s32.totalorder %s261_s16, %s26845_s19  ;;  %p26853_p8 = scmp.lt.s32.totalorder %s261_s16, %s261_s16 }
  0x6d   : > { %p26854_p9 = scmp.lt.s32.totalorder %s26852_s22, %s26845_s19 }
  0x6e   : > { %p26848_p13 = pnand %p26846_p12, %p27133_p3 }
  0x6f   : > { %p26855_p10 = por %p26854_p9, %p26853_p8 }
  0x70   : > { %p26849_p7 = pneg %p26848_p13 }
  0x72   : > { %p26856_p1 = pnand %p26855_p10, %p26849_p7 }
  0x74   : > { %26859 = shalt.err (!%p26856_p1)
}
  0x75   : > { %22984 = dma.hbm_to_vmem [thread:$0]  (!%p27117_p0), %s30468_s4, 48, %s261_s16, [#allocation9]  }
  0x76   : > { %p20214_p4 = scmp.ge.s32.totalorder %s26994_s27, 8 }
  0x77   : > { %p30490_p2 = scmp.ne.s32.totalorder (!%p20214_p4), %s30481_s11, 0 }
  0x78   : > { %267 = sbr.rel (%p20214_p4) target bundleno = 199 (0xc7), region = 36 }
  0x7f   : > { %270 = sbr.rel (!%p30490_p2) target bundleno = 163 (0xa3), region = 40  ;;  %s271_s18 = sand.u32 (%p30490_p2), 1, %s26994_s27  }
  0x80   : > { %s273_s9 = sand.u32 (%p30490_p2), 1, %s26990_s26   ;;  %s276_s10 = smul.u32 (%p30490_p2), 114, %s26994_s27 }
  0x81   : > { %s22948_s2 = smul.u32 (%p30490_p2), 17328, %s273_s9  ;;  %s27221_s21 = scalar_lea.sflag (%p30490_p2), [#allocation3], %s271_s18 }
  0x82   : > { %s277_s8 = ssub.s32 (%p30490_p2), 910, %s276_s10 }
  0x83   : > { %p278_p3 = scmp.lt.s32.totalorder (%p30490_p2), %s277_s8, 114  ;;  %s275_s23 = scalar_lea.vmem (%p30490_p2), [#allocation10], %s22948_s2 }
  0x86   : > { %s30509_s8 = smov (!%p278_p3, %s277_s8), 114 }
  0x87   : > { %s27218_s20 = smul.u32 2432, %s30509_s8 }
  0x89   : > { %s282_s16 = ssub.s32 277248, %s27218_s20 }
  0x8a   : > { %283 = vsyncadd %s27221_s21, %s282_s16  ;;  %p20215_p0 = scmp.ne.s32.totalorder %s27218_s20, 0  ;;  %s22520_s29 = smul.u32 7296, %s26994_s27 }
  0x8b   : > { %s20217_s17 = sshll.u32 %s30509_s8, 2  ;;  %s289_s19 = sshll.u32 %s275_s23, 4  ;;  %s27232_s19 = int_to_ptr.vmem [resolvable:$true] %s289_s19 }
  0x8c   : > { %s27230_s14 = scalar_lea.hbm %s30469_s5, %s22520_s29  ;;  %s26864_s10 = scalar_lea.hbm %s30469_s5, 2213120 }
  0x8d   : > { %s26860_s18 = scalar_lea.hbm %s27230_s14, %s27218_s20  ;;  %p26865_p12 = scmp.lt.u32.totalorder %s27230_s14, %s30469_s5 }
  0x8e   : > { %p26861_p6 = scmp.ne.s32.totalorder %s27230_s14, %s26860_s18  ;;  %p26866_p13 = scmp.lt.u32.totalorder %s26864_s10, %s26860_s18 }
  0x8f   : > { %p26868_p8 = scmp.lt.u32.totalorder %s26860_s18, %s27230_s14 }
  0x90   : > { %p26862_p5 = pnand %p26861_p6, %p20215_p0  ;;  %p26867_p7 = por %p26866_p13, %p26865_p12 }
  0x92   : > { %p26863_p11 = pneg %p26862_p5  ;;  %p26869_p9 = por %p26868_p8, %p26867_p7 }
  0x94   : > { %p26870_p10 = pnand %p26869_p9, %p26863_p11 }
  0x96   : > { %26873 = shalt.err (!%p26870_p10)
}
  0x97   : > { %s26874_s29 = scalar_lea.vmem %s27232_s19, %s27218_s20  ;;  %s27000_s22 = smov [#allocation10]  }
  0x98   : > { %p26875_p1 = scmp.ne.s32.totalorder %s27232_s19, %s26874_s29  ;;  %s26878_s30 = sshll.u32 %s27000_s22, 4  ;;  %s26879_s30 = int_to_ptr.vmem [resolvable:$false] %s26878_s30 }
  0x99   : > { %s26880_s9 = scalar_lea.vmem %s26879_s30, 554496  ;;  %p26881_p3 = scmp.lt.s32.totalorder %s27232_s19, %s26879_s30 }
  0x9a   : > { %p26876_p4 = pnand %p26875_p1, %p20215_p0  ;;  %p26882_p6 = scmp.lt.s32.totalorder %s26880_s9, %s26874_s29 }
  0x9c   : > { %p26877_p2 = pneg %p26876_p4  ;;  %p26883_p5 = por %p26882_p6, %p26881_p3 }
  0x9e   : > { %p26884_p12 = pnand %p26883_p5, %p26877_p2 }
  0xa0   : > { %26887 = shalt.err (!%p26884_p12)
}
  0xa1   : > { %s27001_s18 = smov 58240   ;;  %s27002_s2 = smov 7296  }
  0xa2   : > { %295 = dma.hbm_to_vmem [thread:$0]  (%p20215_p0), %s27230_s14, %s27218_s20, %s27232_s19, %s27221_s21, %s27001_s18, %s27002_s2, %s20217_s17  }
  0xa3 PF: > { %p30491_p11 = scmp.ne.s32.totalorder %s30481_s11, 0 }
  0xa4   : > { %s299_s10 = sand.u32 (%p30491_p11), 1, %s26994_s27   ;;  %s301_s16 = sand.u32 (%p30491_p11), 1, %s26990_s26  }
  0xa5   : > { %298 = sbr.rel (!%p30491_p11) target bundleno = 199 (0xc7), region = 44  ;;  %s27269_s8 = scalar_lea.sflag (%p30491_p11), [#allocation3], %s299_s10 }
  0xa6   : > { %s22949_s23 = smul.u32 (%p30491_p11), 114, %s301_s16 }
  0xa7   : > { %s304_s29 = smul.u32 (%p30491_p11), 114, %s26994_s27 }
  0xa8   : > { %s303_s20 = scalar_lea.vmem (%p30491_p11), [#allocation11], %s22949_s23 }
  0xa9   : > { %s305_s22 = ssub.s32 (%p30491_p11), 910, %s304_s29 }
  0xaa   : > { %p306_p13 = scmp.lt.s32.totalorder (%p30491_p11), %s305_s22, 114 }
  0xac   : > { %s30511_s22 = smov (!%p306_p13, %s305_s22), 114 }
  0xad   : > { %s27266_s30 = sshll.u32 %s30511_s22, 4 }
  0xae   : > { %s310_s9 = ssub.s32 1824, %s27266_s30 }
  0xaf   : > { %311 = vsyncadd %s27269_s8, %s310_s9  ;;  %p20221_p0 = scmp.ne.s32.totalorder %s27266_s30, 0  ;;  %s22521_s11 = smul.u32 1824, %s26994_s27 }
  0xb0   : > { %s316_s21 = sshll.u32 %s303_s20, 4  ;;  %s26892_s16 = scalar_lea.hbm %s30470_s6, 14560  ;;  %s317_s21 = int_to_ptr.vmem [resolvable:$true] %s316_s21 }
  0xb1   : > { %s27277_s14 = scalar_lea.hbm %s30470_s6, %s22521_s11 }
  0xb2   : > { %s26888_s18 = scalar_lea.hbm %s27277_s14, %s27266_s30  ;;  %p26893_p10 = scmp.lt.u32.totalorder %s27277_s14, %s30470_s6 }
  0xb3   : > { %p26889_p7 = scmp.ne.s32.totalorder %s27277_s14, %s26888_s18  ;;  %p26894_p1 = scmp.lt.u32.totalorder %s26892_s16, %s26888_s18 }
  0xb4   : > { %p26896_p2 = scmp.lt.u32.totalorder %s26888_s18, %s27277_s14 }
  0xb5   : > { %p26890_p8 = pnand %p26889_p7, %p20221_p0  ;;  %p26895_p4 = por %p26894_p1, %p26893_p10 }
  0xb7   : > { %p26891_p9 = pneg %p26890_p8  ;;  %p26897_p3 = por %p26896_p2, %p26895_p4 }
  0xb9   : > { %p26898_p6 = pnand %p26897_p3, %p26891_p9 }
  0xbb   : > { %26901 = shalt.err (!%p26898_p6)
}
  0xbc   : > { %s26902_s22 = scalar_lea.vmem %s317_s21, %s27266_s30  ;;  %s27003_s9 = smov [#allocation11]  }
  0xbd   : > { %p26903_p5 = scmp.ne.s32.totalorder %s317_s21, %s26902_s22  ;;  %s26906_s20 = sshll.u32 %s27003_s9, 4  ;;  %s26907_s20 = int_to_ptr.vmem [resolvable:$false] %s26906_s20 }
  0xbe   : > { %s26908_s11 = scalar_lea.vmem %s26907_s20, 3648  ;;  %p26909_p13 = scmp.lt.s32.totalorder %s317_s21, %s26907_s20 }
  0xbf   : > { %p26904_p12 = pnand %p26903_p5, %p20221_p0  ;;  %p26910_p7 = scmp.lt.s32.totalorder %s26908_s11, %s26902_s22 }
  0xc1   : > { %p26905_p11 = pneg %p26904_p12  ;;  %p26911_p8 = por %p26910_p7, %p26909_p13 }
  0xc3   : > { %p26912_p1 = pnand %p26911_p8, %p26905_p11 }
  0xc5   : > { %26915 = shalt.err (!%p26912_p1)
}
  0xc6   : > { %319 = dma.hbm_to_vmem [thread:$0]  (%p20221_p0), %s27277_s14, %s27266_s30, %s317_s21, %s27269_s8  }
  0xc7 PF: > { %p30492_p9 = scmp.ne.s32.totalorder %s30486_s15, 0 }
  0xc8   : > { %p30493_p10 = scmp.eq.s32.totalorder (!%p30492_p9), %s27070_s28, 0 }
  0xc9   : > { %325 = sbr.rel (%p30492_p9) target bundleno = 3217 (0xc91), region = 48 }
  0xd0   : > { %26961 = dma.done.wait (%p30493_p10), [#allocation3], 64   ;;  %p30494_p4 = pmov %p30493_p10 }
  0xd2   : > { %26963 = vsyncadd (%p30494_p4), [#allocation3], 4294967232  ;;  %p30495_p2 = pmov %p30494_p4 }
  0xd4   : > { %26965 = dma.done.wait (%p30495_p2), [#allocation6], 96   ;;  %p30496_p3 = pmov %p30495_p2 }
  0xd5   : > { %p30497_p6 = pmov %p30495_p2 }
  0xd6   : > { %26967 = vsyncadd (%p30496_p3), [#allocation6], 4294967200 }
  0xd7   : > { %26969 = dma.done.wait (%p30497_p6), [#allocation9], 48   ;;  %p30498_p0 = pmov %p30495_p2 }
  0xd8   : > { %s343_s15 = sand.u32 1, %s27070_s28   ;;  %s27316_s30 = sand.u32 1, %s26986_s25  }
  0xd9   : > { %26971 = vsyncadd (%p30498_p0), [#allocation9], 4294967248  ;;  %s22950_s8 = smul.u32 17328, %s27316_s30  ;;  %s344_s21 = scalar_lea.sflag [#allocation3], %s343_s15 }
  0xda   : > { %p30499_p5 = scmp.ne.s32.totalorder %s30482_s12, 0 }
  0xdb   : > { %s27319_s17 = scalar_lea.vmem [#allocation10], %s22950_s8 }
  0xdc   : > { %26973 = dma.done.wait (%p30499_p5), %s344_s21, 279072  }
  0xdd   : > { %26975 = vsyncadd (%p30499_p5), %s344_s21, 4294688224  ;;  %v27004_v0 = vmov 0.0   ;;  %v410_v1 = vld [vmem:[%s30465_s1 + $0x8] sm:$0xff]  ;;  %v413_v2 = vld [vmem:[%s30465_s1 + $0x20] sm:$0xff]  ;;  %vm469_vm0 = vcmask 1043456   ;;  %vm465_vm1 = vcmask 818176   ;;  %v450_v60 = vlaneseq }
  0xde   : > { %543 = vmatprep.mubr.f32.mxu1 %v27004_v0  ;;  %v409_v3 = vld [vmem:[%s30465_s1] sm:$0xff]  ;;  %v22566_v4 = vpack.c.bf16 %v413_v2, %v410_v1  ;;  %v412_v5 = vld [vmem:[%s30465_s1 + $0x18] sm:$0xff]  ;;  %v419_v7 = vld [vmem:[%s30465_s1 + $0x50] sm:$0xff]  ;;  %v27005_v45 = vmov 0.0|0.0   ;;  %vm27006_vm2 = vmmov 0   ;;  %vm632_vm5 = vcmask 355328  }
  0xdf   : > { %v416_v6 = vld [vmem:[%s30465_s1 + $0x38] sm:$0xff]  ;;  %v22568_v8 = vpack.c.bf16 %v412_v5, %v409_v3  ;;  %v415_v10 = vld [vmem:[%s30465_s1 + $0x30] sm:$0xff]  ;;  %v418_v11 = vld [vmem:[%s30465_s1 + $0x48] sm:$0xff]  ;;  %v27450_v63 = vshrl.u32 %v450_v60, 7  ;;  %vm14187_vm7 = vcmask 1045504   ;;  %vm14183_vm8 = vcmask 359424  }
  0xe0   : > { %v22570_v9 = vpack.c.bf16 %v419_v7, %v416_v6  ;;  %v422_v12 = vld [vmem:[%s30465_s1 + $0x68] sm:$0xff]  ;;  %22567 = vmatprep.subr.bf16.mxu1 %v22566_v4  ;;  %v425_v13 = vld [vmem:[%s30465_s1 + $0x80] sm:$0xff]  ;;  %v22572_v14 = vpack.c.bf16 %v418_v11, %v415_v10  ;;  %v424_v17 = vld [vmem:[%s30465_s1 + $0x78] sm:$0xff]  ;;  %s22951_s8 = smul.u32 114, %s27316_s30  ;;  %p30500_p12 = scmp.ne.s32.totalorder %s30483_s13, 0 }
  0xe1   : > { %22569 = vmatpush1.bf16.msra.mxu1 %v22568_v8  ;;  %v22574_v15 = vpack.c.bf16 %v425_v13, %v422_v12  ;;  %v421_v16 = vld [vmem:[%s30465_s1 + $0x60] sm:$0xff]  ;;  %v428_v18 = vld [vmem:[%s30465_s1 + $0x98] sm:$0xff]  ;;  %v431_v19 = vld [vmem:[%s30465_s1 + $0xb0] sm:$0xff]  ;;  %v27453_v2 = vsub.s32 0, %v27450_v63  ;;  %v27456_v3 = vsub.s32 1, %v27450_v63  ;;  %v27461_v7 = vsub.s32 2, %v27450_v63 }
  0xe2   : > { %22571 = vmatprep.subr.bf16.mxu1 %v22570_v9  ;;  %v22576_v20 = vpack.c.bf16 %v424_v17, %v421_v16  ;;  %v22578_v21 = vpack.c.bf16 %v431_v19, %v428_v18  ;;  %v427_v22 = vld [vmem:[%s30465_s1 + $0x90] sm:$0xff]  ;;  %v430_v23 = vld [vmem:[%s30465_s1 + $0xa8] sm:$0xff]  ;;  %v437_v25 = vld [vmem:[%s30465_s1 + $0xe0] sm:$0xff]  ;;  %s27786_s21 = scalar_lea.vmem [#allocation11], %s22951_s8  ;;  %s22952_s19 = smul.u32 456, %s27316_s30 }
  0xe3   : > { %v434_v24 = vld [vmem:[%s30465_s1 + $0xc8] sm:$0xff]  ;;  %v22580_v26 = vpack.c.bf16 %v430_v23, %v427_v22  ;;  %v433_v27 = vld [vmem:[%s30465_s1 + $0xc0] sm:$0xff]  ;;  %v436_v28 = vld [vmem:[%s30465_s1 + $0xd8] sm:$0xff]  ;;  %s20067_s18 = smul.u32 (%p30500_p12), 114, %s27070_s28 }
  0xe4   : > { %v22582_v29 = vpack.c.bf16 %v437_v25, %v434_v24  ;;  %v440_v30 = vld [vmem:[%s30465_s1 + $0xf8] sm:$0xff]  ;;  %v443_v31 = vld [vmem:[%s30465_s1 + $0x110] sm:$0xff]  ;;  %v442_v33 = vld [vmem:[%s30465_s1 + $0x108] sm:$0xff]  ;;  %v22584_v34 = vpack.c.bf16 %v436_v28, %v433_v27  ;;  %s27851_s14 = scalar_lea.vmem [#allocation12], %s22952_s19 }
  0xe5   : > { %22573 = vmatpush1.bf16.msra.mxu1 %v22572_v14  ;;  %v439_v32 = vld [vmem:[%s30465_s1 + $0xf0] sm:$0xff]  ;;  %v22586_v35 = vpack.c.bf16 %v443_v31, %v440_v30  ;;  %v446_v37 = vld [vmem:[%s30465_s1 + $0x128] sm:$0xf]  ;;  %v445_v40 = vld [vmem:[%s30465_s1 + $0x120] sm:$0xf]  ;;  %s20068_s2 = ssub.s32 (%p30500_p12), 910, %s20067_s18 }
  0xe6   : > { %22575 = vmatprep.subr.bf16.mxu1 %v22574_v15  ;;  %v22588_v36 = vpack.c.bf16 %v442_v33, %v439_v32  ;;  %v411_v38 = vld [vmem:[%s30465_s1 + $0x10] sm:$0xff]  ;;  %v414_v39 = vld [vmem:[%s30465_s1 + $0x28] sm:$0xff]  ;;  %v408_v41 = vld [vmem:[#allocation2] sm:$0xf]  ;;  %p20069_p11 = scmp.lt.s32.totalorder (%p30500_p12), %s20068_s2, 114 }
  0xe7   : > { %v417_v42 = vld [vmem:[%s30465_s1 + $0x40] sm:$0xff]  ;;  %v420_v43 = vld [vmem:[%s30465_s1 + $0x58] sm:$0xff]  ;;  %v22591_v44 = vpack.c.bf16 %v414_v39, %v411_v38  ;;  %v423_v46 = vld [vmem:[%s30465_s1 + $0x70] sm:$0xff] }
  0xe8   : > { %v426_v47 = vld [vmem:[%s30465_s1 + $0x88] sm:$0xff]  ;;  %v22594_v48 = vpack.c.bf16 %v420_v43, %v417_v42  ;;  %v429_v49 = vld [vmem:[%s30465_s1 + $0xa0] sm:$0xff]  ;;  %v432_v50 = vld [vmem:[%s30465_s1 + $0xb8] sm:$0xff] }
  0xe9   : > { %22577 = vmatpush1.bf16.msra.mxu1 %v22576_v20  ;;  %v22597_v51 = vpack.c.bf16 %v426_v47, %v423_v46  ;;  %v435_v52 = vld [vmem:[%s30465_s1 + $0xd0] sm:$0xff]  ;;  %v438_v53 = vld [vmem:[%s30465_s1 + $0xe8] sm:$0xff]  ;;  %v22600_v54 = vpack.c.bf16 %v432_v50, %v429_v49  ;;  %v441_v55 = vld [vmem:[%s30465_s1 + $0x100] sm:$0xff] }
  0xea   : > { %22579 = vmatprep.subr.bf16.mxu1 %v22578_v21  ;;  %v444_v56 = vld [vmem:[%s30465_s1 + $0x118] sm:$0xff]  ;;  %v22603_v57 = vpack.c.bf16 %v438_v53, %v435_v52  ;;  %v447_v59 = vld [vmem:[%s30465_s1 + $0x130] sm:$0xf]  ;;  %v448_v1 = vld [vmem:[#allocation5] sm:$0x7] }
  0xeb   : > { %v22606_v58 = vpack.c.bf16 %v444_v56, %v441_v55  ;;  %v453_v4 = vrot.slane %v448_v1, %v27453_v2  ;;  %v461_v10 = vrot.slane %v448_v1, %v27461_v7  ;;  %v23040_v23 = vld [vmem:[%s27319_s17 + $0x4] ss:$456 sps:$4 sm:$0xff]   ;;  %v23042_v24 = vld [vmem:[%s27319_s17] ss:$456 sps:$4 sm:$0xff]   ;;  %v23043_v25 = vld [vmem:[%s27319_s17 + $0x394] ss:$456 sps:$4 sm:$0xff]  }
  0xec   : > { %14530 = vmatprep.subr.bf16.mxu0 %v23040_v23  ;;  %v23046_v27 = vld [vmem:[%s27319_s17 + $0x724] ss:$456 sps:$4 sm:$0xff]   ;;  %v23048_v28 = vld [vmem:[%s27319_s17 + $0x720] ss:$456 sps:$4 sm:$0xff]   ;;  %v23051_v30 = vld [vmem:[%s27319_s17 + $0xab0] ss:$456 sps:$4 sm:$0xff]  }
  0xed   : > { %22581 = vmatpush1.bf16.msra.mxu1 %v22580_v26  ;;  %14531 = vmatpush1.bf16.msra.mxu0 %v23042_v24  ;;  %v23045_v26 = vld [vmem:[%s27319_s17 + $0x390] ss:$456 sps:$4 sm:$0xff]   ;;  %v23052_v31 = vld [vmem:[%s27319_s17 + $0xe44] ss:$456 sps:$4 sm:$0xff]   ;;  %v23054_v32 = vld [vmem:[%s27319_s17 + $0xe40] ss:$456 sps:$4 sm:$0xff]  }
  0xee   : > { %22583 = vmatprep.subr.bf16.mxu1 %v22582_v29  ;;  %14532 = vmatprep.subr.bf16.mxu0 %v23043_v25  ;;  %v23049_v29 = vld [vmem:[%s27319_s17 + $0xab4] ss:$456 sps:$4 sm:$0xff]   ;;  %v23063_v38 = vld [vmem:[%s27319_s17 + $0x18f0] ss:$456 sps:$4 sm:$0xff]   ;;  %v23064_v39 = vld [vmem:[%s27319_s17 + $0x1c84] ss:$456 sps:$4 sm:$0xff]  }
  0xef   : > { %v23055_v33 = vld [vmem:[%s27319_s17 + $0x11d4] ss:$456 sps:$4 sm:$0xff]   ;;  %v23069_v42 = vld [vmem:[%s27319_s17 + $0x2010] ss:$456 sps:$4 sm:$0xff]   ;;  %v23070_v43 = vld [vmem:[%s27319_s17 + $0x23a4] ss:$456 sps:$4 sm:$0xff]  }
  0xf0   : > { %v23076_v60 = vld [vmem:[%s27319_s17 + $0x2ac4] ss:$456 sps:$4 sm:$0xff]  }
  0xf1   : > { %22585 = vmatpush1.bf16.msra.mxu1 %v22584_v34  ;;  %14533 = vmatpush1.bf16.msra.mxu0 %v23045_v26  ;;  %v23057_v34 = vld [vmem:[%s27319_s17 + $0x11d0] ss:$456 sps:$4 sm:$0xff]  }
  0xf2   : > { %22587 = vmatprep.subr.bf16.mxu1 %v22586_v35  ;;  %14534 = vmatprep.subr.bf16.mxu0 %v23046_v27  ;;  %v23058_v35 = vld [vmem:[%s27319_s17 + $0x1564] ss:$456 sps:$4 sm:$0xff]  }
  0xf5   : > { %22589 = vmatpush1.bf16.msra.mxu1 %v22588_v36  ;;  %14535 = vmatpush1.bf16.msra.mxu0 %v23048_v28  ;;  %v23060_v36 = vld [vmem:[%s27319_s17 + $0x1560] ss:$456 sps:$4 sm:$0xff]  }
  0xf6   : > { %20228 = vmatprep.subr.msk.mxu1 %vm469_vm0, %v446_v37  ;;  %14536 = vmatprep.subr.bf16.mxu0 %v23049_v29  ;;  %v23061_v37 = vld [vmem:[%s27319_s17 + $0x18f4] ss:$456 sps:$4 sm:$0xff]  }
  0xf9   : > { %20229 = vmatpush1.msk.msra.mxu1 %vm469_vm0, %v445_v40  ;;  %14537 = vmatpush1.bf16.msra.mxu0 %v23051_v30  ;;  %v23066_v40 = vld [vmem:[%s27319_s17 + $0x1c80] ss:$456 sps:$4 sm:$0xff]  }
  0xfa   : > { %20230 = vmatmul.mubr.msk.f32.vlgmr.msra.gmra.mrb[0].mxu1 %vm465_vm1, %v408_v41  ;;  %22590 = vmatprep.subr.bf16.mxu1 %v27005_v45 }
  0xfb   : > { %22592 = vmatpush3.bf16.msra.mxu1 %v22591_v44  ;;  %22563 = vmatprep.mubr.msk.f32.mxu1 %vm27006_vm2, %v27004_v0 }
  0xfc   : > { %22593 = vmatprep.subr.bf16.mxu1 %v27005_v45  ;;  %14538 = vmatprep.subr.bf16.mxu0 %v23052_v31 }
  0xfd   : > { %14539 = vmatpush1.bf16.msra.mxu0 %v23054_v32 }
  0xfe   : > { %14540 = vmatprep.subr.bf16.mxu0 %v23055_v33 }
  0xff   : > { %22595 = vmatpush3.bf16.msra.mxu1 %v22594_v48 }
 0x100   : > { %22596 = vmatprep.subr.bf16.mxu1 %v27005_v45 }
 0x101   : > { %14541 = vmatpush1.bf16.msra.mxu0 %v23057_v34 }
 0x102   : > { %14542 = vmatprep.subr.bf16.mxu0 %v23058_v35 }
 0x103   : > { %22598 = vmatpush3.bf16.msra.mxu1 %v22597_v51 }
 0x104   : > { %22599 = vmatprep.subr.bf16.mxu1 %v27005_v45 }
 0x105   : > { %14543 = vmatpush1.bf16.msra.mxu0 %v23060_v36 }
 0x106   : > { %14544 = vmatprep.subr.bf16.mxu0 %v23061_v37 }
 0x107   : > { %22601 = vmatpush3.bf16.msra.mxu1 %v22600_v54 }
 0x108   : > { %22602 = vmatprep.subr.bf16.mxu1 %v27005_v45 }
 0x109   : > { %14545 = vmatpush1.bf16.msra.mxu0 %v23063_v38 }
 0x10a   : > { %14546 = vmatprep.subr.bf16.mxu0 %v23064_v39  ;;  %v23097_v39 = vld [vmem:[%s27319_s17 + $0x8] ss:$456 sps:$4 sm:$0xff]  }
 0x10b   : > { %22604 = vmatpush3.bf16.msra.mxu1 %v22603_v57  ;;  %v23072_v57 = vld [vmem:[%s27319_s17 + $0x23a0] ss:$456 sps:$4 sm:$0xff]  }
 0x10c   : > { %22605 = vmatprep.subr.bf16.mxu1 %v27005_v45 }
 0x10d   : > { %14547 = vmatpush1.bf16.msra.mxu0 %v23066_v40 }
 0x10f   : > { %22607 = vmatpush3.bf16.msra.mxu1 %v22606_v58  ;;  %v23073_v58 = vld [vmem:[%s27319_s17 + $0x2734] ss:$456 sps:$4 sm:$0xff]  }
 0x110   : > { %22561 = vmatprep.subr.mxu1 %v27004_v0  ;;  %v457_v0 = vrot.slane %v448_v1, %v27456_v3  ;;  %v23079_v1 = vld [vmem:[%s27319_s17 + $0x3900] ss:$456 sps:$4 sm:$0xff]  }
 0x113   : > { %22562 = vmatpush3.msk.msra.mxu1 %vm469_vm0, %v447_v59  ;;  %v23075_v59 = vld [vmem:[%s27319_s17 + $0x2730] ss:$456 sps:$4 sm:$0xff]  }
 0x114   : > { %22564 = vmatmul.mubr.msk.f32.vlgmr.msra.gmra.mrb[2].mxu1 %vm465_vm1, %v408_v41  ;;  %v23067_v41 = vld [vmem:[%s27319_s17 + $0x2014] ss:$456 sps:$4 sm:$0xff]  }
 0x115   : > { %14548 = vmatprep.subr.bf16.mxu0 %v23067_v41 }
 0x116   : > { %14549 = vmatpush1.bf16.msra.mxu0 %v23069_v42 }
 0x117   : > { %14550 = vmatprep.subr.bf16.mxu0 %v23070_v43  ;;  %v23100_v43 = vld [vmem:[%s27319_s17 + $0x10] ss:$456 sps:$4 sm:$0xff]  }
 0x11a   : > { %14551 = vmatpush1.bf16.msra.mxu0 %v23072_v57  ;;  %v23126_v57 = vld [vmem:[%s27319_s17 + $0xe54] ss:$456 sps:$4 sm:$0xff]  }
 0x11b   : > { %14552 = vmatprep.subr.bf16.mxu0 %v23073_v58  ;;  %v23121_v58 = vld [vmem:[%s27319_s17 + $0xe48] ss:$456 sps:$4 sm:$0xff]  }
 0x11e   : > { %14553 = vmatpush1.bf16.msra.mxu0 %v23075_v59  ;;  %v23124_v59 = vld [vmem:[%s27319_s17 + $0xe50] ss:$456 sps:$4 sm:$0xff]  }
 0x11f   : > { %14554 = vmatprep.subr.bf16.mxu0 %v23076_v60  ;;  %v23129_v60 = vld [vmem:[%s27319_s17 + $0x11dc] ss:$456 sps:$4 sm:$0xff]  }
 0x1cd   : > { %v545_v61 = vpop.f32.mrb[0].mxu1 }
 0x1ce   : > { %v547_v62 = vpop.f32.mrb[1].mxu1  ;;  %v546_v5 = vadd.f32 %v545_v61, %v453_v4  ;;  %v23078_v61 = vld [vmem:[%s27319_s17 + $0x2ac0] ss:$456 sps:$4 sm:$0xff]   ;;  %v23082_v4 = vld [vmem:[%s27319_s17 + $0x2e54] ss:$456 sps:$4 sm:$0xff]  }
 0x1cf   : > { %v548_v6 = vadd.f32 %v547_v62, %v457_v0  ;;  %14555 = vmatpush1.bf16.msra.mxu0 %v23078_v61  ;;  %v23081_v62 = vld [vmem:[%s27319_s17 + $0x3904] ss:$456 sps:$4 sm:$0xff]   ;;  %v23084_v0 = vld [vmem:[%s27319_s17 + $0x2e50] ss:$456 sps:$4 sm:$0xff]  }
 0x1d0   : > { %v623_v8 = vmul.f32 0.2, %v546_v5  ;;  %vm620_vm3 = vcmp.ge.f32.partialorder %v546_v5, 0.0  ;;  %14571 = vmatprep.subr.bf16.mxu1 %v23081_v62  ;;  %14556 = vmatprep.subr.bf16.mxu0 %v23082_v4  ;;  %v23132_v61 = vld [vmem:[%s27319_s17 + $0x11e4] ss:$456 sps:$4 sm:$0xff]  }
 0x1d1   : > { %v624_v9 = vmul.f32 0.2, %v548_v6  ;;  %vm621_vm4 = vcmp.ge.f32.partialorder %v548_v6, 0.0  ;;  %14572 = vmatpush1.bf16.msra.mxu1 %v23079_v1  ;;  %v23127_v62 = vld [vmem:[%s27319_s17 + $0x11d8] ss:$456 sps:$4 sm:$0xff]  }
 0x1d2   : > { %v626_v11 = vsel %vm620_vm3, %v546_v5, %v623_v8  ;;  %v23087_v5 = vld [vmem:[%s27319_s17 + $0x3c94] ss:$456 sps:$4 sm:$0xff]   ;;  %v23088_v8 = vld [vmem:[%s27319_s17 + $0x31e4] ss:$456 sps:$4 sm:$0xff]   ;;  %v23130_v1 = vld [vmem:[%s27319_s17 + $0x11e0] ss:$456 sps:$4 sm:$0xff]  }
 0x1d3   : > { %v627_v12 = vsel %vm621_vm4, %v548_v6, %v624_v9  ;;  %v629_v16 = vsel %vm469_vm0, %v626_v11, 0.0  ;;  %14557 = vmatpush1.bf16.msra.mxu0 %v23084_v0  ;;  %v23085_v6 = vld [vmem:[%s27319_s17 + $0x3c90] ss:$456 sps:$4 sm:$0xff]   ;;  %14573 = vmatprep.subr.bf16.mxu1 %v23087_v5  ;;  %v23090_v9 = vld [vmem:[%s27319_s17 + $0x31e0] ss:$456 sps:$4 sm:$0xff]  }
 0x1d4   : > { %v630_v17 = vsel %vm469_vm0, %v627_v12, 0.0  ;;  %14558 = vmatprep.subr.bf16.mxu0 %v23088_v8  ;;  %v23135_v4 = vld [vmem:[%s27319_s17 + $0x156c] ss:$456 sps:$4 sm:$0xff]   ;;  %v23133_v5 = vld [vmem:[%s27319_s17 + $0x1568] ss:$456 sps:$4 sm:$0xff]  }
 0x1d5   : > { %v631_v20 = vadd.f32 %v630_v17, %v629_v16  ;;  %14574 = vmatpush1.bf16.msra.mxu1 %v23085_v6  ;;  %v27007_v16 = vmov 0   ;;  %v23102_v17 = vld [vmem:[%s27319_s17 + $0x14] ss:$456 sps:$4 sm:$0xff]   ;;  %v23136_v6 = vld [vmem:[%s27319_s17 + $0x1570] ss:$456 sps:$4 sm:$0xff]  }
 0x1d6   : > { %14603 = vmatprep.mubr.bf16.mxu1 %v27007_v16  ;;  %v23138_v0 = vld [vmem:[%s27319_s17 + $0x1574] ss:$456 sps:$4 sm:$0xff]  }
 0x1d7   : > { %14559 = vmatpush1.bf16.msra.mxu0 %v23090_v9  ;;  %v23141_v8 = vld [vmem:[%s27319_s17 + $0x18fc] ss:$456 sps:$4 sm:$0xff]  }
 0x1d8   : > { %v23144_v9 = vld [vmem:[%s27319_s17 + $0x1904] ss:$456 sps:$4 sm:$0xff]  }
 0x1e7   : > { %v616_v13 = vpop.f32.mrb[2].mxu1 }
 0x1e8   : > { %v617_v14 = vadd.f32 %v616_v13, %v461_v10  ;;  %v22565_v15 = vpop.f32.mrb[3].mxu1  ;;  %v23091_v10 = vld [vmem:[%s27319_s17 + $0x4024] ss:$456 sps:$4 sm:$0x3f]  }
 0x1e9   : > { %22399 = vmatprep.subr.msk.bf16.mxu1 %vm14187_vm7, %v23091_v10  ;;  %v23099_v15 = vld [vmem:[%s27319_s17 + $0xc] ss:$456 sps:$4 sm:$0xff]   ;;  %v23139_v10 = vld [vmem:[%s27319_s17 + $0x18f8] ss:$456 sps:$4 sm:$0xff]  }
 0x1ea   : > { %v625_v18 = vmul.f32 0.2, %v617_v14  ;;  %vm622_vm6 = vcmp.ge.f32.partialorder %v617_v14, 0.0 }
 0x1ec   : > { %v628_v19 = vsel %vm622_vm6, %v617_v14, %v625_v18  ;;  %v23096_v14 = vld [vmem:[%s27319_s17 + $0x3570] ss:$456 sps:$4 sm:$0xff]  }
 0x1ed   : > { %v633_v21 = vsel %vm632_vm5, %v628_v19, 0.0 }
 0x1ee   : > { %v634_v22 = vadd.f32 %v633_v21, %v631_v20  ;;  %v658_v21 = vld [vmem:[#allocation7] sm:$0x7] }
 0x1ef   : > { %v663_v23 = vrot.slane %v658_v21, %v27453_v2  ;;  %v667_v24 = vrot.slane %v658_v21, %v27456_v3  ;;  %v671_v25 = vrot.slane %v658_v21, %v27461_v7  ;;  %v23159_v21 = vld [vmem:[%s27319_s17 + $0x23ac] ss:$456 sps:$4 sm:$0xff]  }
 0x1f0   : > { %635 = vadd.xlane.f32.xlu0 %v634_v22  ;;  %v678_v22 = vld [vmem:[#allocation8] sm:$0x7] }
 0x1f1   : > { %v683_v27 = vrot.slane %v678_v22, %v27453_v2  ;;  %v687_v28 = vrot.slane %v678_v22, %v27456_v3  ;;  %v691_v29 = vrot.slane %v678_v22, %v27461_v7  ;;  %v23162_v22 = vld [vmem:[%s27319_s17 + $0x23b4] ss:$456 sps:$4 sm:$0xff]  }
 0x27d   : > { %v636_v44 = vpop.xlane.xlu0 %635 }
 0x27e   : > { %v638_v45 = vmul.f32 0.0033333334, %v636_v44  ;;  %v23105_v44 = vld [vmem:[%s27319_s17 + $0x39c] ss:$456 sps:$4 sm:$0xff]  }
 0x280   : > { %v27488_v46 = vsub.f32 %v626_v11, %v638_v45  ;;  %v27490_v47 = vsub.f32 %v627_v12, %v638_v45  ;;  %v27492_v48 = vsub.f32 %v628_v19, %v638_v45  ;;  %v23095_v11 = vld [vmem:[%s27319_s17 + $0x4020] ss:$456 sps:$4 sm:$0x3f]   ;;  %v23093_v12 = vld [vmem:[%s27319_s17 + $0x3574] ss:$456 sps:$4 sm:$0xff]  }
 0x281   : > { %v14189_v13 = vsel %vm14187_vm7, %v23095_v11, 0  ;;  %14560 = vmatprep.subr.bf16.mxu0 %v23093_v12  ;;  %v23103_v45 = vld [vmem:[%s27319_s17 + $0x398] ss:$456 sps:$4 sm:$0xff]   ;;  %v23147_v12 = vld [vmem:[%s27319_s17 + $0x1c8c] ss:$456 sps:$4 sm:$0xff]  }
 0x282   : > { %v642_v49 = vmul.f32 %v27488_v46, %v27488_v46  ;;  %v643_v50 = vmul.f32 %v27490_v47, %v27490_v47  ;;  %v644_v51 = vmul.f32 %v27492_v48, %v27492_v48  ;;  %14576 = vmatpush1.bf16.msra.mxu1 %v14189_v13  ;;  %14561 = vmatpush1.bf16.msra.mxu0 %v23096_v14  ;;  %v23142_v11 = vld [vmem:[%s27319_s17 + $0x1900] ss:$456 sps:$4 sm:$0xff]   ;;  %v23150_v13 = vld [vmem:[%s27319_s17 + $0x1c94] ss:$456 sps:$4 sm:$0xff]  }
 0x283   : > { %14612 = vmatprep.subr.bf16.mxu1 %v23099_v15  ;;  %14694 = vmatprep.subr.bf16.mxu0 %v23102_v17  ;;  %v23145_v14 = vld [vmem:[%s27319_s17 + $0x1c88] ss:$456 sps:$4 sm:$0xff]   ;;  %v23153_v17 = vld [vmem:[%s27319_s17 + $0x201c] ss:$456 sps:$4 sm:$0xff]  }
 0x284   : > { %v645_v52 = vsel %vm469_vm0, %v642_v49, 0.0  ;;  %v646_v53 = vsel %vm469_vm0, %v643_v50, 0.0  ;;  %v648_v55 = vsel %vm632_vm5, %v644_v51, 0.0  ;;  %v23114_v49 = vld [vmem:[%s27319_s17 + $0x734] ss:$456 sps:$4 sm:$0xff]  }
 0x285   : > { %v647_v54 = vadd.f32 %v646_v53, %v645_v52  ;;  %v23109_v50 = vld [vmem:[%s27319_s17 + $0x728] ss:$456 sps:$4 sm:$0xff]   ;;  %v23117_v52 = vld [vmem:[%s27319_s17 + $0xabc] ss:$456 sps:$4 sm:$0xff]  }
 0x286   : > { %v23112_v51 = vld [vmem:[%s27319_s17 + $0x730] ss:$456 sps:$4 sm:$0xff]   ;;  %v23120_v53 = vld [vmem:[%s27319_s17 + $0xac4] ss:$456 sps:$4 sm:$0xff]  }
 0x287   : > { %v649_v56 = vadd.f32 %v648_v55, %v647_v54  ;;  %v23115_v54 = vld [vmem:[%s27319_s17 + $0xab8] ss:$456 sps:$4 sm:$0xff]  }
 0x288   : > { %v23118_v55 = vld [vmem:[%s27319_s17 + $0xac0] ss:$456 sps:$4 sm:$0xff]   ;;  %v23148_v15 = vld [vmem:[%s27319_s17 + $0x1c90] ss:$456 sps:$4 sm:$0xff]  }
 0x289   : > { %650 = vadd.xlane.f32.xlu0 %v649_v56  ;;  %v23123_v56 = vld [vmem:[%s27319_s17 + $0xe4c] ss:$456 sps:$4 sm:$0xff]  }
 0x316   : > { %v651_v18 = vpop.xlane.xlu0 %650 }
 0x317   : > { %v652_v19 = vmul.f32 0.0033333334, %v651_v18  ;;  %v23156_v18 = vld [vmem:[%s27319_s17 + $0x2024] ss:$456 sps:$4 sm:$0xff]  }
 0x319   : > { %v653_v20 = vadd.f32 1e-05, %v652_v19  ;;  %v23151_v19 = vld [vmem:[%s27319_s17 + $0x2018] ss:$456 sps:$4 sm:$0xff]  }
 0x31b   : > { %26289 = vrsqrt.f32 %v653_v20  ;;  %v23154_v20 = vld [vmem:[%s27319_s17 + $0x2020] ss:$456 sps:$4 sm:$0xff]  }
 0x325   : > { %v26290_v26 = vpop.eup %26289 }
 0x326   : > { %v655_v30 = vmul.f32 %v26290_v26, %v27488_v46  ;;  %v656_v31 = vmul.f32 %v26290_v26, %v27490_v47  ;;  %v657_v32 = vmul.f32 %v26290_v26, %v27492_v48  ;;  %v23108_v46 = vld [vmem:[%s27319_s17 + $0x3a4] ss:$456 sps:$4 sm:$0xff]   ;;  %v23106_v47 = vld [vmem:[%s27319_s17 + $0x3a0] ss:$456 sps:$4 sm:$0xff]  }
 0x327   : > { %v23111_v48 = vld [vmem:[%s27319_s17 + $0x72c] ss:$456 sps:$4 sm:$0xff]  }
 0x328   : > { %v675_v33 = vmul.f32 %v663_v23, %v655_v30  ;;  %v676_v34 = vmul.f32 %v667_v24, %v656_v31  ;;  %v677_v35 = vmul.f32 %v671_v25, %v657_v32  ;;  %v23157_v23 = vld [vmem:[%s27319_s17 + $0x23a8] ss:$456 sps:$4 sm:$0xff]   ;;  %v23165_v25 = vld [vmem:[%s27319_s17 + $0x273c] ss:$456 sps:$4 sm:$0xff]  }
 0x329   : > { %v23160_v24 = vld [vmem:[%s27319_s17 + $0x23b0] ss:$456 sps:$4 sm:$0xff]   ;;  %v23168_v26 = vld [vmem:[%s27319_s17 + $0x2744] ss:$456 sps:$4 sm:$0xff]   ;;  %v23174_v30 = vld [vmem:[%s27319_s17 + $0x2ad4] ss:$456 sps:$4 sm:$0xff]  }
 0x32a   : > { %v695_v36 = vadd.f32 %v683_v27, %v675_v33  ;;  %v696_v37 = vadd.f32 %v687_v28, %v676_v34  ;;  %v697_v38 = vadd.f32 %v691_v29, %v677_v35  ;;  %v23163_v27 = vld [vmem:[%s27319_s17 + $0x2738] ss:$456 sps:$4 sm:$0xff]   ;;  %v23171_v29 = vld [vmem:[%s27319_s17 + $0x2acc] ss:$456 sps:$4 sm:$0xff]   ;;  %v23169_v31 = vld [vmem:[%s27319_s17 + $0x2ac8] ss:$456 sps:$4 sm:$0xff]  }
 0x32b   : > { %v23166_v28 = vld [vmem:[%s27319_s17 + $0x2740] ss:$456 sps:$4 sm:$0xff]   ;;  %v23172_v32 = vld [vmem:[%s27319_s17 + $0x2ad0] ss:$456 sps:$4 sm:$0xff]   ;;  %v23177_v33 = vld [vmem:[%s27319_s17 + $0x2e5c] ss:$456 sps:$4 sm:$0xff]  }
 0x32c   : > { %v27535_v40 = vpack.c.bf16 %v695_v36, %v695_v36  ;;  %v27537_v41 = vpack.c.bf16 %v696_v37, %v696_v37  ;;  %v27539_v42 = vpack.c.bf16 %v697_v38, %v697_v38  ;;  %v23180_v34 = vld [vmem:[%s27319_s17 + $0x2e64] ss:$456 sps:$4 sm:$0xff]   ;;  %v23175_v35 = vld [vmem:[%s27319_s17 + $0x2e58] ss:$456 sps:$4 sm:$0xff]   ;;  %v23186_v38 = vld [vmem:[%s27319_s17 + $0x31f4] ss:$456 sps:$4 sm:$0xff]  }
 0x32d   : > { %v23178_v36 = vld [vmem:[%s27319_s17 + $0x2e60] ss:$456 sps:$4 sm:$0xff]   ;;  %v23183_v37 = vld [vmem:[%s27319_s17 + $0x31ec] ss:$456 sps:$4 sm:$0xff]  }
 0x32e   : > { %14562 = vmatprep.mubr.bf16.mxu0 %v27537_v41  ;;  %22400 = vmatmul.mubr.msk.bf16.vlgmr.msra.gmra.mrb[4].mxu1 %vm14183_vm8, %v27539_v42 }
 0x32f   : > { %14613 = vmatpush1.bf16.msra.mxu1 %v23097_v39  ;;  %14563 = vmatmul.mubr.bf16.vlgmr.msra.gmra.mrb[0].mxu0 %v27535_v40  ;;  %v23181_v39 = vld [vmem:[%s27319_s17 + $0x31e8] ss:$456 sps:$4 sm:$0xff]  }
 0x330   : > { %14644 = vmatprep.mubr.bf16.mxu1 %v27537_v41  ;;  %14695 = vmatpush1.bf16.msra.mxu0 %v23100_v43  ;;  %v23184_v43 = vld [vmem:[%s27319_s17 + $0x31f0] ss:$456 sps:$4 sm:$0xff]  }
 0x331   : > { %14726 = vmatprep.mubr.bf16.mxu0 %v27537_v41  ;;  %14614 = vmatprep.subr.bf16.mxu1 %v23105_v44  ;;  %v23189_v44 = vld [vmem:[%s27319_s17 + $0x357c] ss:$456 sps:$4 sm:$0xff]  }
 0x332   : > { %14696 = vmatprep.subr.bf16.mxu0 %v23108_v46  ;;  %v23187_v46 = vld [vmem:[%s27319_s17 + $0x3578] ss:$456 sps:$4 sm:$0xff]  }
 0x333   : > { %14615 = vmatpush1.bf16.msra.mxu1 %v23103_v45  ;;  %v23192_v45 = vld [vmem:[%s27319_s17 + $0x3584] ss:$456 sps:$4 sm:$0xff]  }
 0x334   : > { %14697 = vmatpush1.bf16.msra.mxu0 %v23106_v47  ;;  %14616 = vmatprep.subr.bf16.mxu1 %v23111_v48  ;;  %v23190_v47 = vld [vmem:[%s27319_s17 + $0x3580] ss:$456 sps:$4 sm:$0xff]   ;;  %v23195_v48 = vld [vmem:[%s27319_s17 + $0x390c] ss:$456 sps:$4 sm:$0xff]  }
 0x335   : > { %14698 = vmatprep.subr.bf16.mxu0 %v23114_v49  ;;  %v23198_v49 = vld [vmem:[%s27319_s17 + $0x3914] ss:$456 sps:$4 sm:$0xff]  }
 0x337   : > { %14617 = vmatpush1.bf16.msra.mxu1 %v23109_v50  ;;  %v23193_v50 = vld [vmem:[%s27319_s17 + $0x3908] ss:$456 sps:$4 sm:$0xff]  }
 0x338   : > { %14699 = vmatpush1.bf16.msra.mxu0 %v23112_v51  ;;  %14618 = vmatprep.subr.bf16.mxu1 %v23117_v52  ;;  %v23196_v51 = vld [vmem:[%s27319_s17 + $0x3910] ss:$456 sps:$4 sm:$0xff]   ;;  %v23201_v52 = vld [vmem:[%s27319_s17 + $0x3c9c] ss:$456 sps:$4 sm:$0xff]  }
 0x339   : > { %14700 = vmatprep.subr.bf16.mxu0 %v23120_v53  ;;  %v23204_v53 = vld [vmem:[%s27319_s17 + $0x3ca4] ss:$456 sps:$4 sm:$0xff]  }
 0x33b   : > { %14619 = vmatpush1.bf16.msra.mxu1 %v23115_v54  ;;  %v23199_v54 = vld [vmem:[%s27319_s17 + $0x3c98] ss:$456 sps:$4 sm:$0xff]  }
 0x33c   : > { %14701 = vmatpush1.bf16.msra.mxu0 %v23118_v55  ;;  %14620 = vmatprep.subr.bf16.mxu1 %v23123_v56  ;;  %v23205_v55 = vld [vmem:[%s27319_s17 + $0x402c] ss:$456 sps:$4 sm:$0x3f]   ;;  %v23207_v56 = vld [vmem:[%s27319_s17 + $0x4028] ss:$456 sps:$4 sm:$0x3f]  }
 0x33d   : > { %14702 = vmatprep.subr.bf16.mxu0 %v23126_v57  ;;  %v23208_v57 = vld [vmem:[%s27319_s17 + $0x4034] ss:$456 sps:$4 sm:$0x3f]  }
 0x33f   : > { %14621 = vmatpush1.bf16.msra.mxu1 %v23121_v58  ;;  %v23202_v58 = vld [vmem:[%s27319_s17 + $0x3ca0] ss:$456 sps:$4 sm:$0xff]  }
 0x340   : > { %14703 = vmatpush1.bf16.msra.mxu0 %v23124_v59  ;;  %14622 = vmatprep.subr.bf16.mxu1 %v23129_v60  ;;  %v23210_v59 = vld [vmem:[%s27319_s17 + $0x4030] ss:$456 sps:$4 sm:$0x3f]   ;;  %v14195_v60 = vsel %vm14187_vm7, %v23207_v56, 0 }
 0x341   : > { %14704 = vmatprep.subr.bf16.mxu0 %v23132_v61  ;;  %v23213_v61 = vld [vmem:[%s27319_s17 + $0x1c] ss:$456 sps:$4 sm:$0xff]   ;;  %v23283_v56 = vld [vmem:[%s27319_s17 + $0x2ad8] ss:$456 sps:$4 sm:$0xff]  }
 0x343   : > { %14623 = vmatpush1.bf16.msra.mxu1 %v23127_v62  ;;  %v23216_v62 = vld [vmem:[%s27319_s17 + $0x24] ss:$456 sps:$4 sm:$0xff]  }
 0x344   : > { %14705 = vmatpush1.bf16.msra.mxu0 %v23130_v1  ;;  %14624 = vmatprep.subr.bf16.mxu1 %v23135_v4  ;;  %v14201_v1 = vsel %vm14187_vm7, %v23210_v59, 0  ;;  %v23211_v4 = vld [vmem:[%s27319_s17 + $0x18] ss:$456 sps:$4 sm:$0xff]   ;;  %v23294_v59 = vld [vmem:[%s27319_s17 + $0x2e74] ss:$456 sps:$4 sm:$0xff]  }
 0x345   : > { %14706 = vmatprep.subr.bf16.mxu0 %v23138_v0  ;;  %v23214_v0 = vld [vmem:[%s27319_s17 + $0x20] ss:$456 sps:$4 sm:$0xff]  }
 0x347   : > { %14625 = vmatpush1.bf16.msra.mxu1 %v23133_v5  ;;  %v23219_v5 = vld [vmem:[%s27319_s17 + $0x3ac] ss:$456 sps:$4 sm:$0xff]  }
 0x348   : > { %14707 = vmatpush1.bf16.msra.mxu0 %v23136_v6  ;;  %14626 = vmatprep.subr.bf16.mxu1 %v23141_v8  ;;  %v23217_v6 = vld [vmem:[%s27319_s17 + $0x3a8] ss:$456 sps:$4 sm:$0xff]   ;;  %v23222_v8 = vld [vmem:[%s27319_s17 + $0x3b4] ss:$456 sps:$4 sm:$0xff]  }
 0x349   : > { %14708 = vmatprep.subr.bf16.mxu0 %v23144_v9  ;;  %v23220_v9 = vld [vmem:[%s27319_s17 + $0x3b0] ss:$456 sps:$4 sm:$0xff]  }
 0x34b   : > { %14627 = vmatpush1.bf16.msra.mxu1 %v23139_v10  ;;  %v23225_v10 = vld [vmem:[%s27319_s17 + $0x73c] ss:$456 sps:$4 sm:$0xff]  }
 0x34c   : > { %14709 = vmatpush1.bf16.msra.mxu0 %v23142_v11  ;;  %14628 = vmatprep.subr.bf16.mxu1 %v23147_v12  ;;  %v23228_v11 = vld [vmem:[%s27319_s17 + $0x744] ss:$456 sps:$4 sm:$0xff]   ;;  %v23223_v12 = vld [vmem:[%s27319_s17 + $0x738] ss:$456 sps:$4 sm:$0xff]  }
 0x34d   : > { %14710 = vmatprep.subr.bf16.mxu0 %v23150_v13  ;;  %v23226_v13 = vld [vmem:[%s27319_s17 + $0x740] ss:$456 sps:$4 sm:$0xff]  }
 0x34f   : > { %14629 = vmatpush1.bf16.msra.mxu1 %v23145_v14  ;;  %v23231_v14 = vld [vmem:[%s27319_s17 + $0xacc] ss:$456 sps:$4 sm:$0xff]  }
 0x350   : > { %14711 = vmatpush1.bf16.msra.mxu0 %v23148_v15  ;;  %14630 = vmatprep.subr.bf16.mxu1 %v23153_v17  ;;  %v23234_v15 = vld [vmem:[%s27319_s17 + $0xad4] ss:$456 sps:$4 sm:$0xff]   ;;  %v23229_v17 = vld [vmem:[%s27319_s17 + $0xac8] ss:$456 sps:$4 sm:$0xff]  }
 0x351   : > { %14712 = vmatprep.subr.bf16.mxu0 %v23156_v18  ;;  %v23232_v18 = vld [vmem:[%s27319_s17 + $0xad0] ss:$456 sps:$4 sm:$0xff]  }
 0x353   : > { %14631 = vmatpush1.bf16.msra.mxu1 %v23151_v19  ;;  %v23237_v19 = vld [vmem:[%s27319_s17 + $0xe5c] ss:$456 sps:$4 sm:$0xff]  }
 0x354   : > { %14713 = vmatpush1.bf16.msra.mxu0 %v23154_v20  ;;  %14632 = vmatprep.subr.bf16.mxu1 %v23159_v21  ;;  %v23240_v20 = vld [vmem:[%s27319_s17 + $0xe64] ss:$456 sps:$4 sm:$0xff]   ;;  %v23235_v21 = vld [vmem:[%s27319_s17 + $0xe58] ss:$456 sps:$4 sm:$0xff]  }
 0x355   : > { %14714 = vmatprep.subr.bf16.mxu0 %v23162_v22  ;;  %v23238_v22 = vld [vmem:[%s27319_s17 + $0xe60] ss:$456 sps:$4 sm:$0xff]  }
 0x357   : > { %14633 = vmatpush1.bf16.msra.mxu1 %v23157_v23  ;;  %v23243_v23 = vld [vmem:[%s27319_s17 + $0x11ec] ss:$456 sps:$4 sm:$0xff]  }
 0x358   : > { %14715 = vmatpush1.bf16.msra.mxu0 %v23160_v24  ;;  %14634 = vmatprep.subr.bf16.mxu1 %v23165_v25  ;;  %v23246_v24 = vld [vmem:[%s27319_s17 + $0x11f4] ss:$456 sps:$4 sm:$0xff]   ;;  %v23241_v25 = vld [vmem:[%s27319_s17 + $0x11e8] ss:$456 sps:$4 sm:$0xff]  }
 0x359   : > { %14716 = vmatprep.subr.bf16.mxu0 %v23168_v26  ;;  %v23244_v26 = vld [vmem:[%s27319_s17 + $0x11f0] ss:$456 sps:$4 sm:$0xff]  }
 0x35b   : > { %14635 = vmatpush1.bf16.msra.mxu1 %v23163_v27  ;;  %v23249_v27 = vld [vmem:[%s27319_s17 + $0x157c] ss:$456 sps:$4 sm:$0xff]  }
 0x35c   : > { %14717 = vmatpush1.bf16.msra.mxu0 %v23166_v28  ;;  %14636 = vmatprep.subr.bf16.mxu1 %v23171_v29  ;;  %v23252_v28 = vld [vmem:[%s27319_s17 + $0x1584] ss:$456 sps:$4 sm:$0xff]   ;;  %v23247_v29 = vld [vmem:[%s27319_s17 + $0x1578] ss:$456 sps:$4 sm:$0xff]  }
 0x35d   : > { %14718 = vmatprep.subr.bf16.mxu0 %v23174_v30  ;;  %v23250_v30 = vld [vmem:[%s27319_s17 + $0x1580] ss:$456 sps:$4 sm:$0xff]  }
 0x35f   : > { %14637 = vmatpush1.bf16.msra.mxu1 %v23169_v31  ;;  %v23255_v31 = vld [vmem:[%s27319_s17 + $0x190c] ss:$456 sps:$4 sm:$0xff]  }
 0x360   : > { %14719 = vmatpush1.bf16.msra.mxu0 %v23172_v32  ;;  %14638 = vmatprep.subr.bf16.mxu1 %v23177_v33  ;;  %v23258_v32 = vld [vmem:[%s27319_s17 + $0x1914] ss:$456 sps:$4 sm:$0xff]   ;;  %v23253_v33 = vld [vmem:[%s27319_s17 + $0x1908] ss:$456 sps:$4 sm:$0xff]  }
 0x361   : > { %14720 = vmatprep.subr.bf16.mxu0 %v23180_v34  ;;  %v23256_v34 = vld [vmem:[%s27319_s17 + $0x1910] ss:$456 sps:$4 sm:$0xff]  }
 0x363   : > { %14639 = vmatpush1.bf16.msra.mxu1 %v23175_v35  ;;  %v23261_v35 = vld [vmem:[%s27319_s17 + $0x1c9c] ss:$456 sps:$4 sm:$0xff]  }
 0x364   : > { %14721 = vmatpush1.bf16.msra.mxu0 %v23178_v36  ;;  %14640 = vmatprep.subr.bf16.mxu1 %v23183_v37  ;;  %v23264_v36 = vld [vmem:[%s27319_s17 + $0x1ca4] ss:$456 sps:$4 sm:$0xff]   ;;  %v23259_v37 = vld [vmem:[%s27319_s17 + $0x1c98] ss:$456 sps:$4 sm:$0xff]  }
 0x365   : > { %14722 = vmatprep.subr.bf16.mxu0 %v23186_v38  ;;  %v23262_v38 = vld [vmem:[%s27319_s17 + $0x1ca0] ss:$456 sps:$4 sm:$0xff]  }
 0x367   : > { %14641 = vmatpush1.bf16.msra.mxu1 %v23181_v39  ;;  %v23267_v39 = vld [vmem:[%s27319_s17 + $0x202c] ss:$456 sps:$4 sm:$0xff]  }
 0x368   : > { %14723 = vmatpush1.bf16.msra.mxu0 %v23184_v43  ;;  %14642 = vmatprep.subr.bf16.mxu1 %v23189_v44  ;;  %v23270_v43 = vld [vmem:[%s27319_s17 + $0x2034] ss:$456 sps:$4 sm:$0xff]   ;;  %v23265_v44 = vld [vmem:[%s27319_s17 + $0x2028] ss:$456 sps:$4 sm:$0xff]  }
 0x369   : > { %14724 = vmatprep.subr.bf16.mxu0 %v23192_v45  ;;  %v23268_v45 = vld [vmem:[%s27319_s17 + $0x2030] ss:$456 sps:$4 sm:$0xff]  }
 0x36b   : > { %14643 = vmatpush1.bf16.msra.mxu1 %v23187_v46  ;;  %v23273_v46 = vld [vmem:[%s27319_s17 + $0x23bc] ss:$456 sps:$4 sm:$0xff]  }
 0x36c   : > { %14725 = vmatpush1.bf16.msra.mxu0 %v23190_v47  ;;  %14653 = vmatprep.subr.bf16.mxu1 %v23195_v48  ;;  %v23276_v47 = vld [vmem:[%s27319_s17 + $0x23c4] ss:$456 sps:$4 sm:$0xff]   ;;  %v23271_v48 = vld [vmem:[%s27319_s17 + $0x23b8] ss:$456 sps:$4 sm:$0xff]  }
 0x36d   : > { %14735 = vmatprep.subr.bf16.mxu0 %v23198_v49  ;;  %v23274_v49 = vld [vmem:[%s27319_s17 + $0x23c0] ss:$456 sps:$4 sm:$0xff]  }
 0x36e   : > { %14645 = vmatmul.mubr.bf16.vlgmr.msra.gmra.mrb[8].mxu1 %v27535_v40 }
 0x36f   : > { %14654 = vmatpush1.bf16.msra.mxu1 %v23193_v50  ;;  %14727 = vmatmul.mubr.bf16.vlgmr.msra.gmra.mrb[4].mxu0 %v27535_v40  ;;  %v23279_v50 = vld [vmem:[%s27319_s17 + $0x274c] ss:$456 sps:$4 sm:$0xff]  }
 0x370   : > { %14736 = vmatpush1.bf16.msra.mxu0 %v23196_v51  ;;  %14655 = vmatprep.subr.bf16.mxu1 %v23201_v52  ;;  %v23282_v51 = vld [vmem:[%s27319_s17 + $0x2754] ss:$456 sps:$4 sm:$0xff]   ;;  %v23277_v52 = vld [vmem:[%s27319_s17 + $0x2748] ss:$456 sps:$4 sm:$0xff]  }
 0x371   : > { %14737 = vmatprep.subr.bf16.mxu0 %v23204_v53  ;;  %14685 = vmatprep.mubr.bf16.mxu1 %v27007_v16  ;;  %v23280_v53 = vld [vmem:[%s27319_s17 + $0x2750] ss:$456 sps:$4 sm:$0xff]  }
 0x372   : > { %14767 = vmatprep.mubr.bf16.mxu0 %v27007_v16 }
 0x373   : > { %14656 = vmatpush1.bf16.msra.mxu1 %v23199_v54  ;;  %v23285_v54 = vld [vmem:[%s27319_s17 + $0x2adc] ss:$456 sps:$4 sm:$0xff]  }
 0x374   : > { %14738 = vmatpush1.bf16.msra.mxu0 %v23202_v58  ;;  %22401 = vmatprep.subr.msk.bf16.mxu1 %vm14187_vm7, %v23205_v55  ;;  %v23288_v55 = vld [vmem:[%s27319_s17 + $0x2ae4] ss:$456 sps:$4 sm:$0xff]  }
 0x375   : > { %22403 = vmatprep.subr.msk.bf16.mxu0 %vm14187_vm7, %v23208_v57  ;;  %v23286_v57 = vld [vmem:[%s27319_s17 + $0x2ae0] ss:$456 sps:$4 sm:$0xff]   ;;  %v23291_v58 = vld [vmem:[%s27319_s17 + $0x2e6c] ss:$456 sps:$4 sm:$0xff]  }
 0x377   : > { %14658 = vmatpush1.bf16.msra.mxu1 %v14195_v60  ;;  %v23289_v60 = vld [vmem:[%s27319_s17 + $0x2e68] ss:$456 sps:$4 sm:$0xff]  }
 0x378   : > { %14740 = vmatpush1.bf16.msra.mxu0 %v14201_v1  ;;  %14776 = vmatprep.subr.bf16.mxu1 %v23213_v61  ;;  %v23292_v61 = vld [vmem:[%s27319_s17 + $0x2e70] ss:$456 sps:$4 sm:$0xff]   ;;  %v23300_v1 = vld [vmem:[%s27319_s17 + $0x3204] ss:$456 sps:$4 sm:$0xff]  }
 0x379   : > { %14858 = vmatprep.subr.bf16.mxu0 %v23216_v62  ;;  %v23297_v62 = vld [vmem:[%s27319_s17 + $0x31fc] ss:$456 sps:$4 sm:$0xff]  }
 0x37a   : > { %22402 = vmatmul.mubr.msk.bf16.vlgmr.msra.gmra.mrb[8].mxu1 %vm14183_vm8, %v27539_v42 }
 0x37b   : > { %22404 = vmatmul.mubr.msk.bf16.vlgmr.msra.gmra.mrb[4].mxu0 %vm14183_vm8, %v27539_v42  ;;  %14777 = vmatpush1.bf16.msra.mxu1 %v23211_v4  ;;  %v23295_v4 = vld [vmem:[%s27319_s17 + $0x31f8] ss:$456 sps:$4 sm:$0xff]  }
 0x37c   : > { %14808 = vmatprep.mubr.bf16.mxu1 %v27537_v41  ;;  %14859 = vmatpush1.bf16.msra.mxu0 %v23214_v0  ;;  %v23298_v0 = vld [vmem:[%s27319_s17 + $0x3200] ss:$456 sps:$4 sm:$0xff]  }
 0x37d   : > { %14890 = vmatprep.mubr.bf16.mxu0 %v27537_v41  ;;  %14778 = vmatprep.subr.bf16.mxu1 %v23219_v5  ;;  %v23303_v5 = vld [vmem:[%s27319_s17 + $0x358c] ss:$456 sps:$4 sm:$0xff]  }
 0x37e   : > { %14860 = vmatprep.subr.bf16.mxu0 %v23222_v8  ;;  %v23301_v8 = vld [vmem:[%s27319_s17 + $0x3588] ss:$456 sps:$4 sm:$0xff]  }
 0x37f   : > { %14779 = vmatpush1.bf16.msra.mxu1 %v23217_v6  ;;  %v23306_v6 = vld [vmem:[%s27319_s17 + $0x3594] ss:$456 sps:$4 sm:$0xff]  }
 0x380   : > { %14861 = vmatpush1.bf16.msra.mxu0 %v23220_v9  ;;  %14780 = vmatprep.subr.bf16.mxu1 %v23225_v10  ;;  %v23304_v9 = vld [vmem:[%s27319_s17 + $0x3590] ss:$456 sps:$4 sm:$0xff]   ;;  %v23309_v10 = vld [vmem:[%s27319_s17 + $0x391c] ss:$456 sps:$4 sm:$0xff]  }
 0x381   : > { %14862 = vmatprep.subr.bf16.mxu0 %v23228_v11  ;;  %v23312_v11 = vld [vmem:[%s27319_s17 + $0x3924] ss:$456 sps:$4 sm:$0xff]  }
 0x383   : > { %14781 = vmatpush1.bf16.msra.mxu1 %v23223_v12  ;;  %v23307_v12 = vld [vmem:[%s27319_s17 + $0x3918] ss:$456 sps:$4 sm:$0xff]  }
 0x384   : > { %14863 = vmatpush1.bf16.msra.mxu0 %v23226_v13  ;;  %14782 = vmatprep.subr.bf16.mxu1 %v23231_v14  ;;  %v23310_v13 = vld [vmem:[%s27319_s17 + $0x3920] ss:$456 sps:$4 sm:$0xff]   ;;  %v23315_v14 = vld [vmem:[%s27319_s17 + $0x3cac] ss:$456 sps:$4 sm:$0xff]  }
 0x385   : > { %14864 = vmatprep.subr.bf16.mxu0 %v23234_v15  ;;  %v23318_v15 = vld [vmem:[%s27319_s17 + $0x3cb4] ss:$456 sps:$4 sm:$0xff]  }
 0x387   : > { %14783 = vmatpush1.bf16.msra.mxu1 %v23229_v17  ;;  %v23313_v17 = vld [vmem:[%s27319_s17 + $0x3ca8] ss:$456 sps:$4 sm:$0xff]  }
 0x388   : > { %14865 = vmatpush1.bf16.msra.mxu0 %v23232_v18  ;;  %14784 = vmatprep.subr.bf16.mxu1 %v23237_v19  ;;  %v23319_v18 = vld [vmem:[%s27319_s17 + $0x403c] ss:$456 sps:$4 sm:$0x3f]   ;;  %v23321_v19 = vld [vmem:[%s27319_s17 + $0x4038] ss:$456 sps:$4 sm:$0x3f]  }
 0x389   : > { %14866 = vmatprep.subr.bf16.mxu0 %v23240_v20  ;;  %v23322_v20 = vld [vmem:[%s27319_s17 + $0x4044] ss:$456 sps:$4 sm:$0x3f]  }
 0x38b   : > { %14785 = vmatpush1.bf16.msra.mxu1 %v23235_v21  ;;  %v23316_v21 = vld [vmem:[%s27319_s17 + $0x3cb0] ss:$456 sps:$4 sm:$0xff]  }
 0x38c   : > { %14867 = vmatpush1.bf16.msra.mxu0 %v23238_v22  ;;  %14786 = vmatprep.subr.bf16.mxu1 %v23243_v23  ;;  %v23324_v22 = vld [vmem:[%s27319_s17 + $0x4040] ss:$456 sps:$4 sm:$0x3f]   ;;  %v14207_v23 = vsel %vm14187_vm7, %v23321_v19, 0 }
 0x38d   : > { %14868 = vmatprep.subr.bf16.mxu0 %v23246_v24  ;;  %v23327_v24 = vld [vmem:[%s27319_s17 + $0x2c] ss:$456 sps:$4 sm:$0xff]   ;;  %v23397_v19 = vld [vmem:[%s27319_s17 + $0x2ae8] ss:$456 sps:$4 sm:$0xff]  }
 0x38f   : > { %14787 = vmatpush1.bf16.msra.mxu1 %v23241_v25  ;;  %v23330_v25 = vld [vmem:[%s27319_s17 + $0x34] ss:$456 sps:$4 sm:$0xff]  }
 0x390   : > { %14869 = vmatpush1.bf16.msra.mxu0 %v23244_v26  ;;  %14788 = vmatprep.subr.bf16.mxu1 %v23249_v27  ;;  %v14213_v26 = vsel %vm14187_vm7, %v23324_v22, 0  ;;  %v23325_v27 = vld [vmem:[%s27319_s17 + $0x28] ss:$456 sps:$4 sm:$0xff]   ;;  %v23408_v22 = vld [vmem:[%s27319_s17 + $0x2e84] ss:$456 sps:$4 sm:$0xff]  }
 0x391   : > { %14870 = vmatprep.subr.bf16.mxu0 %v23252_v28  ;;  %v23328_v28 = vld [vmem:[%s27319_s17 + $0x30] ss:$456 sps:$4 sm:$0xff]  }
 0x393   : > { %14789 = vmatpush1.bf16.msra.mxu1 %v23247_v29  ;;  %v23333_v29 = vld [vmem:[%s27319_s17 + $0x3bc] ss:$456 sps:$4 sm:$0xff]  }
 0x394   : > { %14871 = vmatpush1.bf16.msra.mxu0 %v23250_v30  ;;  %14790 = vmatprep.subr.bf16.mxu1 %v23255_v31  ;;  %v23331_v30 = vld [vmem:[%s27319_s17 + $0x3b8] ss:$456 sps:$4 sm:$0xff]   ;;  %v23336_v31 = vld [vmem:[%s27319_s17 + $0x3c4] ss:$456 sps:$4 sm:$0xff]  }
 0x395   : > { %14872 = vmatprep.subr.bf16.mxu0 %v23258_v32  ;;  %v23334_v32 = vld [vmem:[%s27319_s17 + $0x3c0] ss:$456 sps:$4 sm:$0xff]  }
 0x397   : > { %14791 = vmatpush1.bf16.msra.mxu1 %v23253_v33  ;;  %v23339_v33 = vld [vmem:[%s27319_s17 + $0x74c] ss:$456 sps:$4 sm:$0xff]  }
 0x398   : > { %14873 = vmatpush1.bf16.msra.mxu0 %v23256_v34  ;;  %14792 = vmatprep.subr.bf16.mxu1 %v23261_v35  ;;  %v23342_v34 = vld [vmem:[%s27319_s17 + $0x754] ss:$456 sps:$4 sm:$0xff]   ;;  %v23337_v35 = vld [vmem:[%s27319_s17 + $0x748] ss:$456 sps:$4 sm:$0xff]  }
 0x399   : > { %14874 = vmatprep.subr.bf16.mxu0 %v23264_v36  ;;  %v23340_v36 = vld [vmem:[%s27319_s17 + $0x750] ss:$456 sps:$4 sm:$0xff]  }
 0x39b   : > { %14793 = vmatpush1.bf16.msra.mxu1 %v23259_v37  ;;  %v23345_v37 = vld [vmem:[%s27319_s17 + $0xadc] ss:$456 sps:$4 sm:$0xff]  }
 0x39c   : > { %14875 = vmatpush1.bf16.msra.mxu0 %v23262_v38  ;;  %14794 = vmatprep.subr.bf16.mxu1 %v23267_v39  ;;  %v23348_v38 = vld [vmem:[%s27319_s17 + $0xae4] ss:$456 sps:$4 sm:$0xff]   ;;  %v23343_v39 = vld [vmem:[%s27319_s17 + $0xad8] ss:$456 sps:$4 sm:$0xff]  }
 0x39d   : > { %14876 = vmatprep.subr.bf16.mxu0 %v23270_v43  ;;  %v23346_v43 = vld [vmem:[%s27319_s17 + $0xae0] ss:$456 sps:$4 sm:$0xff]  }
 0x39f   : > { %14795 = vmatpush1.bf16.msra.mxu1 %v23265_v44  ;;  %v23351_v44 = vld [vmem:[%s27319_s17 + $0xe6c] ss:$456 sps:$4 sm:$0xff]  }
 0x3a0   : > { %14877 = vmatpush1.bf16.msra.mxu0 %v23268_v45  ;;  %14796 = vmatprep.subr.bf16.mxu1 %v23273_v46  ;;  %v23354_v45 = vld [vmem:[%s27319_s17 + $0xe74] ss:$456 sps:$4 sm:$0xff]   ;;  %v23349_v46 = vld [vmem:[%s27319_s17 + $0xe68] ss:$456 sps:$4 sm:$0xff]  }
 0x3a1   : > { %14878 = vmatprep.subr.bf16.mxu0 %v23276_v47  ;;  %v23352_v47 = vld [vmem:[%s27319_s17 + $0xe70] ss:$456 sps:$4 sm:$0xff]  }
 0x3a3   : > { %14797 = vmatpush1.bf16.msra.mxu1 %v23271_v48  ;;  %v23357_v48 = vld [vmem:[%s27319_s17 + $0x11fc] ss:$456 sps:$4 sm:$0xff]  }
 0x3a4   : > { %14879 = vmatpush1.bf16.msra.mxu0 %v23274_v49  ;;  %14798 = vmatprep.subr.bf16.mxu1 %v23279_v50  ;;  %v23360_v49 = vld [vmem:[%s27319_s17 + $0x1204] ss:$456 sps:$4 sm:$0xff]   ;;  %v23355_v50 = vld [vmem:[%s27319_s17 + $0x11f8] ss:$456 sps:$4 sm:$0xff]  }
 0x3a5   : > { %14880 = vmatprep.subr.bf16.mxu0 %v23282_v51  ;;  %v23358_v51 = vld [vmem:[%s27319_s17 + $0x1200] ss:$456 sps:$4 sm:$0xff]  }
 0x3a7   : > { %14799 = vmatpush1.bf16.msra.mxu1 %v23277_v52  ;;  %v23363_v52 = vld [vmem:[%s27319_s17 + $0x158c] ss:$456 sps:$4 sm:$0xff]  }
 0x3a8   : > { %14881 = vmatpush1.bf16.msra.mxu0 %v23280_v53  ;;  %14800 = vmatprep.subr.bf16.mxu1 %v23285_v54  ;;  %v23366_v53 = vld [vmem:[%s27319_s17 + $0x1594] ss:$456 sps:$4 sm:$0xff]   ;;  %v23361_v54 = vld [vmem:[%s27319_s17 + $0x1588] ss:$456 sps:$4 sm:$0xff]  }
 0x3a9   : > { %14882 = vmatprep.subr.bf16.mxu0 %v23288_v55  ;;  %v23364_v55 = vld [vmem:[%s27319_s17 + $0x1590] ss:$456 sps:$4 sm:$0xff]  }
 0x3ab   : > { %14801 = vmatpush1.bf16.msra.mxu1 %v23283_v56  ;;  %v23369_v56 = vld [vmem:[%s27319_s17 + $0x191c] ss:$456 sps:$4 sm:$0xff]  }
 0x3ac   : > { %14883 = vmatpush1.bf16.msra.mxu0 %v23286_v57  ;;  %14802 = vmatprep.subr.bf16.mxu1 %v23291_v58  ;;  %v23372_v57 = vld [vmem:[%s27319_s17 + $0x1924] ss:$456 sps:$4 sm:$0xff]   ;;  %v23367_v58 = vld [vmem:[%s27319_s17 + $0x1918] ss:$456 sps:$4 sm:$0xff]  }
 0x3ad   : > { %14884 = vmatprep.subr.bf16.mxu0 %v23294_v59  ;;  %v23370_v59 = vld [vmem:[%s27319_s17 + $0x1920] ss:$456 sps:$4 sm:$0xff]  }
 0x3af   : > { %14803 = vmatpush1.bf16.msra.mxu1 %v23289_v60  ;;  %v23375_v60 = vld [vmem:[%s27319_s17 + $0x1cac] ss:$456 sps:$4 sm:$0xff]  }
 0x3b0   : > { %14885 = vmatpush1.bf16.msra.mxu0 %v23292_v61  ;;  %14804 = vmatprep.subr.bf16.mxu1 %v23297_v62  ;;  %v23378_v61 = vld [vmem:[%s27319_s17 + $0x1cb4] ss:$456 sps:$4 sm:$0xff]   ;;  %v23373_v62 = vld [vmem:[%s27319_s17 + $0x1ca8] ss:$456 sps:$4 sm:$0xff]  }
 0x3b1   : > { %14886 = vmatprep.subr.bf16.mxu0 %v23300_v1  ;;  %v23376_v1 = vld [vmem:[%s27319_s17 + $0x1cb0] ss:$456 sps:$4 sm:$0xff]  }
 0x3b3   : > { %14805 = vmatpush1.bf16.msra.mxu1 %v23295_v4  ;;  %v23381_v4 = vld [vmem:[%s27319_s17 + $0x203c] ss:$456 sps:$4 sm:$0xff]  }
 0x3b4   : > { %14887 = vmatpush1.bf16.msra.mxu0 %v23298_v0  ;;  %14806 = vmatprep.subr.bf16.mxu1 %v23303_v5  ;;  %v23384_v0 = vld [vmem:[%s27319_s17 + $0x2044] ss:$456 sps:$4 sm:$0xff]   ;;  %v23379_v5 = vld [vmem:[%s27319_s17 + $0x2038] ss:$456 sps:$4 sm:$0xff]  }
 0x3b5   : > { %14888 = vmatprep.subr.bf16.mxu0 %v23306_v6  ;;  %v23382_v6 = vld [vmem:[%s27319_s17 + $0x2040] ss:$456 sps:$4 sm:$0xff]  }
 0x3b7   : > { %14807 = vmatpush1.bf16.msra.mxu1 %v23301_v8  ;;  %v23387_v8 = vld [vmem:[%s27319_s17 + $0x23cc] ss:$456 sps:$4 sm:$0xff]  }
 0x3b8   : > { %14889 = vmatpush1.bf16.msra.mxu0 %v23304_v9  ;;  %14817 = vmatprep.subr.bf16.mxu1 %v23309_v10  ;;  %v23390_v9 = vld [vmem:[%s27319_s17 + $0x23d4] ss:$456 sps:$4 sm:$0xff]   ;;  %v23385_v10 = vld [vmem:[%s27319_s17 + $0x23c8] ss:$456 sps:$4 sm:$0xff]  }
 0x3b9   : > { %14899 = vmatprep.subr.bf16.mxu0 %v23312_v11  ;;  %v23388_v11 = vld [vmem:[%s27319_s17 + $0x23d0] ss:$456 sps:$4 sm:$0xff]  }
 0x3ba   : > { %14809 = vmatmul.mubr.bf16.vlgmr.msra.gmra.mrb[12].mxu1 %v27535_v40 }
 0x3bb   : > { %14818 = vmatpush1.bf16.msra.mxu1 %v23307_v12  ;;  %14891 = vmatmul.mubr.bf16.vlgmr.msra.gmra.mrb[8].mxu0 %v27535_v40  ;;  %v23393_v12 = vld [vmem:[%s27319_s17 + $0x275c] ss:$456 sps:$4 sm:$0xff]  }
 0x3bc   : > { %14900 = vmatpush1.bf16.msra.mxu0 %v23310_v13  ;;  %14819 = vmatprep.subr.bf16.mxu1 %v23315_v14  ;;  %v23396_v13 = vld [vmem:[%s27319_s17 + $0x2764] ss:$456 sps:$4 sm:$0xff]   ;;  %v23391_v14 = vld [vmem:[%s27319_s17 + $0x2758] ss:$456 sps:$4 sm:$0xff]  }
 0x3bd   : > { %14901 = vmatprep.subr.bf16.mxu0 %v23318_v15  ;;  %14849 = vmatprep.mubr.bf16.mxu1 %v27007_v16  ;;  %v23394_v15 = vld [vmem:[%s27319_s17 + $0x2760] ss:$456 sps:$4 sm:$0xff]  }
 0x3be   : > { %14931 = vmatprep.mubr.bf16.mxu0 %v27007_v16 }
 0x3bf   : > { %14820 = vmatpush1.bf16.msra.mxu1 %v23313_v17  ;;  %v23399_v17 = vld [vmem:[%s27319_s17 + $0x2aec] ss:$456 sps:$4 sm:$0xff]  }
 0x3c0   : > { %14902 = vmatpush1.bf16.msra.mxu0 %v23316_v21  ;;  %22405 = vmatprep.subr.msk.bf16.mxu1 %vm14187_vm7, %v23319_v18  ;;  %v23402_v18 = vld [vmem:[%s27319_s17 + $0x2af4] ss:$456 sps:$4 sm:$0xff]  }
 0x3c1   : > { %22407 = vmatprep.subr.msk.bf16.mxu0 %vm14187_vm7, %v23322_v20  ;;  %v23400_v20 = vld [vmem:[%s27319_s17 + $0x2af0] ss:$456 sps:$4 sm:$0xff]   ;;  %v23405_v21 = vld [vmem:[%s27319_s17 + $0x2e7c] ss:$456 sps:$4 sm:$0xff]  }
 0x3c3   : > { %14822 = vmatpush1.bf16.msra.mxu1 %v14207_v23  ;;  %v23403_v23 = vld [vmem:[%s27319_s17 + $0x2e78] ss:$456 sps:$4 sm:$0xff]  }
 0x3c4   : > { %14904 = vmatpush1.bf16.msra.mxu0 %v14213_v26  ;;  %14940 = vmatprep.subr.bf16.mxu1 %v23327_v24  ;;  %v23406_v24 = vld [vmem:[%s27319_s17 + $0x2e80] ss:$456 sps:$4 sm:$0xff]   ;;  %v23414_v26 = vld [vmem:[%s27319_s17 + $0x3214] ss:$456 sps:$4 sm:$0xff]  }
 0x3c5   : > { %15022 = vmatprep.subr.bf16.mxu0 %v23330_v25  ;;  %v23411_v25 = vld [vmem:[%s27319_s17 + $0x320c] ss:$456 sps:$4 sm:$0xff]  }
 0x3c6   : > { %22406 = vmatmul.mubr.msk.bf16.vlgmr.msra.gmra.mrb[12].mxu1 %vm14183_vm8, %v27539_v42 }
 0x3c7   : > { %22408 = vmatmul.mubr.msk.bf16.vlgmr.msra.gmra.mrb[8].mxu0 %vm14183_vm8, %v27539_v42  ;;  %14941 = vmatpush1.bf16.msra.mxu1 %v23325_v27  ;;  %v23409_v27 = vld [vmem:[%s27319_s17 + $0x3208] ss:$456 sps:$4 sm:$0xff]  }
 0x3c8   : > { %14972 = vmatprep.mubr.bf16.mxu1 %v27537_v41  ;;  %15023 = vmatpush1.bf16.msra.mxu0 %v23328_v28  ;;  %v23412_v28 = vld [vmem:[%s27319_s17 + $0x3210] ss:$456 sps:$4 sm:$0xff]  }
 0x3c9   : > { %15054 = vmatprep.mubr.bf16.mxu0 %v27537_v41  ;;  %14942 = vmatprep.subr.bf16.mxu1 %v23333_v29  ;;  %v23417_v29 = vld [vmem:[%s27319_s17 + $0x359c] ss:$456 sps:$4 sm:$0xff]  }
 0x3ca   : > { %15024 = vmatprep.subr.bf16.mxu0 %v23336_v31  ;;  %v23420_v31 = vld [vmem:[%s27319_s17 + $0x35a4] ss:$456 sps:$4 sm:$0xff]  }
 0x3cb   : > { %14943 = vmatpush1.bf16.msra.mxu1 %v23331_v30  ;;  %v27789_v30 = vld [vmem:[%s27786_s21] sm:$0xff] }
 0x3cc   : > { %15025 = vmatpush1.bf16.msra.mxu0 %v23334_v32  ;;  %14944 = vmatprep.subr.bf16.mxu1 %v23339_v33  ;;  %v23415_v32 = vld [vmem:[%s27319_s17 + $0x3598] ss:$456 sps:$4 sm:$0xff]   ;;  %v2900_v33 = vrot.slane %v27789_v30, %v27453_v2 }
 0x3cd   : > { %15026 = vmatprep.subr.bf16.mxu0 %v23342_v34  ;;  %v23418_v34 = vld [vmem:[%s27319_s17 + $0x35a0] ss:$456 sps:$4 sm:$0xff]  }
 0x3cf   : > { %14945 = vmatpush1.bf16.msra.mxu1 %v23337_v35  ;;  %v2904_v35 = vrot.slane %v27789_v30, %v27456_v3 }
 0x3d0   : > { %15027 = vmatpush1.bf16.msra.mxu0 %v23340_v36  ;;  %14946 = vmatprep.subr.bf16.mxu1 %v23345_v37  ;;  %v23423_v36 = vld [vmem:[%s27319_s17 + $0x392c] ss:$456 sps:$4 sm:$0xff]  }
 0x3d1   : > { %15028 = vmatprep.subr.bf16.mxu0 %v23348_v38  ;;  %v23426_v37 = vld [vmem:[%s27319_s17 + $0x3934] ss:$456 sps:$4 sm:$0xff]  }
 0x3d3   : > { %14947 = vmatpush1.bf16.msra.mxu1 %v23343_v39 }
 0x3d4   : > { %15029 = vmatpush1.bf16.msra.mxu0 %v23346_v43  ;;  %14948 = vmatprep.subr.bf16.mxu1 %v23351_v44  ;;  %v23421_v44 = vld [vmem:[%s27319_s17 + $0x3928] ss:$456 sps:$4 sm:$0xff]  }
 0x3d5   : > { %15030 = vmatprep.subr.bf16.mxu0 %v23354_v45 }
 0x3d7   : > { %14949 = vmatpush1.bf16.msra.mxu1 %v23349_v46 }
 0x3d8   : > { %15031 = vmatpush1.bf16.msra.mxu0 %v23352_v47  ;;  %14950 = vmatprep.subr.bf16.mxu1 %v23357_v48  ;;  %v23424_v48 = vld [vmem:[%s27319_s17 + $0x3930] ss:$456 sps:$4 sm:$0xff]  }
 0x3d9   : > { %15032 = vmatprep.subr.bf16.mxu0 %v23360_v49 }
 0x3db   : > { %14951 = vmatpush1.bf16.msra.mxu1 %v23355_v50 }
 0x3dc   : > { %15033 = vmatpush1.bf16.msra.mxu0 %v23358_v51  ;;  %14952 = vmatprep.subr.bf16.mxu1 %v23363_v52  ;;  %v23429_v52 = vld [vmem:[%s27319_s17 + $0x3cbc] ss:$456 sps:$4 sm:$0xff]  }
 0x3dd   : > { %15034 = vmatprep.subr.bf16.mxu0 %v23366_v53  ;;  %v23432_v53 = vld [vmem:[%s27319_s17 + $0x3cc4] ss:$456 sps:$4 sm:$0xff]  }
 0x3df   : > { %14953 = vmatpush1.bf16.msra.mxu1 %v23361_v54 }
 0x3e0   : > { %15035 = vmatpush1.bf16.msra.mxu0 %v23364_v55  ;;  %14954 = vmatprep.subr.bf16.mxu1 %v23369_v56  ;;  %v23427_v56 = vld [vmem:[%s27319_s17 + $0x3cb8] ss:$456 sps:$4 sm:$0xff]  }
 0x3e1   : > { %15036 = vmatprep.subr.bf16.mxu0 %v23372_v57 }
 0x3e3   : > { %14955 = vmatpush1.bf16.msra.mxu1 %v23367_v58  ;;  %v23430_v58 = vld [vmem:[%s27319_s17 + $0x3cc0] ss:$456 sps:$4 sm:$0xff]  }
 0x3e4   : > { %15037 = vmatpush1.bf16.msra.mxu0 %v23370_v59  ;;  %14956 = vmatprep.subr.bf16.mxu1 %v23375_v60  ;;  %v23433_v59 = vld [vmem:[%s27319_s17 + $0x404c] ss:$456 sps:$4 sm:$0x3f]   ;;  %v23435_v60 = vld [vmem:[%s27319_s17 + $0x4048] ss:$456 sps:$4 sm:$0x3f]  }
 0x3e5   : > { %15038 = vmatprep.subr.bf16.mxu0 %v23378_v61 }
 0x3e7   : > { %14957 = vmatpush1.bf16.msra.mxu1 %v23373_v62  ;;  %v23436_v62 = vld [vmem:[%s27319_s17 + $0x4054] ss:$456 sps:$4 sm:$0x3f]  }
 0x3e8   : > { %15039 = vmatpush1.bf16.msra.mxu0 %v23376_v1  ;;  %14958 = vmatprep.subr.bf16.mxu1 %v23381_v4  ;;  %v23438_v4 = vld [vmem:[%s27319_s17 + $0x4050] ss:$456 sps:$4 sm:$0x3f]  }
 0x3e9   : > { %15040 = vmatprep.subr.bf16.mxu0 %v23384_v0 }
 0x3eb   : > { %14959 = vmatpush1.bf16.msra.mxu1 %v23379_v5 }
 0x3ec   : > { %15041 = vmatpush1.bf16.msra.mxu0 %v23382_v6  ;;  %14960 = vmatprep.subr.bf16.mxu1 %v23387_v8  ;;  %v14219_v6 = vsel %vm14187_vm7, %v23435_v60, 0  ;;  %v23441_v8 = vld [vmem:[%s27319_s17 + $0x3c] ss:$456 sps:$4 sm:$0xff]   ;;  %v23496_v60 = vld [vmem:[%s27319_s17 + $0x2050] ss:$456 sps:$4 sm:$0xff]  }
 0x3ed   : > { %15042 = vmatprep.subr.bf16.mxu0 %v23390_v9  ;;  %v23444_v9 = vld [vmem:[%s27319_s17 + $0x44] ss:$456 sps:$4 sm:$0xff]  }
 0x3ef   : > { %14961 = vmatpush1.bf16.msra.mxu1 %v23385_v10  ;;  %v14225_v10 = vsel %vm14187_vm7, %v23438_v4, 0  ;;  %v23502_v4 = vld [vmem:[%s27319_s17 + $0x23e0] ss:$456 sps:$4 sm:$0xff]  }
 0x3f0   : > { %15043 = vmatpush1.bf16.msra.mxu0 %v23388_v11  ;;  %14962 = vmatprep.subr.bf16.mxu1 %v23393_v12  ;;  %v23439_v11 = vld [vmem:[%s27319_s17 + $0x38] ss:$456 sps:$4 sm:$0xff]  }
 0x3f1   : > { %15044 = vmatprep.subr.bf16.mxu0 %v23396_v13  ;;  %v23442_v12 = vld [vmem:[%s27319_s17 + $0x40] ss:$456 sps:$4 sm:$0xff]   ;;  %v23447_v13 = vld [vmem:[%s27319_s17 + $0x3cc] ss:$456 sps:$4 sm:$0xff]  }
 0x3f3   : > { %14963 = vmatpush1.bf16.msra.mxu1 %v23391_v14  ;;  %v23445_v14 = vld [vmem:[%s27319_s17 + $0x3c8] ss:$456 sps:$4 sm:$0xff]  }
 0x3f4   : > { %15045 = vmatpush1.bf16.msra.mxu0 %v23394_v15  ;;  %14964 = vmatprep.subr.bf16.mxu1 %v23399_v17  ;;  %v23450_v15 = vld [vmem:[%s27319_s17 + $0x3d4] ss:$456 sps:$4 sm:$0xff]   ;;  %v23448_v17 = vld [vmem:[%s27319_s17 + $0x3d0] ss:$456 sps:$4 sm:$0xff]  }
 0x3f5   : > { %15046 = vmatprep.subr.bf16.mxu0 %v23402_v18  ;;  %v23453_v18 = vld [vmem:[%s27319_s17 + $0x75c] ss:$456 sps:$4 sm:$0xff]  }
 0x3f7   : > { %14965 = vmatpush1.bf16.msra.mxu1 %v23397_v19  ;;  %v23456_v19 = vld [vmem:[%s27319_s17 + $0x764] ss:$456 sps:$4 sm:$0xff]  }
 0x3f8   : > { %15047 = vmatpush1.bf16.msra.mxu0 %v23400_v20  ;;  %14966 = vmatprep.subr.bf16.mxu1 %v23405_v21  ;;  %v23451_v21 = vld [vmem:[%s27319_s17 + $0x758] ss:$456 sps:$4 sm:$0xff]  }
 0x3f9   : > { %15048 = vmatprep.subr.bf16.mxu0 %v23408_v22 }
 0x3fb   : > { %14967 = vmatpush1.bf16.msra.mxu1 %v23403_v23 }
 0x3fc   : > { %15049 = vmatpush1.bf16.msra.mxu0 %v23406_v24  ;;  %14968 = vmatprep.subr.bf16.mxu1 %v23411_v25  ;;  %v23454_v24 = vld [vmem:[%s27319_s17 + $0x760] ss:$456 sps:$4 sm:$0xff]  }
 0x3fd   : > { %15050 = vmatprep.subr.bf16.mxu0 %v23414_v26  ;;  %v23459_v26 = vld [vmem:[%s27319_s17 + $0xaec] ss:$456 sps:$4 sm:$0xff]  }
 0x3ff   : > { %14969 = vmatpush1.bf16.msra.mxu1 %v23409_v27  ;;  %v23462_v27 = vld [vmem:[%s27319_s17 + $0xaf4] ss:$456 sps:$4 sm:$0xff]  }
 0x400   : > { %15051 = vmatpush1.bf16.msra.mxu0 %v23412_v28  ;;  %14970 = vmatprep.subr.bf16.mxu1 %v23417_v29  ;;  %v23457_v28 = vld [vmem:[%s27319_s17 + $0xae8] ss:$456 sps:$4 sm:$0xff]  }
 0x401   : > { %v14605_v38 = vpop.f32.mrb[4].mxu1  ;;  %15052 = vmatprep.subr.bf16.mxu0 %v23420_v31  ;;  %v23460_v29 = vld [vmem:[%s27319_s17 + $0xaf0] ss:$456 sps:$4 sm:$0xff]   ;;  %v23465_v31 = vld [vmem:[%s27319_s17 + $0xe7c] ss:$456 sps:$4 sm:$0xff]  }
 0x402   : > { %v14564_v39 = vpop.f32.mrb[0].mxu0  ;;  %v14607_v43 = vpop.f32.mrb[5].mxu1 }
 0x403   : > { %v14565_v45 = vadd.f32 %v14564_v39, %v2900_v33  ;;  %14971 = vmatpush1.bf16.msra.mxu1 %v23415_v32  ;;  %v14566_v46 = vpop.f32.mrb[1].mxu0  ;;  %v14609_v47 = vpop.f32.mrb[6].mxu1  ;;  %v23468_v32 = vld [vmem:[%s27319_s17 + $0xe84] ss:$456 sps:$4 sm:$0xff]   ;;  %v23463_v33 = vld [vmem:[%s27319_s17 + $0xe78] ss:$456 sps:$4 sm:$0xff]  }
 0x404   : > { %v14567_v49 = vadd.f32 %v14566_v46, %v2904_v35  ;;  %15053 = vmatpush1.bf16.msra.mxu0 %v23418_v34  ;;  %v14568_v50 = vpop.f32.mrb[2].mxu0  ;;  %v14610_v51 = vpop.f32.mrb[7].mxu1  ;;  %14981 = vmatprep.subr.bf16.mxu1 %v23423_v36  ;;  %v23466_v34 = vld [vmem:[%s27319_s17 + $0xe80] ss:$456 sps:$4 sm:$0xff]   ;;  %v23471_v35 = vld [vmem:[%s27319_s17 + $0x120c] ss:$456 sps:$4 sm:$0xff]  }
 0x405   : > { %v14606_v54 = vadd.f32 %v14605_v38, %v14565_v45  ;;  %v14569_v55 = vpop.f32.mrb[3].mxu0  ;;  %15063 = vmatprep.subr.bf16.mxu0 %v23426_v37  ;;  %v23474_v36 = vld [vmem:[%s27319_s17 + $0x1214] ss:$456 sps:$4 sm:$0xff]   ;;  %v23469_v38 = vld [vmem:[%s27319_s17 + $0x1208] ss:$456 sps:$4 sm:$0xff]  }
 0x406   : > { %v14608_v57 = vadd.f32 %v14607_v43, %v14567_v49  ;;  %14973 = vmatmul.mubr.bf16.vlgmr.msra.gmra.mrb[16].mxu1 %v27535_v40  ;;  %v23472_v39 = vld [vmem:[%s27319_s17 + $0x1210] ss:$456 sps:$4 sm:$0xff]   ;;  %v23480_v46 = vld [vmem:[%s27319_s17 + $0x15a4] ss:$456 sps:$4 sm:$0xff]   ;;  %v23486_v50 = vld [vmem:[%s27319_s17 + $0x1934] ss:$456 sps:$4 sm:$0xff]  }
 0x407   : > { %v19204_v61 = vsub.f32 0.0, %v14606_v54  ;;  %14982 = vmatpush1.bf16.msra.mxu1 %v23421_v44  ;;  %15055 = vmatmul.mubr.bf16.vlgmr.msra.gmra.mrb[12].mxu0 %v27535_v40  ;;  %v23477_v44 = vld [vmem:[%s27319_s17 + $0x159c] ss:$456 sps:$4 sm:$0xff]   ;;  %v23475_v47 = vld [vmem:[%s27319_s17 + $0x1598] ss:$456 sps:$4 sm:$0xff]  }
 0x408   : > { %v19205_v1 = vsub.f32 0.0, %v14608_v57  ;;  %15064 = vmatpush1.bf16.msra.mxu0 %v23424_v48  ;;  %14983 = vmatprep.subr.bf16.mxu1 %v23429_v52  ;;  %v23478_v48 = vld [vmem:[%s27319_s17 + $0x15a0] ss:$456 sps:$4 sm:$0xff]   ;;  %v23483_v49 = vld [vmem:[%s27319_s17 + $0x192c] ss:$456 sps:$4 sm:$0xff]  }
 0x409   : > { %v19318_v0 = vmul.f32 1.442695, %v19204_v61  ;;  %15065 = vmatprep.subr.bf16.mxu0 %v23432_v53  ;;  %15013 = vmatprep.mubr.bf16.mxu1 %v27007_v16  ;;  %v23481_v51 = vld [vmem:[%s27319_s17 + $0x1928] ss:$456 sps:$4 sm:$0xff]   ;;  %v23489_v53 = vld [vmem:[%s27319_s17 + $0x1cbc] ss:$456 sps:$4 sm:$0xff]  }
 0x40a   : > { %v19320_v5 = vmul.f32 1.442695, %v19205_v1  ;;  %15095 = vmatprep.mubr.bf16.mxu0 %v27007_v16  ;;  %v23484_v52 = vld [vmem:[%s27319_s17 + $0x1930] ss:$456 sps:$4 sm:$0xff]   ;;  %v23492_v54 = vld [vmem:[%s27319_s17 + $0x1cc4] ss:$456 sps:$4 sm:$0xff]  }
 0x40b   : > { %26291 = vpow2.f32 %v19318_v0  ;;  %14984 = vmatpush1.bf16.msra.mxu1 %v23427_v56  ;;  %v23487_v55 = vld [vmem:[%s27319_s17 + $0x1cb8] ss:$456 sps:$4 sm:$0xff]   ;;  %v23495_v57 = vld [vmem:[%s27319_s17 + $0x204c] ss:$456 sps:$4 sm:$0xff]   ;;  %v23501_v61 = vld [vmem:[%s27319_s17 + $0x23dc] ss:$456 sps:$4 sm:$0xff]  }
 0x40c   : > { %26293 = vpow2.f32 %v19320_v5  ;;  %15066 = vmatpush1.bf16.msra.mxu0 %v23430_v58  ;;  %22409 = vmatprep.subr.msk.bf16.mxu1 %vm14187_vm7, %v23433_v59  ;;  %v23490_v56 = vld [vmem:[%s27319_s17 + $0x1cc0] ss:$456 sps:$4 sm:$0xff]   ;;  %v23498_v58 = vld [vmem:[%s27319_s17 + $0x2054] ss:$456 sps:$4 sm:$0xff]  }
 0x40d   : > { %22411 = vmatprep.subr.msk.bf16.mxu0 %vm14187_vm7, %v23436_v62  ;;  %v23493_v59 = vld [vmem:[%s27319_s17 + $0x2048] ss:$456 sps:$4 sm:$0xff]   ;;  %v23504_v62 = vld [vmem:[%s27319_s17 + $0x23e4] ss:$456 sps:$4 sm:$0xff]   ;;  %v23499_v1 = vld [vmem:[%s27319_s17 + $0x23d8] ss:$456 sps:$4 sm:$0xff]  }
 0x40e   : > { %v23507_v0 = vld [vmem:[%s27319_s17 + $0x276c] ss:$456 sps:$4 sm:$0xff]  }
 0x40f   : > { %14986 = vmatpush1.bf16.msra.mxu1 %v14219_v6  ;;  %v23510_v5 = vld [vmem:[%s27319_s17 + $0x2774] ss:$456 sps:$4 sm:$0xff]   ;;  %v23505_v6 = vld [vmem:[%s27319_s17 + $0x2768] ss:$456 sps:$4 sm:$0xff]  }
 0x410   : > { %15068 = vmatpush1.bf16.msra.mxu0 %v14225_v10  ;;  %15104 = vmatprep.subr.bf16.mxu1 %v23441_v8  ;;  %v23508_v8 = vld [vmem:[%s27319_s17 + $0x2770] ss:$456 sps:$4 sm:$0xff]   ;;  %v23516_v10 = vld [vmem:[%s27319_s17 + $0x2b04] ss:$456 sps:$4 sm:$0xff]  }
 0x411   : > { %15186 = vmatprep.subr.bf16.mxu0 %v23444_v9  ;;  %v23513_v9 = vld [vmem:[%s27319_s17 + $0x2afc] ss:$456 sps:$4 sm:$0xff]  }
 0x412   : > { %22410 = vmatmul.mubr.msk.bf16.vlgmr.msra.gmra.mrb[16].mxu1 %vm14183_vm8, %v27539_v42 }
 0x413   : > { %22412 = vmatmul.mubr.msk.bf16.vlgmr.msra.gmra.mrb[12].mxu0 %vm14183_vm8, %v27539_v42  ;;  %15105 = vmatpush1.bf16.msra.mxu1 %v23439_v11  ;;  %v23511_v11 = vld [vmem:[%s27319_s17 + $0x2af8] ss:$456 sps:$4 sm:$0xff]  }
 0x414   : > { %15136 = vmatprep.mubr.bf16.mxu1 %v27537_v41  ;;  %15187 = vmatpush1.bf16.msra.mxu0 %v23442_v12  ;;  %v23514_v12 = vld [vmem:[%s27319_s17 + $0x2b00] ss:$456 sps:$4 sm:$0xff]  }
 0x415   : > { %v26292_v20 = vpop.eup %26291  ;;  %15218 = vmatprep.mubr.bf16.mxu0 %v27537_v41  ;;  %15106 = vmatprep.subr.bf16.mxu1 %v23447_v13  ;;  %v23519_v13 = vld [vmem:[%s27319_s17 + $0x2e8c] ss:$456 sps:$4 sm:$0xff]  }
 0x416   : > { %v26294_v22 = vpop.eup %26293  ;;  %v19546_v23 = vadd.f32 1.0, %v26292_v20  ;;  %15188 = vmatprep.subr.bf16.mxu0 %v23450_v15  ;;  %v23517_v15 = vld [vmem:[%s27319_s17 + $0x2e88] ss:$456 sps:$4 sm:$0xff]   ;;  %v23523_v20 = vld [vmem:[%s27319_s17 + $0x3218] ss:$456 sps:$4 sm:$0xff]  }
 0x417   : > { %v19547_v25 = vadd.f32 1.0, %v26294_v22  ;;  %15107 = vmatpush1.bf16.msra.mxu1 %v23445_v14  ;;  %v23522_v14 = vld [vmem:[%s27319_s17 + $0x2e94] ss:$456 sps:$4 sm:$0xff]   ;;  %v27889_v22 = vsub.s32 3, %v27450_v63 }
 0x418   : > { %26295 = vrcp.f32 %v19546_v23  ;;  %15189 = vmatpush1.bf16.msra.mxu0 %v23448_v17  ;;  %15108 = vmatprep.subr.bf16.mxu1 %v23453_v18  ;;  %v23520_v17 = vld [vmem:[%s27319_s17 + $0x2e90] ss:$456 sps:$4 sm:$0xff]   ;;  %v23525_v18 = vld [vmem:[%s27319_s17 + $0x321c] ss:$456 sps:$4 sm:$0xff]   ;;  %v27892_v23 = vsub.s32 4, %v27450_v63 }
 0x419   : > { %26297 = vrcp.f32 %v19547_v25  ;;  %15190 = vmatprep.subr.bf16.mxu0 %v23456_v19  ;;  %v23528_v19 = vld [vmem:[%s27319_s17 + $0x3224] ss:$456 sps:$4 sm:$0xff]   ;;  %v27896_v25 = vsub.s32 5, %v27450_v63 }
 0x41b   : > { %15109 = vmatpush1.bf16.msra.mxu1 %v23451_v21  ;;  %v23526_v21 = vld [vmem:[%s27319_s17 + $0x3220] ss:$456 sps:$4 sm:$0xff]  }
 0x41c   : > { %15191 = vmatpush1.bf16.msra.mxu0 %v23454_v24  ;;  %15110 = vmatprep.subr.bf16.mxu1 %v23459_v26  ;;  %v23531_v24 = vld [vmem:[%s27319_s17 + $0x35ac] ss:$456 sps:$4 sm:$0xff]  }
 0x41d   : > { %15192 = vmatprep.subr.bf16.mxu0 %v23462_v27  ;;  %v23534_v26 = vld [vmem:[%s27319_s17 + $0x35b4] ss:$456 sps:$4 sm:$0xff]   ;;  %v2908_v27 = vrot.slane %v27789_v30, %v27461_v7 }
 0x41f   : > { %15111 = vmatpush1.bf16.msra.mxu1 %v23457_v28  ;;  %v23529_v28 = vld [vmem:[%s27319_s17 + $0x35a8] ss:$456 sps:$4 sm:$0xff]  }
 0x420   : > { %15193 = vmatpush1.bf16.msra.mxu0 %v23460_v29  ;;  %15112 = vmatprep.subr.bf16.mxu1 %v23465_v31  ;;  %v2912_v29 = vrot.slane %v27789_v30, %v27889_v22  ;;  %v2916_v31 = vrot.slane %v27789_v30, %v27892_v23 }
 0x421   : > { %15194 = vmatprep.subr.bf16.mxu0 %v23468_v32  ;;  %v23532_v32 = vld [vmem:[%s27319_s17 + $0x35b0] ss:$456 sps:$4 sm:$0xff]  }
 0x422   : > { %v26296_v37 = vpop.eup %26295 }
 0x423   : > { %v26298_v43 = vpop.eup %26297  ;;  %15113 = vmatpush1.bf16.msra.mxu1 %v23463_v33  ;;  %v2920_v33 = vrot.slane %v27789_v30, %v27896_v25 }
 0x424   : > { %v19888_v45 = vcombine.low %v26296_v37, %v26298_v43  ;;  %15195 = vmatpush1.bf16.msra.mxu0 %v23466_v34  ;;  %15114 = vmatprep.subr.bf16.mxu1 %v23471_v35  ;;  %v23537_v34 = vld [vmem:[%s27319_s17 + $0x393c] ss:$456 sps:$4 sm:$0xff]   ;;  %v23535_v43 = vld [vmem:[%s27319_s17 + $0x3938] ss:$456 sps:$4 sm:$0xff]  }
 0x425   : > { %15196 = vmatprep.subr.bf16.mxu0 %v23474_v36  ;;  %v23540_v35 = vld [vmem:[%s27319_s17 + $0x3944] ss:$456 sps:$4 sm:$0xff]  }
 0x426   : > { %20002 = vst [vmem:[%s27851_s14] sm:$0xff] %v19888_v45 }
 0x427   : > { %15115 = vmatpush1.bf16.msra.mxu1 %v23469_v38 }
 0x428   : > { %15197 = vmatpush1.bf16.msra.mxu0 %v23472_v39  ;;  %15116 = vmatprep.subr.bf16.mxu1 %v23477_v44 }
 0x429   : > { %15198 = vmatprep.subr.bf16.mxu0 %v23480_v46 }
 0x42b   : > { %15117 = vmatpush1.bf16.msra.mxu1 %v23475_v47 }
 0x42c   : > { %15199 = vmatpush1.bf16.msra.mxu0 %v23478_v48  ;;  %15118 = vmatprep.subr.bf16.mxu1 %v23483_v49  ;;  %v23538_v48 = vld [vmem:[%s27319_s17 + $0x3940] ss:$456 sps:$4 sm:$0xff]  }
 0x42d   : > { %15200 = vmatprep.subr.bf16.mxu0 %v23486_v50 }
 0x42f   : > { %15119 = vmatpush1.bf16.msra.mxu1 %v23481_v51 }
 0x430   : > { %15201 = vmatpush1.bf16.msra.mxu0 %v23484_v52  ;;  %15120 = vmatprep.subr.bf16.mxu1 %v23489_v53  ;;  %v23543_v52 = vld [vmem:[%s27319_s17 + $0x3ccc] ss:$456 sps:$4 sm:$0xff]  }
 0x431   : > { %15202 = vmatprep.subr.bf16.mxu0 %v23492_v54 }
 0x433   : > { %15121 = vmatpush1.bf16.msra.mxu1 %v23487_v55 }
 0x434   : > { %15203 = vmatpush1.bf16.msra.mxu0 %v23490_v56  ;;  %15122 = vmatprep.subr.bf16.mxu1 %v23495_v57  ;;  %v23546_v56 = vld [vmem:[%s27319_s17 + $0x3cd4] ss:$456 sps:$4 sm:$0xff]  }
 0x435   : > { %15204 = vmatprep.subr.bf16.mxu0 %v23498_v58 }
 0x437   : > { %15123 = vmatpush1.bf16.msra.mxu1 %v23493_v59  ;;  %v23541_v59 = vld [vmem:[%s27319_s17 + $0x3cc8] ss:$456 sps:$4 sm:$0xff]  }
 0x438   : > { %15205 = vmatpush1.bf16.msra.mxu0 %v23496_v60  ;;  %15124 = vmatprep.subr.bf16.mxu1 %v23501_v61  ;;  %v23547_v60 = vld [vmem:[%s27319_s17 + $0x405c] ss:$456 sps:$4 sm:$0x3f]   ;;  %v23549_v61 = vld [vmem:[%s27319_s17 + $0x4058] ss:$456 sps:$4 sm:$0x3f]  }
 0x439   : > { %15206 = vmatprep.subr.bf16.mxu0 %v23504_v62 }
 0x43b   : > { %15125 = vmatpush1.bf16.msra.mxu1 %v23499_v1 }
 0x43c   : > { %15207 = vmatpush1.bf16.msra.mxu0 %v23502_v4  ;;  %15126 = vmatprep.subr.bf16.mxu1 %v23507_v0  ;;  %v23544_v4 = vld [vmem:[%s27319_s17 + $0x3cd0] ss:$456 sps:$4 sm:$0xff]   ;;  %v23550_v0 = vld [vmem:[%s27319_s17 + $0x4064] ss:$456 sps:$4 sm:$0x3f]  }
 0x43d   : > { %15208 = vmatprep.subr.bf16.mxu0 %v23510_v5 }
 0x43f   : > { %15127 = vmatpush1.bf16.msra.mxu1 %v23505_v6  ;;  %v23552_v6 = vld [vmem:[%s27319_s17 + $0x4060] ss:$456 sps:$4 sm:$0x3f]  }
 0x440   : > { %15209 = vmatpush1.bf16.msra.mxu0 %v23508_v8  ;;  %15128 = vmatprep.subr.bf16.mxu1 %v23513_v9  ;;  %v14231_v8 = vsel %vm14187_vm7, %v23549_v61, 0  ;;  %v23555_v9 = vld [vmem:[%s27319_s17 + $0x4c] ss:$456 sps:$4 sm:$0xff]   ;;  %v23595_v61 = vld [vmem:[%s27319_s17 + $0x1938] ss:$456 sps:$4 sm:$0xff]  }
 0x441   : > { %15210 = vmatprep.subr.bf16.mxu0 %v23516_v10  ;;  %v23558_v10 = vld [vmem:[%s27319_s17 + $0x54] ss:$456 sps:$4 sm:$0xff]  }
 0x443   : > { %15129 = vmatpush1.bf16.msra.mxu1 %v23511_v11  ;;  %v14237_v11 = vsel %vm14187_vm7, %v23552_v6, 0  ;;  %v23609_v6 = vld [vmem:[%s27319_s17 + $0x205c] ss:$456 sps:$4 sm:$0xff]  }
 0x444   : > { %15211 = vmatpush1.bf16.msra.mxu0 %v23514_v12  ;;  %15130 = vmatprep.subr.bf16.mxu1 %v23519_v13  ;;  %v23553_v12 = vld [vmem:[%s27319_s17 + $0x48] ss:$456 sps:$4 sm:$0xff]  }
 0x445   : > { %15212 = vmatprep.subr.bf16.mxu0 %v23522_v14  ;;  %v23556_v13 = vld [vmem:[%s27319_s17 + $0x50] ss:$456 sps:$4 sm:$0xff]   ;;  %v23561_v14 = vld [vmem:[%s27319_s17 + $0x3dc] ss:$456 sps:$4 sm:$0xff]  }
 0x447   : > { %15131 = vmatpush1.bf16.msra.mxu1 %v23517_v15  ;;  %v23559_v15 = vld [vmem:[%s27319_s17 + $0x3d8] ss:$456 sps:$4 sm:$0xff]  }
 0x448   : > { %15213 = vmatpush1.bf16.msra.mxu0 %v23520_v17  ;;  %15132 = vmatprep.subr.bf16.mxu1 %v23525_v18  ;;  %v23564_v18 = vld [vmem:[%s27319_s17 + $0x3e4] ss:$456 sps:$4 sm:$0xff]  }
 0x449   : > { %15214 = vmatprep.subr.bf16.mxu0 %v23528_v19 }
 0x44b   : > { %15133 = vmatpush1.bf16.msra.mxu1 %v23523_v20 }
 0x44c   : > { %15215 = vmatpush1.bf16.msra.mxu0 %v23526_v21  ;;  %15134 = vmatprep.subr.bf16.mxu1 %v23531_v24  ;;  %v23562_v21 = vld [vmem:[%s27319_s17 + $0x3e0] ss:$456 sps:$4 sm:$0xff]  }
 0x44d   : > { %v14687_v36 = vpop.f32.mrb[8].mxu1  ;;  %15216 = vmatprep.subr.bf16.mxu0 %v23534_v26 }
 0x44e   : > { %v22612_v37 = vadd.f32 %v14687_v36, %v2908_v27  ;;  %v14689_v38 = vpop.f32.mrb[9].mxu1  ;;  %v14769_v39 = vpop.f32.mrb[4].mxu0  ;;  %v23567_v27 = vld [vmem:[%s27319_s17 + $0x76c] ss:$456 sps:$4 sm:$0xff]  }
 0x44f   : > { %v22613_v44 = vadd.f32 %v14689_v38, %v2912_v29  ;;  %v22614_v45 = vadd.f32 %v14769_v39, %v2916_v31  ;;  %v14691_v46 = vpop.f32.mrb[10].mxu1  ;;  %v14771_v47 = vpop.f32.mrb[5].mxu0  ;;  %15135 = vmatpush1.bf16.msra.mxu1 %v23529_v28  ;;  %v23570_v28 = vld [vmem:[%s27319_s17 + $0x774] ss:$456 sps:$4 sm:$0xff]   ;;  %v23576_v36 = vld [vmem:[%s27319_s17 + $0xb04] ss:$456 sps:$4 sm:$0xff]  }
 0x450   : > { %v19206_v49 = vsub.f32 0.0, %v22612_v37  ;;  %v22615_v30 = vadd.f32 %v14771_v47, %v2920_v33  ;;  %v14692_v50 = vpop.f32.mrb[11].mxu1  ;;  %v14773_v51 = vpop.f32.mrb[6].mxu0  ;;  %15217 = vmatpush1.bf16.msra.mxu0 %v23532_v32  ;;  %15145 = vmatprep.subr.bf16.mxu1 %v23537_v34  ;;  %v23565_v33 = vld [vmem:[%s27319_s17 + $0x768] ss:$456 sps:$4 sm:$0xff]  }
 0x451   : > { %v19207_v53 = vsub.f32 0.0, %v22613_v44  ;;  %v19208_v54 = vsub.f32 0.0, %v22614_v45  ;;  %v14774_v55 = vpop.f32.mrb[7].mxu0  ;;  %15227 = vmatprep.subr.bf16.mxu0 %v23540_v35  ;;  %v23568_v34 = vld [vmem:[%s27319_s17 + $0x770] ss:$456 sps:$4 sm:$0xff]  }
 0x452   : > { %v19322_v57 = vmul.f32 1.442695, %v19206_v49  ;;  %v19209_v58 = vsub.f32 0.0, %v22615_v30  ;;  %15137 = vmatmul.mubr.bf16.vlgmr.msra.gmra.mrb[20].mxu1 %v27535_v40  ;;  %v23573_v35 = vld [vmem:[%s27319_s17 + $0xafc] ss:$456 sps:$4 sm:$0xff]  }
 0x453   : > { %v19324_v62 = vmul.f32 1.442695, %v19207_v53  ;;  %v19326_v1 = vmul.f32 1.442695, %v19208_v54  ;;  %15146 = vmatpush1.bf16.msra.mxu1 %v23535_v43  ;;  %15219 = vmatmul.mubr.bf16.vlgmr.msra.gmra.mrb[16].mxu0 %v27535_v40  ;;  %v23571_v37 = vld [vmem:[%s27319_s17 + $0xaf8] ss:$456 sps:$4 sm:$0xff]  }
 0x454   : > { %26299 = vpow2.f32 %v19322_v57  ;;  %v19328_v5 = vmul.f32 1.442695, %v19209_v58  ;;  %15228 = vmatpush1.bf16.msra.mxu0 %v23538_v48  ;;  %15147 = vmatprep.subr.bf16.mxu1 %v23543_v52  ;;  %v23574_v38 = vld [vmem:[%s27319_s17 + $0xb00] ss:$456 sps:$4 sm:$0xff]   ;;  %v23579_v39 = vld [vmem:[%s27319_s17 + $0xe8c] ss:$456 sps:$4 sm:$0xff]  }
 0x455   : > { %26301 = vpow2.f32 %v19324_v62  ;;  %15229 = vmatprep.subr.bf16.mxu0 %v23546_v56  ;;  %15177 = vmatprep.mubr.bf16.mxu1 %v27007_v16  ;;  %v23582_v43 = vld [vmem:[%s27319_s17 + $0xe94] ss:$456 sps:$4 sm:$0xff]   ;;  %v23577_v45 = vld [vmem:[%s27319_s17 + $0xe88] ss:$456 sps:$4 sm:$0xff]   ;;  %v23588_v50 = vld [vmem:[%s27319_s17 + $0x1224] ss:$456 sps:$4 sm:$0xff]  }
 0x456   : > { %26303 = vpow2.f32 %v19326_v1  ;;  %15259 = vmatprep.mubr.bf16.mxu0 %v27007_v16  ;;  %v23580_v47 = vld [vmem:[%s27319_s17 + $0xe90] ss:$456 sps:$4 sm:$0xff]   ;;  %v23585_v48 = vld [vmem:[%s27319_s17 + $0x121c] ss:$456 sps:$4 sm:$0xff]   ;;  %v23586_v54 = vld [vmem:[%s27319_s17 + $0x1220] ss:$456 sps:$4 sm:$0xff]  }
 0x457   : > { %26305 = vpow2.f32 %v19328_v5  ;;  %15148 = vmatpush1.bf16.msra.mxu1 %v23541_v59  ;;  %v23583_v53 = vld [vmem:[%s27319_s17 + $0x1218] ss:$456 sps:$4 sm:$0xff]   ;;  %v23591_v55 = vld [vmem:[%s27319_s17 + $0x15ac] ss:$456 sps:$4 sm:$0xff]   ;;  %v23589_v57 = vld [vmem:[%s27319_s17 + $0x15a8] ss:$456 sps:$4 sm:$0xff]  }
 0x458   : > { %15230 = vmatpush1.bf16.msra.mxu0 %v23544_v4  ;;  %22413 = vmatprep.subr.msk.bf16.mxu1 %vm14187_vm7, %v23547_v60  ;;  %v23594_v56 = vld [vmem:[%s27319_s17 + $0x15b4] ss:$456 sps:$4 sm:$0xff]   ;;  %v23592_v58 = vld [vmem:[%s27319_s17 + $0x15b0] ss:$456 sps:$4 sm:$0xff]   ;;  %v23600_v60 = vld [vmem:[%s27319_s17 + $0x1944] ss:$456 sps:$4 sm:$0xff]  }
 0x459   : > { %22415 = vmatprep.subr.msk.bf16.mxu0 %vm14187_vm7, %v23550_v0  ;;  %v23597_v59 = vld [vmem:[%s27319_s17 + $0x193c] ss:$456 sps:$4 sm:$0xff]   ;;  %v23598_v62 = vld [vmem:[%s27319_s17 + $0x1940] ss:$456 sps:$4 sm:$0xff]   ;;  %v23603_v1 = vld [vmem:[%s27319_s17 + $0x1ccc] ss:$456 sps:$4 sm:$0xff]  }
 0x45a   : > { %v23606_v4 = vld [vmem:[%s27319_s17 + $0x1cd4] ss:$456 sps:$4 sm:$0xff]   ;;  %v23601_v0 = vld [vmem:[%s27319_s17 + $0x1cc8] ss:$456 sps:$4 sm:$0xff]  }
 0x45b   : > { %15150 = vmatpush1.bf16.msra.mxu1 %v14231_v8  ;;  %v23604_v5 = vld [vmem:[%s27319_s17 + $0x1cd0] ss:$456 sps:$4 sm:$0xff]   ;;  %v23612_v8 = vld [vmem:[%s27319_s17 + $0x2064] ss:$456 sps:$4 sm:$0xff]  }
 0x45c   : > { %15232 = vmatpush1.bf16.msra.mxu0 %v14237_v11  ;;  %15268 = vmatprep.subr.bf16.mxu1 %v23555_v9  ;;  %v23607_v9 = vld [vmem:[%s27319_s17 + $0x2058] ss:$456 sps:$4 sm:$0xff]   ;;  %v23615_v11 = vld [vmem:[%s27319_s17 + $0x23ec] ss:$456 sps:$4 sm:$0xff]  }
 0x45d   : > { %15350 = vmatprep.subr.bf16.mxu0 %v23558_v10  ;;  %v23610_v10 = vld [vmem:[%s27319_s17 + $0x2060] ss:$456 sps:$4 sm:$0xff]  }
 0x45e   : > { %v26300_v17 = vpop.eup %26299  ;;  %22414 = vmatmul.mubr.msk.bf16.vlgmr.msra.gmra.mrb[20].mxu1 %vm14183_vm8, %v27539_v42 }
 0x45f   : > { %v26302_v19 = vpop.eup %26301  ;;  %v19548_v20 = vadd.f32 1.0, %v26300_v17  ;;  %22416 = vmatmul.mubr.msk.bf16.vlgmr.msra.gmra.mrb[16].mxu0 %vm14183_vm8, %v27539_v42  ;;  %15269 = vmatpush1.bf16.msra.mxu1 %v23553_v12  ;;  %v23618_v12 = vld [vmem:[%s27319_s17 + $0x23f4] ss:$456 sps:$4 sm:$0xff]   ;;  %v23624_v17 = vld [vmem:[%s27319_s17 + $0x2784] ss:$456 sps:$4 sm:$0xff]  }
 0x460   : > { %v26304_v24 = vpop.eup %26303  ;;  %v19549_v26 = vadd.f32 1.0, %v26302_v19  ;;  %15300 = vmatprep.mubr.bf16.mxu1 %v27537_v41  ;;  %15351 = vmatpush1.bf16.msra.mxu0 %v23556_v13  ;;  %v23613_v13 = vld [vmem:[%s27319_s17 + $0x23e8] ss:$456 sps:$4 sm:$0xff]  }
 0x461   : > { %v26306_v29 = vpop.eup %26305  ;;  %26307 = vrcp.f32 %v19548_v20  ;;  %v19550_v31 = vadd.f32 1.0, %v26304_v24  ;;  %15382 = vmatprep.mubr.bf16.mxu0 %v27537_v41  ;;  %15270 = vmatprep.subr.bf16.mxu1 %v23561_v14  ;;  %v23616_v14 = vld [vmem:[%s27319_s17 + $0x23f0] ss:$456 sps:$4 sm:$0xff]   ;;  %v23622_v19 = vld [vmem:[%s27319_s17 + $0x2780] ss:$456 sps:$4 sm:$0xff]  }
 0x462   : > { %26309 = vrcp.f32 %v19549_v26  ;;  %v19551_v32 = vadd.f32 1.0, %v26306_v29  ;;  %15352 = vmatprep.subr.bf16.mxu0 %v23564_v18  ;;  %v23619_v18 = vld [vmem:[%s27319_s17 + $0x2778] ss:$456 sps:$4 sm:$0xff]   ;;  %v23627_v20 = vld [vmem:[%s27319_s17 + $0x2b0c] ss:$456 sps:$4 sm:$0xff]  }
 0x463   : > { %26311 = vrcp.f32 %v19550_v31  ;;  %15271 = vmatpush1.bf16.msra.mxu1 %v23559_v15  ;;  %v23621_v15 = vld [vmem:[%s27319_s17 + $0x277c] ss:$456 sps:$4 sm:$0xff]   ;;  %v23625_v24 = vld [vmem:[%s27319_s17 + $0x2b08] ss:$456 sps:$4 sm:$0xff]   ;;  %v23631_v29 = vld [vmem:[%s27319_s17 + $0x2e98] ss:$456 sps:$4 sm:$0xff]  }
 0x464   : > { %26313 = vrcp.f32 %v19551_v32  ;;  %15353 = vmatpush1.bf16.msra.mxu0 %v23562_v21  ;;  %15272 = vmatprep.subr.bf16.mxu1 %v23567_v27  ;;  %v23630_v21 = vld [vmem:[%s27319_s17 + $0x2b14] ss:$456 sps:$4 sm:$0xff]   ;;  %v23628_v26 = vld [vmem:[%s27319_s17 + $0x2b10] ss:$456 sps:$4 sm:$0xff]   ;;  %v23634_v31 = vld [vmem:[%s27319_s17 + $0x2ea0] ss:$456 sps:$4 sm:$0xff]  }
 0x465   : > { %15354 = vmatprep.subr.bf16.mxu0 %v23570_v28  ;;  %v23633_v27 = vld [vmem:[%s27319_s17 + $0x2e9c] ss:$456 sps:$4 sm:$0xff]   ;;  %v23639_v32 = vld [vmem:[%s27319_s17 + $0x322c] ss:$456 sps:$4 sm:$0xff]  }
 0x466   : > { %v23636_v28 = vld [vmem:[%s27319_s17 + $0x2ea4] ss:$456 sps:$4 sm:$0xff]  }
 0x467   : > { %15273 = vmatpush1.bf16.msra.mxu1 %v23565_v33  ;;  %v23642_v33 = vld [vmem:[%s27319_s17 + $0x3234] ss:$456 sps:$4 sm:$0xff]  }
 0x468   : > { %15355 = vmatpush1.bf16.msra.mxu0 %v23568_v34  ;;  %15274 = vmatprep.subr.bf16.mxu1 %v23573_v35  ;;  %v27996_v34 = vsub.s32 6, %v27450_v63  ;;  %v23637_v35 = vld [vmem:[%s27319_s17 + $0x3228] ss:$456 sps:$4 sm:$0xff]  }
 0x469   : > { %15356 = vmatprep.subr.bf16.mxu0 %v23576_v36  ;;  %v28000_v36 = vsub.s32 7, %v27450_v63 }
 0x46b   : > { %v26308_v44 = vpop.eup %26307  ;;  %15275 = vmatpush1.bf16.msra.mxu1 %v23571_v37  ;;  %v23640_v37 = vld [vmem:[%s27319_s17 + $0x3230] ss:$456 sps:$4 sm:$0xff]  }
 0x46c   : > { %v26310_v46 = vpop.eup %26309  ;;  %15357 = vmatpush1.bf16.msra.mxu0 %v23574_v38  ;;  %15276 = vmatprep.subr.bf16.mxu1 %v23579_v39  ;;  %v28004_v38 = vld [vmem:[%s27786_s21 + $0x8] sm:$0xff]  ;;  %v23645_v39 = vld [vmem:[%s27319_s17 + $0x35bc] ss:$456 sps:$4 sm:$0xff]  }
 0x46d   : > { %v26312_v49 = vpop.eup %26311  ;;  %v19889_v30 = vcombine.low %v26308_v44, %v26310_v46  ;;  %15358 = vmatprep.subr.bf16.mxu0 %v23582_v43  ;;  %v23648_v43 = vld [vmem:[%s27319_s17 + $0x35c4] ss:$456 sps:$4 sm:$0xff]   ;;  %v2932_v63 = vrot.slane %v28004_v38, %v27453_v2 }
 0x46e   : > { %v26314_v51 = vpop.eup %26313  ;;  %v26747_v44 = vld [vmem:[%s27786_s21] sm:$0xff] }
 0x46f   : > { %20003 = vst [vmem:[%s27851_s14 + $0x8] sm:$0xff] %v19889_v30  ;;  %v19890_v52 = vcombine.low %v26312_v49, %v26314_v51  ;;  %15277 = vmatpush1.bf16.msra.mxu1 %v23577_v45  ;;  %v2924_v45 = vrot.slane %v26747_v44, %v27996_v34  ;;  %v2928_v46 = vrot.slane %v26747_v44, %v28000_v36  ;;  %v23646_v49 = vld [vmem:[%s27319_s17 + $0x35c0] ss:$456 sps:$4 sm:$0xff]   ;;  %v23651_v30 = vld [vmem:[%s27319_s17 + $0x394c] ss:$456 sps:$4 sm:$0xff]  }
 0x470   : > { %15359 = vmatpush1.bf16.msra.mxu0 %v23580_v47  ;;  %15278 = vmatprep.subr.bf16.mxu1 %v23585_v48  ;;  %v23643_v47 = vld [vmem:[%s27319_s17 + $0x35b8] ss:$456 sps:$4 sm:$0xff]   ;;  %v2936_v48 = vrot.slane %v28004_v38, %v27456_v3  ;;  %v23654_v51 = vld [vmem:[%s27319_s17 + $0x3954] ss:$456 sps:$4 sm:$0xff]  }
 0x471   : > { %20004 = vst [vmem:[%s27851_s14 + $0x10] sm:$0xff] %v19890_v52  ;;  %15360 = vmatprep.subr.bf16.mxu0 %v23588_v50 }
 0x473   : > { %15279 = vmatpush1.bf16.msra.mxu1 %v23583_v53 }
 0x474   : > { %15361 = vmatpush1.bf16.msra.mxu0 %v23586_v54  ;;  %15280 = vmatprep.subr.bf16.mxu1 %v23591_v55 }
 0x475   : > { %15362 = vmatprep.subr.bf16.mxu0 %v23594_v56 }
 0x477   : > { %15281 = vmatpush1.bf16.msra.mxu1 %v23589_v57 }
 0x478   : > { %15363 = vmatpush1.bf16.msra.mxu0 %v23592_v58  ;;  %15282 = vmatprep.subr.bf16.mxu1 %v23597_v59  ;;  %v23649_v59 = vld [vmem:[%s27319_s17 + $0x3948] ss:$456 sps:$4 sm:$0xff]  }
 0x479   : > { %15364 = vmatprep.subr.bf16.mxu0 %v23600_v60  ;;  %v23652_v60 = vld [vmem:[%s27319_s17 + $0x3950] ss:$456 sps:$4 sm:$0xff]  }
 0x47b   : > { %15283 = vmatpush1.bf16.msra.mxu1 %v23595_v61 }
 0x47c   : > { %15365 = vmatpush1.bf16.msra.mxu0 %v23598_v62  ;;  %15284 = vmatprep.subr.bf16.mxu1 %v23603_v1 }
 0x47d   : > { %15366 = vmatprep.subr.bf16.mxu0 %v23606_v4 }
 0x47f   : > { %15285 = vmatpush1.bf16.msra.mxu1 %v23601_v0  ;;  %v23657_v0 = vld [vmem:[%s27319_s17 + $0x3cdc] ss:$456 sps:$4 sm:$0xff]  }
 0x480   : > { %15367 = vmatpush1.bf16.msra.mxu0 %v23604_v5  ;;  %15286 = vmatprep.subr.bf16.mxu1 %v23609_v6 }
 0x481   : > { %15368 = vmatprep.subr.bf16.mxu0 %v23612_v8 }
 0x483   : > { %15287 = vmatpush1.bf16.msra.mxu1 %v23607_v9  ;;  %v23655_v9 = vld [vmem:[%s27319_s17 + $0x3cd8] ss:$456 sps:$4 sm:$0xff]  }
 0x484   : > { %15369 = vmatpush1.bf16.msra.mxu0 %v23610_v10  ;;  %15288 = vmatprep.subr.bf16.mxu1 %v23615_v11  ;;  %v23660_v10 = vld [vmem:[%s27319_s17 + $0x3ce4] ss:$456 sps:$4 sm:$0xff]  }
 0x485   : > { %15370 = vmatprep.subr.bf16.mxu0 %v23618_v12 }
 0x487   : > { %15289 = vmatpush1.bf16.msra.mxu1 %v23613_v13  ;;  %v23661_v13 = vld [vmem:[%s27319_s17 + $0x406c] ss:$456 sps:$4 sm:$0x3f]  }
 0x488   : > { %15371 = vmatpush1.bf16.msra.mxu0 %v23616_v14  ;;  %15290 = vmatprep.subr.bf16.mxu1 %v23621_v15 }
 0x489   : > { %15372 = vmatprep.subr.bf16.mxu0 %v23624_v17  ;;  %v23658_v17 = vld [vmem:[%s27319_s17 + $0x3ce0] ss:$456 sps:$4 sm:$0xff]  }
 0x48b   : > { %15291 = vmatpush1.bf16.msra.mxu1 %v23619_v18 }
 0x48c   : > { %15373 = vmatpush1.bf16.msra.mxu0 %v23622_v19  ;;  %15292 = vmatprep.subr.bf16.mxu1 %v23627_v20  ;;  %v23663_v19 = vld [vmem:[%s27319_s17 + $0x4068] ss:$456 sps:$4 sm:$0x3f]   ;;  %v23664_v20 = vld [vmem:[%s27319_s17 + $0x4074] ss:$456 sps:$4 sm:$0x3f]  }
 0x48d   : > { %15374 = vmatprep.subr.bf16.mxu0 %v23630_v21  ;;  %v23666_v21 = vld [vmem:[%s27319_s17 + $0x4070] ss:$456 sps:$4 sm:$0x3f]  }
 0x48f   : > { %15293 = vmatpush1.bf16.msra.mxu1 %v23625_v24  ;;  %v14243_v24 = vsel %vm14187_vm7, %v23663_v19, 0  ;;  %v23717_v19 = vld [vmem:[%s27319_s17 + $0x1cdc] ss:$456 sps:$4 sm:$0xff]  }
 0x490   : > { %15375 = vmatpush1.bf16.msra.mxu0 %v23628_v26  ;;  %15294 = vmatprep.subr.bf16.mxu1 %v23633_v27  ;;  %v23669_v26 = vld [vmem:[%s27319_s17 + $0x5c] ss:$456 sps:$4 sm:$0xff]   ;;  %v14249_v27 = vsel %vm14187_vm7, %v23666_v21, 0  ;;  %v23715_v21 = vld [vmem:[%s27319_s17 + $0x1cd8] ss:$456 sps:$4 sm:$0xff]  }
 0x491   : > { %15376 = vmatprep.subr.bf16.mxu0 %v23636_v28  ;;  %v23672_v28 = vld [vmem:[%s27319_s17 + $0x64] ss:$456 sps:$4 sm:$0xff]  }
 0x493   : > { %15295 = vmatpush1.bf16.msra.mxu1 %v23631_v29  ;;  %v23667_v29 = vld [vmem:[%s27319_s17 + $0x58] ss:$456 sps:$4 sm:$0xff]  }
 0x494   : > { %15377 = vmatpush1.bf16.msra.mxu0 %v23634_v31  ;;  %15296 = vmatprep.subr.bf16.mxu1 %v23639_v32  ;;  %v23670_v31 = vld [vmem:[%s27319_s17 + $0x60] ss:$456 sps:$4 sm:$0xff]   ;;  %v23675_v32 = vld [vmem:[%s27319_s17 + $0x3ec] ss:$456 sps:$4 sm:$0xff]  }
 0x495   : > { %15378 = vmatprep.subr.bf16.mxu0 %v23642_v33 }
 0x497   : > { %15297 = vmatpush1.bf16.msra.mxu1 %v23637_v35  ;;  %v23678_v35 = vld [vmem:[%s27319_s17 + $0x3f4] ss:$456 sps:$4 sm:$0xff]  }
 0x498   : > { %15379 = vmatpush1.bf16.msra.mxu0 %v23640_v37  ;;  %15298 = vmatprep.subr.bf16.mxu1 %v23645_v39 }
 0x499   : > { %v14851_v50 = vpop.f32.mrb[12].mxu1  ;;  %15380 = vmatprep.subr.bf16.mxu0 %v23648_v43  ;;  %v23673_v43 = vld [vmem:[%s27319_s17 + $0x3e8] ss:$456 sps:$4 sm:$0xff]  }
 0x49a   : > { %v22616_v52 = vadd.f32 %v14851_v50, %v2924_v45  ;;  %v14853_v53 = vpop.f32.mrb[13].mxu1  ;;  %v14933_v54 = vpop.f32.mrb[8].mxu0  ;;  %v23679_v50 = vld [vmem:[%s27319_s17 + $0x778] ss:$456 sps:$4 sm:$0xff]  }
 0x49b   : > { %v22617_v55 = vadd.f32 %v14853_v53, %v2928_v46  ;;  %v22618_v56 = vadd.f32 %v14933_v54, %v2932_v63  ;;  %v14855_v57 = vpop.f32.mrb[14].mxu1  ;;  %v14935_v58 = vpop.f32.mrb[9].mxu0  ;;  %15299 = vmatpush1.bf16.msra.mxu1 %v23643_v47  ;;  %v23676_v46 = vld [vmem:[%s27319_s17 + $0x3f0] ss:$456 sps:$4 sm:$0xff]   ;;  %v23681_v63 = vld [vmem:[%s27319_s17 + $0x77c] ss:$456 sps:$4 sm:$0xff]  }
 0x49c   : > { %v19210_v61 = vsub.f32 0.0, %v22616_v52  ;;  %v22619_v62 = vadd.f32 %v14935_v58, %v2936_v48  ;;  %v14856_v1 = vpop.f32.mrb[15].mxu1  ;;  %v14937_v4 = vpop.f32.mrb[10].mxu0  ;;  %15381 = vmatpush1.bf16.msra.mxu0 %v23646_v49  ;;  %15309 = vmatprep.subr.bf16.mxu1 %v23651_v30  ;;  %v23684_v49 = vld [vmem:[%s27319_s17 + $0x784] ss:$456 sps:$4 sm:$0xff]  }
 0x49d   : > { %v19211_v5 = vsub.f32 0.0, %v22617_v55  ;;  %v19212_v6 = vsub.f32 0.0, %v22618_v56  ;;  %v14938_v8 = vpop.f32.mrb[11].mxu0  ;;  %15391 = vmatprep.subr.bf16.mxu0 %v23654_v51  ;;  %v23682_v51 = vld [vmem:[%s27319_s17 + $0x780] ss:$456 sps:$4 sm:$0xff]  }
 0x49e   : > { %v19330_v11 = vmul.f32 1.442695, %v19210_v61  ;;  %v19213_v12 = vsub.f32 0.0, %v22619_v62  ;;  %15301 = vmatmul.mubr.bf16.vlgmr.msra.gmra.mrb[24].mxu1 %v27535_v40  ;;  %v23687_v52 = vld [vmem:[%s27319_s17 + $0xb0c] ss:$456 sps:$4 sm:$0xff]  }
 0x49f   : > { %v19332_v14 = vmul.f32 1.442695, %v19211_v5  ;;  %v19334_v15 = vmul.f32 1.442695, %v19212_v6  ;;  %15310 = vmatpush1.bf16.msra.mxu1 %v23649_v59  ;;  %15383 = vmatmul.mubr.bf16.vlgmr.msra.gmra.mrb[20].mxu0 %v27535_v40  ;;  %v23690_v53 = vld [vmem:[%s27319_s17 + $0xb14] ss:$456 sps:$4 sm:$0xff]  }
 0x4a0   : > { %26315 = vpow2.f32 %v19330_v11  ;;  %v19336_v18 = vmul.f32 1.442695, %v19213_v12  ;;  %15392 = vmatpush1.bf16.msra.mxu0 %v23652_v60  ;;  %15311 = vmatprep.subr.bf16.mxu1 %v23657_v0  ;;  %v23685_v54 = vld [vmem:[%s27319_s17 + $0xb08] ss:$456 sps:$4 sm:$0xff]   ;;  %v23693_v56 = vld [vmem:[%s27319_s17 + $0xe9c] ss:$456 sps:$4 sm:$0xff]  }
 0x4a1   : > { %26317 = vpow2.f32 %v19332_v14  ;;  %15393 = vmatprep.subr.bf16.mxu0 %v23660_v10  ;;  %15341 = vmatprep.mubr.bf16.mxu1 %v27007_v16  ;;  %v23688_v55 = vld [vmem:[%s27319_s17 + $0xb10] ss:$456 sps:$4 sm:$0xff]   ;;  %v23696_v57 = vld [vmem:[%s27319_s17 + $0xea4] ss:$456 sps:$4 sm:$0xff]   ;;  %v23694_v61 = vld [vmem:[%s27319_s17 + $0xea0] ss:$456 sps:$4 sm:$0xff]  }
 0x4a2   : > { %26319 = vpow2.f32 %v19334_v15  ;;  %15423 = vmatprep.mubr.bf16.mxu0 %v27007_v16  ;;  %v23691_v59 = vld [vmem:[%s27319_s17 + $0xe98] ss:$456 sps:$4 sm:$0xff]   ;;  %v23699_v62 = vld [vmem:[%s27319_s17 + $0x122c] ss:$456 sps:$4 sm:$0xff]   ;;  %v23697_v8 = vld [vmem:[%s27319_s17 + $0x1228] ss:$456 sps:$4 sm:$0xff]  }
 0x4a3   : > { %26321 = vpow2.f32 %v19336_v18  ;;  %15312 = vmatpush1.bf16.msra.mxu1 %v23655_v9  ;;  %v23702_v0 = vld [vmem:[%s27319_s17 + $0x1234] ss:$456 sps:$4 sm:$0xff]   ;;  %v23700_v9 = vld [vmem:[%s27319_s17 + $0x1230] ss:$456 sps:$4 sm:$0xff]   ;;  %v23708_v11 = vld [vmem:[%s27319_s17 + $0x15c4] ss:$456 sps:$4 sm:$0xff]  }
 0x4a4   : > { %15394 = vmatpush1.bf16.msra.mxu0 %v23658_v17  ;;  %22417 = vmatprep.subr.msk.bf16.mxu1 %vm14187_vm7, %v23661_v13  ;;  %v23705_v10 = vld [vmem:[%s27319_s17 + $0x15bc] ss:$456 sps:$4 sm:$0xff]   ;;  %v23703_v12 = vld [vmem:[%s27319_s17 + $0x15b8] ss:$456 sps:$4 sm:$0xff]   ;;  %v23711_v14 = vld [vmem:[%s27319_s17 + $0x194c] ss:$456 sps:$4 sm:$0xff]  }
 0x4a5   : > { %22419 = vmatprep.subr.msk.bf16.mxu0 %vm14187_vm7, %v23664_v20  ;;  %v23706_v13 = vld [vmem:[%s27319_s17 + $0x15c0] ss:$456 sps:$4 sm:$0xff]   ;;  %v23714_v15 = vld [vmem:[%s27319_s17 + $0x1954] ss:$456 sps:$4 sm:$0xff]   ;;  %v23712_v18 = vld [vmem:[%s27319_s17 + $0x1950] ss:$456 sps:$4 sm:$0xff]  }
 0x4a6   : > { %v23709_v17 = vld [vmem:[%s27319_s17 + $0x1948] ss:$456 sps:$4 sm:$0xff]   ;;  %v23720_v20 = vld [vmem:[%s27319_s17 + $0x1ce4] ss:$456 sps:$4 sm:$0xff]  }
 0x4a7   : > { %15314 = vmatpush1.bf16.msra.mxu1 %v14243_v24  ;;  %v23718_v24 = vld [vmem:[%s27319_s17 + $0x1ce0] ss:$456 sps:$4 sm:$0xff]  }
 0x4a8   : > { %15396 = vmatpush1.bf16.msra.mxu0 %v14249_v27  ;;  %15432 = vmatprep.subr.bf16.mxu1 %v23669_v26  ;;  %v23723_v26 = vld [vmem:[%s27319_s17 + $0x206c] ss:$456 sps:$4 sm:$0xff]  }
 0x4a9   : > { %15514 = vmatprep.subr.bf16.mxu0 %v23672_v28  ;;  %v23726_v27 = vld [vmem:[%s27319_s17 + $0x2074] ss:$456 sps:$4 sm:$0xff]   ;;  %v23721_v28 = vld [vmem:[%s27319_s17 + $0x2068] ss:$456 sps:$4 sm:$0xff]  }
 0x4aa   : > { %v26316_v33 = vpop.eup %26315  ;;  %22418 = vmatmul.mubr.msk.bf16.vlgmr.msra.gmra.mrb[24].mxu1 %vm14183_vm8, %v27539_v42 }
 0x4ab   : > { %v26318_v37 = vpop.eup %26317  ;;  %v19552_v39 = vadd.f32 1.0, %v26316_v33  ;;  %22420 = vmatmul.mubr.msk.bf16.vlgmr.msra.gmra.mrb[20].mxu0 %vm14183_vm8, %v27539_v42  ;;  %15433 = vmatpush1.bf16.msra.mxu1 %v23667_v29  ;;  %v23724_v29 = vld [vmem:[%s27319_s17 + $0x2070] ss:$456 sps:$4 sm:$0xff]  }
 0x4ac   : > { %v26320_v44 = vpop.eup %26319  ;;  %v19553_v45 = vadd.f32 1.0, %v26318_v37  ;;  %15464 = vmatprep.mubr.bf16.mxu1 %v27537_v41  ;;  %15515 = vmatpush1.bf16.msra.mxu0 %v23670_v31  ;;  %v23729_v31 = vld [vmem:[%s27319_s17 + $0x23fc] ss:$456 sps:$4 sm:$0xff]   ;;  %v23727_v33 = vld [vmem:[%s27319_s17 + $0x23f8] ss:$456 sps:$4 sm:$0xff]  }
 0x4ad   : > { %v26322_v47 = vpop.eup %26321  ;;  %26323 = vrcp.f32 %v19552_v39  ;;  %v19554_v48 = vadd.f32 1.0, %v26320_v44  ;;  %15546 = vmatprep.mubr.bf16.mxu0 %v27537_v41  ;;  %15434 = vmatprep.subr.bf16.mxu1 %v23675_v32  ;;  %v23732_v32 = vld [vmem:[%s27319_s17 + $0x2404] ss:$456 sps:$4 sm:$0xff]   ;;  %v23738_v39 = vld [vmem:[%s27319_s17 + $0x2794] ss:$456 sps:$4 sm:$0xff]  }
 0x4ae   : > { %26325 = vrcp.f32 %v19553_v45  ;;  %v19555_v30 = vadd.f32 1.0, %v26322_v47  ;;  %15516 = vmatprep.subr.bf16.mxu0 %v23678_v35  ;;  %v23730_v35 = vld [vmem:[%s27319_s17 + $0x2400] ss:$456 sps:$4 sm:$0xff]   ;;  %v23735_v37 = vld [vmem:[%s27319_s17 + $0x278c] ss:$456 sps:$4 sm:$0xff]  }
 0x4af   : > { %26327 = vrcp.f32 %v19554_v48  ;;  %15435 = vmatpush1.bf16.msra.mxu1 %v23673_v43  ;;  %v23733_v43 = vld [vmem:[%s27319_s17 + $0x2788] ss:$456 sps:$4 sm:$0xff]   ;;  %v23741_v45 = vld [vmem:[%s27319_s17 + $0x2b1c] ss:$456 sps:$4 sm:$0xff]   ;;  %v23747_v48 = vld [vmem:[%s27319_s17 + $0x2eac] ss:$456 sps:$4 sm:$0xff]  }
 0x4b0   : > { %26329 = vrcp.f32 %v19555_v30  ;;  %15517 = vmatpush1.bf16.msra.mxu0 %v23676_v46  ;;  %15436 = vmatprep.subr.bf16.mxu1 %v23681_v63  ;;  %v23736_v44 = vld [vmem:[%s27319_s17 + $0x2790] ss:$456 sps:$4 sm:$0xff]   ;;  %v23744_v46 = vld [vmem:[%s27319_s17 + $0x2b24] ss:$456 sps:$4 sm:$0xff]   ;;  %v23742_v47 = vld [vmem:[%s27319_s17 + $0x2b20] ss:$456 sps:$4 sm:$0xff]  }
 0x4b1   : > { %15518 = vmatprep.subr.bf16.mxu0 %v23684_v49  ;;  %v23739_v63 = vld [vmem:[%s27319_s17 + $0x2b18] ss:$456 sps:$4 sm:$0xff]   ;;  %v23750_v49 = vld [vmem:[%s27319_s17 + $0x2eb4] ss:$456 sps:$4 sm:$0xff]   ;;  %v23745_v30 = vld [vmem:[%s27319_s17 + $0x2ea8] ss:$456 sps:$4 sm:$0xff]  }
 0x4b3   : > { %15437 = vmatpush1.bf16.msra.mxu1 %v23679_v50  ;;  %v23748_v50 = vld [vmem:[%s27319_s17 + $0x2eb0] ss:$456 sps:$4 sm:$0xff]  }
 0x4b4   : > { %15519 = vmatpush1.bf16.msra.mxu0 %v23682_v51  ;;  %15438 = vmatprep.subr.bf16.mxu1 %v23687_v52  ;;  %v23753_v51 = vld [vmem:[%s27319_s17 + $0x323c] ss:$456 sps:$4 sm:$0xff]  }
 0x4b5   : > { %15520 = vmatprep.subr.bf16.mxu0 %v23690_v53  ;;  %v23756_v52 = vld [vmem:[%s27319_s17 + $0x3244] ss:$456 sps:$4 sm:$0xff]   ;;  %v23751_v53 = vld [vmem:[%s27319_s17 + $0x3238] ss:$456 sps:$4 sm:$0xff]  }
 0x4b7   : > { %v26324_v58 = vpop.eup %26323  ;;  %15439 = vmatpush1.bf16.msra.mxu1 %v23685_v54  ;;  %v23754_v54 = vld [vmem:[%s27319_s17 + $0x3240] ss:$456 sps:$4 sm:$0xff]  }
 0x4b8   : > { %v26326_v60 = vpop.eup %26325  ;;  %15521 = vmatpush1.bf16.msra.mxu0 %v23688_v55  ;;  %15440 = vmatprep.subr.bf16.mxu1 %v23693_v56  ;;  %v23759_v55 = vld [vmem:[%s27319_s17 + $0x35cc] ss:$456 sps:$4 sm:$0xff]  }
 0x4b9   : > { %v26328_v1 = vpop.eup %26327  ;;  %v19891_v4 = vcombine.low %v26324_v58, %v26326_v60  ;;  %15522 = vmatprep.subr.bf16.mxu0 %v23696_v57  ;;  %v23762_v56 = vld [vmem:[%s27319_s17 + $0x35d4] ss:$456 sps:$4 sm:$0xff]   ;;  %v2940_v57 = vrot.slane %v28004_v38, %v27461_v7  ;;  %v2944_v58 = vrot.slane %v28004_v38, %v27889_v22  ;;  %v23757_v60 = vld [vmem:[%s27319_s17 + $0x35c8] ss:$456 sps:$4 sm:$0xff]  }
 0x4ba   : > { %v26330_v5 = vpop.eup %26329 }
 0x4bb   : > { %20005 = vst [vmem:[%s27851_s14 + $0x18] sm:$0xff] %v19891_v4  ;;  %v19892_v6 = vcombine.low %v26328_v1, %v26330_v5  ;;  %15441 = vmatpush1.bf16.msra.mxu1 %v23691_v59  ;;  %v2948_v59 = vrot.slane %v28004_v38, %v27892_v23  ;;  %v23765_v1 = vld [vmem:[%s27319_s17 + $0x395c] ss:$456 sps:$4 sm:$0xff]  }
 0x4bc   : > { %15523 = vmatpush1.bf16.msra.mxu0 %v23694_v61  ;;  %15442 = vmatprep.subr.bf16.mxu1 %v23699_v62  ;;  %v2952_v61 = vrot.slane %v28004_v38, %v27896_v25  ;;  %v23760_v62 = vld [vmem:[%s27319_s17 + $0x35d0] ss:$456 sps:$4 sm:$0xff]  }
 0x4bd   : > { %20006 = vst [vmem:[%s27851_s14 + $0x20] sm:$0xff] %v19892_v6  ;;  %15524 = vmatprep.subr.bf16.mxu0 %v23702_v0  ;;  %v23768_v0 = vld [vmem:[%s27319_s17 + $0x3964] ss:$456 sps:$4 sm:$0xff]  }
 0x4bf   : > { %15443 = vmatpush1.bf16.msra.mxu1 %v23697_v8 }
 0x4c0   : > { %15525 = vmatpush1.bf16.msra.mxu0 %v23700_v9  ;;  %15444 = vmatprep.subr.bf16.mxu1 %v23705_v10 }
 0x4c1   : > { %15526 = vmatprep.subr.bf16.mxu0 %v23708_v11 }
 0x4c3   : > { %15445 = vmatpush1.bf16.msra.mxu1 %v23703_v12 }
 0x4c4   : > { %15527 = vmatpush1.bf16.msra.mxu0 %v23706_v13  ;;  %15446 = vmatprep.subr.bf16.mxu1 %v23711_v14  ;;  %v23763_v13 = vld [vmem:[%s27319_s17 + $0x3958] ss:$456 sps:$4 sm:$0xff]  }
 0x4c5   : > { %15528 = vmatprep.subr.bf16.mxu0 %v23714_v15  ;;  %v23766_v14 = vld [vmem:[%s27319_s17 + $0x3960] ss:$456 sps:$4 sm:$0xff]  }
 0x4c7   : > { %15447 = vmatpush1.bf16.msra.mxu1 %v23709_v17 }
 0x4c8   : > { %15529 = vmatpush1.bf16.msra.mxu0 %v23712_v18  ;;  %15448 = vmatprep.subr.bf16.mxu1 %v23717_v19 }
 0x4c9   : > { %15530 = vmatprep.subr.bf16.mxu0 %v23720_v20  ;;  %v23771_v20 = vld [vmem:[%s27319_s17 + $0x3cec] ss:$456 sps:$4 sm:$0xff]  }
 0x4cb   : > { %15449 = vmatpush1.bf16.msra.mxu1 %v23715_v21 }
 0x4cc   : > { %15531 = vmatpush1.bf16.msra.mxu0 %v23718_v24  ;;  %15450 = vmatprep.subr.bf16.mxu1 %v23723_v26 }
 0x4cd   : > { %15532 = vmatprep.subr.bf16.mxu0 %v23726_v27  ;;  %v23769_v27 = vld [vmem:[%s27319_s17 + $0x3ce8] ss:$456 sps:$4 sm:$0xff]  }
 0x4cf   : > { %15451 = vmatpush1.bf16.msra.mxu1 %v23721_v28  ;;  %v23774_v28 = vld [vmem:[%s27319_s17 + $0x3cf4] ss:$456 sps:$4 sm:$0xff]  }
 0x4d0   : > { %15533 = vmatpush1.bf16.msra.mxu0 %v23724_v29  ;;  %15452 = vmatprep.subr.bf16.mxu1 %v23729_v31 }
 0x4d1   : > { %15534 = vmatprep.subr.bf16.mxu0 %v23732_v32  ;;  %v23775_v32 = vld [vmem:[%s27319_s17 + $0x407c] ss:$456 sps:$4 sm:$0x3f]  }
 0x4d3   : > { %15453 = vmatpush1.bf16.msra.mxu1 %v23727_v33 }
 0x4d4   : > { %15535 = vmatpush1.bf16.msra.mxu0 %v23730_v35  ;;  %15454 = vmatprep.subr.bf16.mxu1 %v23735_v37  ;;  %v23772_v37 = vld [vmem:[%s27319_s17 + $0x3cf0] ss:$456 sps:$4 sm:$0xff]  }
 0x4d5   : > { %15536 = vmatprep.subr.bf16.mxu0 %v23738_v39 }
 0x4d7   : > { %15455 = vmatpush1.bf16.msra.mxu1 %v23733_v43  ;;  %v23777_v43 = vld [vmem:[%s27319_s17 + $0x4078] ss:$456 sps:$4 sm:$0x3f]  }
 0x4d8   : > { %15537 = vmatpush1.bf16.msra.mxu0 %v23736_v44  ;;  %15456 = vmatprep.subr.bf16.mxu1 %v23741_v45  ;;  %v23778_v44 = vld [vmem:[%s27319_s17 + $0x4084] ss:$456 sps:$4 sm:$0x3f]   ;;  %v23780_v45 = vld [vmem:[%s27319_s17 + $0x4080] ss:$456 sps:$4 sm:$0x3f]  }
 0x4d9   : > { %15538 = vmatprep.subr.bf16.mxu0 %v23744_v46  ;;  %v14255_v46 = vsel %vm14187_vm7, %v23777_v43, 0  ;;  %v23831_v43 = vld [vmem:[%s27319_s17 + $0x1cec] ss:$456 sps:$4 sm:$0xff]  }
 0x4db   : > { %15457 = vmatpush1.bf16.msra.mxu1 %v23739_v63  ;;  %v23783_v63 = vld [vmem:[%s27319_s17 + $0x6c] ss:$456 sps:$4 sm:$0xff]  }
 0x4dc   : > { %15539 = vmatpush1.bf16.msra.mxu0 %v23742_v47  ;;  %15458 = vmatprep.subr.bf16.mxu1 %v23747_v48  ;;  %v14261_v47 = vsel %vm14187_vm7, %v23780_v45, 0  ;;  %v23786_v48 = vld [vmem:[%s27319_s17 + $0x74] ss:$456 sps:$4 sm:$0xff]   ;;  %v23829_v45 = vld [vmem:[%s27319_s17 + $0x1ce8] ss:$456 sps:$4 sm:$0xff]  }
 0x4dd   : > { %15540 = vmatprep.subr.bf16.mxu0 %v23750_v49  ;;  %v23781_v49 = vld [vmem:[%s27319_s17 + $0x68] ss:$456 sps:$4 sm:$0xff]  }
 0x4df   : > { %15459 = vmatpush1.bf16.msra.mxu1 %v23745_v30  ;;  %v23784_v30 = vld [vmem:[%s27319_s17 + $0x70] ss:$456 sps:$4 sm:$0xff]  }
 0x4e0   : > { %15541 = vmatpush1.bf16.msra.mxu0 %v23748_v50  ;;  %15460 = vmatprep.subr.bf16.mxu1 %v23753_v51  ;;  %v23789_v50 = vld [vmem:[%s27319_s17 + $0x3fc] ss:$456 sps:$4 sm:$0xff]  }
 0x4e1   : > { %15542 = vmatprep.subr.bf16.mxu0 %v23756_v52  ;;  %v23792_v52 = vld [vmem:[%s27319_s17 + $0x404] ss:$456 sps:$4 sm:$0xff]  }
 0x4e3   : > { %15461 = vmatpush1.bf16.msra.mxu1 %v23751_v53 }
 0x4e4   : > { %15543 = vmatpush1.bf16.msra.mxu0 %v23754_v54  ;;  %15462 = vmatprep.subr.bf16.mxu1 %v23759_v55  ;;  %v23787_v55 = vld [vmem:[%s27319_s17 + $0x3f8] ss:$456 sps:$4 sm:$0xff]  }
 0x4e5   : > { %v15015_v4 = vpop.f32.mrb[16].mxu1  ;;  %15544 = vmatprep.subr.bf16.mxu0 %v23762_v56 }
 0x4e6   : > { %v22620_v5 = vadd.f32 %v15015_v4, %v2940_v57  ;;  %v15017_v6 = vpop.f32.mrb[17].mxu1  ;;  %v15097_v8 = vpop.f32.mrb[12].mxu0  ;;  %v23793_v4 = vld [vmem:[%s27319_s17 + $0x788] ss:$456 sps:$4 sm:$0xff]  }
 0x4e7   : > { %v22621_v9 = vadd.f32 %v15017_v6, %v2944_v58  ;;  %v22622_v10 = vadd.f32 %v15097_v8, %v2948_v59  ;;  %v15019_v11 = vpop.f32.mrb[18].mxu1  ;;  %v15099_v12 = vpop.f32.mrb[13].mxu0  ;;  %15463 = vmatpush1.bf16.msra.mxu1 %v23757_v60  ;;  %v23790_v58 = vld [vmem:[%s27319_s17 + $0x400] ss:$456 sps:$4 sm:$0xff]   ;;  %v23795_v59 = vld [vmem:[%s27319_s17 + $0x78c] ss:$456 sps:$4 sm:$0xff]  }
 0x4e8   : > { %v19214_v15 = vsub.f32 0.0, %v22620_v5  ;;  %v22623_v17 = vadd.f32 %v15099_v12, %v2952_v61  ;;  %v15020_v18 = vpop.f32.mrb[19].mxu1  ;;  %v15101_v19 = vpop.f32.mrb[14].mxu0  ;;  %15545 = vmatpush1.bf16.msra.mxu0 %v23760_v62  ;;  %15473 = vmatprep.subr.bf16.mxu1 %v23765_v1  ;;  %v23798_v62 = vld [vmem:[%s27319_s17 + $0x794] ss:$456 sps:$4 sm:$0xff]  }
 0x4e9   : > { %v19215_v21 = vsub.f32 0.0, %v22621_v9  ;;  %v19216_v24 = vsub.f32 0.0, %v22622_v10  ;;  %v15102_v26 = vpop.f32.mrb[15].mxu0  ;;  %15555 = vmatprep.subr.bf16.mxu0 %v23768_v0  ;;  %v23796_v0 = vld [vmem:[%s27319_s17 + $0x790] ss:$456 sps:$4 sm:$0xff]  }
 0x4ea   : > { %v19338_v29 = vmul.f32 1.442695, %v19214_v15  ;;  %v19217_v31 = vsub.f32 0.0, %v22623_v17  ;;  %15465 = vmatmul.mubr.bf16.vlgmr.msra.gmra.mrb[28].mxu1 %v27535_v40  ;;  %v23801_v5 = vld [vmem:[%s27319_s17 + $0xb1c] ss:$456 sps:$4 sm:$0xff]  }
 0x4eb   : > { %v19340_v33 = vmul.f32 1.442695, %v19215_v21  ;;  %v19342_v35 = vmul.f32 1.442695, %v19216_v24  ;;  %15474 = vmatpush1.bf16.msra.mxu1 %v23763_v13  ;;  %15547 = vmatmul.mubr.bf16.vlgmr.msra.gmra.mrb[24].mxu0 %v27535_v40  ;;  %v23804_v6 = vld [vmem:[%s27319_s17 + $0xb24] ss:$456 sps:$4 sm:$0xff]  }
 0x4ec   : > { %26331 = vpow2.f32 %v19338_v29  ;;  %v19344_v39 = vmul.f32 1.442695, %v19217_v31  ;;  %15556 = vmatpush1.bf16.msra.mxu0 %v23766_v14  ;;  %15475 = vmatprep.subr.bf16.mxu1 %v23771_v20  ;;  %v23799_v8 = vld [vmem:[%s27319_s17 + $0xb18] ss:$456 sps:$4 sm:$0xff]   ;;  %v23807_v10 = vld [vmem:[%s27319_s17 + $0xeac] ss:$456 sps:$4 sm:$0xff]  }
 0x4ed   : > { %26333 = vpow2.f32 %v19340_v33  ;;  %15557 = vmatprep.subr.bf16.mxu0 %v23774_v28  ;;  %15505 = vmatprep.mubr.bf16.mxu1 %v27007_v16  ;;  %v23802_v9 = vld [vmem:[%s27319_s17 + $0xb20] ss:$456 sps:$4 sm:$0xff]   ;;  %v23810_v11 = vld [vmem:[%s27319_s17 + $0xeb4] ss:$456 sps:$4 sm:$0xff]   ;;  %v23808_v15 = vld [vmem:[%s27319_s17 + $0xeb0] ss:$456 sps:$4 sm:$0xff]  }
 0x4ee   : > { %26335 = vpow2.f32 %v19342_v35  ;;  %15587 = vmatprep.mubr.bf16.mxu0 %v27007_v16  ;;  %v23805_v13 = vld [vmem:[%s27319_s17 + $0xea8] ss:$456 sps:$4 sm:$0xff]   ;;  %v23813_v17 = vld [vmem:[%s27319_s17 + $0x123c] ss:$456 sps:$4 sm:$0xff]   ;;  %v23811_v26 = vld [vmem:[%s27319_s17 + $0x1238] ss:$456 sps:$4 sm:$0xff]  }
 0x4ef   : > { %26337 = vpow2.f32 %v19344_v39  ;;  %15476 = vmatpush1.bf16.msra.mxu1 %v23769_v27  ;;  %v23816_v20 = vld [vmem:[%s27319_s17 + $0x1244] ss:$456 sps:$4 sm:$0xff]   ;;  %v23814_v27 = vld [vmem:[%s27319_s17 + $0x1240] ss:$456 sps:$4 sm:$0xff]   ;;  %v23822_v29 = vld [vmem:[%s27319_s17 + $0x15d4] ss:$456 sps:$4 sm:$0xff]  }
 0x4f0   : > { %15558 = vmatpush1.bf16.msra.mxu0 %v23772_v37  ;;  %22421 = vmatprep.subr.msk.bf16.mxu1 %vm14187_vm7, %v23775_v32  ;;  %v23819_v28 = vld [vmem:[%s27319_s17 + $0x15cc] ss:$456 sps:$4 sm:$0xff]   ;;  %v23817_v31 = vld [vmem:[%s27319_s17 + $0x15c8] ss:$456 sps:$4 sm:$0xff]   ;;  %v23825_v33 = vld [vmem:[%s27319_s17 + $0x195c] ss:$456 sps:$4 sm:$0xff]  }
 0x4f1   : > { %22423 = vmatprep.subr.msk.bf16.mxu0 %vm14187_vm7, %v23778_v44  ;;  %v23820_v32 = vld [vmem:[%s27319_s17 + $0x15d0] ss:$456 sps:$4 sm:$0xff]   ;;  %v23828_v35 = vld [vmem:[%s27319_s17 + $0x1964] ss:$456 sps:$4 sm:$0xff]   ;;  %v23826_v39 = vld [vmem:[%s27319_s17 + $0x1960] ss:$456 sps:$4 sm:$0xff]  }
 0x4f2   : > { %v23823_v37 = vld [vmem:[%s27319_s17 + $0x1958] ss:$456 sps:$4 sm:$0xff]   ;;  %v23834_v44 = vld [vmem:[%s27319_s17 + $0x1cf4] ss:$456 sps:$4 sm:$0xff]  }
 0x4f3   : > { %15478 = vmatpush1.bf16.msra.mxu1 %v14255_v46  ;;  %v23832_v46 = vld [vmem:[%s27319_s17 + $0x1cf0] ss:$456 sps:$4 sm:$0xff]  }
 0x4f4   : > { %15560 = vmatpush1.bf16.msra.mxu0 %v14261_v47  ;;  %15596 = vmatprep.subr.bf16.mxu1 %v23783_v63  ;;  %v23837_v63 = vld [vmem:[%s27319_s17 + $0x207c] ss:$456 sps:$4 sm:$0xff]  }
 0x4f5   : > { %15678 = vmatprep.subr.bf16.mxu0 %v23786_v48  ;;  %v23840_v47 = vld [vmem:[%s27319_s17 + $0x2084] ss:$456 sps:$4 sm:$0xff]   ;;  %v23835_v48 = vld [vmem:[%s27319_s17 + $0x2078] ss:$456 sps:$4 sm:$0xff]  }
 0x4f6   : > { %v26332_v51 = vpop.eup %26331  ;;  %22422 = vmatmul.mubr.msk.bf16.vlgmr.msra.gmra.mrb[28].mxu1 %vm14183_vm8, %v27539_v42 }
 0x4f7   : > { %v26334_v53 = vpop.eup %26333  ;;  %v19556_v54 = vadd.f32 1.0, %v26332_v51  ;;  %22424 = vmatmul.mubr.msk.bf16.vlgmr.msra.gmra.mrb[24].mxu0 %vm14183_vm8, %v27539_v42  ;;  %15597 = vmatpush1.bf16.msra.mxu1 %v23781_v49  ;;  %v23838_v49 = vld [vmem:[%s27319_s17 + $0x2080] ss:$456 sps:$4 sm:$0xff]  }
 0x4f8   : > { %v26336_v56 = vpop.eup %26335  ;;  %v19557_v57 = vadd.f32 1.0, %v26334_v53  ;;  %15628 = vmatprep.mubr.bf16.mxu1 %v27537_v41  ;;  %15679 = vmatpush1.bf16.msra.mxu0 %v23784_v30  ;;  %v23843_v30 = vld [vmem:[%s27319_s17 + $0x240c] ss:$456 sps:$4 sm:$0xff]   ;;  %v23841_v51 = vld [vmem:[%s27319_s17 + $0x2408] ss:$456 sps:$4 sm:$0xff]  }
 0x4f9   : > { %v26338_v60 = vpop.eup %26337  ;;  %26339 = vrcp.f32 %v19556_v54  ;;  %v19558_v61 = vadd.f32 1.0, %v26336_v56  ;;  %15710 = vmatprep.mubr.bf16.mxu0 %v27537_v41  ;;  %15598 = vmatprep.subr.bf16.mxu1 %v23789_v50  ;;  %v23846_v50 = vld [vmem:[%s27319_s17 + $0x2414] ss:$456 sps:$4 sm:$0xff]   ;;  %v23852_v54 = vld [vmem:[%s27319_s17 + $0x27a4] ss:$456 sps:$4 sm:$0xff]  }
 0x4fa   : > { %26341 = vrcp.f32 %v19557_v57  ;;  %v19559_v1 = vadd.f32 1.0, %v26338_v60  ;;  %15680 = vmatprep.subr.bf16.mxu0 %v23792_v52  ;;  %v23844_v52 = vld [vmem:[%s27319_s17 + $0x2410] ss:$456 sps:$4 sm:$0xff]   ;;  %v23849_v53 = vld [vmem:[%s27319_s17 + $0x279c] ss:$456 sps:$4 sm:$0xff]  }
 0x4fb   : > { %26343 = vrcp.f32 %v19558_v61  ;;  %15599 = vmatpush1.bf16.msra.mxu1 %v23787_v55  ;;  %v23847_v55 = vld [vmem:[%s27319_s17 + $0x2798] ss:$456 sps:$4 sm:$0xff]   ;;  %v23855_v57 = vld [vmem:[%s27319_s17 + $0x2b2c] ss:$456 sps:$4 sm:$0xff]   ;;  %v23861_v61 = vld [vmem:[%s27319_s17 + $0x2ebc] ss:$456 sps:$4 sm:$0xff]  }
 0x4fc   : > { %26345 = vrcp.f32 %v19559_v1  ;;  %15681 = vmatpush1.bf16.msra.mxu0 %v23790_v58  ;;  %15600 = vmatprep.subr.bf16.mxu1 %v23795_v59  ;;  %v23850_v56 = vld [vmem:[%s27319_s17 + $0x27a0] ss:$456 sps:$4 sm:$0xff]   ;;  %v23858_v58 = vld [vmem:[%s27319_s17 + $0x2b34] ss:$456 sps:$4 sm:$0xff]   ;;  %v23856_v60 = vld [vmem:[%s27319_s17 + $0x2b30] ss:$456 sps:$4 sm:$0xff]  }
 0x4fd   : > { %15682 = vmatprep.subr.bf16.mxu0 %v23798_v62  ;;  %v23853_v59 = vld [vmem:[%s27319_s17 + $0x2b28] ss:$456 sps:$4 sm:$0xff]   ;;  %v23864_v62 = vld [vmem:[%s27319_s17 + $0x2ec4] ss:$456 sps:$4 sm:$0xff]   ;;  %v23859_v1 = vld [vmem:[%s27319_s17 + $0x2eb8] ss:$456 sps:$4 sm:$0xff]  }
 0x4ff   : > { %15601 = vmatpush1.bf16.msra.mxu1 %v23793_v4  ;;  %v23862_v4 = vld [vmem:[%s27319_s17 + $0x2ec0] ss:$456 sps:$4 sm:$0xff]  }
 0x500   : > { %15683 = vmatpush1.bf16.msra.mxu0 %v23796_v0  ;;  %15602 = vmatprep.subr.bf16.mxu1 %v23801_v5  ;;  %v23867_v0 = vld [vmem:[%s27319_s17 + $0x324c] ss:$456 sps:$4 sm:$0xff]  }
 0x501   : > { %15684 = vmatprep.subr.bf16.mxu0 %v23804_v6  ;;  %v23870_v5 = vld [vmem:[%s27319_s17 + $0x3254] ss:$456 sps:$4 sm:$0xff]   ;;  %v23865_v6 = vld [vmem:[%s27319_s17 + $0x3248] ss:$456 sps:$4 sm:$0xff]  }
 0x503   : > { %v26340_v12 = vpop.eup %26339  ;;  %15603 = vmatpush1.bf16.msra.mxu1 %v23799_v8  ;;  %v23868_v8 = vld [vmem:[%s27319_s17 + $0x3250] ss:$456 sps:$4 sm:$0xff]  }
 0x504   : > { %v26342_v14 = vpop.eup %26341  ;;  %15685 = vmatpush1.bf16.msra.mxu0 %v23802_v9  ;;  %15604 = vmatprep.subr.bf16.mxu1 %v23807_v10  ;;  %v28206_v9 = vld [vmem:[%s27786_s21 + $0x10] sm:$0xff]  ;;  %v23873_v10 = vld [vmem:[%s27319_s17 + $0x35dc] ss:$456 sps:$4 sm:$0xff]  }
 0x505   : > { %v26344_v18 = vpop.eup %26343  ;;  %v19893_v19 = vcombine.low %v26340_v12, %v26342_v14  ;;  %15686 = vmatprep.subr.bf16.mxu0 %v23810_v11  ;;  %v23876_v11 = vld [vmem:[%s27319_s17 + $0x35e4] ss:$456 sps:$4 sm:$0xff]   ;;  %v2956_v12 = vrot.slane %v28004_v38, %v27996_v34  ;;  %v2964_v14 = vrot.slane %v28206_v9, %v27453_v2 }
 0x506   : > { %v26346_v21 = vpop.eup %26345 }
 0x507   : > { %20007 = vst [vmem:[%s27851_s14 + $0x28] sm:$0xff] %v19893_v19  ;;  %v19894_v24 = vcombine.low %v26344_v18, %v26346_v21  ;;  %15605 = vmatpush1.bf16.msra.mxu1 %v23805_v13  ;;  %v2960_v13 = vrot.slane %v28004_v38, %v28000_v36  ;;  %v23874_v18 = vld [vmem:[%s27319_s17 + $0x35e0] ss:$456 sps:$4 sm:$0xff]   ;;  %v23879_v19 = vld [vmem:[%s27319_s17 + $0x396c] ss:$456 sps:$4 sm:$0xff]  }
 0x508   : > { %15687 = vmatpush1.bf16.msra.mxu0 %v23808_v15  ;;  %15606 = vmatprep.subr.bf16.mxu1 %v23813_v17  ;;  %v23871_v15 = vld [vmem:[%s27319_s17 + $0x35d8] ss:$456 sps:$4 sm:$0xff]   ;;  %v2968_v17 = vrot.slane %v28206_v9, %v27456_v3  ;;  %v23882_v21 = vld [vmem:[%s27319_s17 + $0x3974] ss:$456 sps:$4 sm:$0xff]  }
 0x509   : > { %20008 = vst [vmem:[%s27851_s14 + $0x30] sm:$0xff] %v19894_v24  ;;  %15688 = vmatprep.subr.bf16.mxu0 %v23816_v20 }
 0x50b   : > { %15607 = vmatpush1.bf16.msra.mxu1 %v23811_v26 }
 0x50c   : > { %15689 = vmatpush1.bf16.msra.mxu0 %v23814_v27  ;;  %15608 = vmatprep.subr.bf16.mxu1 %v23819_v28 }
 0x50d   : > { %15690 = vmatprep.subr.bf16.mxu0 %v23822_v29 }
 0x50f   : > { %15609 = vmatpush1.bf16.msra.mxu1 %v23817_v31 }
 0x510   : > { %15691 = vmatpush1.bf16.msra.mxu0 %v23820_v32  ;;  %15610 = vmatprep.subr.bf16.mxu1 %v23825_v33  ;;  %v23877_v32 = vld [vmem:[%s27319_s17 + $0x3968] ss:$456 sps:$4 sm:$0xff]  }
 0x511   : > { %15692 = vmatprep.subr.bf16.mxu0 %v23828_v35  ;;  %v23880_v33 = vld [vmem:[%s27319_s17 + $0x3970] ss:$456 sps:$4 sm:$0xff]  }
 0x513   : > { %15611 = vmatpush1.bf16.msra.mxu1 %v23823_v37 }
 0x514   : > { %15693 = vmatpush1.bf16.msra.mxu0 %v23826_v39  ;;  %15612 = vmatprep.subr.bf16.mxu1 %v23831_v43 }
 0x515   : > { %15694 = vmatprep.subr.bf16.mxu0 %v23834_v44  ;;  %v23885_v44 = vld [vmem:[%s27319_s17 + $0x3cfc] ss:$456 sps:$4 sm:$0xff]  }
 0x517   : > { %15613 = vmatpush1.bf16.msra.mxu1 %v23829_v45 }
 0x518   : > { %15695 = vmatpush1.bf16.msra.mxu0 %v23832_v46  ;;  %15614 = vmatprep.subr.bf16.mxu1 %v23837_v63 }
 0x519   : > { %15696 = vmatprep.subr.bf16.mxu0 %v23840_v47  ;;  %v23883_v47 = vld [vmem:[%s27319_s17 + $0x3cf8] ss:$456 sps:$4 sm:$0xff]  }
 0x51b   : > { %15615 = vmatpush1.bf16.msra.mxu1 %v23835_v48  ;;  %v23888_v48 = vld [vmem:[%s27319_s17 + $0x3d04] ss:$456 sps:$4 sm:$0xff]  }
 0x51c   : > { %15697 = vmatpush1.bf16.msra.mxu0 %v23838_v49  ;;  %15616 = vmatprep.subr.bf16.mxu1 %v23843_v30 }
 0x51d   : > { %15698 = vmatprep.subr.bf16.mxu0 %v23846_v50  ;;  %v23889_v50 = vld [vmem:[%s27319_s17 + $0x408c] ss:$456 sps:$4 sm:$0x3f]  }
 0x51f   : > { %15617 = vmatpush1.bf16.msra.mxu1 %v23841_v51 }
 0x520   : > { %15699 = vmatpush1.bf16.msra.mxu0 %v23844_v52  ;;  %15618 = vmatprep.subr.bf16.mxu1 %v23849_v53  ;;  %v23886_v53 = vld [vmem:[%s27319_s17 + $0x3d00] ss:$456 sps:$4 sm:$0xff]  }
 0x521   : > { %15700 = vmatprep.subr.bf16.mxu0 %v23852_v54 }
 0x523   : > { %15619 = vmatpush1.bf16.msra.mxu1 %v23847_v55  ;;  %v23891_v55 = vld [vmem:[%s27319_s17 + $0x4088] ss:$456 sps:$4 sm:$0x3f]  }
 0x524   : > { %15701 = vmatpush1.bf16.msra.mxu0 %v23850_v56  ;;  %15620 = vmatprep.subr.bf16.mxu1 %v23855_v57  ;;  %v23892_v56 = vld [vmem:[%s27319_s17 + $0x4094] ss:$456 sps:$4 sm:$0x3f]   ;;  %v23894_v57 = vld [vmem:[%s27319_s17 + $0x4090] ss:$456 sps:$4 sm:$0x3f]  }
 0x525   : > { %15702 = vmatprep.subr.bf16.mxu0 %v23858_v58  ;;  %v14267_v58 = vsel %vm14187_vm7, %v23891_v55, 0  ;;  %v23945_v55 = vld [vmem:[%s27319_s17 + $0x1cfc] ss:$456 sps:$4 sm:$0xff]  }
 0x527   : > { %15621 = vmatpush1.bf16.msra.mxu1 %v23853_v59  ;;  %v23897_v59 = vld [vmem:[%s27319_s17 + $0x7c] ss:$456 sps:$4 sm:$0xff]  }
 0x528   : > { %15703 = vmatpush1.bf16.msra.mxu0 %v23856_v60  ;;  %15622 = vmatprep.subr.bf16.mxu1 %v23861_v61  ;;  %v14273_v60 = vsel %vm14187_vm7, %v23894_v57, 0  ;;  %v23900_v61 = vld [vmem:[%s27319_s17 + $0x84] ss:$456 sps:$4 sm:$0xff]   ;;  %v23943_v57 = vld [vmem:[%s27319_s17 + $0x1cf8] ss:$456 sps:$4 sm:$0xff]  }
 0x529   : > { %15704 = vmatprep.subr.bf16.mxu0 %v23864_v62  ;;  %v23895_v62 = vld [vmem:[%s27319_s17 + $0x78] ss:$456 sps:$4 sm:$0xff]  }
 0x52b   : > { %15623 = vmatpush1.bf16.msra.mxu1 %v23859_v1  ;;  %v23898_v1 = vld [vmem:[%s27319_s17 + $0x80] ss:$456 sps:$4 sm:$0xff]  }
 0x52c   : > { %15705 = vmatpush1.bf16.msra.mxu0 %v23862_v4  ;;  %15624 = vmatprep.subr.bf16.mxu1 %v23867_v0  ;;  %v23903_v4 = vld [vmem:[%s27319_s17 + $0x40c] ss:$456 sps:$4 sm:$0xff]  }
 0x52d   : > { %15706 = vmatprep.subr.bf16.mxu0 %v23870_v5  ;;  %v23906_v5 = vld [vmem:[%s27319_s17 + $0x414] ss:$456 sps:$4 sm:$0xff]  }
 0x52f   : > { %15625 = vmatpush1.bf16.msra.mxu1 %v23865_v6 }
 0x530   : > { %15707 = vmatpush1.bf16.msra.mxu0 %v23868_v8  ;;  %15626 = vmatprep.subr.bf16.mxu1 %v23873_v10  ;;  %v23901_v10 = vld [vmem:[%s27319_s17 + $0x408] ss:$456 sps:$4 sm:$0xff]  }
 0x531   : > { %v15179_v20 = vpop.f32.mrb[20].mxu1  ;;  %15708 = vmatprep.subr.bf16.mxu0 %v23876_v11 }
 0x532   : > { %v22624_v24 = vadd.f32 %v15179_v20, %v2956_v12  ;;  %v15181_v26 = vpop.f32.mrb[21].mxu1  ;;  %v15261_v38 = vpop.f32.mrb[16].mxu0  ;;  %v23907_v20 = vld [vmem:[%s27319_s17 + $0x798] ss:$456 sps:$4 sm:$0xff]  }
 0x533   : > { %v22625_v27 = vadd.f32 %v15181_v26, %v2960_v13  ;;  %v22626_v28 = vadd.f32 %v15261_v38, %v2964_v14  ;;  %v15183_v29 = vpop.f32.mrb[22].mxu1  ;;  %v15263_v31 = vpop.f32.mrb[17].mxu0  ;;  %15627 = vmatpush1.bf16.msra.mxu1 %v23871_v15  ;;  %v23904_v13 = vld [vmem:[%s27319_s17 + $0x410] ss:$456 sps:$4 sm:$0xff]   ;;  %v23909_v14 = vld [vmem:[%s27319_s17 + $0x79c] ss:$456 sps:$4 sm:$0xff]  }
 0x534   : > { %v19218_v35 = vsub.f32 0.0, %v22624_v24  ;;  %v22627_v37 = vadd.f32 %v15263_v31, %v2968_v17  ;;  %v15184_v39 = vpop.f32.mrb[23].mxu1  ;;  %v15265_v43 = vpop.f32.mrb[18].mxu0  ;;  %15709 = vmatpush1.bf16.msra.mxu0 %v23874_v18  ;;  %15637 = vmatprep.subr.bf16.mxu1 %v23879_v19  ;;  %v23912_v18 = vld [vmem:[%s27319_s17 + $0x7a4] ss:$456 sps:$4 sm:$0xff]  }
 0x535   : > { %v19219_v45 = vsub.f32 0.0, %v22625_v27  ;;  %v19220_v46 = vsub.f32 0.0, %v22626_v28  ;;  %v15266_v63 = vpop.f32.mrb[19].mxu0  ;;  %15719 = vmatprep.subr.bf16.mxu0 %v23882_v21  ;;  %v23910_v21 = vld [vmem:[%s27319_s17 + $0x7a0] ss:$456 sps:$4 sm:$0xff]  }
 0x536   : > { %v19346_v49 = vmul.f32 1.442695, %v19218_v35  ;;  %v19221_v30 = vsub.f32 0.0, %v22627_v37  ;;  %15629 = vmatmul.mubr.bf16.vlgmr.msra.gmra.mrb[32].mxu1 %v27535_v40  ;;  %v23915_v24 = vld [vmem:[%s27319_s17 + $0xb2c] ss:$456 sps:$4 sm:$0xff]  }
 0x537   : > { %v19348_v51 = vmul.f32 1.442695, %v19219_v45  ;;  %v19350_v52 = vmul.f32 1.442695, %v19220_v46  ;;  %15638 = vmatpush1.bf16.msra.mxu1 %v23877_v32  ;;  %15711 = vmatmul.mubr.bf16.vlgmr.msra.gmra.mrb[28].mxu0 %v27535_v40  ;;  %v23918_v26 = vld [vmem:[%s27319_s17 + $0xb34] ss:$456 sps:$4 sm:$0xff]  }
 0x538   : > { %26347 = vpow2.f32 %v19346_v49  ;;  %v19352_v54 = vmul.f32 1.442695, %v19221_v30  ;;  %15720 = vmatpush1.bf16.msra.mxu0 %v23880_v33  ;;  %15639 = vmatprep.subr.bf16.mxu1 %v23885_v44  ;;  %v23913_v38 = vld [vmem:[%s27319_s17 + $0xb28] ss:$456 sps:$4 sm:$0xff]   ;;  %v23921_v28 = vld [vmem:[%s27319_s17 + $0xebc] ss:$456 sps:$4 sm:$0xff]  }
 0x539   : > { %26349 = vpow2.f32 %v19348_v51  ;;  %15721 = vmatprep.subr.bf16.mxu0 %v23888_v48  ;;  %15669 = vmatprep.mubr.bf16.mxu1 %v27007_v16  ;;  %v23916_v27 = vld [vmem:[%s27319_s17 + $0xb30] ss:$456 sps:$4 sm:$0xff]   ;;  %v23924_v29 = vld [vmem:[%s27319_s17 + $0xec4] ss:$456 sps:$4 sm:$0xff]   ;;  %v23922_v35 = vld [vmem:[%s27319_s17 + $0xec0] ss:$456 sps:$4 sm:$0xff]  }
 0x53a   : > { %26351 = vpow2.f32 %v19350_v52  ;;  %15751 = vmatprep.mubr.bf16.mxu0 %v27007_v16  ;;  %v23919_v32 = vld [vmem:[%s27319_s17 + $0xeb8] ss:$456 sps:$4 sm:$0xff]   ;;  %v23927_v37 = vld [vmem:[%s27319_s17 + $0x124c] ss:$456 sps:$4 sm:$0xff]   ;;  %v23925_v63 = vld [vmem:[%s27319_s17 + $0x1248] ss:$456 sps:$4 sm:$0xff]  }
 0x53b   : > { %26353 = vpow2.f32 %v19352_v54  ;;  %15640 = vmatpush1.bf16.msra.mxu1 %v23883_v47  ;;  %v23930_v44 = vld [vmem:[%s27319_s17 + $0x1254] ss:$456 sps:$4 sm:$0xff]   ;;  %v23928_v47 = vld [vmem:[%s27319_s17 + $0x1250] ss:$456 sps:$4 sm:$0xff]   ;;  %v23936_v49 = vld [vmem:[%s27319_s17 + $0x15e4] ss:$456 sps:$4 sm:$0xff]  }
 0x53c   : > { %15722 = vmatpush1.bf16.msra.mxu0 %v23886_v53  ;;  %22425 = vmatprep.subr.msk.bf16.mxu1 %vm14187_vm7, %v23889_v50  ;;  %v23933_v48 = vld [vmem:[%s27319_s17 + $0x15dc] ss:$456 sps:$4 sm:$0xff]   ;;  %v23931_v30 = vld [vmem:[%s27319_s17 + $0x15d8] ss:$456 sps:$4 sm:$0xff]   ;;  %v23939_v51 = vld [vmem:[%s27319_s17 + $0x196c] ss:$456 sps:$4 sm:$0xff]  }
 0x53d   : > { %22427 = vmatprep.subr.msk.bf16.mxu0 %vm14187_vm7, %v23892_v56  ;;  %v23934_v50 = vld [vmem:[%s27319_s17 + $0x15e0] ss:$456 sps:$4 sm:$0xff]   ;;  %v23942_v52 = vld [vmem:[%s27319_s17 + $0x1974] ss:$456 sps:$4 sm:$0xff]   ;;  %v23940_v54 = vld [vmem:[%s27319_s17 + $0x1970] ss:$456 sps:$4 sm:$0xff]  }
 0x53e   : > { %v23937_v53 = vld [vmem:[%s27319_s17 + $0x1968] ss:$456 sps:$4 sm:$0xff]   ;;  %v23948_v56 = vld [vmem:[%s27319_s17 + $0x1d04] ss:$456 sps:$4 sm:$0xff]  }
 0x53f   : > { %15642 = vmatpush1.bf16.msra.mxu1 %v14267_v58  ;;  %v23946_v58 = vld [vmem:[%s27319_s17 + $0x1d00] ss:$456 sps:$4 sm:$0xff]  }
 0x540   : > { %15724 = vmatpush1.bf16.msra.mxu0 %v14273_v60  ;;  %15760 = vmatprep.subr.bf16.mxu1 %v23897_v59  ;;  %v23951_v59 = vld [vmem:[%s27319_s17 + $0x208c] ss:$456 sps:$4 sm:$0xff]  }
 0x541   : > { %15842 = vmatprep.subr.bf16.mxu0 %v23900_v61  ;;  %v23954_v60 = vld [vmem:[%s27319_s17 + $0x2094] ss:$456 sps:$4 sm:$0xff]   ;;  %v23949_v61 = vld [vmem:[%s27319_s17 + $0x2088] ss:$456 sps:$4 sm:$0xff]  }
 0x542   : > { %v26348_v0 = vpop.eup %26347  ;;  %22426 = vmatmul.mubr.msk.bf16.vlgmr.msra.gmra.mrb[32].mxu1 %vm14183_vm8, %v27539_v42 }
 0x543   : > { %v26350_v6 = vpop.eup %26349  ;;  %v19560_v8 = vadd.f32 1.0, %v26348_v0  ;;  %22428 = vmatmul.mubr.msk.bf16.vlgmr.msra.gmra.mrb[28].mxu0 %vm14183_vm8, %v27539_v42  ;;  %15761 = vmatpush1.bf16.msra.mxu1 %v23895_v62  ;;  %v23952_v62 = vld [vmem:[%s27319_s17 + $0x2090] ss:$456 sps:$4 sm:$0xff]  }
 0x544   : > { %v26352_v11 = vpop.eup %26351  ;;  %v19561_v12 = vadd.f32 1.0, %v26350_v6  ;;  %15792 = vmatprep.mubr.bf16.mxu1 %v27537_v41  ;;  %15843 = vmatpush1.bf16.msra.mxu0 %v23898_v1  ;;  %v23957_v1 = vld [vmem:[%s27319_s17 + $0x241c] ss:$456 sps:$4 sm:$0xff]   ;;  %v23955_v0 = vld [vmem:[%s27319_s17 + $0x2418] ss:$456 sps:$4 sm:$0xff]  }
 0x545   : > { %v26354_v15 = vpop.eup %26353  ;;  %26355 = vrcp.f32 %v19560_v8  ;;  %v19562_v17 = vadd.f32 1.0, %v26352_v11  ;;  %15874 = vmatprep.mubr.bf16.mxu0 %v27537_v41  ;;  %15762 = vmatprep.subr.bf16.mxu1 %v23903_v4  ;;  %v23960_v4 = vld [vmem:[%s27319_s17 + $0x2424] ss:$456 sps:$4 sm:$0xff]   ;;  %v23966_v8 = vld [vmem:[%s27319_s17 + $0x27b4] ss:$456 sps:$4 sm:$0xff]  }
 0x546   : > { %26357 = vrcp.f32 %v19561_v12  ;;  %v19563_v19 = vadd.f32 1.0, %v26354_v15  ;;  %15844 = vmatprep.subr.bf16.mxu0 %v23906_v5  ;;  %v23958_v5 = vld [vmem:[%s27319_s17 + $0x2420] ss:$456 sps:$4 sm:$0xff]   ;;  %v23963_v6 = vld [vmem:[%s27319_s17 + $0x27ac] ss:$456 sps:$4 sm:$0xff]  }
 0x547   : > { %26359 = vrcp.f32 %v19562_v17  ;;  %15763 = vmatpush1.bf16.msra.mxu1 %v23901_v10  ;;  %v23961_v10 = vld [vmem:[%s27319_s17 + $0x27a8] ss:$456 sps:$4 sm:$0xff]   ;;  %v23969_v12 = vld [vmem:[%s27319_s17 + $0x2b3c] ss:$456 sps:$4 sm:$0xff]   ;;  %v23975_v17 = vld [vmem:[%s27319_s17 + $0x2ecc] ss:$456 sps:$4 sm:$0xff]  }
 0x548   : > { %26361 = vrcp.f32 %v19563_v19  ;;  %15845 = vmatpush1.bf16.msra.mxu0 %v23904_v13  ;;  %15764 = vmatprep.subr.bf16.mxu1 %v23909_v14  ;;  %v23964_v11 = vld [vmem:[%s27319_s17 + $0x27b0] ss:$456 sps:$4 sm:$0xff]   ;;  %v23972_v13 = vld [vmem:[%s27319_s17 + $0x2b44] ss:$456 sps:$4 sm:$0xff]   ;;  %v23970_v15 = vld [vmem:[%s27319_s17 + $0x2b40] ss:$456 sps:$4 sm:$0xff]  }
 0x549   : > { %15846 = vmatprep.subr.bf16.mxu0 %v23912_v18  ;;  %v23967_v14 = vld [vmem:[%s27319_s17 + $0x2b38] ss:$456 sps:$4 sm:$0xff]   ;;  %v23978_v18 = vld [vmem:[%s27319_s17 + $0x2ed4] ss:$456 sps:$4 sm:$0xff]   ;;  %v23973_v19 = vld [vmem:[%s27319_s17 + $0x2ec8] ss:$456 sps:$4 sm:$0xff]  }
 0x54b   : > { %15765 = vmatpush1.bf16.msra.mxu1 %v23907_v20  ;;  %v23976_v20 = vld [vmem:[%s27319_s17 + $0x2ed0] ss:$456 sps:$4 sm:$0xff]  }
 0x54c   : > { %15847 = vmatpush1.bf16.msra.mxu0 %v23910_v21  ;;  %15766 = vmatprep.subr.bf16.mxu1 %v23915_v24  ;;  %v23981_v21 = vld [vmem:[%s27319_s17 + $0x325c] ss:$456 sps:$4 sm:$0xff]  }
 0x54d   : > { %15848 = vmatprep.subr.bf16.mxu0 %v23918_v26  ;;  %v23984_v24 = vld [vmem:[%s27319_s17 + $0x3264] ss:$456 sps:$4 sm:$0xff]   ;;  %v23979_v26 = vld [vmem:[%s27319_s17 + $0x3258] ss:$456 sps:$4 sm:$0xff]  }
 0x54f   : > { %v26356_v31 = vpop.eup %26355  ;;  %15767 = vmatpush1.bf16.msra.mxu1 %v23913_v38  ;;  %v23982_v38 = vld [vmem:[%s27319_s17 + $0x3260] ss:$456 sps:$4 sm:$0xff]  }
 0x550   : > { %v26358_v33 = vpop.eup %26357  ;;  %15849 = vmatpush1.bf16.msra.mxu0 %v23916_v27  ;;  %15768 = vmatprep.subr.bf16.mxu1 %v23921_v28  ;;  %v23987_v27 = vld [vmem:[%s27319_s17 + $0x35ec] ss:$456 sps:$4 sm:$0xff]  }
 0x551   : > { %v26360_v39 = vpop.eup %26359  ;;  %v19895_v43 = vcombine.low %v26356_v31, %v26358_v33  ;;  %15850 = vmatprep.subr.bf16.mxu0 %v23924_v29  ;;  %v23990_v28 = vld [vmem:[%s27319_s17 + $0x35f4] ss:$456 sps:$4 sm:$0xff]   ;;  %v2972_v29 = vrot.slane %v28206_v9, %v27461_v7  ;;  %v2976_v31 = vrot.slane %v28206_v9, %v27889_v22  ;;  %v23985_v33 = vld [vmem:[%s27319_s17 + $0x35e8] ss:$456 sps:$4 sm:$0xff]  }
 0x552   : > { %v26362_v45 = vpop.eup %26361 }
 0x553   : > { %20009 = vst [vmem:[%s27851_s14 + $0x38] sm:$0xff] %v19895_v43  ;;  %v19896_v46 = vcombine.low %v26360_v39, %v26362_v45  ;;  %15769 = vmatpush1.bf16.msra.mxu1 %v23919_v32  ;;  %v2980_v32 = vrot.slane %v28206_v9, %v27892_v23  ;;  %v23993_v39 = vld [vmem:[%s27319_s17 + $0x397c] ss:$456 sps:$4 sm:$0xff]  }
 0x554   : > { %15851 = vmatpush1.bf16.msra.mxu0 %v23922_v35  ;;  %15770 = vmatprep.subr.bf16.mxu1 %v23927_v37  ;;  %v2984_v35 = vrot.slane %v28206_v9, %v27896_v25  ;;  %v23988_v37 = vld [vmem:[%s27319_s17 + $0x35f0] ss:$456 sps:$4 sm:$0xff]  }
 0x555   : > { %20010 = vst [vmem:[%s27851_s14 + $0x40] sm:$0xff] %v19896_v46  ;;  %15852 = vmatprep.subr.bf16.mxu0 %v23930_v44  ;;  %v23996_v44 = vld [vmem:[%s27319_s17 + $0x3984] ss:$456 sps:$4 sm:$0xff]  }
 0x557   : > { %15771 = vmatpush1.bf16.msra.mxu1 %v23925_v63 }
 0x558   : > { %15853 = vmatpush1.bf16.msra.mxu0 %v23928_v47  ;;  %15772 = vmatprep.subr.bf16.mxu1 %v23933_v48 }
 0x559   : > { %15854 = vmatprep.subr.bf16.mxu0 %v23936_v49 }
 0x55b   : > { %15773 = vmatpush1.bf16.msra.mxu1 %v23931_v30 }
 0x55c   : > { %15855 = vmatpush1.bf16.msra.mxu0 %v23934_v50  ;;  %15774 = vmatprep.subr.bf16.mxu1 %v23939_v51  ;;  %v23991_v50 = vld [vmem:[%s27319_s17 + $0x3978] ss:$456 sps:$4 sm:$0xff]  }
 0x55d   : > { %15856 = vmatprep.subr.bf16.mxu0 %v23942_v52  ;;  %v23994_v51 = vld [vmem:[%s27319_s17 + $0x3980] ss:$456 sps:$4 sm:$0xff]  }
 0x55f   : > { %15775 = vmatpush1.bf16.msra.mxu1 %v23937_v53 }
 0x560   : > { %15857 = vmatpush1.bf16.msra.mxu0 %v23940_v54  ;;  %15776 = vmatprep.subr.bf16.mxu1 %v23945_v55 }
 0x561   : > { %15858 = vmatprep.subr.bf16.mxu0 %v23948_v56  ;;  %v23999_v56 = vld [vmem:[%s27319_s17 + $0x3d0c] ss:$456 sps:$4 sm:$0xff]  }
 0x563   : > { %15777 = vmatpush1.bf16.msra.mxu1 %v23943_v57 }
 0x564   : > { %15859 = vmatpush1.bf16.msra.mxu0 %v23946_v58  ;;  %15778 = vmatprep.subr.bf16.mxu1 %v23951_v59 }
 0x565   : > { %15860 = vmatprep.subr.bf16.mxu0 %v23954_v60  ;;  %v23997_v60 = vld [vmem:[%s27319_s17 + $0x3d08] ss:$456 sps:$4 sm:$0xff]  }
 0x567   : > { %15779 = vmatpush1.bf16.msra.mxu1 %v23949_v61  ;;  %v24002_v61 = vld [vmem:[%s27319_s17 + $0x3d14] ss:$456 sps:$4 sm:$0xff]  }
 0x568   : > { %15861 = vmatpush1.bf16.msra.mxu0 %v23952_v62  ;;  %15780 = vmatprep.subr.bf16.mxu1 %v23957_v1 }
 0x569   : > { %15862 = vmatprep.subr.bf16.mxu0 %v23960_v4  ;;  %v24003_v4 = vld [vmem:[%s27319_s17 + $0x409c] ss:$456 sps:$4 sm:$0x3f]  }
 0x56b   : > { %15781 = vmatpush1.bf16.msra.mxu1 %v23955_v0 }
 0x56c   : > { %15863 = vmatpush1.bf16.msra.mxu0 %v23958_v5  ;;  %15782 = vmatprep.subr.bf16.mxu1 %v23963_v6  ;;  %v24000_v6 = vld [vmem:[%s27319_s17 + $0x3d10] ss:$456 sps:$4 sm:$0xff]  }
 0x56d   : > { %15864 = vmatprep.subr.bf16.mxu0 %v23966_v8 }
 0x56f   : > { %15783 = vmatpush1.bf16.msra.mxu1 %v23961_v10  ;;  %v24005_v10 = vld [vmem:[%s27319_s17 + $0x4098] ss:$456 sps:$4 sm:$0x3f]  }
 0x570   : > { %15865 = vmatpush1.bf16.msra.mxu0 %v23964_v11  ;;  %15784 = vmatprep.subr.bf16.mxu1 %v23969_v12  ;;  %v24006_v11 = vld [vmem:[%s27319_s17 + $0x40a4] ss:$456 sps:$4 sm:$0x3f]   ;;  %v24008_v12 = vld [vmem:[%s27319_s17 + $0x40a0] ss:$456 sps:$4 sm:$0x3f]  }
 0x571   : > { %15866 = vmatprep.subr.bf16.mxu0 %v23972_v13  ;;  %v14279_v13 = vsel %vm14187_vm7, %v24005_v10, 0  ;;  %v24059_v10 = vld [vmem:[%s27319_s17 + $0x1d0c] ss:$456 sps:$4 sm:$0xff]  }
 0x573   : > { %15785 = vmatpush1.bf16.msra.mxu1 %v23967_v14  ;;  %v24011_v14 = vld [vmem:[%s27319_s17 + $0x8c] ss:$456 sps:$4 sm:$0xff]  }
 0x574   : > { %15867 = vmatpush1.bf16.msra.mxu0 %v23970_v15  ;;  %15786 = vmatprep.subr.bf16.mxu1 %v23975_v17  ;;  %v14285_v15 = vsel %vm14187_vm7, %v24008_v12, 0  ;;  %v24014_v17 = vld [vmem:[%s27319_s17 + $0x94] ss:$456 sps:$4 sm:$0xff]   ;;  %v24057_v12 = vld [vmem:[%s27319_s17 + $0x1d08] ss:$456 sps:$4 sm:$0xff]  }
 0x575   : > { %15868 = vmatprep.subr.bf16.mxu0 %v23978_v18  ;;  %v24009_v18 = vld [vmem:[%s27319_s17 + $0x88] ss:$456 sps:$4 sm:$0xff]  }
 0x577   : > { %15787 = vmatpush1.bf16.msra.mxu1 %v23973_v19  ;;  %v24012_v19 = vld [vmem:[%s27319_s17 + $0x90] ss:$456 sps:$4 sm:$0xff]  }
 0x578   : > { %15869 = vmatpush1.bf16.msra.mxu0 %v23976_v20  ;;  %15788 = vmatprep.subr.bf16.mxu1 %v23981_v21  ;;  %v24017_v20 = vld [vmem:[%s27319_s17 + $0x41c] ss:$456 sps:$4 sm:$0xff]  }
 0x579   : > { %15870 = vmatprep.subr.bf16.mxu0 %v23984_v24  ;;  %v24020_v24 = vld [vmem:[%s27319_s17 + $0x424] ss:$456 sps:$4 sm:$0xff]  }
 0x57b   : > { %15789 = vmatpush1.bf16.msra.mxu1 %v23979_v26 }
 0x57c   : > { %15871 = vmatpush1.bf16.msra.mxu0 %v23982_v38  ;;  %15790 = vmatprep.subr.bf16.mxu1 %v23987_v27  ;;  %v24015_v27 = vld [vmem:[%s27319_s17 + $0x418] ss:$456 sps:$4 sm:$0xff]  }
 0x57d   : > { %v15343_v43 = vpop.f32.mrb[24].mxu1  ;;  %15872 = vmatprep.subr.bf16.mxu0 %v23990_v28 }
 0x57e   : > { %v22628_v45 = vadd.f32 %v15343_v43, %v2972_v29  ;;  %v15345_v46 = vpop.f32.mrb[25].mxu1  ;;  %v15425_v63 = vpop.f32.mrb[20].mxu0  ;;  %v24021_v43 = vld [vmem:[%s27319_s17 + $0x7a8] ss:$456 sps:$4 sm:$0xff]  }
 0x57f   : > { %v22629_v47 = vadd.f32 %v15345_v46, %v2976_v31  ;;  %v22630_v48 = vadd.f32 %v15425_v63, %v2980_v32  ;;  %v15347_v49 = vpop.f32.mrb[26].mxu1  ;;  %v15427_v30 = vpop.f32.mrb[21].mxu0  ;;  %15791 = vmatpush1.bf16.msra.mxu1 %v23985_v33  ;;  %v24018_v31 = vld [vmem:[%s27319_s17 + $0x420] ss:$456 sps:$4 sm:$0xff]   ;;  %v24023_v32 = vld [vmem:[%s27319_s17 + $0x7ac] ss:$456 sps:$4 sm:$0xff]  }
 0x580   : > { %v19222_v52 = vsub.f32 0.0, %v22628_v45  ;;  %v22631_v53 = vadd.f32 %v15427_v30, %v2984_v35  ;;  %v15348_v54 = vpop.f32.mrb[27].mxu1  ;;  %v15429_v55 = vpop.f32.mrb[22].mxu0  ;;  %15873 = vmatpush1.bf16.msra.mxu0 %v23988_v37  ;;  %15801 = vmatprep.subr.bf16.mxu1 %v23993_v39  ;;  %v24026_v37 = vld [vmem:[%s27319_s17 + $0x7b4] ss:$456 sps:$4 sm:$0xff]  }
 0x581   : > { %v19223_v57 = vsub.f32 0.0, %v22629_v47  ;;  %v19224_v58 = vsub.f32 0.0, %v22630_v48  ;;  %v15430_v59 = vpop.f32.mrb[23].mxu0  ;;  %15883 = vmatprep.subr.bf16.mxu0 %v23996_v44  ;;  %v24024_v44 = vld [vmem:[%s27319_s17 + $0x7b0] ss:$456 sps:$4 sm:$0xff]  }
 0x582   : > { %v19354_v62 = vmul.f32 1.442695, %v19222_v52  ;;  %v19225_v1 = vsub.f32 0.0, %v22631_v53  ;;  %15793 = vmatmul.mubr.bf16.vlgmr.msra.gmra.mrb[36].mxu1 %v27535_v40  ;;  %v24029_v45 = vld [vmem:[%s27319_s17 + $0xb3c] ss:$456 sps:$4 sm:$0xff]  }
 0x583   : > { %v19356_v0 = vmul.f32 1.442695, %v19223_v57  ;;  %v19358_v5 = vmul.f32 1.442695, %v19224_v58  ;;  %15802 = vmatpush1.bf16.msra.mxu1 %v23991_v50  ;;  %15875 = vmatmul.mubr.bf16.vlgmr.msra.gmra.mrb[32].mxu0 %v27535_v40  ;;  %v24032_v46 = vld [vmem:[%s27319_s17 + $0xb44] ss:$456 sps:$4 sm:$0xff]  }
 0x584   : > { %26363 = vpow2.f32 %v19354_v62  ;;  %v19360_v8 = vmul.f32 1.442695, %v19225_v1  ;;  %15884 = vmatpush1.bf16.msra.mxu0 %v23994_v51  ;;  %15803 = vmatprep.subr.bf16.mxu1 %v23999_v56  ;;  %v24027_v63 = vld [vmem:[%s27319_s17 + $0xb38] ss:$456 sps:$4 sm:$0xff]   ;;  %v24035_v48 = vld [vmem:[%s27319_s17 + $0xecc] ss:$456 sps:$4 sm:$0xff]  }
 0x585   : > { %26365 = vpow2.f32 %v19356_v0  ;;  %15885 = vmatprep.subr.bf16.mxu0 %v24002_v61  ;;  %15833 = vmatprep.mubr.bf16.mxu1 %v27007_v16  ;;  %v24030_v47 = vld [vmem:[%s27319_s17 + $0xb40] ss:$456 sps:$4 sm:$0xff]   ;;  %v24038_v49 = vld [vmem:[%s27319_s17 + $0xed4] ss:$456 sps:$4 sm:$0xff]   ;;  %v24036_v52 = vld [vmem:[%s27319_s17 + $0xed0] ss:$456 sps:$4 sm:$0xff]  }
 0x586   : > { %26367 = vpow2.f32 %v19358_v5  ;;  %15915 = vmatprep.mubr.bf16.mxu0 %v27007_v16  ;;  %v24033_v50 = vld [vmem:[%s27319_s17 + $0xec8] ss:$456 sps:$4 sm:$0xff]   ;;  %v24041_v53 = vld [vmem:[%s27319_s17 + $0x125c] ss:$456 sps:$4 sm:$0xff]   ;;  %v24039_v59 = vld [vmem:[%s27319_s17 + $0x1258] ss:$456 sps:$4 sm:$0xff]  }
 0x587   : > { %26369 = vpow2.f32 %v19360_v8  ;;  %15804 = vmatpush1.bf16.msra.mxu1 %v23997_v60  ;;  %v24044_v56 = vld [vmem:[%s27319_s17 + $0x1264] ss:$456 sps:$4 sm:$0xff]   ;;  %v24042_v60 = vld [vmem:[%s27319_s17 + $0x1260] ss:$456 sps:$4 sm:$0xff]   ;;  %v24050_v62 = vld [vmem:[%s27319_s17 + $0x15f4] ss:$456 sps:$4 sm:$0xff]  }
 0x588   : > { %15886 = vmatpush1.bf16.msra.mxu0 %v24000_v6  ;;  %22429 = vmatprep.subr.msk.bf16.mxu1 %vm14187_vm7, %v24003_v4  ;;  %v24047_v61 = vld [vmem:[%s27319_s17 + $0x15ec] ss:$456 sps:$4 sm:$0xff]   ;;  %v24045_v1 = vld [vmem:[%s27319_s17 + $0x15e8] ss:$456 sps:$4 sm:$0xff]   ;;  %v24053_v0 = vld [vmem:[%s27319_s17 + $0x197c] ss:$456 sps:$4 sm:$0xff]  }
 0x589   : > { %22431 = vmatprep.subr.msk.bf16.mxu0 %vm14187_vm7, %v24006_v11  ;;  %v24048_v4 = vld [vmem:[%s27319_s17 + $0x15f0] ss:$456 sps:$4 sm:$0xff]   ;;  %v24056_v5 = vld [vmem:[%s27319_s17 + $0x1984] ss:$456 sps:$4 sm:$0xff]   ;;  %v24054_v8 = vld [vmem:[%s27319_s17 + $0x1980] ss:$456 sps:$4 sm:$0xff]  }
 0x58a   : > { %v24051_v6 = vld [vmem:[%s27319_s17 + $0x1978] ss:$456 sps:$4 sm:$0xff]   ;;  %v24062_v11 = vld [vmem:[%s27319_s17 + $0x1d14] ss:$456 sps:$4 sm:$0xff]  }
 0x58b   : > { %15806 = vmatpush1.bf16.msra.mxu1 %v14279_v13  ;;  %v24060_v13 = vld [vmem:[%s27319_s17 + $0x1d10] ss:$456 sps:$4 sm:$0xff]  }
 0x58c   : > { %15888 = vmatpush1.bf16.msra.mxu0 %v14285_v15  ;;  %15924 = vmatprep.subr.bf16.mxu1 %v24011_v14  ;;  %v24065_v14 = vld [vmem:[%s27319_s17 + $0x209c] ss:$456 sps:$4 sm:$0xff]  }
 0x58d   : > { %16006 = vmatprep.subr.bf16.mxu0 %v24014_v17  ;;  %v24068_v15 = vld [vmem:[%s27319_s17 + $0x20a4] ss:$456 sps:$4 sm:$0xff]   ;;  %v24063_v17 = vld [vmem:[%s27319_s17 + $0x2098] ss:$456 sps:$4 sm:$0xff]  }
 0x58e   : > { %v26364_v21 = vpop.eup %26363  ;;  %22430 = vmatmul.mubr.msk.bf16.vlgmr.msra.gmra.mrb[36].mxu1 %vm14183_vm8, %v27539_v42 }
 0x58f   : > { %v26366_v26 = vpop.eup %26365  ;;  %v19564_v38 = vadd.f32 1.0, %v26364_v21  ;;  %22432 = vmatmul.mubr.msk.bf16.vlgmr.msra.gmra.mrb[32].mxu0 %vm14183_vm8, %v27539_v42  ;;  %15925 = vmatpush1.bf16.msra.mxu1 %v24009_v18  ;;  %v24066_v18 = vld [vmem:[%s27319_s17 + $0x20a0] ss:$456 sps:$4 sm:$0xff]  }
 0x590   : > { %v26368_v28 = vpop.eup %26367  ;;  %v19565_v29 = vadd.f32 1.0, %v26366_v26  ;;  %15956 = vmatprep.mubr.bf16.mxu1 %v27537_v41  ;;  %16007 = vmatpush1.bf16.msra.mxu0 %v24012_v19  ;;  %v24071_v19 = vld [vmem:[%s27319_s17 + $0x242c] ss:$456 sps:$4 sm:$0xff]   ;;  %v24069_v21 = vld [vmem:[%s27319_s17 + $0x2428] ss:$456 sps:$4 sm:$0xff]  }
 0x591   : > { %v26370_v33 = vpop.eup %26369  ;;  %26371 = vrcp.f32 %v19564_v38  ;;  %v19566_v35 = vadd.f32 1.0, %v26368_v28  ;;  %16038 = vmatprep.mubr.bf16.mxu0 %v27537_v41  ;;  %15926 = vmatprep.subr.bf16.mxu1 %v24017_v20  ;;  %v24074_v20 = vld [vmem:[%s27319_s17 + $0x2434] ss:$456 sps:$4 sm:$0xff]   ;;  %v24080_v38 = vld [vmem:[%s27319_s17 + $0x27c4] ss:$456 sps:$4 sm:$0xff]  }
 0x592   : > { %26373 = vrcp.f32 %v19565_v29  ;;  %v19567_v39 = vadd.f32 1.0, %v26370_v33  ;;  %16008 = vmatprep.subr.bf16.mxu0 %v24020_v24  ;;  %v24072_v24 = vld [vmem:[%s27319_s17 + $0x2430] ss:$456 sps:$4 sm:$0xff]   ;;  %v24077_v26 = vld [vmem:[%s27319_s17 + $0x27bc] ss:$456 sps:$4 sm:$0xff]  }
 0x593   : > { %26375 = vrcp.f32 %v19566_v35  ;;  %15927 = vmatpush1.bf16.msra.mxu1 %v24015_v27  ;;  %v24075_v27 = vld [vmem:[%s27319_s17 + $0x27b8] ss:$456 sps:$4 sm:$0xff]   ;;  %v24083_v29 = vld [vmem:[%s27319_s17 + $0x2b4c] ss:$456 sps:$4 sm:$0xff]   ;;  %v24089_v35 = vld [vmem:[%s27319_s17 + $0x2edc] ss:$456 sps:$4 sm:$0xff]  }
 0x594   : > { %26377 = vrcp.f32 %v19567_v39  ;;  %16009 = vmatpush1.bf16.msra.mxu0 %v24018_v31  ;;  %15928 = vmatprep.subr.bf16.mxu1 %v24023_v32  ;;  %v24078_v28 = vld [vmem:[%s27319_s17 + $0x27c0] ss:$456 sps:$4 sm:$0xff]   ;;  %v24086_v31 = vld [vmem:[%s27319_s17 + $0x2b54] ss:$456 sps:$4 sm:$0xff]   ;;  %v24084_v33 = vld [vmem:[%s27319_s17 + $0x2b50] ss:$456 sps:$4 sm:$0xff]  }
 0x595   : > { %16010 = vmatprep.subr.bf16.mxu0 %v24026_v37  ;;  %v24081_v32 = vld [vmem:[%s27319_s17 + $0x2b48] ss:$456 sps:$4 sm:$0xff]   ;;  %v24092_v37 = vld [vmem:[%s27319_s17 + $0x2ee4] ss:$456 sps:$4 sm:$0xff]   ;;  %v24087_v39 = vld [vmem:[%s27319_s17 + $0x2ed8] ss:$456 sps:$4 sm:$0xff]  }
 0x597   : > { %15929 = vmatpush1.bf16.msra.mxu1 %v24021_v43  ;;  %v24090_v43 = vld [vmem:[%s27319_s17 + $0x2ee0] ss:$456 sps:$4 sm:$0xff]  }
 0x598   : > { %16011 = vmatpush1.bf16.msra.mxu0 %v24024_v44  ;;  %15930 = vmatprep.subr.bf16.mxu1 %v24029_v45  ;;  %v24095_v44 = vld [vmem:[%s27319_s17 + $0x326c] ss:$456 sps:$4 sm:$0xff]  }
 0x599   : > { %16012 = vmatprep.subr.bf16.mxu0 %v24032_v46  ;;  %v24098_v45 = vld [vmem:[%s27319_s17 + $0x3274] ss:$456 sps:$4 sm:$0xff]   ;;  %v24093_v46 = vld [vmem:[%s27319_s17 + $0x3268] ss:$456 sps:$4 sm:$0xff]  }
 0x59b   : > { %v26372_v30 = vpop.eup %26371  ;;  %15931 = vmatpush1.bf16.msra.mxu1 %v24027_v63  ;;  %v24096_v63 = vld [vmem:[%s27319_s17 + $0x3270] ss:$456 sps:$4 sm:$0xff]  }
 0x59c   : > { %v26374_v51 = vpop.eup %26373  ;;  %16013 = vmatpush1.bf16.msra.mxu0 %v24030_v47  ;;  %15932 = vmatprep.subr.bf16.mxu1 %v24035_v48  ;;  %v28409_v47 = vld [vmem:[%s27786_s21 + $0x18] sm:$0xff] }
 0x59d   : > { %v26376_v54 = vpop.eup %26375  ;;  %v19897_v55 = vcombine.low %v26372_v30, %v26374_v51  ;;  %16014 = vmatprep.subr.bf16.mxu0 %v24038_v49  ;;  %v24101_v48 = vld [vmem:[%s27319_s17 + $0x35fc] ss:$456 sps:$4 sm:$0xff]   ;;  %v2988_v30 = vrot.slane %v28206_v9, %v27996_v34  ;;  %v2996_v51 = vrot.slane %v28409_v47, %v27453_v2 }
 0x59e   : > { %v26378_v57 = vpop.eup %26377  ;;  %v24104_v49 = vld [vmem:[%s27319_s17 + $0x3604] ss:$456 sps:$4 sm:$0xff]  }
 0x59f   : > { %20011 = vst [vmem:[%s27851_s14 + $0x48] sm:$0xff] %v19897_v55  ;;  %v19898_v58 = vcombine.low %v26376_v54, %v26378_v57  ;;  %15933 = vmatpush1.bf16.msra.mxu1 %v24033_v50  ;;  %v2992_v50 = vrot.slane %v28206_v9, %v28000_v36  ;;  %v24102_v54 = vld [vmem:[%s27319_s17 + $0x3600] ss:$456 sps:$4 sm:$0xff]   ;;  %v24107_v55 = vld [vmem:[%s27319_s17 + $0x398c] ss:$456 sps:$4 sm:$0xff]  }
 0x5a0   : > { %16015 = vmatpush1.bf16.msra.mxu0 %v24036_v52  ;;  %15934 = vmatprep.subr.bf16.mxu1 %v24041_v53  ;;  %v24099_v52 = vld [vmem:[%s27319_s17 + $0x35f8] ss:$456 sps:$4 sm:$0xff]   ;;  %v3000_v53 = vrot.slane %v28409_v47, %v27456_v3  ;;  %v24110_v57 = vld [vmem:[%s27319_s17 + $0x3994] ss:$456 sps:$4 sm:$0xff]  }
 0x5a1   : > { %20012 = vst [vmem:[%s27851_s14 + $0x50] sm:$0xff] %v19898_v58  ;;  %16016 = vmatprep.subr.bf16.mxu0 %v24044_v56 }
 0x5a3   : > { %15935 = vmatpush1.bf16.msra.mxu1 %v24039_v59 }
 0x5a4   : > { %16017 = vmatpush1.bf16.msra.mxu0 %v24042_v60  ;;  %15936 = vmatprep.subr.bf16.mxu1 %v24047_v61 }
 0x5a5   : > { %16018 = vmatprep.subr.bf16.mxu0 %v24050_v62 }
 0x5a7   : > { %15937 = vmatpush1.bf16.msra.mxu1 %v24045_v1 }
 0x5a8   : > { %16019 = vmatpush1.bf16.msra.mxu0 %v24048_v4  ;;  %15938 = vmatprep.subr.bf16.mxu1 %v24053_v0  ;;  %v24105_v4 = vld [vmem:[%s27319_s17 + $0x3988] ss:$456 sps:$4 sm:$0xff]  }
 0x5a9   : > { %16020 = vmatprep.subr.bf16.mxu0 %v24056_v5  ;;  %v24108_v0 = vld [vmem:[%s27319_s17 + $0x3990] ss:$456 sps:$4 sm:$0xff]  }
 0x5ab   : > { %15939 = vmatpush1.bf16.msra.mxu1 %v24051_v6 }
 0x5ac   : > { %16021 = vmatpush1.bf16.msra.mxu0 %v24054_v8  ;;  %15940 = vmatprep.subr.bf16.mxu1 %v24059_v10 }
 0x5ad   : > { %16022 = vmatprep.subr.bf16.mxu0 %v24062_v11  ;;  %v24113_v11 = vld [vmem:[%s27319_s17 + $0x3d1c] ss:$456 sps:$4 sm:$0xff]  }
 0x5af   : > { %15941 = vmatpush1.bf16.msra.mxu1 %v24057_v12 }
 0x5b0   : > { %16023 = vmatpush1.bf16.msra.mxu0 %v24060_v13  ;;  %15942 = vmatprep.subr.bf16.mxu1 %v24065_v14 }
 0x5b1   : > { %16024 = vmatprep.subr.bf16.mxu0 %v24068_v15  ;;  %v24111_v15 = vld [vmem:[%s27319_s17 + $0x3d18] ss:$456 sps:$4 sm:$0xff]  }
 0x5b3   : > { %15943 = vmatpush1.bf16.msra.mxu1 %v24063_v17  ;;  %v24116_v17 = vld [vmem:[%s27319_s17 + $0x3d24] ss:$456 sps:$4 sm:$0xff]  }
 0x5b4   : > { %16025 = vmatpush1.bf16.msra.mxu0 %v24066_v18  ;;  %15944 = vmatprep.subr.bf16.mxu1 %v24071_v19 }
 0x5b5   : > { %16026 = vmatprep.subr.bf16.mxu0 %v24074_v20  ;;  %v24117_v20 = vld [vmem:[%s27319_s17 + $0x40ac] ss:$456 sps:$4 sm:$0x3f]  }
 0x5b7   : > { %15945 = vmatpush1.bf16.msra.mxu1 %v24069_v21 }
 0x5b8   : > { %16027 = vmatpush1.bf16.msra.mxu0 %v24072_v24  ;;  %15946 = vmatprep.subr.bf16.mxu1 %v24077_v26  ;;  %v24114_v26 = vld [vmem:[%s27319_s17 + $0x3d20] ss:$456 sps:$4 sm:$0xff]  }
 0x5b9   : > { %16028 = vmatprep.subr.bf16.mxu0 %v24080_v38 }
 0x5bb   : > { %15947 = vmatpush1.bf16.msra.mxu1 %v24075_v27  ;;  %v24119_v27 = vld [vmem:[%s27319_s17 + $0x40a8] ss:$456 sps:$4 sm:$0x3f]  }
 0x5bc   : > { %16029 = vmatpush1.bf16.msra.mxu0 %v24078_v28  ;;  %15948 = vmatprep.subr.bf16.mxu1 %v24083_v29  ;;  %v24120_v28 = vld [vmem:[%s27319_s17 + $0x40b4] ss:$456 sps:$4 sm:$0x3f]   ;;  %v24122_v29 = vld [vmem:[%s27319_s17 + $0x40b0] ss:$456 sps:$4 sm:$0x3f]  }
 0x5bd   : > { %16030 = vmatprep.subr.bf16.mxu0 %v24086_v31  ;;  %v14291_v31 = vsel %vm14187_vm7, %v24119_v27, 0  ;;  %v24173_v27 = vld [vmem:[%s27319_s17 + $0x1d1c] ss:$456 sps:$4 sm:$0xff]  }
 0x5bf   : > { %15949 = vmatpush1.bf16.msra.mxu1 %v24081_v32  ;;  %v24125_v32 = vld [vmem:[%s27319_s17 + $0x9c] ss:$456 sps:$4 sm:$0xff]  }
 0x5c0   : > { %16031 = vmatpush1.bf16.msra.mxu0 %v24084_v33  ;;  %15950 = vmatprep.subr.bf16.mxu1 %v24089_v35  ;;  %v14297_v33 = vsel %vm14187_vm7, %v24122_v29, 0  ;;  %v24128_v35 = vld [vmem:[%s27319_s17 + $0xa4] ss:$456 sps:$4 sm:$0xff]   ;;  %v24171_v29 = vld [vmem:[%s27319_s17 + $0x1d18] ss:$456 sps:$4 sm:$0xff]  }
 0x5c1   : > { %16032 = vmatprep.subr.bf16.mxu0 %v24092_v37  ;;  %v24123_v37 = vld [vmem:[%s27319_s17 + $0x98] ss:$456 sps:$4 sm:$0xff]  }
 0x5c3   : > { %15951 = vmatpush1.bf16.msra.mxu1 %v24087_v39  ;;  %v24126_v39 = vld [vmem:[%s27319_s17 + $0xa0] ss:$456 sps:$4 sm:$0xff]  }
 0x5c4   : > { %16033 = vmatpush1.bf16.msra.mxu0 %v24090_v43  ;;  %15952 = vmatprep.subr.bf16.mxu1 %v24095_v44  ;;  %v24131_v43 = vld [vmem:[%s27319_s17 + $0x42c] ss:$456 sps:$4 sm:$0xff]  }
 0x5c5   : > { %16034 = vmatprep.subr.bf16.mxu0 %v24098_v45  ;;  %v24134_v45 = vld [vmem:[%s27319_s17 + $0x434] ss:$456 sps:$4 sm:$0xff]  }
 0x5c7   : > { %15953 = vmatpush1.bf16.msra.mxu1 %v24093_v46 }
 0x5c8   : > { %16035 = vmatpush1.bf16.msra.mxu0 %v24096_v63  ;;  %15954 = vmatprep.subr.bf16.mxu1 %v24101_v48  ;;  %v24129_v48 = vld [vmem:[%s27319_s17 + $0x428] ss:$456 sps:$4 sm:$0xff]  }
 0x5c9   : > { %v15507_v56 = vpop.f32.mrb[28].mxu1  ;;  %16036 = vmatprep.subr.bf16.mxu0 %v24104_v49 }
 0x5ca   : > { %v22632_v58 = vadd.f32 %v15507_v56, %v2988_v30  ;;  %v15509_v59 = vpop.f32.mrb[29].mxu1  ;;  %v15589_v9 = vpop.f32.mrb[24].mxu0  ;;  %v24135_v56 = vld [vmem:[%s27319_s17 + $0x7b8] ss:$456 sps:$4 sm:$0xff]  }
 0x5cb   : > { %v22633_v60 = vadd.f32 %v15509_v59, %v2992_v50  ;;  %v22634_v61 = vadd.f32 %v15589_v9, %v2996_v51  ;;  %v15511_v62 = vpop.f32.mrb[30].mxu1  ;;  %v15591_v1 = vpop.f32.mrb[25].mxu0  ;;  %15955 = vmatpush1.bf16.msra.mxu1 %v24099_v52  ;;  %v24132_v50 = vld [vmem:[%s27319_s17 + $0x430] ss:$456 sps:$4 sm:$0xff]   ;;  %v24137_v51 = vld [vmem:[%s27319_s17 + $0x7bc] ss:$456 sps:$4 sm:$0xff]  }
 0x5cc   : > { %v19226_v5 = vsub.f32 0.0, %v22632_v58  ;;  %v22635_v6 = vadd.f32 %v15591_v1, %v3000_v53  ;;  %v15512_v8 = vpop.f32.mrb[31].mxu1  ;;  %v15593_v10 = vpop.f32.mrb[26].mxu0  ;;  %16037 = vmatpush1.bf16.msra.mxu0 %v24102_v54  ;;  %15965 = vmatprep.subr.bf16.mxu1 %v24107_v55  ;;  %v24140_v54 = vld [vmem:[%s27319_s17 + $0x7c4] ss:$456 sps:$4 sm:$0xff]  }
 0x5cd   : > { %v19227_v12 = vsub.f32 0.0, %v22633_v60  ;;  %v19228_v13 = vsub.f32 0.0, %v22634_v61  ;;  %v15594_v14 = vpop.f32.mrb[27].mxu0  ;;  %16047 = vmatprep.subr.bf16.mxu0 %v24110_v57  ;;  %v24138_v57 = vld [vmem:[%s27319_s17 + $0x7c0] ss:$456 sps:$4 sm:$0xff]  }
 0x5ce   : > { %v19362_v18 = vmul.f32 1.442695, %v19226_v5  ;;  %v19229_v19 = vsub.f32 0.0, %v22635_v6  ;;  %15957 = vmatmul.mubr.bf16.vlgmr.msra.gmra.mrb[40].mxu1 %v27535_v40  ;;  %v24143_v58 = vld [vmem:[%s27319_s17 + $0xb4c] ss:$456 sps:$4 sm:$0xff]  }
 0x5cf   : > { %v19364_v21 = vmul.f32 1.442695, %v19227_v12  ;;  %v19366_v24 = vmul.f32 1.442695, %v19228_v13  ;;  %15966 = vmatpush1.bf16.msra.mxu1 %v24105_v4  ;;  %16039 = vmatmul.mubr.bf16.vlgmr.msra.gmra.mrb[36].mxu0 %v27535_v40  ;;  %v24146_v59 = vld [vmem:[%s27319_s17 + $0xb54] ss:$456 sps:$4 sm:$0xff]  }
 0x5d0   : > { %26379 = vpow2.f32 %v19362_v18  ;;  %v19368_v38 = vmul.f32 1.442695, %v19229_v19  ;;  %16048 = vmatpush1.bf16.msra.mxu0 %v24108_v0  ;;  %15967 = vmatprep.subr.bf16.mxu1 %v24113_v11  ;;  %v24141_v9 = vld [vmem:[%s27319_s17 + $0xb48] ss:$456 sps:$4 sm:$0xff]   ;;  %v24149_v61 = vld [vmem:[%s27319_s17 + $0xedc] ss:$456 sps:$4 sm:$0xff]  }
 0x5d1   : > { %26381 = vpow2.f32 %v19364_v21  ;;  %16049 = vmatprep.subr.bf16.mxu0 %v24116_v17  ;;  %15997 = vmatprep.mubr.bf16.mxu1 %v27007_v16  ;;  %v24144_v60 = vld [vmem:[%s27319_s17 + $0xb50] ss:$456 sps:$4 sm:$0xff]   ;;  %v24152_v62 = vld [vmem:[%s27319_s17 + $0xee4] ss:$456 sps:$4 sm:$0xff]   ;;  %v24150_v5 = vld [vmem:[%s27319_s17 + $0xee0] ss:$456 sps:$4 sm:$0xff]  }
 0x5d2   : > { %26383 = vpow2.f32 %v19366_v24  ;;  %16079 = vmatprep.mubr.bf16.mxu0 %v27007_v16  ;;  %v24147_v4 = vld [vmem:[%s27319_s17 + $0xed8] ss:$456 sps:$4 sm:$0xff]   ;;  %v24155_v6 = vld [vmem:[%s27319_s17 + $0x126c] ss:$456 sps:$4 sm:$0xff]   ;;  %v24153_v14 = vld [vmem:[%s27319_s17 + $0x1268] ss:$456 sps:$4 sm:$0xff]  }
 0x5d3   : > { %26385 = vpow2.f32 %v19368_v38  ;;  %15968 = vmatpush1.bf16.msra.mxu1 %v24111_v15  ;;  %v24158_v11 = vld [vmem:[%s27319_s17 + $0x1274] ss:$456 sps:$4 sm:$0xff]   ;;  %v24156_v15 = vld [vmem:[%s27319_s17 + $0x1270] ss:$456 sps:$4 sm:$0xff]   ;;  %v24164_v18 = vld [vmem:[%s27319_s17 + $0x1604] ss:$456 sps:$4 sm:$0xff]  }
 0x5d4   : > { %16050 = vmatpush1.bf16.msra.mxu0 %v24114_v26  ;;  %22433 = vmatprep.subr.msk.bf16.mxu1 %vm14187_vm7, %v24117_v20  ;;  %v24161_v17 = vld [vmem:[%s27319_s17 + $0x15fc] ss:$456 sps:$4 sm:$0xff]   ;;  %v24159_v19 = vld [vmem:[%s27319_s17 + $0x15f8] ss:$456 sps:$4 sm:$0xff]   ;;  %v24167_v21 = vld [vmem:[%s27319_s17 + $0x198c] ss:$456 sps:$4 sm:$0xff]  }
 0x5d5   : > { %22435 = vmatprep.subr.msk.bf16.mxu0 %vm14187_vm7, %v24120_v28  ;;  %v24162_v20 = vld [vmem:[%s27319_s17 + $0x1600] ss:$456 sps:$4 sm:$0xff]   ;;  %v24170_v24 = vld [vmem:[%s27319_s17 + $0x1994] ss:$456 sps:$4 sm:$0xff]   ;;  %v24168_v38 = vld [vmem:[%s27319_s17 + $0x1990] ss:$456 sps:$4 sm:$0xff]  }
 0x5d6   : > { %v24165_v26 = vld [vmem:[%s27319_s17 + $0x1988] ss:$456 sps:$4 sm:$0xff]   ;;  %v24176_v28 = vld [vmem:[%s27319_s17 + $0x1d24] ss:$456 sps:$4 sm:$0xff]  }
 0x5d7   : > { %15970 = vmatpush1.bf16.msra.mxu1 %v14291_v31  ;;  %v24174_v31 = vld [vmem:[%s27319_s17 + $0x1d20] ss:$456 sps:$4 sm:$0xff]  }
 0x5d8   : > { %16052 = vmatpush1.bf16.msra.mxu0 %v14297_v33  ;;  %16088 = vmatprep.subr.bf16.mxu1 %v24125_v32  ;;  %v24179_v32 = vld [vmem:[%s27319_s17 + $0x20ac] ss:$456 sps:$4 sm:$0xff]  }
 0x5d9   : > { %16170 = vmatprep.subr.bf16.mxu0 %v24128_v35  ;;  %v24182_v33 = vld [vmem:[%s27319_s17 + $0x20b4] ss:$456 sps:$4 sm:$0xff]   ;;  %v24177_v35 = vld [vmem:[%s27319_s17 + $0x20a8] ss:$456 sps:$4 sm:$0xff]  }
 0x5da   : > { %v26380_v44 = vpop.eup %26379  ;;  %22434 = vmatmul.mubr.msk.bf16.vlgmr.msra.gmra.mrb[40].mxu1 %vm14183_vm8, %v27539_v42 }
 0x5db   : > { %v26382_v46 = vpop.eup %26381  ;;  %v19568_v63 = vadd.f32 1.0, %v26380_v44  ;;  %22436 = vmatmul.mubr.msk.bf16.vlgmr.msra.gmra.mrb[36].mxu0 %vm14183_vm8, %v27539_v42  ;;  %16089 = vmatpush1.bf16.msra.mxu1 %v24123_v37  ;;  %v24180_v37 = vld [vmem:[%s27319_s17 + $0x20b0] ss:$456 sps:$4 sm:$0xff]  }
 0x5dc   : > { %v26384_v49 = vpop.eup %26383  ;;  %v19569_v30 = vadd.f32 1.0, %v26382_v46  ;;  %16120 = vmatprep.mubr.bf16.mxu1 %v27537_v41  ;;  %16171 = vmatpush1.bf16.msra.mxu0 %v24126_v39  ;;  %v24185_v39 = vld [vmem:[%s27319_s17 + $0x243c] ss:$456 sps:$4 sm:$0xff]   ;;  %v24183_v44 = vld [vmem:[%s27319_s17 + $0x2438] ss:$456 sps:$4 sm:$0xff]  }
 0x5dd   : > { %v26386_v52 = vpop.eup %26385  ;;  %26387 = vrcp.f32 %v19568_v63  ;;  %v19570_v53 = vadd.f32 1.0, %v26384_v49  ;;  %16202 = vmatprep.mubr.bf16.mxu0 %v27537_v41  ;;  %16090 = vmatprep.subr.bf16.mxu1 %v24131_v43  ;;  %v24188_v43 = vld [vmem:[%s27319_s17 + $0x2444] ss:$456 sps:$4 sm:$0xff]   ;;  %v24194_v63 = vld [vmem:[%s27319_s17 + $0x27d4] ss:$456 sps:$4 sm:$0xff]  }
 0x5de   : > { %26389 = vrcp.f32 %v19569_v30  ;;  %v19571_v55 = vadd.f32 1.0, %v26386_v52  ;;  %16172 = vmatprep.subr.bf16.mxu0 %v24134_v45  ;;  %v24186_v45 = vld [vmem:[%s27319_s17 + $0x2440] ss:$456 sps:$4 sm:$0xff]   ;;  %v24191_v46 = vld [vmem:[%s27319_s17 + $0x27cc] ss:$456 sps:$4 sm:$0xff]  }
 0x5df   : > { %26391 = vrcp.f32 %v19570_v53  ;;  %16091 = vmatpush1.bf16.msra.mxu1 %v24129_v48  ;;  %v24189_v48 = vld [vmem:[%s27319_s17 + $0x27c8] ss:$456 sps:$4 sm:$0xff]   ;;  %v24197_v30 = vld [vmem:[%s27319_s17 + $0x2b5c] ss:$456 sps:$4 sm:$0xff]   ;;  %v24203_v53 = vld [vmem:[%s27319_s17 + $0x2eec] ss:$456 sps:$4 sm:$0xff]  }
 0x5e0   : > { %26393 = vrcp.f32 %v19571_v55  ;;  %16173 = vmatpush1.bf16.msra.mxu0 %v24132_v50  ;;  %16092 = vmatprep.subr.bf16.mxu1 %v24137_v51  ;;  %v24192_v49 = vld [vmem:[%s27319_s17 + $0x27d0] ss:$456 sps:$4 sm:$0xff]   ;;  %v24200_v50 = vld [vmem:[%s27319_s17 + $0x2b64] ss:$456 sps:$4 sm:$0xff]   ;;  %v24198_v52 = vld [vmem:[%s27319_s17 + $0x2b60] ss:$456 sps:$4 sm:$0xff]  }
 0x5e1   : > { %16174 = vmatprep.subr.bf16.mxu0 %v24140_v54  ;;  %v24195_v51 = vld [vmem:[%s27319_s17 + $0x2b58] ss:$456 sps:$4 sm:$0xff]   ;;  %v24206_v54 = vld [vmem:[%s27319_s17 + $0x2ef4] ss:$456 sps:$4 sm:$0xff]   ;;  %v24201_v55 = vld [vmem:[%s27319_s17 + $0x2ee8] ss:$456 sps:$4 sm:$0xff]  }
 0x5e3   : > { %16093 = vmatpush1.bf16.msra.mxu1 %v24135_v56  ;;  %v24204_v56 = vld [vmem:[%s27319_s17 + $0x2ef0] ss:$456 sps:$4 sm:$0xff]  }
 0x5e4   : > { %16175 = vmatpush1.bf16.msra.mxu0 %v24138_v57  ;;  %16094 = vmatprep.subr.bf16.mxu1 %v24143_v58  ;;  %v24209_v57 = vld [vmem:[%s27319_s17 + $0x327c] ss:$456 sps:$4 sm:$0xff]  }
 0x5e5   : > { %16176 = vmatprep.subr.bf16.mxu0 %v24146_v59  ;;  %v24212_v58 = vld [vmem:[%s27319_s17 + $0x3284] ss:$456 sps:$4 sm:$0xff]   ;;  %v24207_v59 = vld [vmem:[%s27319_s17 + $0x3278] ss:$456 sps:$4 sm:$0xff]  }
 0x5e7   : > { %v26388_v1 = vpop.eup %26387  ;;  %16095 = vmatpush1.bf16.msra.mxu1 %v24141_v9  ;;  %v24210_v9 = vld [vmem:[%s27319_s17 + $0x3280] ss:$456 sps:$4 sm:$0xff]  }
 0x5e8   : > { %v26390_v0 = vpop.eup %26389  ;;  %16177 = vmatpush1.bf16.msra.mxu0 %v24144_v60  ;;  %16096 = vmatprep.subr.bf16.mxu1 %v24149_v61  ;;  %v24215_v60 = vld [vmem:[%s27319_s17 + $0x360c] ss:$456 sps:$4 sm:$0xff]  }
 0x5e9   : > { %v26392_v8 = vpop.eup %26391  ;;  %v19899_v10 = vcombine.low %v26388_v1, %v26390_v0  ;;  %16178 = vmatprep.subr.bf16.mxu0 %v24152_v62  ;;  %v24218_v61 = vld [vmem:[%s27319_s17 + $0x3614] ss:$456 sps:$4 sm:$0xff]   ;;  %v3004_v62 = vrot.slane %v28409_v47, %v27461_v7  ;;  %v3008_v1 = vrot.slane %v28409_v47, %v27889_v22  ;;  %v24213_v0 = vld [vmem:[%s27319_s17 + $0x3608] ss:$456 sps:$4 sm:$0xff]  }
 0x5ea   : > { %v26394_v12 = vpop.eup %26393 }
 0x5eb   : > { %20013 = vst [vmem:[%s27851_s14 + $0x58] sm:$0xff] %v19899_v10  ;;  %v19900_v13 = vcombine.low %v26392_v8, %v26394_v12  ;;  %16097 = vmatpush1.bf16.msra.mxu1 %v24147_v4  ;;  %v3012_v4 = vrot.slane %v28409_v47, %v27892_v23  ;;  %v24221_v8 = vld [vmem:[%s27319_s17 + $0x399c] ss:$456 sps:$4 sm:$0xff]  }
 0x5ec   : > { %16179 = vmatpush1.bf16.msra.mxu0 %v24150_v5  ;;  %16098 = vmatprep.subr.bf16.mxu1 %v24155_v6  ;;  %v3016_v5 = vrot.slane %v28409_v47, %v27896_v25  ;;  %v24216_v6 = vld [vmem:[%s27319_s17 + $0x3610] ss:$456 sps:$4 sm:$0xff]  }
 0x5ed   : > { %20014 = vst [vmem:[%s27851_s14 + $0x60] sm:$0xff] %v19900_v13  ;;  %16180 = vmatprep.subr.bf16.mxu0 %v24158_v11  ;;  %v24224_v11 = vld [vmem:[%s27319_s17 + $0x39a4] ss:$456 sps:$4 sm:$0xff]  }
 0x5ef   : > { %16099 = vmatpush1.bf16.msra.mxu1 %v24153_v14 }
 0x5f0   : > { %16181 = vmatpush1.bf16.msra.mxu0 %v24156_v15  ;;  %16100 = vmatprep.subr.bf16.mxu1 %v24161_v17 }
 0x5f1   : > { %16182 = vmatprep.subr.bf16.mxu0 %v24164_v18 }
 0x5f3   : > { %16101 = vmatpush1.bf16.msra.mxu1 %v24159_v19 }
 0x5f4   : > { %16183 = vmatpush1.bf16.msra.mxu0 %v24162_v20  ;;  %16102 = vmatprep.subr.bf16.mxu1 %v24167_v21  ;;  %v24219_v20 = vld [vmem:[%s27319_s17 + $0x3998] ss:$456 sps:$4 sm:$0xff]  }
 0x5f5   : > { %16184 = vmatprep.subr.bf16.mxu0 %v24170_v24  ;;  %v24222_v21 = vld [vmem:[%s27319_s17 + $0x39a0] ss:$456 sps:$4 sm:$0xff]  }
 0x5f7   : > { %16103 = vmatpush1.bf16.msra.mxu1 %v24165_v26 }
 0x5f8   : > { %16185 = vmatpush1.bf16.msra.mxu0 %v24168_v38  ;;  %16104 = vmatprep.subr.bf16.mxu1 %v24173_v27 }
 0x5f9   : > { %16186 = vmatprep.subr.bf16.mxu0 %v24176_v28  ;;  %v24227_v28 = vld [vmem:[%s27319_s17 + $0x3d2c] ss:$456 sps:$4 sm:$0xff]  }
 0x5fb   : > { %16105 = vmatpush1.bf16.msra.mxu1 %v24171_v29 }
 0x5fc   : > { %16187 = vmatpush1.bf16.msra.mxu0 %v24174_v31  ;;  %16106 = vmatprep.subr.bf16.mxu1 %v24179_v32 }
 0x5fd   : > { %16188 = vmatprep.subr.bf16.mxu0 %v24182_v33  ;;  %v24225_v33 = vld [vmem:[%s27319_s17 + $0x3d28] ss:$456 sps:$4 sm:$0xff]  }
 0x5ff   : > { %16107 = vmatpush1.bf16.msra.mxu1 %v24177_v35  ;;  %v24230_v35 = vld [vmem:[%s27319_s17 + $0x3d34] ss:$456 sps:$4 sm:$0xff]  }
 0x600   : > { %16189 = vmatpush1.bf16.msra.mxu0 %v24180_v37  ;;  %16108 = vmatprep.subr.bf16.mxu1 %v24185_v39 }
 0x601   : > { %16190 = vmatprep.subr.bf16.mxu0 %v24188_v43  ;;  %v24231_v43 = vld [vmem:[%s27319_s17 + $0x40bc] ss:$456 sps:$4 sm:$0x3f]  }
 0x603   : > { %16109 = vmatpush1.bf16.msra.mxu1 %v24183_v44 }
 0x604   : > { %16191 = vmatpush1.bf16.msra.mxu0 %v24186_v45  ;;  %16110 = vmatprep.subr.bf16.mxu1 %v24191_v46  ;;  %v24228_v46 = vld [vmem:[%s27319_s17 + $0x3d30] ss:$456 sps:$4 sm:$0xff]  }
 0x605   : > { %16192 = vmatprep.subr.bf16.mxu0 %v24194_v63 }
 0x607   : > { %16111 = vmatpush1.bf16.msra.mxu1 %v24189_v48  ;;  %v24233_v48 = vld [vmem:[%s27319_s17 + $0x40b8] ss:$456 sps:$4 sm:$0x3f]  }
 0x608   : > { %16193 = vmatpush1.bf16.msra.mxu0 %v24192_v49  ;;  %16112 = vmatprep.subr.bf16.mxu1 %v24197_v30  ;;  %v24234_v49 = vld [vmem:[%s27319_s17 + $0x40c4] ss:$456 sps:$4 sm:$0x3f]   ;;  %v24236_v30 = vld [vmem:[%s27319_s17 + $0x40c0] ss:$456 sps:$4 sm:$0x3f]  }
 0x609   : > { %16194 = vmatprep.subr.bf16.mxu0 %v24200_v50  ;;  %v14303_v50 = vsel %vm14187_vm7, %v24233_v48, 0  ;;  %v24287_v48 = vld [vmem:[%s27319_s17 + $0x1d2c] ss:$456 sps:$4 sm:$0xff]  }
 0x60b   : > { %16113 = vmatpush1.bf16.msra.mxu1 %v24195_v51  ;;  %v24239_v51 = vld [vmem:[%s27319_s17 + $0xac] ss:$456 sps:$4 sm:$0xff]  }
 0x60c   : > { %16195 = vmatpush1.bf16.msra.mxu0 %v24198_v52  ;;  %16114 = vmatprep.subr.bf16.mxu1 %v24203_v53  ;;  %v14309_v52 = vsel %vm14187_vm7, %v24236_v30, 0  ;;  %v24242_v53 = vld [vmem:[%s27319_s17 + $0xb4] ss:$456 sps:$4 sm:$0xff]   ;;  %v24285_v30 = vld [vmem:[%s27319_s17 + $0x1d28] ss:$456 sps:$4 sm:$0xff]  }
 0x60d   : > { %16196 = vmatprep.subr.bf16.mxu0 %v24206_v54  ;;  %v24237_v54 = vld [vmem:[%s27319_s17 + $0xa8] ss:$456 sps:$4 sm:$0xff]  }
 0x60f   : > { %16115 = vmatpush1.bf16.msra.mxu1 %v24201_v55  ;;  %v24240_v55 = vld [vmem:[%s27319_s17 + $0xb0] ss:$456 sps:$4 sm:$0xff]  }
 0x610   : > { %16197 = vmatpush1.bf16.msra.mxu0 %v24204_v56  ;;  %16116 = vmatprep.subr.bf16.mxu1 %v24209_v57  ;;  %v24245_v56 = vld [vmem:[%s27319_s17 + $0x43c] ss:$456 sps:$4 sm:$0xff]  }
 0x611   : > { %16198 = vmatprep.subr.bf16.mxu0 %v24212_v58  ;;  %v24248_v58 = vld [vmem:[%s27319_s17 + $0x444] ss:$456 sps:$4 sm:$0xff]  }
 0x613   : > { %16117 = vmatpush1.bf16.msra.mxu1 %v24207_v59 }
 0x614   : > { %16199 = vmatpush1.bf16.msra.mxu0 %v24210_v9  ;;  %16118 = vmatprep.subr.bf16.mxu1 %v24215_v60  ;;  %v24243_v60 = vld [vmem:[%s27319_s17 + $0x438] ss:$456 sps:$4 sm:$0xff]  }
 0x615   : > { %v15671_v10 = vpop.f32.mrb[32].mxu1  ;;  %16200 = vmatprep.subr.bf16.mxu0 %v24218_v61 }
 0x616   : > { %v22636_v12 = vadd.f32 %v15671_v10, %v3004_v62  ;;  %v15673_v13 = vpop.f32.mrb[33].mxu1  ;;  %v15753_v14 = vpop.f32.mrb[28].mxu0  ;;  %v24249_v10 = vld [vmem:[%s27319_s17 + $0x7c8] ss:$456 sps:$4 sm:$0xff]  }
 0x617   : > { %v22637_v15 = vadd.f32 %v15673_v13, %v3008_v1  ;;  %v22638_v17 = vadd.f32 %v15753_v14, %v3012_v4  ;;  %v15675_v18 = vpop.f32.mrb[34].mxu1  ;;  %v15755_v19 = vpop.f32.mrb[29].mxu0  ;;  %16119 = vmatpush1.bf16.msra.mxu1 %v24213_v0  ;;  %v24246_v1 = vld [vmem:[%s27319_s17 + $0x440] ss:$456 sps:$4 sm:$0xff]   ;;  %v24251_v4 = vld [vmem:[%s27319_s17 + $0x7cc] ss:$456 sps:$4 sm:$0xff]  }
 0x618   : > { %v19230_v24 = vsub.f32 0.0, %v22636_v12  ;;  %v22639_v26 = vadd.f32 %v15755_v19, %v3016_v5  ;;  %v15676_v38 = vpop.f32.mrb[35].mxu1  ;;  %v15757_v27 = vpop.f32.mrb[30].mxu0  ;;  %16201 = vmatpush1.bf16.msra.mxu0 %v24216_v6  ;;  %16129 = vmatprep.subr.bf16.mxu1 %v24221_v8  ;;  %v24254_v6 = vld [vmem:[%s27319_s17 + $0x7d4] ss:$456 sps:$4 sm:$0xff]  }
 0x619   : > { %v19231_v29 = vsub.f32 0.0, %v22637_v15  ;;  %v19232_v31 = vsub.f32 0.0, %v22638_v17  ;;  %v15758_v32 = vpop.f32.mrb[31].mxu0  ;;  %16211 = vmatprep.subr.bf16.mxu0 %v24224_v11  ;;  %v24252_v11 = vld [vmem:[%s27319_s17 + $0x7d0] ss:$456 sps:$4 sm:$0xff]  }
 0x61a   : > { %v19370_v37 = vmul.f32 1.442695, %v19230_v24  ;;  %v19233_v39 = vsub.f32 0.0, %v22639_v26  ;;  %16121 = vmatmul.mubr.bf16.vlgmr.msra.gmra.mrb[44].mxu1 %v27535_v40  ;;  %v24257_v12 = vld [vmem:[%s27319_s17 + $0xb5c] ss:$456 sps:$4 sm:$0xff]  }
 0x61b   : > { %v19372_v44 = vmul.f32 1.442695, %v19231_v29  ;;  %v19374_v45 = vmul.f32 1.442695, %v19232_v31  ;;  %16130 = vmatpush1.bf16.msra.mxu1 %v24219_v20  ;;  %16203 = vmatmul.mubr.bf16.vlgmr.msra.gmra.mrb[40].mxu0 %v27535_v40  ;;  %v24260_v13 = vld [vmem:[%s27319_s17 + $0xb64] ss:$456 sps:$4 sm:$0xff]  }
 0x61c   : > { %26395 = vpow2.f32 %v19370_v37  ;;  %v19376_v63 = vmul.f32 1.442695, %v19233_v39  ;;  %16212 = vmatpush1.bf16.msra.mxu0 %v24222_v21  ;;  %16131 = vmatprep.subr.bf16.mxu1 %v24227_v28  ;;  %v24255_v14 = vld [vmem:[%s27319_s17 + $0xb58] ss:$456 sps:$4 sm:$0xff]   ;;  %v24263_v17 = vld [vmem:[%s27319_s17 + $0xeec] ss:$456 sps:$4 sm:$0xff]  }
 0x61d   : > { %26397 = vpow2.f32 %v19372_v44  ;;  %16213 = vmatprep.subr.bf16.mxu0 %v24230_v35  ;;  %16161 = vmatprep.mubr.bf16.mxu1 %v27007_v16  ;;  %v24258_v15 = vld [vmem:[%s27319_s17 + $0xb60] ss:$456 sps:$4 sm:$0xff]   ;;  %v24266_v18 = vld [vmem:[%s27319_s17 + $0xef4] ss:$456 sps:$4 sm:$0xff]   ;;  %v24264_v24 = vld [vmem:[%s27319_s17 + $0xef0] ss:$456 sps:$4 sm:$0xff]  }
 0x61e   : > { %26399 = vpow2.f32 %v19374_v45  ;;  %16243 = vmatprep.mubr.bf16.mxu0 %v27007_v16  ;;  %v24261_v20 = vld [vmem:[%s27319_s17 + $0xee8] ss:$456 sps:$4 sm:$0xff]   ;;  %v24269_v26 = vld [vmem:[%s27319_s17 + $0x127c] ss:$456 sps:$4 sm:$0xff]   ;;  %v24267_v32 = vld [vmem:[%s27319_s17 + $0x1278] ss:$456 sps:$4 sm:$0xff]  }
 0x61f   : > { %26401 = vpow2.f32 %v19376_v63  ;;  %16132 = vmatpush1.bf16.msra.mxu1 %v24225_v33  ;;  %v24272_v28 = vld [vmem:[%s27319_s17 + $0x1284] ss:$456 sps:$4 sm:$0xff]   ;;  %v24270_v33 = vld [vmem:[%s27319_s17 + $0x1280] ss:$456 sps:$4 sm:$0xff]   ;;  %v24278_v37 = vld [vmem:[%s27319_s17 + $0x1614] ss:$456 sps:$4 sm:$0xff]  }
 0x620   : > { %16214 = vmatpush1.bf16.msra.mxu0 %v24228_v46  ;;  %22437 = vmatprep.subr.msk.bf16.mxu1 %vm14187_vm7, %v24231_v43  ;;  %v24275_v35 = vld [vmem:[%s27319_s17 + $0x160c] ss:$456 sps:$4 sm:$0xff]   ;;  %v24273_v39 = vld [vmem:[%s27319_s17 + $0x1608] ss:$456 sps:$4 sm:$0xff]   ;;  %v24281_v44 = vld [vmem:[%s27319_s17 + $0x199c] ss:$456 sps:$4 sm:$0xff]  }
 0x621   : > { %22439 = vmatprep.subr.msk.bf16.mxu0 %vm14187_vm7, %v24234_v49  ;;  %v24276_v43 = vld [vmem:[%s27319_s17 + $0x1610] ss:$456 sps:$4 sm:$0xff]   ;;  %v24284_v45 = vld [vmem:[%s27319_s17 + $0x19a4] ss:$456 sps:$4 sm:$0xff]   ;;  %v24282_v63 = vld [vmem:[%s27319_s17 + $0x19a0] ss:$456 sps:$4 sm:$0xff]  }
 0x622   : > { %v24279_v46 = vld [vmem:[%s27319_s17 + $0x1998] ss:$456 sps:$4 sm:$0xff]   ;;  %v24290_v49 = vld [vmem:[%s27319_s17 + $0x1d34] ss:$456 sps:$4 sm:$0xff]  }
 0x623   : > { %16134 = vmatpush1.bf16.msra.mxu1 %v14303_v50  ;;  %v24288_v50 = vld [vmem:[%s27319_s17 + $0x1d30] ss:$456 sps:$4 sm:$0xff]  }
 0x624   : > { %16216 = vmatpush1.bf16.msra.mxu0 %v14309_v52  ;;  %16252 = vmatprep.subr.bf16.mxu1 %v24239_v51  ;;  %v24293_v51 = vld [vmem:[%s27319_s17 + $0x20bc] ss:$456 sps:$4 sm:$0xff]  }
 0x625   : > { %16334 = vmatprep.subr.bf16.mxu0 %v24242_v53  ;;  %v24296_v52 = vld [vmem:[%s27319_s17 + $0x20c4] ss:$456 sps:$4 sm:$0xff]   ;;  %v24291_v53 = vld [vmem:[%s27319_s17 + $0x20b8] ss:$456 sps:$4 sm:$0xff]  }
 0x626   : > { %v26396_v57 = vpop.eup %26395  ;;  %22438 = vmatmul.mubr.msk.bf16.vlgmr.msra.gmra.mrb[44].mxu1 %vm14183_vm8, %v27539_v42 }
 0x627   : > { %v26398_v59 = vpop.eup %26397  ;;  %v19572_v9 = vadd.f32 1.0, %v26396_v57  ;;  %22440 = vmatmul.mubr.msk.bf16.vlgmr.msra.gmra.mrb[40].mxu0 %vm14183_vm8, %v27539_v42  ;;  %16253 = vmatpush1.bf16.msra.mxu1 %v24237_v54  ;;  %v24294_v54 = vld [vmem:[%s27319_s17 + $0x20c0] ss:$456 sps:$4 sm:$0xff]  }
 0x628   : > { %v26400_v61 = vpop.eup %26399  ;;  %v19573_v62 = vadd.f32 1.0, %v26398_v59  ;;  %16284 = vmatprep.mubr.bf16.mxu1 %v27537_v41  ;;  %16335 = vmatpush1.bf16.msra.mxu0 %v24240_v55  ;;  %v24299_v55 = vld [vmem:[%s27319_s17 + $0x244c] ss:$456 sps:$4 sm:$0xff]   ;;  %v24297_v57 = vld [vmem:[%s27319_s17 + $0x2448] ss:$456 sps:$4 sm:$0xff]  }
 0x629   : > { %v26402_v0 = vpop.eup %26401  ;;  %26403 = vrcp.f32 %v19572_v9  ;;  %v19574_v5 = vadd.f32 1.0, %v26400_v61  ;;  %16366 = vmatprep.mubr.bf16.mxu0 %v27537_v41  ;;  %16254 = vmatprep.subr.bf16.mxu1 %v24245_v56  ;;  %v24302_v56 = vld [vmem:[%s27319_s17 + $0x2454] ss:$456 sps:$4 sm:$0xff]   ;;  %v24308_v9 = vld [vmem:[%s27319_s17 + $0x27e4] ss:$456 sps:$4 sm:$0xff]  }
 0x62a   : > { %26405 = vrcp.f32 %v19573_v62  ;;  %v19575_v8 = vadd.f32 1.0, %v26402_v0  ;;  %16336 = vmatprep.subr.bf16.mxu0 %v24248_v58  ;;  %v24300_v58 = vld [vmem:[%s27319_s17 + $0x2450] ss:$456 sps:$4 sm:$0xff]   ;;  %v24305_v59 = vld [vmem:[%s27319_s17 + $0x27dc] ss:$456 sps:$4 sm:$0xff]  }
 0x62b   : > { %26407 = vrcp.f32 %v19574_v5  ;;  %16255 = vmatpush1.bf16.msra.mxu1 %v24243_v60  ;;  %v24303_v60 = vld [vmem:[%s27319_s17 + $0x27d8] ss:$456 sps:$4 sm:$0xff]   ;;  %v24311_v62 = vld [vmem:[%s27319_s17 + $0x2b6c] ss:$456 sps:$4 sm:$0xff]   ;;  %v24317_v5 = vld [vmem:[%s27319_s17 + $0x2efc] ss:$456 sps:$4 sm:$0xff]  }
 0x62c   : > { %26409 = vrcp.f32 %v19575_v8  ;;  %16337 = vmatpush1.bf16.msra.mxu0 %v24246_v1  ;;  %16256 = vmatprep.subr.bf16.mxu1 %v24251_v4  ;;  %v24306_v61 = vld [vmem:[%s27319_s17 + $0x27e0] ss:$456 sps:$4 sm:$0xff]   ;;  %v24314_v1 = vld [vmem:[%s27319_s17 + $0x2b74] ss:$456 sps:$4 sm:$0xff]   ;;  %v24312_v0 = vld [vmem:[%s27319_s17 + $0x2b70] ss:$456 sps:$4 sm:$0xff]  }
 0x62d   : > { %16338 = vmatprep.subr.bf16.mxu0 %v24254_v6  ;;  %v24309_v4 = vld [vmem:[%s27319_s17 + $0x2b68] ss:$456 sps:$4 sm:$0xff]   ;;  %v24320_v6 = vld [vmem:[%s27319_s17 + $0x2f04] ss:$456 sps:$4 sm:$0xff]   ;;  %v24315_v8 = vld [vmem:[%s27319_s17 + $0x2ef8] ss:$456 sps:$4 sm:$0xff]  }
 0x62f   : > { %16257 = vmatpush1.bf16.msra.mxu1 %v24249_v10  ;;  %v24318_v10 = vld [vmem:[%s27319_s17 + $0x2f00] ss:$456 sps:$4 sm:$0xff]  }
 0x630   : > { %16339 = vmatpush1.bf16.msra.mxu0 %v24252_v11  ;;  %16258 = vmatprep.subr.bf16.mxu1 %v24257_v12  ;;  %v24323_v11 = vld [vmem:[%s27319_s17 + $0x328c] ss:$456 sps:$4 sm:$0xff]  }
 0x631   : > { %16340 = vmatprep.subr.bf16.mxu0 %v24260_v13  ;;  %v24326_v12 = vld [vmem:[%s27319_s17 + $0x3294] ss:$456 sps:$4 sm:$0xff]   ;;  %v24321_v13 = vld [vmem:[%s27319_s17 + $0x3288] ss:$456 sps:$4 sm:$0xff]  }
 0x633   : > { %v26404_v19 = vpop.eup %26403  ;;  %16259 = vmatpush1.bf16.msra.mxu1 %v24255_v14  ;;  %v24324_v14 = vld [vmem:[%s27319_s17 + $0x3290] ss:$456 sps:$4 sm:$0xff]  }
 0x634   : > { %v26406_v21 = vpop.eup %26405  ;;  %16341 = vmatpush1.bf16.msra.mxu0 %v24258_v15  ;;  %16260 = vmatprep.subr.bf16.mxu1 %v24263_v17  ;;  %v28612_v15 = vld [vmem:[%s27786_s21 + $0x20] sm:$0xff] }
 0x635   : > { %v26408_v38 = vpop.eup %26407  ;;  %v19901_v27 = vcombine.low %v26404_v19, %v26406_v21  ;;  %16342 = vmatprep.subr.bf16.mxu0 %v24266_v18  ;;  %v24329_v17 = vld [vmem:[%s27319_s17 + $0x361c] ss:$456 sps:$4 sm:$0xff]   ;;  %v3020_v19 = vrot.slane %v28409_v47, %v27996_v34  ;;  %v3028_v21 = vrot.slane %v28612_v15, %v27453_v2 }
 0x636   : > { %v26410_v29 = vpop.eup %26409  ;;  %v24332_v18 = vld [vmem:[%s27319_s17 + $0x3624] ss:$456 sps:$4 sm:$0xff]  }
 0x637   : > { %20015 = vst [vmem:[%s27851_s14 + $0x68] sm:$0xff] %v19901_v27  ;;  %v19902_v31 = vcombine.low %v26408_v38, %v26410_v29  ;;  %16261 = vmatpush1.bf16.msra.mxu1 %v24261_v20  ;;  %v3024_v20 = vrot.slane %v28409_v47, %v28000_v36  ;;  %v24330_v38 = vld [vmem:[%s27319_s17 + $0x3620] ss:$456 sps:$4 sm:$0xff]   ;;  %v24335_v27 = vld [vmem:[%s27319_s17 + $0x39ac] ss:$456 sps:$4 sm:$0xff]  }
 0x638   : > { %16343 = vmatpush1.bf16.msra.mxu0 %v24264_v24  ;;  %16262 = vmatprep.subr.bf16.mxu1 %v24269_v26  ;;  %v24327_v24 = vld [vmem:[%s27319_s17 + $0x3618] ss:$456 sps:$4 sm:$0xff]   ;;  %v3032_v26 = vrot.slane %v28612_v15, %v27456_v3  ;;  %v24338_v29 = vld [vmem:[%s27319_s17 + $0x39b4] ss:$456 sps:$4 sm:$0xff]  }
 0x639   : > { %20016 = vst [vmem:[%s27851_s14 + $0x70] sm:$0xff] %v19902_v31  ;;  %16344 = vmatprep.subr.bf16.mxu0 %v24272_v28 }
 0x63b   : > { %16263 = vmatpush1.bf16.msra.mxu1 %v24267_v32 }
 0x63c   : > { %16345 = vmatpush1.bf16.msra.mxu0 %v24270_v33  ;;  %16264 = vmatprep.subr.bf16.mxu1 %v24275_v35 }
 0x63d   : > { %16346 = vmatprep.subr.bf16.mxu0 %v24278_v37 }
 0x63f   : > { %16265 = vmatpush1.bf16.msra.mxu1 %v24273_v39 }
 0x640   : > { %16347 = vmatpush1.bf16.msra.mxu0 %v24276_v43  ;;  %16266 = vmatprep.subr.bf16.mxu1 %v24281_v44  ;;  %v24333_v43 = vld [vmem:[%s27319_s17 + $0x39a8] ss:$456 sps:$4 sm:$0xff]  }
 0x641   : > { %16348 = vmatprep.subr.bf16.mxu0 %v24284_v45  ;;  %v24336_v44 = vld [vmem:[%s27319_s17 + $0x39b0] ss:$456 sps:$4 sm:$0xff]  }
 0x643   : > { %16267 = vmatpush1.bf16.msra.mxu1 %v24279_v46 }
 0x644   : > { %16349 = vmatpush1.bf16.msra.mxu0 %v24282_v63  ;;  %16268 = vmatprep.subr.bf16.mxu1 %v24287_v48 }
 0x645   : > { %16350 = vmatprep.subr.bf16.mxu0 %v24290_v49  ;;  %v24341_v49 = vld [vmem:[%s27319_s17 + $0x3d3c] ss:$456 sps:$4 sm:$0xff]  }
 0x647   : > { %16269 = vmatpush1.bf16.msra.mxu1 %v24285_v30 }
 0x648   : > { %16351 = vmatpush1.bf16.msra.mxu0 %v24288_v50  ;;  %16270 = vmatprep.subr.bf16.mxu1 %v24293_v51 }
 0x649   : > { %16352 = vmatprep.subr.bf16.mxu0 %v24296_v52  ;;  %v24339_v52 = vld [vmem:[%s27319_s17 + $0x3d38] ss:$456 sps:$4 sm:$0xff]  }
 0x64b   : > { %16271 = vmatpush1.bf16.msra.mxu1 %v24291_v53  ;;  %v24344_v53 = vld [vmem:[%s27319_s17 + $0x3d44] ss:$456 sps:$4 sm:$0xff]  }
 0x64c   : > { %16353 = vmatpush1.bf16.msra.mxu0 %v24294_v54  ;;  %16272 = vmatprep.subr.bf16.mxu1 %v24299_v55 }
 0x64d   : > { %16354 = vmatprep.subr.bf16.mxu0 %v24302_v56  ;;  %v24345_v56 = vld [vmem:[%s27319_s17 + $0x40cc] ss:$456 sps:$4 sm:$0x3f]  }
 0x64f   : > { %16273 = vmatpush1.bf16.msra.mxu1 %v24297_v57 }
 0x650   : > { %16355 = vmatpush1.bf16.msra.mxu0 %v24300_v58  ;;  %16274 = vmatprep.subr.bf16.mxu1 %v24305_v59  ;;  %v24342_v59 = vld [vmem:[%s27319_s17 + $0x3d40] ss:$456 sps:$4 sm:$0xff]  }
 0x651   : > { %16356 = vmatprep.subr.bf16.mxu0 %v24308_v9 }
 0x653   : > { %16275 = vmatpush1.bf16.msra.mxu1 %v24303_v60  ;;  %v24347_v60 = vld [vmem:[%s27319_s17 + $0x40c8] ss:$456 sps:$4 sm:$0x3f]  }
 0x654   : > { %16357 = vmatpush1.bf16.msra.mxu0 %v24306_v61  ;;  %16276 = vmatprep.subr.bf16.mxu1 %v24311_v62  ;;  %v24348_v61 = vld [vmem:[%s27319_s17 + $0x40d4] ss:$456 sps:$4 sm:$0x3f]   ;;  %v24350_v62 = vld [vmem:[%s27319_s17 + $0x40d0] ss:$456 sps:$4 sm:$0x3f]  }
 0x655   : > { %16358 = vmatprep.subr.bf16.mxu0 %v24314_v1  ;;  %v14315_v1 = vsel %vm14187_vm7, %v24347_v60, 0  ;;  %v24401_v60 = vld [vmem:[%s27319_s17 + $0x1d3c] ss:$456 sps:$4 sm:$0xff]  }
 0x657   : > { %16277 = vmatpush1.bf16.msra.mxu1 %v24309_v4  ;;  %v24353_v4 = vld [vmem:[%s27319_s17 + $0xbc] ss:$456 sps:$4 sm:$0xff]  }
 0x658   : > { %16359 = vmatpush1.bf16.msra.mxu0 %v24312_v0  ;;  %16278 = vmatprep.subr.bf16.mxu1 %v24317_v5  ;;  %v14321_v0 = vsel %vm14187_vm7, %v24350_v62, 0  ;;  %v24356_v5 = vld [vmem:[%s27319_s17 + $0xc4] ss:$456 sps:$4 sm:$0xff]   ;;  %v24399_v62 = vld [vmem:[%s27319_s17 + $0x1d38] ss:$456 sps:$4 sm:$0xff]  }
 0x659   : > { %16360 = vmatprep.subr.bf16.mxu0 %v24320_v6  ;;  %v24351_v6 = vld [vmem:[%s27319_s17 + $0xb8] ss:$456 sps:$4 sm:$0xff]  }
 0x65b   : > { %16279 = vmatpush1.bf16.msra.mxu1 %v24315_v8  ;;  %v24354_v8 = vld [vmem:[%s27319_s17 + $0xc0] ss:$456 sps:$4 sm:$0xff]  }
 0x65c   : > { %16361 = vmatpush1.bf16.msra.mxu0 %v24318_v10  ;;  %16280 = vmatprep.subr.bf16.mxu1 %v24323_v11  ;;  %v24359_v10 = vld [vmem:[%s27319_s17 + $0x44c] ss:$456 sps:$4 sm:$0xff]  }
 0x65d   : > { %16362 = vmatprep.subr.bf16.mxu0 %v24326_v12  ;;  %v24362_v12 = vld [vmem:[%s27319_s17 + $0x454] ss:$456 sps:$4 sm:$0xff]  }
 0x65f   : > { %16281 = vmatpush1.bf16.msra.mxu1 %v24321_v13 }
 0x660   : > { %16363 = vmatpush1.bf16.msra.mxu0 %v24324_v14  ;;  %16282 = vmatprep.subr.bf16.mxu1 %v24329_v17  ;;  %v24357_v17 = vld [vmem:[%s27319_s17 + $0x448] ss:$456 sps:$4 sm:$0xff]  }
 0x661   : > { %v15835_v28 = vpop.f32.mrb[36].mxu1  ;;  %16364 = vmatprep.subr.bf16.mxu0 %v24332_v18 }
 0x662   : > { %v22640_v31 = vadd.f32 %v15835_v28, %v3020_v19  ;;  %v15837_v32 = vpop.f32.mrb[37].mxu1  ;;  %v15917_v47 = vpop.f32.mrb[32].mxu0  ;;  %v24363_v28 = vld [vmem:[%s27319_s17 + $0x7d8] ss:$456 sps:$4 sm:$0xff]  }
 0x663   : > { %v22641_v33 = vadd.f32 %v15837_v32, %v3024_v20  ;;  %v22642_v35 = vadd.f32 %v15917_v47, %v3028_v21  ;;  %v15839_v37 = vpop.f32.mrb[38].mxu1  ;;  %v15919_v39 = vpop.f32.mrb[33].mxu0  ;;  %16283 = vmatpush1.bf16.msra.mxu1 %v24327_v24  ;;  %v24360_v20 = vld [vmem:[%s27319_s17 + $0x450] ss:$456 sps:$4 sm:$0xff]   ;;  %v24365_v21 = vld [vmem:[%s27319_s17 + $0x7dc] ss:$456 sps:$4 sm:$0xff]  }
 0x664   : > { %v19234_v45 = vsub.f32 0.0, %v22640_v31  ;;  %v22643_v46 = vadd.f32 %v15919_v39, %v3032_v26  ;;  %v15840_v63 = vpop.f32.mrb[39].mxu1  ;;  %v15921_v48 = vpop.f32.mrb[34].mxu0  ;;  %16365 = vmatpush1.bf16.msra.mxu0 %v24330_v38  ;;  %16293 = vmatprep.subr.bf16.mxu1 %v24335_v27  ;;  %v24368_v38 = vld [vmem:[%s27319_s17 + $0x7e4] ss:$456 sps:$4 sm:$0xff]  }
 0x665   : > { %v19235_v30 = vsub.f32 0.0, %v22641_v33  ;;  %v19236_v50 = vsub.f32 0.0, %v22642_v35  ;;  %v15922_v51 = vpop.f32.mrb[35].mxu0  ;;  %16375 = vmatprep.subr.bf16.mxu0 %v24338_v29  ;;  %v24366_v29 = vld [vmem:[%s27319_s17 + $0x7e0] ss:$456 sps:$4 sm:$0xff]  }
 0x666   : > { %v19378_v54 = vmul.f32 1.442695, %v19234_v45  ;;  %v19237_v55 = vsub.f32 0.0, %v22643_v46  ;;  %16285 = vmatmul.mubr.bf16.vlgmr.msra.gmra.mrb[48].mxu1 %v27535_v40  ;;  %v24371_v31 = vld [vmem:[%s27319_s17 + $0xb6c] ss:$456 sps:$4 sm:$0xff]  }
 0x667   : > { %v19380_v57 = vmul.f32 1.442695, %v19235_v30  ;;  %v19382_v58 = vmul.f32 1.442695, %v19236_v50  ;;  %16294 = vmatpush1.bf16.msra.mxu1 %v24333_v43  ;;  %16367 = vmatmul.mubr.bf16.vlgmr.msra.gmra.mrb[44].mxu0 %v27535_v40  ;;  %v24374_v32 = vld [vmem:[%s27319_s17 + $0xb74] ss:$456 sps:$4 sm:$0xff]  }
 0x668   : > { %26411 = vpow2.f32 %v19378_v54  ;;  %v19384_v9 = vmul.f32 1.442695, %v19237_v55  ;;  %16376 = vmatpush1.bf16.msra.mxu0 %v24336_v44  ;;  %16295 = vmatprep.subr.bf16.mxu1 %v24341_v49  ;;  %v24369_v47 = vld [vmem:[%s27319_s17 + $0xb68] ss:$456 sps:$4 sm:$0xff]   ;;  %v24377_v35 = vld [vmem:[%s27319_s17 + $0xefc] ss:$456 sps:$4 sm:$0xff]  }
 0x669   : > { %26413 = vpow2.f32 %v19380_v57  ;;  %16377 = vmatprep.subr.bf16.mxu0 %v24344_v53  ;;  %16325 = vmatprep.mubr.bf16.mxu1 %v27007_v16  ;;  %v24372_v33 = vld [vmem:[%s27319_s17 + $0xb70] ss:$456 sps:$4 sm:$0xff]   ;;  %v24380_v37 = vld [vmem:[%s27319_s17 + $0xf04] ss:$456 sps:$4 sm:$0xff]   ;;  %v24378_v45 = vld [vmem:[%s27319_s17 + $0xf00] ss:$456 sps:$4 sm:$0xff]  }
 0x66a   : > { %26415 = vpow2.f32 %v19382_v58  ;;  %16407 = vmatprep.mubr.bf16.mxu0 %v27007_v16  ;;  %v24375_v43 = vld [vmem:[%s27319_s17 + $0xef8] ss:$456 sps:$4 sm:$0xff]   ;;  %v24383_v46 = vld [vmem:[%s27319_s17 + $0x128c] ss:$456 sps:$4 sm:$0xff]   ;;  %v24381_v51 = vld [vmem:[%s27319_s17 + $0x1288] ss:$456 sps:$4 sm:$0xff]  }
 0x66b   : > { %26417 = vpow2.f32 %v19384_v9  ;;  %16296 = vmatpush1.bf16.msra.mxu1 %v24339_v52  ;;  %v24386_v49 = vld [vmem:[%s27319_s17 + $0x1294] ss:$456 sps:$4 sm:$0xff]   ;;  %v24384_v52 = vld [vmem:[%s27319_s17 + $0x1290] ss:$456 sps:$4 sm:$0xff]   ;;  %v24392_v54 = vld [vmem:[%s27319_s17 + $0x1624] ss:$456 sps:$4 sm:$0xff]  }
 0x66c   : > { %16378 = vmatpush1.bf16.msra.mxu0 %v24342_v59  ;;  %22441 = vmatprep.subr.msk.bf16.mxu1 %vm14187_vm7, %v24345_v56  ;;  %v24389_v53 = vld [vmem:[%s27319_s17 + $0x161c] ss:$456 sps:$4 sm:$0xff]   ;;  %v24387_v55 = vld [vmem:[%s27319_s17 + $0x1618] ss:$456 sps:$4 sm:$0xff]   ;;  %v24395_v57 = vld [vmem:[%s27319_s17 + $0x19ac] ss:$456 sps:$4 sm:$0xff]  }
 0x66d   : > { %22443 = vmatprep.subr.msk.bf16.mxu0 %vm14187_vm7, %v24348_v61  ;;  %v24390_v56 = vld [vmem:[%s27319_s17 + $0x1620] ss:$456 sps:$4 sm:$0xff]   ;;  %v24398_v58 = vld [vmem:[%s27319_s17 + $0x19b4] ss:$456 sps:$4 sm:$0xff]   ;;  %v24396_v9 = vld [vmem:[%s27319_s17 + $0x19b0] ss:$456 sps:$4 sm:$0xff]  }
 0x66e   : > { %v24393_v59 = vld [vmem:[%s27319_s17 + $0x19a8] ss:$456 sps:$4 sm:$0xff]   ;;  %v24404_v61 = vld [vmem:[%s27319_s17 + $0x1d44] ss:$456 sps:$4 sm:$0xff]  }
 0x66f   : > { %16298 = vmatpush1.bf16.msra.mxu1 %v14315_v1  ;;  %v24402_v1 = vld [vmem:[%s27319_s17 + $0x1d40] ss:$456 sps:$4 sm:$0xff]  }
 0x670   : > { %16380 = vmatpush1.bf16.msra.mxu0 %v14321_v0  ;;  %16416 = vmatprep.subr.bf16.mxu1 %v24353_v4  ;;  %v24407_v4 = vld [vmem:[%s27319_s17 + $0x20cc] ss:$456 sps:$4 sm:$0xff]  }
 0x671   : > { %16498 = vmatprep.subr.bf16.mxu0 %v24356_v5  ;;  %v24410_v0 = vld [vmem:[%s27319_s17 + $0x20d4] ss:$456 sps:$4 sm:$0xff]   ;;  %v24405_v5 = vld [vmem:[%s27319_s17 + $0x20c8] ss:$456 sps:$4 sm:$0xff]  }
 0x672   : > { %v26412_v11 = vpop.eup %26411  ;;  %22442 = vmatmul.mubr.msk.bf16.vlgmr.msra.gmra.mrb[48].mxu1 %vm14183_vm8, %v27539_v42 }
 0x673   : > { %v26414_v13 = vpop.eup %26413  ;;  %v19576_v14 = vadd.f32 1.0, %v26412_v11  ;;  %22444 = vmatmul.mubr.msk.bf16.vlgmr.msra.gmra.mrb[44].mxu0 %vm14183_vm8, %v27539_v42  ;;  %16417 = vmatpush1.bf16.msra.mxu1 %v24351_v6  ;;  %v24408_v6 = vld [vmem:[%s27319_s17 + $0x20d0] ss:$456 sps:$4 sm:$0xff]  }
 0x674   : > { %v26416_v18 = vpop.eup %26415  ;;  %v19577_v19 = vadd.f32 1.0, %v26414_v13  ;;  %16448 = vmatprep.mubr.bf16.mxu1 %v27537_v41  ;;  %16499 = vmatpush1.bf16.msra.mxu0 %v24354_v8  ;;  %v24413_v8 = vld [vmem:[%s27319_s17 + $0x245c] ss:$456 sps:$4 sm:$0xff]   ;;  %v24411_v11 = vld [vmem:[%s27319_s17 + $0x2458] ss:$456 sps:$4 sm:$0xff]  }
 0x675   : > { %v26418_v24 = vpop.eup %26417  ;;  %26419 = vrcp.f32 %v19576_v14  ;;  %v19578_v26 = vadd.f32 1.0, %v26416_v18  ;;  %16530 = vmatprep.mubr.bf16.mxu0 %v27537_v41  ;;  %16418 = vmatprep.subr.bf16.mxu1 %v24359_v10  ;;  %v24416_v10 = vld [vmem:[%s27319_s17 + $0x2464] ss:$456 sps:$4 sm:$0xff]   ;;  %v24422_v14 = vld [vmem:[%s27319_s17 + $0x27f4] ss:$456 sps:$4 sm:$0xff]  }
 0x676   : > { %26421 = vrcp.f32 %v19577_v19  ;;  %v19579_v27 = vadd.f32 1.0, %v26418_v24  ;;  %16500 = vmatprep.subr.bf16.mxu0 %v24362_v12  ;;  %v24414_v12 = vld [vmem:[%s27319_s17 + $0x2460] ss:$456 sps:$4 sm:$0xff]   ;;  %v24419_v13 = vld [vmem:[%s27319_s17 + $0x27ec] ss:$456 sps:$4 sm:$0xff]  }
 0x677   : > { %26423 = vrcp.f32 %v19578_v26  ;;  %16419 = vmatpush1.bf16.msra.mxu1 %v24357_v17  ;;  %v24417_v17 = vld [vmem:[%s27319_s17 + $0x27e8] ss:$456 sps:$4 sm:$0xff]   ;;  %v24425_v19 = vld [vmem:[%s27319_s17 + $0x2b7c] ss:$456 sps:$4 sm:$0xff]   ;;  %v24431_v26 = vld [vmem:[%s27319_s17 + $0x2f0c] ss:$456 sps:$4 sm:$0xff]  }
 0x678   : > { %26425 = vrcp.f32 %v19579_v27  ;;  %16501 = vmatpush1.bf16.msra.mxu0 %v24360_v20  ;;  %16420 = vmatprep.subr.bf16.mxu1 %v24365_v21  ;;  %v24420_v18 = vld [vmem:[%s27319_s17 + $0x27f0] ss:$456 sps:$4 sm:$0xff]   ;;  %v24428_v20 = vld [vmem:[%s27319_s17 + $0x2b84] ss:$456 sps:$4 sm:$0xff]   ;;  %v24426_v24 = vld [vmem:[%s27319_s17 + $0x2b80] ss:$456 sps:$4 sm:$0xff]  }
 0x679   : > { %16502 = vmatprep.subr.bf16.mxu0 %v24368_v38  ;;  %v24423_v21 = vld [vmem:[%s27319_s17 + $0x2b78] ss:$456 sps:$4 sm:$0xff]   ;;  %v24434_v38 = vld [vmem:[%s27319_s17 + $0x2f14] ss:$456 sps:$4 sm:$0xff]   ;;  %v24429_v27 = vld [vmem:[%s27319_s17 + $0x2f08] ss:$456 sps:$4 sm:$0xff]  }
 0x67b   : > { %16421 = vmatpush1.bf16.msra.mxu1 %v24363_v28  ;;  %v24432_v28 = vld [vmem:[%s27319_s17 + $0x2f10] ss:$456 sps:$4 sm:$0xff]  }
 0x67c   : > { %16503 = vmatpush1.bf16.msra.mxu0 %v24366_v29  ;;  %16422 = vmatprep.subr.bf16.mxu1 %v24371_v31  ;;  %v24437_v29 = vld [vmem:[%s27319_s17 + $0x329c] ss:$456 sps:$4 sm:$0xff]  }
 0x67d   : > { %16504 = vmatprep.subr.bf16.mxu0 %v24374_v32  ;;  %v24440_v31 = vld [vmem:[%s27319_s17 + $0x32a4] ss:$456 sps:$4 sm:$0xff]   ;;  %v24435_v32 = vld [vmem:[%s27319_s17 + $0x3298] ss:$456 sps:$4 sm:$0xff]  }
 0x67f   : > { %v26420_v39 = vpop.eup %26419  ;;  %16423 = vmatpush1.bf16.msra.mxu1 %v24369_v47  ;;  %v24438_v47 = vld [vmem:[%s27319_s17 + $0x32a0] ss:$456 sps:$4 sm:$0xff]  }
 0x680   : > { %v26422_v44 = vpop.eup %26421  ;;  %16505 = vmatpush1.bf16.msra.mxu0 %v24372_v33  ;;  %16424 = vmatprep.subr.bf16.mxu1 %v24377_v35  ;;  %v24443_v33 = vld [vmem:[%s27319_s17 + $0x362c] ss:$456 sps:$4 sm:$0xff]  }
 0x681   : > { %v26424_v63 = vpop.eup %26423  ;;  %v19903_v48 = vcombine.low %v26420_v39, %v26422_v44  ;;  %16506 = vmatprep.subr.bf16.mxu0 %v24380_v37  ;;  %v24446_v35 = vld [vmem:[%s27319_s17 + $0x3634] ss:$456 sps:$4 sm:$0xff]   ;;  %v3036_v37 = vrot.slane %v28612_v15, %v27461_v7  ;;  %v3040_v39 = vrot.slane %v28612_v15, %v27889_v22  ;;  %v24441_v44 = vld [vmem:[%s27319_s17 + $0x3628] ss:$456 sps:$4 sm:$0xff]  }
 0x682   : > { %v26426_v30 = vpop.eup %26425 }
 0x683   : > { %20017 = vst [vmem:[%s27851_s14 + $0x78] sm:$0xff] %v19903_v48  ;;  %v19904_v50 = vcombine.low %v26424_v63, %v26426_v30  ;;  %16425 = vmatpush1.bf16.msra.mxu1 %v24375_v43  ;;  %v3044_v43 = vrot.slane %v28612_v15, %v27892_v23  ;;  %v24449_v63 = vld [vmem:[%s27319_s17 + $0x39bc] ss:$456 sps:$4 sm:$0xff]  }
 0x684   : > { %16507 = vmatpush1.bf16.msra.mxu0 %v24378_v45  ;;  %16426 = vmatprep.subr.bf16.mxu1 %v24383_v46  ;;  %v3048_v45 = vrot.slane %v28612_v15, %v27896_v25  ;;  %v24444_v46 = vld [vmem:[%s27319_s17 + $0x3630] ss:$456 sps:$4 sm:$0xff]  }
 0x685   : > { %20018 = vst [vmem:[%s27851_s14 + $0x80] sm:$0xff] %v19904_v50  ;;  %16508 = vmatprep.subr.bf16.mxu0 %v24386_v49  ;;  %v24452_v49 = vld [vmem:[%s27319_s17 + $0x39c4] ss:$456 sps:$4 sm:$0xff]  }
 0x687   : > { %16427 = vmatpush1.bf16.msra.mxu1 %v24381_v51 }
 0x688   : > { %16509 = vmatpush1.bf16.msra.mxu0 %v24384_v52  ;;  %16428 = vmatprep.subr.bf16.mxu1 %v24389_v53 }
 0x689   : > { %16510 = vmatprep.subr.bf16.mxu0 %v24392_v54 }
 0x68b   : > { %16429 = vmatpush1.bf16.msra.mxu1 %v24387_v55 }
 0x68c   : > { %16511 = vmatpush1.bf16.msra.mxu0 %v24390_v56  ;;  %16430 = vmatprep.subr.bf16.mxu1 %v24395_v57  ;;  %v24447_v56 = vld [vmem:[%s27319_s17 + $0x39b8] ss:$456 sps:$4 sm:$0xff]  }
 0x68d   : > { %16512 = vmatprep.subr.bf16.mxu0 %v24398_v58  ;;  %v24450_v57 = vld [vmem:[%s27319_s17 + $0x39c0] ss:$456 sps:$4 sm:$0xff]  }
 0x68f   : > { %16431 = vmatpush1.bf16.msra.mxu1 %v24393_v59 }
 0x690   : > { %16513 = vmatpush1.bf16.msra.mxu0 %v24396_v9  ;;  %16432 = vmatprep.subr.bf16.mxu1 %v24401_v60 }
 0x691   : > { %16514 = vmatprep.subr.bf16.mxu0 %v24404_v61  ;;  %v24455_v61 = vld [vmem:[%s27319_s17 + $0x3d4c] ss:$456 sps:$4 sm:$0xff]  }
 0x693   : > { %16433 = vmatpush1.bf16.msra.mxu1 %v24399_v62 }
 0x694   : > { %16515 = vmatpush1.bf16.msra.mxu0 %v24402_v1  ;;  %16434 = vmatprep.subr.bf16.mxu1 %v24407_v4 }
 0x695   : > { %16516 = vmatprep.subr.bf16.mxu0 %v24410_v0  ;;  %v24453_v0 = vld [vmem:[%s27319_s17 + $0x3d48] ss:$456 sps:$4 sm:$0xff]  }
 0x697   : > { %16435 = vmatpush1.bf16.msra.mxu1 %v24405_v5  ;;  %v24458_v5 = vld [vmem:[%s27319_s17 + $0x3d54] ss:$456 sps:$4 sm:$0xff]  }
 0x698   : > { %16517 = vmatpush1.bf16.msra.mxu0 %v24408_v6  ;;  %16436 = vmatprep.subr.bf16.mxu1 %v24413_v8 }
 0x699   : > { %16518 = vmatprep.subr.bf16.mxu0 %v24416_v10  ;;  %v24459_v10 = vld [vmem:[%s27319_s17 + $0x40dc] ss:$456 sps:$4 sm:$0x3f]  }
 0x69b   : > { %16437 = vmatpush1.bf16.msra.mxu1 %v24411_v11 }
 0x69c   : > { %16519 = vmatpush1.bf16.msra.mxu0 %v24414_v12  ;;  %16438 = vmatprep.subr.bf16.mxu1 %v24419_v13  ;;  %v24456_v13 = vld [vmem:[%s27319_s17 + $0x3d50] ss:$456 sps:$4 sm:$0xff]  }
 0x69d   : > { %16520 = vmatprep.subr.bf16.mxu0 %v24422_v14 }
 0x69f   : > { %16439 = vmatpush1.bf16.msra.mxu1 %v24417_v17  ;;  %v24461_v17 = vld [vmem:[%s27319_s17 + $0x40d8] ss:$456 sps:$4 sm:$0x3f]  }
 0x6a0   : > { %16521 = vmatpush1.bf16.msra.mxu0 %v24420_v18  ;;  %16440 = vmatprep.subr.bf16.mxu1 %v24425_v19  ;;  %v24462_v18 = vld [vmem:[%s27319_s17 + $0x40e4] ss:$456 sps:$4 sm:$0x3f]   ;;  %v24464_v19 = vld [vmem:[%s27319_s17 + $0x40e0] ss:$456 sps:$4 sm:$0x3f]  }
 0x6a1   : > { %16522 = vmatprep.subr.bf16.mxu0 %v24428_v20  ;;  %v14327_v20 = vsel %vm14187_vm7, %v24461_v17, 0  ;;  %v24515_v17 = vld [vmem:[%s27319_s17 + $0x1d4c] ss:$456 sps:$4 sm:$0xff]  }
 0x6a3   : > { %16441 = vmatpush1.bf16.msra.mxu1 %v24423_v21  ;;  %v24467_v21 = vld [vmem:[%s27319_s17 + $0xcc] ss:$456 sps:$4 sm:$0xff]  }
 0x6a4   : > { %16523 = vmatpush1.bf16.msra.mxu0 %v24426_v24  ;;  %16442 = vmatprep.subr.bf16.mxu1 %v24431_v26  ;;  %v14333_v24 = vsel %vm14187_vm7, %v24464_v19, 0  ;;  %v24470_v26 = vld [vmem:[%s27319_s17 + $0xd4] ss:$456 sps:$4 sm:$0xff]   ;;  %v24513_v19 = vld [vmem:[%s27319_s17 + $0x1d48] ss:$456 sps:$4 sm:$0xff]  }
 0x6a5   : > { %16524 = vmatprep.subr.bf16.mxu0 %v24434_v38  ;;  %v24465_v38 = vld [vmem:[%s27319_s17 + $0xc8] ss:$456 sps:$4 sm:$0xff]  }
 0x6a7   : > { %16443 = vmatpush1.bf16.msra.mxu1 %v24429_v27  ;;  %v24468_v27 = vld [vmem:[%s27319_s17 + $0xd0] ss:$456 sps:$4 sm:$0xff]  }
 0x6a8   : > { %16525 = vmatpush1.bf16.msra.mxu0 %v24432_v28  ;;  %16444 = vmatprep.subr.bf16.mxu1 %v24437_v29  ;;  %v24473_v28 = vld [vmem:[%s27319_s17 + $0x45c] ss:$456 sps:$4 sm:$0xff]  }
 0x6a9   : > { %16526 = vmatprep.subr.bf16.mxu0 %v24440_v31  ;;  %v24476_v31 = vld [vmem:[%s27319_s17 + $0x464] ss:$456 sps:$4 sm:$0xff]  }
 0x6ab   : > { %16445 = vmatpush1.bf16.msra.mxu1 %v24435_v32 }
 0x6ac   : > { %16527 = vmatpush1.bf16.msra.mxu0 %v24438_v47  ;;  %16446 = vmatprep.subr.bf16.mxu1 %v24443_v33  ;;  %v24471_v33 = vld [vmem:[%s27319_s17 + $0x458] ss:$456 sps:$4 sm:$0xff]  }
 0x6ad   : > { %v15999_v48 = vpop.f32.mrb[40].mxu1  ;;  %16528 = vmatprep.subr.bf16.mxu0 %v24446_v35 }
 0x6ae   : > { %v22644_v30 = vadd.f32 %v15999_v48, %v3036_v37  ;;  %v16001_v50 = vpop.f32.mrb[41].mxu1  ;;  %v16081_v51 = vpop.f32.mrb[36].mxu0  ;;  %v24477_v48 = vld [vmem:[%s27319_s17 + $0x7e8] ss:$456 sps:$4 sm:$0xff]  }
 0x6af   : > { %v22645_v52 = vadd.f32 %v16001_v50, %v3040_v39  ;;  %v22646_v53 = vadd.f32 %v16081_v51, %v3044_v43  ;;  %v16003_v54 = vpop.f32.mrb[42].mxu1  ;;  %v16083_v55 = vpop.f32.mrb[37].mxu0  ;;  %16447 = vmatpush1.bf16.msra.mxu1 %v24441_v44  ;;  %v24474_v39 = vld [vmem:[%s27319_s17 + $0x460] ss:$456 sps:$4 sm:$0xff]   ;;  %v24479_v43 = vld [vmem:[%s27319_s17 + $0x7ec] ss:$456 sps:$4 sm:$0xff]  }
 0x6b0   : > { %v19238_v58 = vsub.f32 0.0, %v22644_v30  ;;  %v22647_v59 = vadd.f32 %v16083_v55, %v3048_v45  ;;  %v16004_v9 = vpop.f32.mrb[43].mxu1  ;;  %v16085_v60 = vpop.f32.mrb[38].mxu0  ;;  %16529 = vmatpush1.bf16.msra.mxu0 %v24444_v46  ;;  %16457 = vmatprep.subr.bf16.mxu1 %v24449_v63  ;;  %v24482_v46 = vld [vmem:[%s27319_s17 + $0x7f4] ss:$456 sps:$4 sm:$0xff]  }
 0x6b1   : > { %v19239_v62 = vsub.f32 0.0, %v22645_v52  ;;  %v19240_v1 = vsub.f32 0.0, %v22646_v53  ;;  %v16086_v4 = vpop.f32.mrb[39].mxu0  ;;  %16539 = vmatprep.subr.bf16.mxu0 %v24452_v49  ;;  %v24480_v49 = vld [vmem:[%s27319_s17 + $0x7f0] ss:$456 sps:$4 sm:$0xff]  }
 0x6b2   : > { %v19386_v6 = vmul.f32 1.442695, %v19238_v58  ;;  %v19241_v8 = vsub.f32 0.0, %v22647_v59  ;;  %16449 = vmatmul.mubr.bf16.vlgmr.msra.gmra.mrb[52].mxu1 %v27535_v40  ;;  %v24485_v30 = vld [vmem:[%s27319_s17 + $0xb7c] ss:$456 sps:$4 sm:$0xff]  }
 0x6b3   : > { %v19388_v11 = vmul.f32 1.442695, %v19239_v62  ;;  %v19390_v12 = vmul.f32 1.442695, %v19240_v1  ;;  %16458 = vmatpush1.bf16.msra.mxu1 %v24447_v56  ;;  %16531 = vmatmul.mubr.bf16.vlgmr.msra.gmra.mrb[48].mxu0 %v27535_v40  ;;  %v24488_v50 = vld [vmem:[%s27319_s17 + $0xb84] ss:$456 sps:$4 sm:$0xff]  }
 0x6b4   : > { %26427 = vpow2.f32 %v19386_v6  ;;  %v19392_v14 = vmul.f32 1.442695, %v19241_v8  ;;  %16540 = vmatpush1.bf16.msra.mxu0 %v24450_v57  ;;  %16459 = vmatprep.subr.bf16.mxu1 %v24455_v61  ;;  %v24483_v51 = vld [vmem:[%s27319_s17 + $0xb78] ss:$456 sps:$4 sm:$0xff]   ;;  %v24491_v53 = vld [vmem:[%s27319_s17 + $0xf0c] ss:$456 sps:$4 sm:$0xff]  }
 0x6b5   : > { %26429 = vpow2.f32 %v19388_v11  ;;  %16541 = vmatprep.subr.bf16.mxu0 %v24458_v5  ;;  %16489 = vmatprep.mubr.bf16.mxu1 %v27007_v16  ;;  %v24486_v52 = vld [vmem:[%s27319_s17 + $0xb80] ss:$456 sps:$4 sm:$0xff]   ;;  %v24494_v54 = vld [vmem:[%s27319_s17 + $0xf14] ss:$456 sps:$4 sm:$0xff]   ;;  %v24492_v58 = vld [vmem:[%s27319_s17 + $0xf10] ss:$456 sps:$4 sm:$0xff]  }
 0x6b6   : > { %26431 = vpow2.f32 %v19390_v12  ;;  %16571 = vmatprep.mubr.bf16.mxu0 %v27007_v16  ;;  %v24489_v56 = vld [vmem:[%s27319_s17 + $0xf08] ss:$456 sps:$4 sm:$0xff]   ;;  %v24497_v59 = vld [vmem:[%s27319_s17 + $0x129c] ss:$456 sps:$4 sm:$0xff]   ;;  %v24495_v4 = vld [vmem:[%s27319_s17 + $0x1298] ss:$456 sps:$4 sm:$0xff]  }
 0x6b7   : > { %26433 = vpow2.f32 %v19392_v14  ;;  %16460 = vmatpush1.bf16.msra.mxu1 %v24453_v0  ;;  %v24500_v61 = vld [vmem:[%s27319_s17 + $0x12a4] ss:$456 sps:$4 sm:$0xff]   ;;  %v24498_v0 = vld [vmem:[%s27319_s17 + $0x12a0] ss:$456 sps:$4 sm:$0xff]   ;;  %v24506_v6 = vld [vmem:[%s27319_s17 + $0x1634] ss:$456 sps:$4 sm:$0xff]  }
 0x6b8   : > { %16542 = vmatpush1.bf16.msra.mxu0 %v24456_v13  ;;  %22445 = vmatprep.subr.msk.bf16.mxu1 %vm14187_vm7, %v24459_v10  ;;  %v24503_v5 = vld [vmem:[%s27319_s17 + $0x162c] ss:$456 sps:$4 sm:$0xff]   ;;  %v24501_v8 = vld [vmem:[%s27319_s17 + $0x1628] ss:$456 sps:$4 sm:$0xff]   ;;  %v24509_v11 = vld [vmem:[%s27319_s17 + $0x19bc] ss:$456 sps:$4 sm:$0xff]  }
 0x6b9   : > { %22447 = vmatprep.subr.msk.bf16.mxu0 %vm14187_vm7, %v24462_v18  ;;  %v24504_v10 = vld [vmem:[%s27319_s17 + $0x1630] ss:$456 sps:$4 sm:$0xff]   ;;  %v24512_v12 = vld [vmem:[%s27319_s17 + $0x19c4] ss:$456 sps:$4 sm:$0xff]   ;;  %v24510_v14 = vld [vmem:[%s27319_s17 + $0x19c0] ss:$456 sps:$4 sm:$0xff]  }
 0x6ba   : > { %v24507_v13 = vld [vmem:[%s27319_s17 + $0x19b8] ss:$456 sps:$4 sm:$0xff]   ;;  %v24518_v18 = vld [vmem:[%s27319_s17 + $0x1d54] ss:$456 sps:$4 sm:$0xff]  }
 0x6bb   : > { %16462 = vmatpush1.bf16.msra.mxu1 %v14327_v20  ;;  %v24516_v20 = vld [vmem:[%s27319_s17 + $0x1d50] ss:$456 sps:$4 sm:$0xff]  }
 0x6bc   : > { %16544 = vmatpush1.bf16.msra.mxu0 %v14333_v24  ;;  %16580 = vmatprep.subr.bf16.mxu1 %v24467_v21  ;;  %v24521_v21 = vld [vmem:[%s27319_s17 + $0x20dc] ss:$456 sps:$4 sm:$0xff]  }
 0x6bd   : > { %16662 = vmatprep.subr.bf16.mxu0 %v24470_v26  ;;  %v24524_v24 = vld [vmem:[%s27319_s17 + $0x20e4] ss:$456 sps:$4 sm:$0xff]   ;;  %v24519_v26 = vld [vmem:[%s27319_s17 + $0x20d8] ss:$456 sps:$4 sm:$0xff]  }
 0x6be   : > { %v26428_v29 = vpop.eup %26427  ;;  %22446 = vmatmul.mubr.msk.bf16.vlgmr.msra.gmra.mrb[52].mxu1 %vm14183_vm8, %v27539_v42 }
 0x6bf   : > { %v26430_v32 = vpop.eup %26429  ;;  %v19580_v47 = vadd.f32 1.0, %v26428_v29  ;;  %22448 = vmatmul.mubr.msk.bf16.vlgmr.msra.gmra.mrb[48].mxu0 %vm14183_vm8, %v27539_v42  ;;  %16581 = vmatpush1.bf16.msra.mxu1 %v24465_v38  ;;  %v24522_v38 = vld [vmem:[%s27319_s17 + $0x20e0] ss:$456 sps:$4 sm:$0xff]  }
 0x6c0   : > { %v26432_v35 = vpop.eup %26431  ;;  %v19581_v37 = vadd.f32 1.0, %v26430_v32  ;;  %16612 = vmatprep.mubr.bf16.mxu1 %v27537_v41  ;;  %16663 = vmatpush1.bf16.msra.mxu0 %v24468_v27  ;;  %v24527_v27 = vld [vmem:[%s27319_s17 + $0x246c] ss:$456 sps:$4 sm:$0xff]   ;;  %v24525_v29 = vld [vmem:[%s27319_s17 + $0x2468] ss:$456 sps:$4 sm:$0xff]  }
 0x6c1   : > { %v26434_v44 = vpop.eup %26433  ;;  %26435 = vrcp.f32 %v19580_v47  ;;  %v19582_v45 = vadd.f32 1.0, %v26432_v35  ;;  %16694 = vmatprep.mubr.bf16.mxu0 %v27537_v41  ;;  %16582 = vmatprep.subr.bf16.mxu1 %v24473_v28  ;;  %v24530_v28 = vld [vmem:[%s27319_s17 + $0x2474] ss:$456 sps:$4 sm:$0xff]   ;;  %v24536_v47 = vld [vmem:[%s27319_s17 + $0x2804] ss:$456 sps:$4 sm:$0xff]  }
 0x6c2   : > { %26437 = vrcp.f32 %v19581_v37  ;;  %v19583_v63 = vadd.f32 1.0, %v26434_v44  ;;  %16664 = vmatprep.subr.bf16.mxu0 %v24476_v31  ;;  %v24528_v31 = vld [vmem:[%s27319_s17 + $0x2470] ss:$456 sps:$4 sm:$0xff]   ;;  %v24533_v32 = vld [vmem:[%s27319_s17 + $0x27fc] ss:$456 sps:$4 sm:$0xff]  }
 0x6c3   : > { %26439 = vrcp.f32 %v19582_v45  ;;  %16583 = vmatpush1.bf16.msra.mxu1 %v24471_v33  ;;  %v24531_v33 = vld [vmem:[%s27319_s17 + $0x27f8] ss:$456 sps:$4 sm:$0xff]   ;;  %v24539_v37 = vld [vmem:[%s27319_s17 + $0x2b8c] ss:$456 sps:$4 sm:$0xff]   ;;  %v24545_v45 = vld [vmem:[%s27319_s17 + $0x2f1c] ss:$456 sps:$4 sm:$0xff]  }
 0x6c4   : > { %26441 = vrcp.f32 %v19583_v63  ;;  %16665 = vmatpush1.bf16.msra.mxu0 %v24474_v39  ;;  %16584 = vmatprep.subr.bf16.mxu1 %v24479_v43  ;;  %v24534_v35 = vld [vmem:[%s27319_s17 + $0x2800] ss:$456 sps:$4 sm:$0xff]   ;;  %v24542_v39 = vld [vmem:[%s27319_s17 + $0x2b94] ss:$456 sps:$4 sm:$0xff]   ;;  %v24540_v44 = vld [vmem:[%s27319_s17 + $0x2b90] ss:$456 sps:$4 sm:$0xff]  }
 0x6c5   : > { %16666 = vmatprep.subr.bf16.mxu0 %v24482_v46  ;;  %v24537_v43 = vld [vmem:[%s27319_s17 + $0x2b88] ss:$456 sps:$4 sm:$0xff]   ;;  %v24548_v46 = vld [vmem:[%s27319_s17 + $0x2f24] ss:$456 sps:$4 sm:$0xff]   ;;  %v24543_v63 = vld [vmem:[%s27319_s17 + $0x2f18] ss:$456 sps:$4 sm:$0xff]  }
 0x6c7   : > { %16585 = vmatpush1.bf16.msra.mxu1 %v24477_v48  ;;  %v24546_v48 = vld [vmem:[%s27319_s17 + $0x2f20] ss:$456 sps:$4 sm:$0xff]  }
 0x6c8   : > { %16667 = vmatpush1.bf16.msra.mxu0 %v24480_v49  ;;  %16586 = vmatprep.subr.bf16.mxu1 %v24485_v30  ;;  %v24551_v49 = vld [vmem:[%s27319_s17 + $0x32ac] ss:$456 sps:$4 sm:$0xff]  }
 0x6c9   : > { %16668 = vmatprep.subr.bf16.mxu0 %v24488_v50  ;;  %v24554_v30 = vld [vmem:[%s27319_s17 + $0x32b4] ss:$456 sps:$4 sm:$0xff]   ;;  %v24549_v50 = vld [vmem:[%s27319_s17 + $0x32a8] ss:$456 sps:$4 sm:$0xff]  }
 0x6cb   : > { %v26436_v55 = vpop.eup %26435  ;;  %16587 = vmatpush1.bf16.msra.mxu1 %v24483_v51  ;;  %v24552_v51 = vld [vmem:[%s27319_s17 + $0x32b0] ss:$456 sps:$4 sm:$0xff]  }
 0x6cc   : > { %v26438_v57 = vpop.eup %26437  ;;  %16669 = vmatpush1.bf16.msra.mxu0 %v24486_v52  ;;  %16588 = vmatprep.subr.bf16.mxu1 %v24491_v53  ;;  %v28815_v52 = vld [vmem:[%s27786_s21 + $0x28] sm:$0xff]  ;;  %v24557_v53 = vld [vmem:[%s27319_s17 + $0x363c] ss:$456 sps:$4 sm:$0xff]  }
 0x6cd   : > { %v26440_v9 = vpop.eup %26439  ;;  %v19905_v60 = vcombine.low %v26436_v55, %v26438_v57  ;;  %16670 = vmatprep.subr.bf16.mxu0 %v24494_v54  ;;  %v24560_v54 = vld [vmem:[%s27319_s17 + $0x3644] ss:$456 sps:$4 sm:$0xff]   ;;  %v3052_v55 = vrot.slane %v28612_v15, %v27996_v34  ;;  %v3060_v57 = vrot.slane %v28815_v52, %v27453_v2 }
 0x6ce   : > { %v26442_v62 = vpop.eup %26441 }
 0x6cf   : > { %20019 = vst [vmem:[%s27851_s14 + $0x88] sm:$0xff] %v19905_v60  ;;  %v19906_v1 = vcombine.low %v26440_v9, %v26442_v62  ;;  %16589 = vmatpush1.bf16.msra.mxu1 %v24489_v56  ;;  %v3056_v56 = vrot.slane %v28612_v15, %v28000_v36  ;;  %v24558_v9 = vld [vmem:[%s27319_s17 + $0x3640] ss:$456 sps:$4 sm:$0xff]   ;;  %v24563_v60 = vld [vmem:[%s27319_s17 + $0x39cc] ss:$456 sps:$4 sm:$0xff]  }
 0x6d0   : > { %16671 = vmatpush1.bf16.msra.mxu0 %v24492_v58  ;;  %16590 = vmatprep.subr.bf16.mxu1 %v24497_v59  ;;  %v24555_v58 = vld [vmem:[%s27319_s17 + $0x3638] ss:$456 sps:$4 sm:$0xff]   ;;  %v3064_v59 = vrot.slane %v28815_v52, %v27456_v3  ;;  %v24566_v62 = vld [vmem:[%s27319_s17 + $0x39d4] ss:$456 sps:$4 sm:$0xff]  }
 0x6d1   : > { %20020 = vst [vmem:[%s27851_s14 + $0x90] sm:$0xff] %v19906_v1  ;;  %16672 = vmatprep.subr.bf16.mxu0 %v24500_v61 }
 0x6d3   : > { %16591 = vmatpush1.bf16.msra.mxu1 %v24495_v4 }
 0x6d4   : > { %16673 = vmatpush1.bf16.msra.mxu0 %v24498_v0  ;;  %16592 = vmatprep.subr.bf16.mxu1 %v24503_v5 }
 0x6d5   : > { %16674 = vmatprep.subr.bf16.mxu0 %v24506_v6 }
 0x6d7   : > { %16593 = vmatpush1.bf16.msra.mxu1 %v24501_v8 }
 0x6d8   : > { %16675 = vmatpush1.bf16.msra.mxu0 %v24504_v10  ;;  %16594 = vmatprep.subr.bf16.mxu1 %v24509_v11  ;;  %v24561_v10 = vld [vmem:[%s27319_s17 + $0x39c8] ss:$456 sps:$4 sm:$0xff]  }
 0x6d9   : > { %16676 = vmatprep.subr.bf16.mxu0 %v24512_v12  ;;  %v24564_v11 = vld [vmem:[%s27319_s17 + $0x39d0] ss:$456 sps:$4 sm:$0xff]  }
 0x6db   : > { %16595 = vmatpush1.bf16.msra.mxu1 %v24507_v13 }
 0x6dc   : > { %16677 = vmatpush1.bf16.msra.mxu0 %v24510_v14  ;;  %16596 = vmatprep.subr.bf16.mxu1 %v24515_v17 }
 0x6dd   : > { %16678 = vmatprep.subr.bf16.mxu0 %v24518_v18  ;;  %v24569_v18 = vld [vmem:[%s27319_s17 + $0x3d5c] ss:$456 sps:$4 sm:$0xff]  }
 0x6df   : > { %16597 = vmatpush1.bf16.msra.mxu1 %v24513_v19 }
 0x6e0   : > { %16679 = vmatpush1.bf16.msra.mxu0 %v24516_v20  ;;  %16598 = vmatprep.subr.bf16.mxu1 %v24521_v21 }
 0x6e1   : > { %16680 = vmatprep.subr.bf16.mxu0 %v24524_v24  ;;  %v24567_v24 = vld [vmem:[%s27319_s17 + $0x3d58] ss:$456 sps:$4 sm:$0xff]  }
 0x6e3   : > { %16599 = vmatpush1.bf16.msra.mxu1 %v24519_v26  ;;  %v24572_v26 = vld [vmem:[%s27319_s17 + $0x3d64] ss:$456 sps:$4 sm:$0xff]  }
 0x6e4   : > { %16681 = vmatpush1.bf16.msra.mxu0 %v24522_v38  ;;  %16600 = vmatprep.subr.bf16.mxu1 %v24527_v27 }
 0x6e5   : > { %16682 = vmatprep.subr.bf16.mxu0 %v24530_v28  ;;  %v24573_v28 = vld [vmem:[%s27319_s17 + $0x40ec] ss:$456 sps:$4 sm:$0x3f]  }
 0x6e7   : > { %16601 = vmatpush1.bf16.msra.mxu1 %v24525_v29 }
 0x6e8   : > { %16683 = vmatpush1.bf16.msra.mxu0 %v24528_v31  ;;  %16602 = vmatprep.subr.bf16.mxu1 %v24533_v32  ;;  %v24570_v32 = vld [vmem:[%s27319_s17 + $0x3d60] ss:$456 sps:$4 sm:$0xff]  }
 0x6e9   : > { %16684 = vmatprep.subr.bf16.mxu0 %v24536_v47 }
 0x6eb   : > { %16603 = vmatpush1.bf16.msra.mxu1 %v24531_v33  ;;  %v24575_v33 = vld [vmem:[%s27319_s17 + $0x40e8] ss:$456 sps:$4 sm:$0x3f]  }
 0x6ec   : > { %16685 = vmatpush1.bf16.msra.mxu0 %v24534_v35  ;;  %16604 = vmatprep.subr.bf16.mxu1 %v24539_v37  ;;  %v24576_v35 = vld [vmem:[%s27319_s17 + $0x40f4] ss:$456 sps:$4 sm:$0x3f]   ;;  %v24578_v37 = vld [vmem:[%s27319_s17 + $0x40f0] ss:$456 sps:$4 sm:$0x3f]  }
 0x6ed   : > { %16686 = vmatprep.subr.bf16.mxu0 %v24542_v39  ;;  %v14339_v39 = vsel %vm14187_vm7, %v24575_v33, 0  ;;  %v24629_v33 = vld [vmem:[%s27319_s17 + $0x1d5c] ss:$456 sps:$4 sm:$0xff]  }
 0x6ef   : > { %16605 = vmatpush1.bf16.msra.mxu1 %v24537_v43  ;;  %v24581_v43 = vld [vmem:[%s27319_s17 + $0xdc] ss:$456 sps:$4 sm:$0xff]  }
 0x6f0   : > { %16687 = vmatpush1.bf16.msra.mxu0 %v24540_v44  ;;  %16606 = vmatprep.subr.bf16.mxu1 %v24545_v45  ;;  %v14345_v44 = vsel %vm14187_vm7, %v24578_v37, 0  ;;  %v24584_v45 = vld [vmem:[%s27319_s17 + $0xe4] ss:$456 sps:$4 sm:$0xff]   ;;  %v24627_v37 = vld [vmem:[%s27319_s17 + $0x1d58] ss:$456 sps:$4 sm:$0xff]  }
 0x6f1   : > { %16688 = vmatprep.subr.bf16.mxu0 %v24548_v46  ;;  %v24579_v46 = vld [vmem:[%s27319_s17 + $0xd8] ss:$456 sps:$4 sm:$0xff]  }
 0x6f3   : > { %16607 = vmatpush1.bf16.msra.mxu1 %v24543_v63  ;;  %v24582_v63 = vld [vmem:[%s27319_s17 + $0xe0] ss:$456 sps:$4 sm:$0xff]  }
 0x6f4   : > { %16689 = vmatpush1.bf16.msra.mxu0 %v24546_v48  ;;  %16608 = vmatprep.subr.bf16.mxu1 %v24551_v49  ;;  %v24587_v48 = vld [vmem:[%s27319_s17 + $0x46c] ss:$456 sps:$4 sm:$0xff]  }
 0x6f5   : > { %16690 = vmatprep.subr.bf16.mxu0 %v24554_v30  ;;  %v24590_v30 = vld [vmem:[%s27319_s17 + $0x474] ss:$456 sps:$4 sm:$0xff]  }
 0x6f7   : > { %16609 = vmatpush1.bf16.msra.mxu1 %v24549_v50 }
 0x6f8   : > { %16691 = vmatpush1.bf16.msra.mxu0 %v24552_v51  ;;  %16610 = vmatprep.subr.bf16.mxu1 %v24557_v53  ;;  %v24585_v53 = vld [vmem:[%s27319_s17 + $0x468] ss:$456 sps:$4 sm:$0xff]  }
 0x6f9   : > { %v16163_v61 = vpop.f32.mrb[44].mxu1  ;;  %16692 = vmatprep.subr.bf16.mxu0 %v24560_v54 }
 0x6fa   : > { %v22648_v1 = vadd.f32 %v16163_v61, %v3052_v55  ;;  %v16165_v4 = vpop.f32.mrb[45].mxu1  ;;  %v16245_v15 = vpop.f32.mrb[40].mxu0  ;;  %v24591_v61 = vld [vmem:[%s27319_s17 + $0x7f8] ss:$456 sps:$4 sm:$0xff]  }
 0x6fb   : > { %v22649_v0 = vadd.f32 %v16165_v4, %v3056_v56  ;;  %v22650_v5 = vadd.f32 %v16245_v15, %v3060_v57  ;;  %v16167_v6 = vpop.f32.mrb[46].mxu1  ;;  %v16247_v8 = vpop.f32.mrb[41].mxu0  ;;  %16611 = vmatpush1.bf16.msra.mxu1 %v24555_v58  ;;  %v24588_v56 = vld [vmem:[%s27319_s17 + $0x470] ss:$456 sps:$4 sm:$0xff]   ;;  %v24593_v57 = vld [vmem:[%s27319_s17 + $0x7fc] ss:$456 sps:$4 sm:$0xff]  }
 0x6fc   : > { %v19242_v12 = vsub.f32 0.0, %v22648_v1  ;;  %v22651_v13 = vadd.f32 %v16247_v8, %v3064_v59  ;;  %v16168_v14 = vpop.f32.mrb[47].mxu1  ;;  %v16249_v17 = vpop.f32.mrb[42].mxu0  ;;  %16693 = vmatpush1.bf16.msra.mxu0 %v24558_v9  ;;  %16621 = vmatprep.subr.bf16.mxu1 %v24563_v60  ;;  %v24596_v9 = vld [vmem:[%s27319_s17 + $0x804] ss:$456 sps:$4 sm:$0xff]  }
 0x6fd   : > { %v19243_v19 = vsub.f32 0.0, %v22649_v0  ;;  %v19244_v20 = vsub.f32 0.0, %v22650_v5  ;;  %v16250_v21 = vpop.f32.mrb[43].mxu0  ;;  %16703 = vmatprep.subr.bf16.mxu0 %v24566_v62  ;;  %v24594_v62 = vld [vmem:[%s27319_s17 + $0x800] ss:$456 sps:$4 sm:$0xff]  }
 0x6fe   : > { %v19394_v38 = vmul.f32 1.442695, %v19242_v12  ;;  %v19245_v27 = vsub.f32 0.0, %v22651_v13  ;;  %16613 = vmatmul.mubr.bf16.vlgmr.msra.gmra.mrb[56].mxu1 %v27535_v40  ;;  %v24599_v1 = vld [vmem:[%s27319_s17 + $0xb8c] ss:$456 sps:$4 sm:$0xff]  }
 0x6ff   : > { %v19396_v29 = vmul.f32 1.442695, %v19243_v19  ;;  %v19398_v31 = vmul.f32 1.442695, %v19244_v20  ;;  %16622 = vmatpush1.bf16.msra.mxu1 %v24561_v10  ;;  %16695 = vmatmul.mubr.bf16.vlgmr.msra.gmra.mrb[52].mxu0 %v27535_v40  ;;  %v24602_v4 = vld [vmem:[%s27319_s17 + $0xb94] ss:$456 sps:$4 sm:$0xff]  }
 0x700   : > { %26443 = vpow2.f32 %v19394_v38  ;;  %v19400_v47 = vmul.f32 1.442695, %v19245_v27  ;;  %16704 = vmatpush1.bf16.msra.mxu0 %v24564_v11  ;;  %16623 = vmatprep.subr.bf16.mxu1 %v24569_v18  ;;  %v24597_v15 = vld [vmem:[%s27319_s17 + $0xb88] ss:$456 sps:$4 sm:$0xff]   ;;  %v24605_v5 = vld [vmem:[%s27319_s17 + $0xf1c] ss:$456 sps:$4 sm:$0xff]  }
 0x701   : > { %26445 = vpow2.f32 %v19396_v29  ;;  %16705 = vmatprep.subr.bf16.mxu0 %v24572_v26  ;;  %16653 = vmatprep.mubr.bf16.mxu1 %v27007_v16  ;;  %v24600_v0 = vld [vmem:[%s27319_s17 + $0xb90] ss:$456 sps:$4 sm:$0xff]   ;;  %v24608_v6 = vld [vmem:[%s27319_s17 + $0xf24] ss:$456 sps:$4 sm:$0xff]   ;;  %v24606_v12 = vld [vmem:[%s27319_s17 + $0xf20] ss:$456 sps:$4 sm:$0xff]  }
 0x702   : > { %26447 = vpow2.f32 %v19398_v31  ;;  %16735 = vmatprep.mubr.bf16.mxu0 %v27007_v16  ;;  %v24603_v10 = vld [vmem:[%s27319_s17 + $0xf18] ss:$456 sps:$4 sm:$0xff]   ;;  %v24611_v13 = vld [vmem:[%s27319_s17 + $0x12ac] ss:$456 sps:$4 sm:$0xff]   ;;  %v24609_v21 = vld [vmem:[%s27319_s17 + $0x12a8] ss:$456 sps:$4 sm:$0xff]  }
 0x703   : > { %26449 = vpow2.f32 %v19400_v47  ;;  %16624 = vmatpush1.bf16.msra.mxu1 %v24567_v24  ;;  %v24614_v18 = vld [vmem:[%s27319_s17 + $0x12b4] ss:$456 sps:$4 sm:$0xff]   ;;  %v24612_v24 = vld [vmem:[%s27319_s17 + $0x12b0] ss:$456 sps:$4 sm:$0xff]   ;;  %v24620_v38 = vld [vmem:[%s27319_s17 + $0x1644] ss:$456 sps:$4 sm:$0xff]  }
 0x704   : > { %16706 = vmatpush1.bf16.msra.mxu0 %v24570_v32  ;;  %22449 = vmatprep.subr.msk.bf16.mxu1 %vm14187_vm7, %v24573_v28  ;;  %v24617_v26 = vld [vmem:[%s27319_s17 + $0x163c] ss:$456 sps:$4 sm:$0xff]   ;;  %v24615_v27 = vld [vmem:[%s27319_s17 + $0x1638] ss:$456 sps:$4 sm:$0xff]   ;;  %v24623_v29 = vld [vmem:[%s27319_s17 + $0x19cc] ss:$456 sps:$4 sm:$0xff]  }
 0x705   : > { %22451 = vmatprep.subr.msk.bf16.mxu0 %vm14187_vm7, %v24576_v35  ;;  %v24618_v28 = vld [vmem:[%s27319_s17 + $0x1640] ss:$456 sps:$4 sm:$0xff]   ;;  %v24626_v31 = vld [vmem:[%s27319_s17 + $0x19d4] ss:$456 sps:$4 sm:$0xff]   ;;  %v24624_v47 = vld [vmem:[%s27319_s17 + $0x19d0] ss:$456 sps:$4 sm:$0xff]  }
 0x706   : > { %v24621_v32 = vld [vmem:[%s27319_s17 + $0x19c8] ss:$456 sps:$4 sm:$0xff]   ;;  %v24632_v35 = vld [vmem:[%s27319_s17 + $0x1d64] ss:$456 sps:$4 sm:$0xff]  }
 0x707   : > { %16626 = vmatpush1.bf16.msra.mxu1 %v14339_v39  ;;  %v24630_v39 = vld [vmem:[%s27319_s17 + $0x1d60] ss:$456 sps:$4 sm:$0xff]  }
 0x708   : > { %16708 = vmatpush1.bf16.msra.mxu0 %v14345_v44  ;;  %16744 = vmatprep.subr.bf16.mxu1 %v24581_v43  ;;  %v24635_v43 = vld [vmem:[%s27319_s17 + $0x20ec] ss:$456 sps:$4 sm:$0xff]  }
 0x709   : > { %16826 = vmatprep.subr.bf16.mxu0 %v24584_v45  ;;  %v24638_v44 = vld [vmem:[%s27319_s17 + $0x20f4] ss:$456 sps:$4 sm:$0xff]   ;;  %v24633_v45 = vld [vmem:[%s27319_s17 + $0x20e8] ss:$456 sps:$4 sm:$0xff]  }
 0x70a   : > { %v26444_v49 = vpop.eup %26443  ;;  %22450 = vmatmul.mubr.msk.bf16.vlgmr.msra.gmra.mrb[56].mxu1 %vm14183_vm8, %v27539_v42 }
 0x70b   : > { %v26446_v50 = vpop.eup %26445  ;;  %v19584_v51 = vadd.f32 1.0, %v26444_v49  ;;  %22452 = vmatmul.mubr.msk.bf16.vlgmr.msra.gmra.mrb[52].mxu0 %vm14183_vm8, %v27539_v42  ;;  %16745 = vmatpush1.bf16.msra.mxu1 %v24579_v46  ;;  %v24636_v46 = vld [vmem:[%s27319_s17 + $0x20f0] ss:$456 sps:$4 sm:$0xff]  }
 0x70c   : > { %v26448_v54 = vpop.eup %26447  ;;  %v19585_v55 = vadd.f32 1.0, %v26446_v50  ;;  %16776 = vmatprep.mubr.bf16.mxu1 %v27537_v41  ;;  %16827 = vmatpush1.bf16.msra.mxu0 %v24582_v63  ;;  %v24641_v63 = vld [vmem:[%s27319_s17 + $0x247c] ss:$456 sps:$4 sm:$0xff]   ;;  %v24639_v49 = vld [vmem:[%s27319_s17 + $0x2478] ss:$456 sps:$4 sm:$0xff]  }
 0x70d   : > { %v26450_v58 = vpop.eup %26449  ;;  %26451 = vrcp.f32 %v19584_v51  ;;  %v19586_v59 = vadd.f32 1.0, %v26448_v54  ;;  %16858 = vmatprep.mubr.bf16.mxu0 %v27537_v41  ;;  %16746 = vmatprep.subr.bf16.mxu1 %v24587_v48  ;;  %v24644_v48 = vld [vmem:[%s27319_s17 + $0x2484] ss:$456 sps:$4 sm:$0xff]   ;;  %v24650_v51 = vld [vmem:[%s27319_s17 + $0x2814] ss:$456 sps:$4 sm:$0xff]  }
 0x70e   : > { %26453 = vrcp.f32 %v19585_v55  ;;  %v19587_v60 = vadd.f32 1.0, %v26450_v58  ;;  %16828 = vmatprep.subr.bf16.mxu0 %v24590_v30  ;;  %v24642_v30 = vld [vmem:[%s27319_s17 + $0x2480] ss:$456 sps:$4 sm:$0xff]   ;;  %v24647_v50 = vld [vmem:[%s27319_s17 + $0x280c] ss:$456 sps:$4 sm:$0xff]  }
 0x70f   : > { %26455 = vrcp.f32 %v19586_v59  ;;  %16747 = vmatpush1.bf16.msra.mxu1 %v24585_v53  ;;  %v24645_v53 = vld [vmem:[%s27319_s17 + $0x2808] ss:$456 sps:$4 sm:$0xff]   ;;  %v24653_v55 = vld [vmem:[%s27319_s17 + $0x2b9c] ss:$456 sps:$4 sm:$0xff]   ;;  %v24659_v59 = vld [vmem:[%s27319_s17 + $0x2f2c] ss:$456 sps:$4 sm:$0xff]  }
 0x710   : > { %26457 = vrcp.f32 %v19587_v60  ;;  %16829 = vmatpush1.bf16.msra.mxu0 %v24588_v56  ;;  %16748 = vmatprep.subr.bf16.mxu1 %v24593_v57  ;;  %v24648_v54 = vld [vmem:[%s27319_s17 + $0x2810] ss:$456 sps:$4 sm:$0xff]   ;;  %v24656_v56 = vld [vmem:[%s27319_s17 + $0x2ba4] ss:$456 sps:$4 sm:$0xff]   ;;  %v24654_v58 = vld [vmem:[%s27319_s17 + $0x2ba0] ss:$456 sps:$4 sm:$0xff]  }
 0x711   : > { %16830 = vmatprep.subr.bf16.mxu0 %v24596_v9  ;;  %v24651_v57 = vld [vmem:[%s27319_s17 + $0x2b98] ss:$456 sps:$4 sm:$0xff]   ;;  %v24662_v9 = vld [vmem:[%s27319_s17 + $0x2f34] ss:$456 sps:$4 sm:$0xff]   ;;  %v24657_v60 = vld [vmem:[%s27319_s17 + $0x2f28] ss:$456 sps:$4 sm:$0xff]  }
 0x713   : > { %16749 = vmatpush1.bf16.msra.mxu1 %v24591_v61  ;;  %v24660_v61 = vld [vmem:[%s27319_s17 + $0x2f30] ss:$456 sps:$4 sm:$0xff]  }
 0x714   : > { %16831 = vmatpush1.bf16.msra.mxu0 %v24594_v62  ;;  %16750 = vmatprep.subr.bf16.mxu1 %v24599_v1  ;;  %v24665_v62 = vld [vmem:[%s27319_s17 + $0x32bc] ss:$456 sps:$4 sm:$0xff]  }
 0x715   : > { %16832 = vmatprep.subr.bf16.mxu0 %v24602_v4  ;;  %v24668_v1 = vld [vmem:[%s27319_s17 + $0x32c4] ss:$456 sps:$4 sm:$0xff]   ;;  %v24663_v4 = vld [vmem:[%s27319_s17 + $0x32b8] ss:$456 sps:$4 sm:$0xff]  }
 0x717   : > { %v26452_v8 = vpop.eup %26451  ;;  %16751 = vmatpush1.bf16.msra.mxu1 %v24597_v15  ;;  %v24666_v15 = vld [vmem:[%s27319_s17 + $0x32c0] ss:$456 sps:$4 sm:$0xff]  }
 0x718   : > { %v26454_v11 = vpop.eup %26453  ;;  %16833 = vmatpush1.bf16.msra.mxu0 %v24600_v0  ;;  %16752 = vmatprep.subr.bf16.mxu1 %v24605_v5  ;;  %v24671_v0 = vld [vmem:[%s27319_s17 + $0x364c] ss:$456 sps:$4 sm:$0xff]  }
 0x719   : > { %v26456_v14 = vpop.eup %26455  ;;  %v19907_v17 = vcombine.low %v26452_v8, %v26454_v11  ;;  %16834 = vmatprep.subr.bf16.mxu0 %v24608_v6  ;;  %v24674_v5 = vld [vmem:[%s27319_s17 + $0x3654] ss:$456 sps:$4 sm:$0xff]   ;;  %v3068_v6 = vrot.slane %v28815_v52, %v27461_v7  ;;  %v3072_v8 = vrot.slane %v28815_v52, %v27889_v22  ;;  %v24669_v11 = vld [vmem:[%s27319_s17 + $0x3648] ss:$456 sps:$4 sm:$0xff]  }
 0x71a   : > { %v26458_v19 = vpop.eup %26457 }
 0x71b   : > { %20021 = vst [vmem:[%s27851_s14 + $0x98] sm:$0xff] %v19907_v17  ;;  %v19908_v20 = vcombine.low %v26456_v14, %v26458_v19  ;;  %16753 = vmatpush1.bf16.msra.mxu1 %v24603_v10  ;;  %v3076_v10 = vrot.slane %v28815_v52, %v27892_v23  ;;  %v24677_v14 = vld [vmem:[%s27319_s17 + $0x39dc] ss:$456 sps:$4 sm:$0xff]  }
 0x71c   : > { %16835 = vmatpush1.bf16.msra.mxu0 %v24606_v12  ;;  %16754 = vmatprep.subr.bf16.mxu1 %v24611_v13  ;;  %v3080_v12 = vrot.slane %v28815_v52, %v27896_v25  ;;  %v24672_v13 = vld [vmem:[%s27319_s17 + $0x3650] ss:$456 sps:$4 sm:$0xff]  }
 0x71d   : > { %20022 = vst [vmem:[%s27851_s14 + $0xa0] sm:$0xff] %v19908_v20  ;;  %16836 = vmatprep.subr.bf16.mxu0 %v24614_v18  ;;  %v24680_v18 = vld [vmem:[%s27319_s17 + $0x39e4] ss:$456 sps:$4 sm:$0xff]  }
 0x71f   : > { %16755 = vmatpush1.bf16.msra.mxu1 %v24609_v21 }
 0x720   : > { %16837 = vmatpush1.bf16.msra.mxu0 %v24612_v24  ;;  %16756 = vmatprep.subr.bf16.mxu1 %v24617_v26 }
 0x721   : > { %16838 = vmatprep.subr.bf16.mxu0 %v24620_v38 }
 0x723   : > { %16757 = vmatpush1.bf16.msra.mxu1 %v24615_v27 }
 0x724   : > { %16839 = vmatpush1.bf16.msra.mxu0 %v24618_v28  ;;  %16758 = vmatprep.subr.bf16.mxu1 %v24623_v29  ;;  %v24675_v28 = vld [vmem:[%s27319_s17 + $0x39d8] ss:$456 sps:$4 sm:$0xff]  }
 0x725   : > { %16840 = vmatprep.subr.bf16.mxu0 %v24626_v31  ;;  %v24678_v29 = vld [vmem:[%s27319_s17 + $0x39e0] ss:$456 sps:$4 sm:$0xff]  }
 0x727   : > { %16759 = vmatpush1.bf16.msra.mxu1 %v24621_v32 }
 0x728   : > { %16841 = vmatpush1.bf16.msra.mxu0 %v24624_v47  ;;  %16760 = vmatprep.subr.bf16.mxu1 %v24629_v33 }
 0x729   : > { %16842 = vmatprep.subr.bf16.mxu0 %v24632_v35  ;;  %v24683_v35 = vld [vmem:[%s27319_s17 + $0x3d6c] ss:$456 sps:$4 sm:$0xff]  }
 0x72b   : > { %16761 = vmatpush1.bf16.msra.mxu1 %v24627_v37 }
 0x72c   : > { %16843 = vmatpush1.bf16.msra.mxu0 %v24630_v39  ;;  %16762 = vmatprep.subr.bf16.mxu1 %v24635_v43 }
 0x72d   : > { %16844 = vmatprep.subr.bf16.mxu0 %v24638_v44  ;;  %v24681_v44 = vld [vmem:[%s27319_s17 + $0x3d68] ss:$456 sps:$4 sm:$0xff]  }
 0x72f   : > { %16763 = vmatpush1.bf16.msra.mxu1 %v24633_v45  ;;  %v24686_v45 = vld [vmem:[%s27319_s17 + $0x3d74] ss:$456 sps:$4 sm:$0xff]  }
 0x730   : > { %16845 = vmatpush1.bf16.msra.mxu0 %v24636_v46  ;;  %16764 = vmatprep.subr.bf16.mxu1 %v24641_v63 }
 0x731   : > { %16846 = vmatprep.subr.bf16.mxu0 %v24644_v48  ;;  %v24687_v48 = vld [vmem:[%s27319_s17 + $0x40fc] ss:$456 sps:$4 sm:$0x3f]  }
 0x733   : > { %16765 = vmatpush1.bf16.msra.mxu1 %v24639_v49 }
 0x734   : > { %16847 = vmatpush1.bf16.msra.mxu0 %v24642_v30  ;;  %16766 = vmatprep.subr.bf16.mxu1 %v24647_v50  ;;  %v24684_v50 = vld [vmem:[%s27319_s17 + $0x3d70] ss:$456 sps:$4 sm:$0xff]  }
 0x735   : > { %16848 = vmatprep.subr.bf16.mxu0 %v24650_v51 }
 0x737   : > { %16767 = vmatpush1.bf16.msra.mxu1 %v24645_v53  ;;  %v24689_v53 = vld [vmem:[%s27319_s17 + $0x40f8] ss:$456 sps:$4 sm:$0x3f]  }
 0x738   : > { %16849 = vmatpush1.bf16.msra.mxu0 %v24648_v54  ;;  %16768 = vmatprep.subr.bf16.mxu1 %v24653_v55  ;;  %v24690_v54 = vld [vmem:[%s27319_s17 + $0x4104] ss:$456 sps:$4 sm:$0x3f]   ;;  %v24692_v55 = vld [vmem:[%s27319_s17 + $0x4100] ss:$456 sps:$4 sm:$0x3f]  }
 0x739   : > { %16850 = vmatprep.subr.bf16.mxu0 %v24656_v56  ;;  %v14351_v56 = vsel %vm14187_vm7, %v24689_v53, 0  ;;  %v24743_v53 = vld [vmem:[%s27319_s17 + $0x1d6c] ss:$456 sps:$4 sm:$0xff]  }
 0x73b   : > { %16769 = vmatpush1.bf16.msra.mxu1 %v24651_v57  ;;  %v24695_v57 = vld [vmem:[%s27319_s17 + $0xec] ss:$456 sps:$4 sm:$0xff]  }
 0x73c   : > { %16851 = vmatpush1.bf16.msra.mxu0 %v24654_v58  ;;  %16770 = vmatprep.subr.bf16.mxu1 %v24659_v59  ;;  %v14357_v58 = vsel %vm14187_vm7, %v24692_v55, 0  ;;  %v24698_v59 = vld [vmem:[%s27319_s17 + $0xf4] ss:$456 sps:$4 sm:$0xff]   ;;  %v24741_v55 = vld [vmem:[%s27319_s17 + $0x1d68] ss:$456 sps:$4 sm:$0xff]  }
 0x73d   : > { %16852 = vmatprep.subr.bf16.mxu0 %v24662_v9  ;;  %v24693_v9 = vld [vmem:[%s27319_s17 + $0xe8] ss:$456 sps:$4 sm:$0xff]  }
 0x73f   : > { %16771 = vmatpush1.bf16.msra.mxu1 %v24657_v60  ;;  %v24696_v60 = vld [vmem:[%s27319_s17 + $0xf0] ss:$456 sps:$4 sm:$0xff]  }
 0x740   : > { %16853 = vmatpush1.bf16.msra.mxu0 %v24660_v61  ;;  %16772 = vmatprep.subr.bf16.mxu1 %v24665_v62  ;;  %v24701_v61 = vld [vmem:[%s27319_s17 + $0x47c] ss:$456 sps:$4 sm:$0xff]  }
 0x741   : > { %16854 = vmatprep.subr.bf16.mxu0 %v24668_v1  ;;  %v24704_v1 = vld [vmem:[%s27319_s17 + $0x484] ss:$456 sps:$4 sm:$0xff]  }
 0x743   : > { %16773 = vmatpush1.bf16.msra.mxu1 %v24663_v4 }
 0x744   : > { %16855 = vmatpush1.bf16.msra.mxu0 %v24666_v15  ;;  %16774 = vmatprep.subr.bf16.mxu1 %v24671_v0  ;;  %v24699_v0 = vld [vmem:[%s27319_s17 + $0x478] ss:$456 sps:$4 sm:$0xff]  }
 0x745   : > { %v16327_v17 = vpop.f32.mrb[48].mxu1  ;;  %16856 = vmatprep.subr.bf16.mxu0 %v24674_v5 }
 0x746   : > { %v22652_v19 = vadd.f32 %v16327_v17, %v3068_v6  ;;  %v16329_v20 = vpop.f32.mrb[49].mxu1  ;;  %v16409_v21 = vpop.f32.mrb[44].mxu0  ;;  %v24705_v17 = vld [vmem:[%s27319_s17 + $0x808] ss:$456 sps:$4 sm:$0xff]  }
 0x747   : > { %v22653_v24 = vadd.f32 %v16329_v20, %v3072_v8  ;;  %v22654_v26 = vadd.f32 %v16409_v21, %v3076_v10  ;;  %v16331_v38 = vpop.f32.mrb[50].mxu1  ;;  %v16411_v27 = vpop.f32.mrb[45].mxu0  ;;  %16775 = vmatpush1.bf16.msra.mxu1 %v24669_v11  ;;  %v24702_v8 = vld [vmem:[%s27319_s17 + $0x480] ss:$456 sps:$4 sm:$0xff]   ;;  %v24707_v10 = vld [vmem:[%s27319_s17 + $0x80c] ss:$456 sps:$4 sm:$0xff]  }
 0x748   : > { %v19246_v31 = vsub.f32 0.0, %v22652_v19  ;;  %v22655_v32 = vadd.f32 %v16411_v27, %v3080_v12  ;;  %v16332_v47 = vpop.f32.mrb[51].mxu1  ;;  %v16413_v33 = vpop.f32.mrb[46].mxu0  ;;  %16857 = vmatpush1.bf16.msra.mxu0 %v24672_v13  ;;  %16785 = vmatprep.subr.bf16.mxu1 %v24677_v14  ;;  %v24710_v13 = vld [vmem:[%s27319_s17 + $0x814] ss:$456 sps:$4 sm:$0xff]  }
 0x749   : > { %v19247_v37 = vsub.f32 0.0, %v22653_v24  ;;  %v19248_v39 = vsub.f32 0.0, %v22654_v26  ;;  %v16414_v43 = vpop.f32.mrb[47].mxu0  ;;  %16867 = vmatprep.subr.bf16.mxu0 %v24680_v18  ;;  %v24708_v18 = vld [vmem:[%s27319_s17 + $0x810] ss:$456 sps:$4 sm:$0xff]  }
 0x74a   : > { %v19402_v46 = vmul.f32 1.442695, %v19246_v31  ;;  %v19249_v63 = vsub.f32 0.0, %v22655_v32  ;;  %16777 = vmatmul.mubr.bf16.vlgmr.msra.gmra.mrb[60].mxu1 %v27535_v40  ;;  %v24713_v19 = vld [vmem:[%s27319_s17 + $0xb9c] ss:$456 sps:$4 sm:$0xff]  }
 0x74b   : > { %v19404_v49 = vmul.f32 1.442695, %v19247_v37  ;;  %v19406_v30 = vmul.f32 1.442695, %v19248_v39  ;;  %16786 = vmatpush1.bf16.msra.mxu1 %v24675_v28  ;;  %16859 = vmatmul.mubr.bf16.vlgmr.msra.gmra.mrb[56].mxu0 %v27535_v40  ;;  %v24716_v20 = vld [vmem:[%s27319_s17 + $0xba4] ss:$456 sps:$4 sm:$0xff]  }
 0x74c   : > { %26459 = vpow2.f32 %v19402_v46  ;;  %v19408_v51 = vmul.f32 1.442695, %v19249_v63  ;;  %16868 = vmatpush1.bf16.msra.mxu0 %v24678_v29  ;;  %16787 = vmatprep.subr.bf16.mxu1 %v24683_v35  ;;  %v24711_v21 = vld [vmem:[%s27319_s17 + $0xb98] ss:$456 sps:$4 sm:$0xff]   ;;  %v24719_v26 = vld [vmem:[%s27319_s17 + $0xf2c] ss:$456 sps:$4 sm:$0xff]  }
 0x74d   : > { %26461 = vpow2.f32 %v19404_v49  ;;  %16869 = vmatprep.subr.bf16.mxu0 %v24686_v45  ;;  %16817 = vmatprep.mubr.bf16.mxu1 %v27007_v16  ;;  %v24714_v24 = vld [vmem:[%s27319_s17 + $0xba0] ss:$456 sps:$4 sm:$0xff]   ;;  %v24722_v38 = vld [vmem:[%s27319_s17 + $0xf34] ss:$456 sps:$4 sm:$0xff]   ;;  %v24720_v31 = vld [vmem:[%s27319_s17 + $0xf30] ss:$456 sps:$4 sm:$0xff]  }
 0x74e   : > { %26463 = vpow2.f32 %v19406_v30  ;;  %16899 = vmatprep.mubr.bf16.mxu0 %v27007_v16  ;;  %v24717_v28 = vld [vmem:[%s27319_s17 + $0xf28] ss:$456 sps:$4 sm:$0xff]   ;;  %v24725_v32 = vld [vmem:[%s27319_s17 + $0x12bc] ss:$456 sps:$4 sm:$0xff]   ;;  %v24723_v43 = vld [vmem:[%s27319_s17 + $0x12b8] ss:$456 sps:$4 sm:$0xff]  }
 0x74f   : > { %26465 = vpow2.f32 %v19408_v51  ;;  %16788 = vmatpush1.bf16.msra.mxu1 %v24681_v44  ;;  %v24728_v35 = vld [vmem:[%s27319_s17 + $0x12c4] ss:$456 sps:$4 sm:$0xff]   ;;  %v24726_v44 = vld [vmem:[%s27319_s17 + $0x12c0] ss:$456 sps:$4 sm:$0xff]   ;;  %v24734_v46 = vld [vmem:[%s27319_s17 + $0x1654] ss:$456 sps:$4 sm:$0xff]  }
 0x750   : > { %16870 = vmatpush1.bf16.msra.mxu0 %v24684_v50  ;;  %22453 = vmatprep.subr.msk.bf16.mxu1 %vm14187_vm7, %v24687_v48  ;;  %v24731_v45 = vld [vmem:[%s27319_s17 + $0x164c] ss:$456 sps:$4 sm:$0xff]   ;;  %v24729_v63 = vld [vmem:[%s27319_s17 + $0x1648] ss:$456 sps:$4 sm:$0xff]   ;;  %v24737_v49 = vld [vmem:[%s27319_s17 + $0x19dc] ss:$456 sps:$4 sm:$0xff]  }
 0x751   : > { %22455 = vmatprep.subr.msk.bf16.mxu0 %vm14187_vm7, %v24690_v54  ;;  %v24732_v48 = vld [vmem:[%s27319_s17 + $0x1650] ss:$456 sps:$4 sm:$0xff]   ;;  %v24740_v30 = vld [vmem:[%s27319_s17 + $0x19e4] ss:$456 sps:$4 sm:$0xff]   ;;  %v24738_v51 = vld [vmem:[%s27319_s17 + $0x19e0] ss:$456 sps:$4 sm:$0xff]  }
 0x752   : > { %v24735_v50 = vld [vmem:[%s27319_s17 + $0x19d8] ss:$456 sps:$4 sm:$0xff]   ;;  %v24746_v54 = vld [vmem:[%s27319_s17 + $0x1d74] ss:$456 sps:$4 sm:$0xff]  }
 0x753   : > { %16790 = vmatpush1.bf16.msra.mxu1 %v14351_v56  ;;  %v24744_v56 = vld [vmem:[%s27319_s17 + $0x1d70] ss:$456 sps:$4 sm:$0xff]  }
 0x754   : > { %16872 = vmatpush1.bf16.msra.mxu0 %v14357_v58  ;;  %16908 = vmatprep.subr.bf16.mxu1 %v24695_v57  ;;  %v24749_v57 = vld [vmem:[%s27319_s17 + $0x20fc] ss:$456 sps:$4 sm:$0xff]  }
 0x755   : > { %16990 = vmatprep.subr.bf16.mxu0 %v24698_v59  ;;  %v24752_v58 = vld [vmem:[%s27319_s17 + $0x2104] ss:$456 sps:$4 sm:$0xff]   ;;  %v24747_v59 = vld [vmem:[%s27319_s17 + $0x20f8] ss:$456 sps:$4 sm:$0xff]  }
 0x756   : > { %v26460_v62 = vpop.eup %26459  ;;  %22454 = vmatmul.mubr.msk.bf16.vlgmr.msra.gmra.mrb[60].mxu1 %vm14183_vm8, %v27539_v42 }
 0x757   : > { %v26462_v4 = vpop.eup %26461  ;;  %v19588_v15 = vadd.f32 1.0, %v26460_v62  ;;  %22456 = vmatmul.mubr.msk.bf16.vlgmr.msra.gmra.mrb[56].mxu0 %vm14183_vm8, %v27539_v42  ;;  %16909 = vmatpush1.bf16.msra.mxu1 %v24693_v9  ;;  %v24750_v9 = vld [vmem:[%s27319_s17 + $0x2100] ss:$456 sps:$4 sm:$0xff]  }
 0x758   : > { %v26464_v5 = vpop.eup %26463  ;;  %v19589_v6 = vadd.f32 1.0, %v26462_v4  ;;  %16940 = vmatprep.mubr.bf16.mxu1 %v27537_v41  ;;  %16991 = vmatpush1.bf16.msra.mxu0 %v24696_v60  ;;  %v24755_v60 = vld [vmem:[%s27319_s17 + $0x248c] ss:$456 sps:$4 sm:$0xff]   ;;  %v24753_v62 = vld [vmem:[%s27319_s17 + $0x2488] ss:$456 sps:$4 sm:$0xff]  }
 0x759   : > { %v26466_v11 = vpop.eup %26465  ;;  %26467 = vrcp.f32 %v19588_v15  ;;  %v19590_v12 = vadd.f32 1.0, %v26464_v5  ;;  %17022 = vmatprep.mubr.bf16.mxu0 %v27537_v41  ;;  %16910 = vmatprep.subr.bf16.mxu1 %v24701_v61  ;;  %v24758_v61 = vld [vmem:[%s27319_s17 + $0x2494] ss:$456 sps:$4 sm:$0xff]   ;;  %v24764_v15 = vld [vmem:[%s27319_s17 + $0x2824] ss:$456 sps:$4 sm:$0xff]  }
 0x75a   : > { %26469 = vrcp.f32 %v19589_v6  ;;  %v19591_v14 = vadd.f32 1.0, %v26466_v11  ;;  %16992 = vmatprep.subr.bf16.mxu0 %v24704_v1  ;;  %v24756_v1 = vld [vmem:[%s27319_s17 + $0x2490] ss:$456 sps:$4 sm:$0xff]   ;;  %v24761_v4 = vld [vmem:[%s27319_s17 + $0x281c] ss:$456 sps:$4 sm:$0xff]  }
 0x75b   : > { %26471 = vrcp.f32 %v19590_v12  ;;  %16911 = vmatpush1.bf16.msra.mxu1 %v24699_v0  ;;  %v24759_v0 = vld [vmem:[%s27319_s17 + $0x2818] ss:$456 sps:$4 sm:$0xff]   ;;  %v24767_v6 = vld [vmem:[%s27319_s17 + $0x2bac] ss:$456 sps:$4 sm:$0xff]   ;;  %v24773_v12 = vld [vmem:[%s27319_s17 + $0x2f3c] ss:$456 sps:$4 sm:$0xff]  }
 0x75c   : > { %26473 = vrcp.f32 %v19591_v14  ;;  %16993 = vmatpush1.bf16.msra.mxu0 %v24702_v8  ;;  %16912 = vmatprep.subr.bf16.mxu1 %v24707_v10  ;;  %v24762_v5 = vld [vmem:[%s27319_s17 + $0x2820] ss:$456 sps:$4 sm:$0xff]   ;;  %v24770_v8 = vld [vmem:[%s27319_s17 + $0x2bb4] ss:$456 sps:$4 sm:$0xff]   ;;  %v24768_v11 = vld [vmem:[%s27319_s17 + $0x2bb0] ss:$456 sps:$4 sm:$0xff]  }
 0x75d   : > { %16994 = vmatprep.subr.bf16.mxu0 %v24710_v13  ;;  %v24765_v10 = vld [vmem:[%s27319_s17 + $0x2ba8] ss:$456 sps:$4 sm:$0xff]   ;;  %v24776_v13 = vld [vmem:[%s27319_s17 + $0x2f44] ss:$456 sps:$4 sm:$0xff]   ;;  %v24771_v14 = vld [vmem:[%s27319_s17 + $0x2f38] ss:$456 sps:$4 sm:$0xff]  }
 0x75f   : > { %16913 = vmatpush1.bf16.msra.mxu1 %v24705_v17  ;;  %v24774_v17 = vld [vmem:[%s27319_s17 + $0x2f40] ss:$456 sps:$4 sm:$0xff]  }
 0x760   : > { %16995 = vmatpush1.bf16.msra.mxu0 %v24708_v18  ;;  %16914 = vmatprep.subr.bf16.mxu1 %v24713_v19  ;;  %v24779_v18 = vld [vmem:[%s27319_s17 + $0x32cc] ss:$456 sps:$4 sm:$0xff]  }
 0x761   : > { %16996 = vmatprep.subr.bf16.mxu0 %v24716_v20  ;;  %v24782_v19 = vld [vmem:[%s27319_s17 + $0x32d4] ss:$456 sps:$4 sm:$0xff]   ;;  %v24777_v20 = vld [vmem:[%s27319_s17 + $0x32c8] ss:$456 sps:$4 sm:$0xff]  }
 0x763   : > { %v26468_v27 = vpop.eup %26467  ;;  %16915 = vmatpush1.bf16.msra.mxu1 %v24711_v21  ;;  %v24780_v21 = vld [vmem:[%s27319_s17 + $0x32d0] ss:$456 sps:$4 sm:$0xff]  }
 0x764   : > { %v26470_v29 = vpop.eup %26469  ;;  %16997 = vmatpush1.bf16.msra.mxu0 %v24714_v24  ;;  %16916 = vmatprep.subr.bf16.mxu1 %v24719_v26  ;;  %v29018_v24 = vld [vmem:[%s27786_s21 + $0x30] sm:$0xff]  ;;  %v24785_v26 = vld [vmem:[%s27319_s17 + $0x365c] ss:$456 sps:$4 sm:$0xff]  }
 0x765   : > { %v26472_v47 = vpop.eup %26471  ;;  %v19909_v33 = vcombine.low %v26468_v27, %v26470_v29  ;;  %16998 = vmatprep.subr.bf16.mxu0 %v24722_v38  ;;  %v24788_v38 = vld [vmem:[%s27319_s17 + $0x3664] ss:$456 sps:$4 sm:$0xff]   ;;  %v3084_v27 = vrot.slane %v28815_v52, %v27996_v34  ;;  %v3092_v29 = vrot.slane %v29018_v24, %v27453_v2 }
 0x766   : > { %v26474_v37 = vpop.eup %26473 }
 0x767   : > { %20023 = vst [vmem:[%s27851_s14 + $0xa8] sm:$0xff] %v19909_v33  ;;  %v19910_v39 = vcombine.low %v26472_v47, %v26474_v37  ;;  %16917 = vmatpush1.bf16.msra.mxu1 %v24717_v28  ;;  %v3088_v28 = vrot.slane %v28815_v52, %v28000_v36  ;;  %v24786_v47 = vld [vmem:[%s27319_s17 + $0x3660] ss:$456 sps:$4 sm:$0xff]   ;;  %v24791_v33 = vld [vmem:[%s27319_s17 + $0x39ec] ss:$456 sps:$4 sm:$0xff]  }
 0x768   : > { %16999 = vmatpush1.bf16.msra.mxu0 %v24720_v31  ;;  %16918 = vmatprep.subr.bf16.mxu1 %v24725_v32  ;;  %v24783_v31 = vld [vmem:[%s27319_s17 + $0x3658] ss:$456 sps:$4 sm:$0xff]   ;;  %v3096_v32 = vrot.slane %v29018_v24, %v27456_v3  ;;  %v24794_v37 = vld [vmem:[%s27319_s17 + $0x39f4] ss:$456 sps:$4 sm:$0xff]  }
 0x769   : > { %20024 = vst [vmem:[%s27851_s14 + $0xb0] sm:$0xff] %v19910_v39  ;;  %17000 = vmatprep.subr.bf16.mxu0 %v24728_v35 }
 0x76b   : > { %16919 = vmatpush1.bf16.msra.mxu1 %v24723_v43 }
 0x76c   : > { %17001 = vmatpush1.bf16.msra.mxu0 %v24726_v44  ;;  %16920 = vmatprep.subr.bf16.mxu1 %v24731_v45 }
 0x76d   : > { %17002 = vmatprep.subr.bf16.mxu0 %v24734_v46 }
 0x76f   : > { %16921 = vmatpush1.bf16.msra.mxu1 %v24729_v63 }
 0x770   : > { %17003 = vmatpush1.bf16.msra.mxu0 %v24732_v48  ;;  %16922 = vmatprep.subr.bf16.mxu1 %v24737_v49  ;;  %v24789_v48 = vld [vmem:[%s27319_s17 + $0x39e8] ss:$456 sps:$4 sm:$0xff]  }
 0x771   : > { %17004 = vmatprep.subr.bf16.mxu0 %v24740_v30  ;;  %v24792_v49 = vld [vmem:[%s27319_s17 + $0x39f0] ss:$456 sps:$4 sm:$0xff]  }
 0x773   : > { %16923 = vmatpush1.bf16.msra.mxu1 %v24735_v50 }
 0x774   : > { %17005 = vmatpush1.bf16.msra.mxu0 %v24738_v51  ;;  %16924 = vmatprep.subr.bf16.mxu1 %v24743_v53 }
 0x775   : > { %17006 = vmatprep.subr.bf16.mxu0 %v24746_v54  ;;  %v24797_v54 = vld [vmem:[%s27319_s17 + $0x3d7c] ss:$456 sps:$4 sm:$0xff]  }
 0x777   : > { %16925 = vmatpush1.bf16.msra.mxu1 %v24741_v55 }
 0x778   : > { %17007 = vmatpush1.bf16.msra.mxu0 %v24744_v56  ;;  %16926 = vmatprep.subr.bf16.mxu1 %v24749_v57 }
 0x779   : > { %17008 = vmatprep.subr.bf16.mxu0 %v24752_v58  ;;  %v24795_v58 = vld [vmem:[%s27319_s17 + $0x3d78] ss:$456 sps:$4 sm:$0xff]  }
 0x77b   : > { %16927 = vmatpush1.bf16.msra.mxu1 %v24747_v59  ;;  %v24800_v59 = vld [vmem:[%s27319_s17 + $0x3d84] ss:$456 sps:$4 sm:$0xff]  }
 0x77c   : > { %17009 = vmatpush1.bf16.msra.mxu0 %v24750_v9  ;;  %16928 = vmatprep.subr.bf16.mxu1 %v24755_v60 }
 0x77d   : > { %17010 = vmatprep.subr.bf16.mxu0 %v24758_v61  ;;  %v24801_v61 = vld [vmem:[%s27319_s17 + $0x410c] ss:$456 sps:$4 sm:$0x3f]  }
 0x77f   : > { %16929 = vmatpush1.bf16.msra.mxu1 %v24753_v62 }
 0x780   : > { %17011 = vmatpush1.bf16.msra.mxu0 %v24756_v1  ;;  %16930 = vmatprep.subr.bf16.mxu1 %v24761_v4  ;;  %v24798_v4 = vld [vmem:[%s27319_s17 + $0x3d80] ss:$456 sps:$4 sm:$0xff]  }
 0x781   : > { %17012 = vmatprep.subr.bf16.mxu0 %v24764_v15 }
 0x783   : > { %16931 = vmatpush1.bf16.msra.mxu1 %v24759_v0  ;;  %v24803_v0 = vld [vmem:[%s27319_s17 + $0x4108] ss:$456 sps:$4 sm:$0x3f]  }
 0x784   : > { %17013 = vmatpush1.bf16.msra.mxu0 %v24762_v5  ;;  %16932 = vmatprep.subr.bf16.mxu1 %v24767_v6  ;;  %v24804_v5 = vld [vmem:[%s27319_s17 + $0x4114] ss:$456 sps:$4 sm:$0x3f]   ;;  %v24806_v6 = vld [vmem:[%s27319_s17 + $0x4110] ss:$456 sps:$4 sm:$0x3f]  }
 0x785   : > { %17014 = vmatprep.subr.bf16.mxu0 %v24770_v8  ;;  %v14363_v8 = vsel %vm14187_vm7, %v24803_v0, 0  ;;  %v24857_v0 = vld [vmem:[%s27319_s17 + $0x1d7c] ss:$456 sps:$4 sm:$0xff]  }
 0x787   : > { %16933 = vmatpush1.bf16.msra.mxu1 %v24765_v10  ;;  %v24809_v10 = vld [vmem:[%s27319_s17 + $0xfc] ss:$456 sps:$4 sm:$0xff]  }
 0x788   : > { %17015 = vmatpush1.bf16.msra.mxu0 %v24768_v11  ;;  %16934 = vmatprep.subr.bf16.mxu1 %v24773_v12  ;;  %v14369_v11 = vsel %vm14187_vm7, %v24806_v6, 0  ;;  %v24812_v12 = vld [vmem:[%s27319_s17 + $0x104] ss:$456 sps:$4 sm:$0xff]   ;;  %v24855_v6 = vld [vmem:[%s27319_s17 + $0x1d78] ss:$456 sps:$4 sm:$0xff]  }
 0x789   : > { %17016 = vmatprep.subr.bf16.mxu0 %v24776_v13  ;;  %v24807_v13 = vld [vmem:[%s27319_s17 + $0xf8] ss:$456 sps:$4 sm:$0xff]  }
 0x78b   : > { %16935 = vmatpush1.bf16.msra.mxu1 %v24771_v14  ;;  %v24810_v14 = vld [vmem:[%s27319_s17 + $0x100] ss:$456 sps:$4 sm:$0xff]  }
 0x78c   : > { %17017 = vmatpush1.bf16.msra.mxu0 %v24774_v17  ;;  %16936 = vmatprep.subr.bf16.mxu1 %v24779_v18  ;;  %v24815_v17 = vld [vmem:[%s27319_s17 + $0x48c] ss:$456 sps:$4 sm:$0xff]  }
 0x78d   : > { %17018 = vmatprep.subr.bf16.mxu0 %v24782_v19  ;;  %v24818_v19 = vld [vmem:[%s27319_s17 + $0x494] ss:$456 sps:$4 sm:$0xff]  }
 0x78f   : > { %16937 = vmatpush1.bf16.msra.mxu1 %v24777_v20 }
 0x790   : > { %17019 = vmatpush1.bf16.msra.mxu0 %v24780_v21  ;;  %16938 = vmatprep.subr.bf16.mxu1 %v24785_v26  ;;  %v24813_v26 = vld [vmem:[%s27319_s17 + $0x488] ss:$456 sps:$4 sm:$0xff]  }
 0x791   : > { %v16491_v35 = vpop.f32.mrb[52].mxu1  ;;  %17020 = vmatprep.subr.bf16.mxu0 %v24788_v38 }
 0x792   : > { %v22656_v39 = vadd.f32 %v16491_v35, %v3084_v27  ;;  %v16493_v43 = vpop.f32.mrb[53].mxu1  ;;  %v16573_v52 = vpop.f32.mrb[48].mxu0  ;;  %v24819_v35 = vld [vmem:[%s27319_s17 + $0x818] ss:$456 sps:$4 sm:$0xff]  }
 0x793   : > { %v22657_v44 = vadd.f32 %v16493_v43, %v3088_v28  ;;  %v22658_v45 = vadd.f32 %v16573_v52, %v3092_v29  ;;  %v16495_v46 = vpop.f32.mrb[54].mxu1  ;;  %v16575_v63 = vpop.f32.mrb[49].mxu0  ;;  %16939 = vmatpush1.bf16.msra.mxu1 %v24783_v31  ;;  %v24816_v28 = vld [vmem:[%s27319_s17 + $0x490] ss:$456 sps:$4 sm:$0xff]   ;;  %v24821_v29 = vld [vmem:[%s27319_s17 + $0x81c] ss:$456 sps:$4 sm:$0xff]  }
 0x794   : > { %v19250_v30 = vsub.f32 0.0, %v22656_v39  ;;  %v22659_v50 = vadd.f32 %v16575_v63, %v3096_v32  ;;  %v16496_v51 = vpop.f32.mrb[55].mxu1  ;;  %v16577_v53 = vpop.f32.mrb[50].mxu0  ;;  %17021 = vmatpush1.bf16.msra.mxu0 %v24786_v47  ;;  %16949 = vmatprep.subr.bf16.mxu1 %v24791_v33  ;;  %v24824_v47 = vld [vmem:[%s27319_s17 + $0x824] ss:$456 sps:$4 sm:$0xff]  }
 0x795   : > { %v19251_v55 = vsub.f32 0.0, %v22657_v44  ;;  %v19252_v56 = vsub.f32 0.0, %v22658_v45  ;;  %v16578_v57 = vpop.f32.mrb[51].mxu0  ;;  %17031 = vmatprep.subr.bf16.mxu0 %v24794_v37  ;;  %v24822_v37 = vld [vmem:[%s27319_s17 + $0x820] ss:$456 sps:$4 sm:$0xff]  }
 0x796   : > { %v19410_v9 = vmul.f32 1.442695, %v19250_v30  ;;  %v19253_v60 = vsub.f32 0.0, %v22659_v50  ;;  %16941 = vmatmul.mubr.bf16.vlgmr.msra.gmra.mrb[64].mxu1 %v27535_v40  ;;  %v24827_v39 = vld [vmem:[%s27319_s17 + $0xbac] ss:$456 sps:$4 sm:$0xff]  }
 0x797   : > { %v19412_v62 = vmul.f32 1.442695, %v19251_v55  ;;  %v19414_v1 = vmul.f32 1.442695, %v19252_v56  ;;  %16950 = vmatpush1.bf16.msra.mxu1 %v24789_v48  ;;  %17023 = vmatmul.mubr.bf16.vlgmr.msra.gmra.mrb[60].mxu0 %v27535_v40  ;;  %v24830_v43 = vld [vmem:[%s27319_s17 + $0xbb4] ss:$456 sps:$4 sm:$0xff]  }
 0x798   : > { %26475 = vpow2.f32 %v19410_v9  ;;  %v19416_v15 = vmul.f32 1.442695, %v19253_v60  ;;  %17032 = vmatpush1.bf16.msra.mxu0 %v24792_v49  ;;  %16951 = vmatprep.subr.bf16.mxu1 %v24797_v54  ;;  %v24825_v52 = vld [vmem:[%s27319_s17 + $0xba8] ss:$456 sps:$4 sm:$0xff]   ;;  %v24833_v45 = vld [vmem:[%s27319_s17 + $0xf3c] ss:$456 sps:$4 sm:$0xff]  }
 0x799   : > { %26477 = vpow2.f32 %v19412_v62  ;;  %17033 = vmatprep.subr.bf16.mxu0 %v24800_v59  ;;  %16981 = vmatprep.mubr.bf16.mxu1 %v27007_v16  ;;  %v24828_v44 = vld [vmem:[%s27319_s17 + $0xbb0] ss:$456 sps:$4 sm:$0xff]   ;;  %v24836_v46 = vld [vmem:[%s27319_s17 + $0xf44] ss:$456 sps:$4 sm:$0xff]   ;;  %v24834_v30 = vld [vmem:[%s27319_s17 + $0xf40] ss:$456 sps:$4 sm:$0xff]  }
 0x79a   : > { %26479 = vpow2.f32 %v19414_v1  ;;  %17063 = vmatprep.mubr.bf16.mxu0 %v27007_v16  ;;  %v24831_v48 = vld [vmem:[%s27319_s17 + $0xf38] ss:$456 sps:$4 sm:$0xff]   ;;  %v24839_v50 = vld [vmem:[%s27319_s17 + $0x12cc] ss:$456 sps:$4 sm:$0xff]   ;;  %v24837_v57 = vld [vmem:[%s27319_s17 + $0x12c8] ss:$456 sps:$4 sm:$0xff]  }
 0x79b   : > { %26481 = vpow2.f32 %v19416_v15  ;;  %16952 = vmatpush1.bf16.msra.mxu1 %v24795_v58  ;;  %v24842_v54 = vld [vmem:[%s27319_s17 + $0x12d4] ss:$456 sps:$4 sm:$0xff]   ;;  %v24840_v58 = vld [vmem:[%s27319_s17 + $0x12d0] ss:$456 sps:$4 sm:$0xff]   ;;  %v24848_v9 = vld [vmem:[%s27319_s17 + $0x1664] ss:$456 sps:$4 sm:$0xff]  }
 0x79c   : > { %17034 = vmatpush1.bf16.msra.mxu0 %v24798_v4  ;;  %22457 = vmatprep.subr.msk.bf16.mxu1 %vm14187_vm7, %v24801_v61  ;;  %v24845_v59 = vld [vmem:[%s27319_s17 + $0x165c] ss:$456 sps:$4 sm:$0xff]   ;;  %v24843_v60 = vld [vmem:[%s27319_s17 + $0x1658] ss:$456 sps:$4 sm:$0xff]   ;;  %v24851_v62 = vld [vmem:[%s27319_s17 + $0x19ec] ss:$456 sps:$4 sm:$0xff]  }
 0x79d   : > { %22459 = vmatprep.subr.msk.bf16.mxu0 %vm14187_vm7, %v24804_v5  ;;  %v24846_v61 = vld [vmem:[%s27319_s17 + $0x1660] ss:$456 sps:$4 sm:$0xff]   ;;  %v24854_v1 = vld [vmem:[%s27319_s17 + $0x19f4] ss:$456 sps:$4 sm:$0xff]   ;;  %v24852_v15 = vld [vmem:[%s27319_s17 + $0x19f0] ss:$456 sps:$4 sm:$0xff]  }
 0x79e   : > { %v24849_v4 = vld [vmem:[%s27319_s17 + $0x19e8] ss:$456 sps:$4 sm:$0xff]   ;;  %v24860_v5 = vld [vmem:[%s27319_s17 + $0x1d84] ss:$456 sps:$4 sm:$0xff]  }
 0x79f   : > { %16954 = vmatpush1.bf16.msra.mxu1 %v14363_v8  ;;  %v24858_v8 = vld [vmem:[%s27319_s17 + $0x1d80] ss:$456 sps:$4 sm:$0xff]  }
 0x7a0   : > { %17036 = vmatpush1.bf16.msra.mxu0 %v14369_v11  ;;  %17072 = vmatprep.subr.bf16.mxu1 %v24809_v10  ;;  %v24863_v10 = vld [vmem:[%s27319_s17 + $0x210c] ss:$456 sps:$4 sm:$0xff]  }
 0x7a1   : > { %17154 = vmatprep.subr.bf16.mxu0 %v24812_v12  ;;  %v24866_v11 = vld [vmem:[%s27319_s17 + $0x2114] ss:$456 sps:$4 sm:$0xff]   ;;  %v24861_v12 = vld [vmem:[%s27319_s17 + $0x2108] ss:$456 sps:$4 sm:$0xff]  }
 0x7a2   : > { %v26476_v18 = vpop.eup %26475  ;;  %22458 = vmatmul.mubr.msk.bf16.vlgmr.msra.gmra.mrb[64].mxu1 %vm14183_vm8, %v27539_v42 }
 0x7a3   : > { %v26478_v20 = vpop.eup %26477  ;;  %v19592_v21 = vadd.f32 1.0, %v26476_v18  ;;  %22460 = vmatmul.mubr.msk.bf16.vlgmr.msra.gmra.mrb[60].mxu0 %vm14183_vm8, %v27539_v42  ;;  %17073 = vmatpush1.bf16.msra.mxu1 %v24807_v13  ;;  %v24864_v13 = vld [vmem:[%s27319_s17 + $0x2110] ss:$456 sps:$4 sm:$0xff]  }
 0x7a4   : > { %v26480_v38 = vpop.eup %26479  ;;  %v19593_v27 = vadd.f32 1.0, %v26478_v20  ;;  %17104 = vmatprep.mubr.bf16.mxu1 %v27537_v41  ;;  %17155 = vmatpush1.bf16.msra.mxu0 %v24810_v14  ;;  %v24869_v14 = vld [vmem:[%s27319_s17 + $0x249c] ss:$456 sps:$4 sm:$0xff]   ;;  %v24867_v18 = vld [vmem:[%s27319_s17 + $0x2498] ss:$456 sps:$4 sm:$0xff]  }
 0x7a5   : > { %v26482_v31 = vpop.eup %26481  ;;  %26483 = vrcp.f32 %v19592_v21  ;;  %v19594_v32 = vadd.f32 1.0, %v26480_v38  ;;  %17186 = vmatprep.mubr.bf16.mxu0 %v27537_v41  ;;  %17074 = vmatprep.subr.bf16.mxu1 %v24815_v17  ;;  %v24872_v17 = vld [vmem:[%s27319_s17 + $0x24a4] ss:$456 sps:$4 sm:$0xff]   ;;  %v24878_v21 = vld [vmem:[%s27319_s17 + $0x2834] ss:$456 sps:$4 sm:$0xff]  }
 0x7a6   : > { %26485 = vrcp.f32 %v19593_v27  ;;  %v19595_v33 = vadd.f32 1.0, %v26482_v31  ;;  %17156 = vmatprep.subr.bf16.mxu0 %v24818_v19  ;;  %v24870_v19 = vld [vmem:[%s27319_s17 + $0x24a0] ss:$456 sps:$4 sm:$0xff]   ;;  %v24875_v20 = vld [vmem:[%s27319_s17 + $0x282c] ss:$456 sps:$4 sm:$0xff]  }
 0x7a7   : > { %26487 = vrcp.f32 %v19594_v32  ;;  %17075 = vmatpush1.bf16.msra.mxu1 %v24813_v26  ;;  %v24873_v26 = vld [vmem:[%s27319_s17 + $0x2828] ss:$456 sps:$4 sm:$0xff]   ;;  %v24881_v27 = vld [vmem:[%s27319_s17 + $0x2bbc] ss:$456 sps:$4 sm:$0xff]   ;;  %v24887_v32 = vld [vmem:[%s27319_s17 + $0x2f4c] ss:$456 sps:$4 sm:$0xff]  }
 0x7a8   : > { %26489 = vrcp.f32 %v19595_v33  ;;  %17157 = vmatpush1.bf16.msra.mxu0 %v24816_v28  ;;  %17076 = vmatprep.subr.bf16.mxu1 %v24821_v29  ;;  %v24876_v38 = vld [vmem:[%s27319_s17 + $0x2830] ss:$456 sps:$4 sm:$0xff]   ;;  %v24884_v28 = vld [vmem:[%s27319_s17 + $0x2bc4] ss:$456 sps:$4 sm:$0xff]   ;;  %v24882_v31 = vld [vmem:[%s27319_s17 + $0x2bc0] ss:$456 sps:$4 sm:$0xff]  }
 0x7a9   : > { %17158 = vmatprep.subr.bf16.mxu0 %v24824_v47  ;;  %v24879_v29 = vld [vmem:[%s27319_s17 + $0x2bb8] ss:$456 sps:$4 sm:$0xff]   ;;  %v24890_v47 = vld [vmem:[%s27319_s17 + $0x2f54] ss:$456 sps:$4 sm:$0xff]   ;;  %v24885_v33 = vld [vmem:[%s27319_s17 + $0x2f48] ss:$456 sps:$4 sm:$0xff]  }
 0x7ab   : > { %17077 = vmatpush1.bf16.msra.mxu1 %v24819_v35  ;;  %v24888_v35 = vld [vmem:[%s27319_s17 + $0x2f50] ss:$456 sps:$4 sm:$0xff]  }
 0x7ac   : > { %17159 = vmatpush1.bf16.msra.mxu0 %v24822_v37  ;;  %17078 = vmatprep.subr.bf16.mxu1 %v24827_v39  ;;  %v24893_v37 = vld [vmem:[%s27319_s17 + $0x32dc] ss:$456 sps:$4 sm:$0xff]  }
 0x7ad   : > { %17160 = vmatprep.subr.bf16.mxu0 %v24830_v43  ;;  %v24896_v39 = vld [vmem:[%s27319_s17 + $0x32e4] ss:$456 sps:$4 sm:$0xff]   ;;  %v24891_v43 = vld [vmem:[%s27319_s17 + $0x32d8] ss:$456 sps:$4 sm:$0xff]  }
 0x7af   : > { %v26484_v63 = vpop.eup %26483  ;;  %17079 = vmatpush1.bf16.msra.mxu1 %v24825_v52  ;;  %v24894_v52 = vld [vmem:[%s27319_s17 + $0x32e0] ss:$456 sps:$4 sm:$0xff]  }
 0x7b0   : > { %v26486_v49 = vpop.eup %26485  ;;  %17161 = vmatpush1.bf16.msra.mxu0 %v24828_v44  ;;  %17080 = vmatprep.subr.bf16.mxu1 %v24833_v45  ;;  %v24899_v44 = vld [vmem:[%s27319_s17 + $0x366c] ss:$456 sps:$4 sm:$0xff]  }
 0x7b1   : > { %v26488_v51 = vpop.eup %26487  ;;  %v19911_v53 = vcombine.low %v26484_v63, %v26486_v49  ;;  %17162 = vmatprep.subr.bf16.mxu0 %v24836_v46  ;;  %v24902_v45 = vld [vmem:[%s27319_s17 + $0x3674] ss:$456 sps:$4 sm:$0xff]   ;;  %v3100_v46 = vrot.slane %v29018_v24, %v27461_v7  ;;  %v3104_v63 = vrot.slane %v29018_v24, %v27889_v22  ;;  %v24897_v49 = vld [vmem:[%s27319_s17 + $0x3668] ss:$456 sps:$4 sm:$0xff]  }
 0x7b2   : > { %v26490_v55 = vpop.eup %26489 }
 0x7b3   : > { %20025 = vst [vmem:[%s27851_s14 + $0xb8] sm:$0xff] %v19911_v53  ;;  %v19912_v56 = vcombine.low %v26488_v51, %v26490_v55  ;;  %17081 = vmatpush1.bf16.msra.mxu1 %v24831_v48  ;;  %v3108_v48 = vrot.slane %v29018_v24, %v27892_v23  ;;  %v24905_v51 = vld [vmem:[%s27319_s17 + $0x39fc] ss:$456 sps:$4 sm:$0xff]  }
 0x7b4   : > { %17163 = vmatpush1.bf16.msra.mxu0 %v24834_v30  ;;  %17082 = vmatprep.subr.bf16.mxu1 %v24839_v50  ;;  %v3112_v30 = vrot.slane %v29018_v24, %v27896_v25  ;;  %v24900_v50 = vld [vmem:[%s27319_s17 + $0x3670] ss:$456 sps:$4 sm:$0xff]  }
 0x7b5   : > { %20026 = vst [vmem:[%s27851_s14 + $0xc0] sm:$0xff] %v19912_v56  ;;  %17164 = vmatprep.subr.bf16.mxu0 %v24842_v54  ;;  %v24908_v54 = vld [vmem:[%s27319_s17 + $0x3a04] ss:$456 sps:$4 sm:$0xff]  }
 0x7b7   : > { %17083 = vmatpush1.bf16.msra.mxu1 %v24837_v57 }
 0x7b8   : > { %17165 = vmatpush1.bf16.msra.mxu0 %v24840_v58  ;;  %17084 = vmatprep.subr.bf16.mxu1 %v24845_v59 }
 0x7b9   : > { %17166 = vmatprep.subr.bf16.mxu0 %v24848_v9 }
 0x7bb   : > { %17085 = vmatpush1.bf16.msra.mxu1 %v24843_v60 }
 0x7bc   : > { %17167 = vmatpush1.bf16.msra.mxu0 %v24846_v61  ;;  %17086 = vmatprep.subr.bf16.mxu1 %v24851_v62  ;;  %v24903_v61 = vld [vmem:[%s27319_s17 + $0x39f8] ss:$456 sps:$4 sm:$0xff]  }
 0x7bd   : > { %17168 = vmatprep.subr.bf16.mxu0 %v24854_v1  ;;  %v24906_v62 = vld [vmem:[%s27319_s17 + $0x3a00] ss:$456 sps:$4 sm:$0xff]  }
 0x7bf   : > { %17087 = vmatpush1.bf16.msra.mxu1 %v24849_v4 }
 0x7c0   : > { %17169 = vmatpush1.bf16.msra.mxu0 %v24852_v15  ;;  %17088 = vmatprep.subr.bf16.mxu1 %v24857_v0 }
 0x7c1   : > { %17170 = vmatprep.subr.bf16.mxu0 %v24860_v5  ;;  %v24911_v5 = vld [vmem:[%s27319_s17 + $0x3d8c] ss:$456 sps:$4 sm:$0xff]  }
 0x7c3   : > { %17089 = vmatpush1.bf16.msra.mxu1 %v24855_v6 }
 0x7c4   : > { %17171 = vmatpush1.bf16.msra.mxu0 %v24858_v8  ;;  %17090 = vmatprep.subr.bf16.mxu1 %v24863_v10 }
 0x7c5   : > { %17172 = vmatprep.subr.bf16.mxu0 %v24866_v11  ;;  %v24909_v11 = vld [vmem:[%s27319_s17 + $0x3d88] ss:$456 sps:$4 sm:$0xff]  }
 0x7c7   : > { %17091 = vmatpush1.bf16.msra.mxu1 %v24861_v12  ;;  %v24914_v12 = vld [vmem:[%s27319_s17 + $0x3d94] ss:$456 sps:$4 sm:$0xff]  }
 0x7c8   : > { %17173 = vmatpush1.bf16.msra.mxu0 %v24864_v13  ;;  %17092 = vmatprep.subr.bf16.mxu1 %v24869_v14 }
 0x7c9   : > { %17174 = vmatprep.subr.bf16.mxu0 %v24872_v17  ;;  %v24915_v17 = vld [vmem:[%s27319_s17 + $0x411c] ss:$456 sps:$4 sm:$0x3f]  }
 0x7cb   : > { %17093 = vmatpush1.bf16.msra.mxu1 %v24867_v18 }
 0x7cc   : > { %17175 = vmatpush1.bf16.msra.mxu0 %v24870_v19  ;;  %17094 = vmatprep.subr.bf16.mxu1 %v24875_v20  ;;  %v24912_v20 = vld [vmem:[%s27319_s17 + $0x3d90] ss:$456 sps:$4 sm:$0xff]  }
 0x7cd   : > { %17176 = vmatprep.subr.bf16.mxu0 %v24878_v21 }
 0x7cf   : > { %17095 = vmatpush1.bf16.msra.mxu1 %v24873_v26  ;;  %v24917_v26 = vld [vmem:[%s27319_s17 + $0x4118] ss:$456 sps:$4 sm:$0x3f]  }
 0x7d0   : > { %17177 = vmatpush1.bf16.msra.mxu0 %v24876_v38  ;;  %17096 = vmatprep.subr.bf16.mxu1 %v24881_v27  ;;  %v24918_v38 = vld [vmem:[%s27319_s17 + $0x4124] ss:$456 sps:$4 sm:$0x3f]   ;;  %v24920_v27 = vld [vmem:[%s27319_s17 + $0x4120] ss:$456 sps:$4 sm:$0x3f]  }
 0x7d1   : > { %17178 = vmatprep.subr.bf16.mxu0 %v24884_v28  ;;  %v14375_v28 = vsel %vm14187_vm7, %v24917_v26, 0  ;;  %v24971_v26 = vld [vmem:[%s27319_s17 + $0x1d8c] ss:$456 sps:$4 sm:$0xff]  }
 0x7d3   : > { %17097 = vmatpush1.bf16.msra.mxu1 %v24879_v29  ;;  %v24923_v29 = vld [vmem:[%s27319_s17 + $0x10c] ss:$456 sps:$4 sm:$0xff]  }
 0x7d4   : > { %17179 = vmatpush1.bf16.msra.mxu0 %v24882_v31  ;;  %17098 = vmatprep.subr.bf16.mxu1 %v24887_v32  ;;  %v14381_v31 = vsel %vm14187_vm7, %v24920_v27, 0  ;;  %v24926_v32 = vld [vmem:[%s27319_s17 + $0x114] ss:$456 sps:$4 sm:$0xff]   ;;  %v24969_v27 = vld [vmem:[%s27319_s17 + $0x1d88] ss:$456 sps:$4 sm:$0xff]  }
 0x7d5   : > { %17180 = vmatprep.subr.bf16.mxu0 %v24890_v47  ;;  %v24921_v47 = vld [vmem:[%s27319_s17 + $0x108] ss:$456 sps:$4 sm:$0xff]  }
 0x7d7   : > { %17099 = vmatpush1.bf16.msra.mxu1 %v24885_v33  ;;  %v24924_v33 = vld [vmem:[%s27319_s17 + $0x110] ss:$456 sps:$4 sm:$0xff]  }
 0x7d8   : > { %17181 = vmatpush1.bf16.msra.mxu0 %v24888_v35  ;;  %17100 = vmatprep.subr.bf16.mxu1 %v24893_v37  ;;  %v24929_v35 = vld [vmem:[%s27319_s17 + $0x49c] ss:$456 sps:$4 sm:$0xff]  }
 0x7d9   : > { %17182 = vmatprep.subr.bf16.mxu0 %v24896_v39  ;;  %v24932_v39 = vld [vmem:[%s27319_s17 + $0x4a4] ss:$456 sps:$4 sm:$0xff]  }
 0x7db   : > { %17101 = vmatpush1.bf16.msra.mxu1 %v24891_v43 }
 0x7dc   : > { %17183 = vmatpush1.bf16.msra.mxu0 %v24894_v52  ;;  %17102 = vmatprep.subr.bf16.mxu1 %v24899_v44  ;;  %v24927_v44 = vld [vmem:[%s27319_s17 + $0x498] ss:$456 sps:$4 sm:$0xff]  }
 0x7dd   : > { %v16655_v53 = vpop.f32.mrb[56].mxu1  ;;  %17184 = vmatprep.subr.bf16.mxu0 %v24902_v45 }
 0x7de   : > { %v22660_v55 = vadd.f32 %v16655_v53, %v3100_v46  ;;  %v16657_v56 = vpop.f32.mrb[57].mxu1  ;;  %v16737_v57 = vpop.f32.mrb[52].mxu0  ;;  %v24933_v53 = vld [vmem:[%s27319_s17 + $0x828] ss:$456 sps:$4 sm:$0xff]  }
 0x7df   : > { %v22661_v58 = vadd.f32 %v16657_v56, %v3104_v63  ;;  %v22662_v59 = vadd.f32 %v16737_v57, %v3108_v48  ;;  %v16659_v9 = vpop.f32.mrb[58].mxu1  ;;  %v16739_v60 = vpop.f32.mrb[53].mxu0  ;;  %17103 = vmatpush1.bf16.msra.mxu1 %v24897_v49  ;;  %v24930_v63 = vld [vmem:[%s27319_s17 + $0x4a0] ss:$456 sps:$4 sm:$0xff]   ;;  %v24935_v48 = vld [vmem:[%s27319_s17 + $0x82c] ss:$456 sps:$4 sm:$0xff]  }
 0x7e0   : > { %v19254_v1 = vsub.f32 0.0, %v22660_v55  ;;  %v22663_v4 = vadd.f32 %v16739_v60, %v3112_v30  ;;  %v16660_v15 = vpop.f32.mrb[59].mxu1  ;;  %v16741_v0 = vpop.f32.mrb[54].mxu0  ;;  %17185 = vmatpush1.bf16.msra.mxu0 %v24900_v50  ;;  %17113 = vmatprep.subr.bf16.mxu1 %v24905_v51  ;;  %v24938_v50 = vld [vmem:[%s27319_s17 + $0x834] ss:$456 sps:$4 sm:$0xff]  }
 0x7e1   : > { %v19255_v6 = vsub.f32 0.0, %v22661_v58  ;;  %v19256_v8 = vsub.f32 0.0, %v22662_v59  ;;  %v16742_v10 = vpop.f32.mrb[55].mxu0  ;;  %17195 = vmatprep.subr.bf16.mxu0 %v24908_v54  ;;  %v24936_v54 = vld [vmem:[%s27319_s17 + $0x830] ss:$456 sps:$4 sm:$0xff]  }
 0x7e2   : > { %v19418_v13 = vmul.f32 1.442695, %v19254_v1  ;;  %v19257_v14 = vsub.f32 0.0, %v22663_v4  ;;  %17105 = vmatmul.mubr.bf16.vlgmr.msra.gmra.mrb[68].mxu1 %v27535_v40  ;;  %v24941_v55 = vld [vmem:[%s27319_s17 + $0xbbc] ss:$456 sps:$4 sm:$0xff]  }
 0x7e3   : > { %v19420_v18 = vmul.f32 1.442695, %v19255_v6  ;;  %v19422_v19 = vmul.f32 1.442695, %v19256_v8  ;;  %17114 = vmatpush1.bf16.msra.mxu1 %v24903_v61  ;;  %17187 = vmatmul.mubr.bf16.vlgmr.msra.gmra.mrb[64].mxu0 %v27535_v40  ;;  %v24944_v56 = vld [vmem:[%s27319_s17 + $0xbc4] ss:$456 sps:$4 sm:$0xff]  }
 0x7e4   : > { %26491 = vpow2.f32 %v19418_v13  ;;  %v19424_v21 = vmul.f32 1.442695, %v19257_v14  ;;  %17196 = vmatpush1.bf16.msra.mxu0 %v24906_v62  ;;  %17115 = vmatprep.subr.bf16.mxu1 %v24911_v5  ;;  %v24939_v57 = vld [vmem:[%s27319_s17 + $0xbb8] ss:$456 sps:$4 sm:$0xff]   ;;  %v24947_v59 = vld [vmem:[%s27319_s17 + $0xf4c] ss:$456 sps:$4 sm:$0xff]  }
 0x7e5   : > { %26493 = vpow2.f32 %v19420_v18  ;;  %17197 = vmatprep.subr.bf16.mxu0 %v24914_v12  ;;  %17145 = vmatprep.mubr.bf16.mxu1 %v27007_v16  ;;  %v24942_v58 = vld [vmem:[%s27319_s17 + $0xbc0] ss:$456 sps:$4 sm:$0xff]   ;;  %v24950_v9 = vld [vmem:[%s27319_s17 + $0xf54] ss:$456 sps:$4 sm:$0xff]   ;;  %v24948_v1 = vld [vmem:[%s27319_s17 + $0xf50] ss:$456 sps:$4 sm:$0xff]  }
 0x7e6   : > { %26495 = vpow2.f32 %v19422_v19  ;;  %17227 = vmatprep.mubr.bf16.mxu0 %v27007_v16  ;;  %v24945_v61 = vld [vmem:[%s27319_s17 + $0xf48] ss:$456 sps:$4 sm:$0xff]   ;;  %v24953_v4 = vld [vmem:[%s27319_s17 + $0x12dc] ss:$456 sps:$4 sm:$0xff]   ;;  %v24951_v10 = vld [vmem:[%s27319_s17 + $0x12d8] ss:$456 sps:$4 sm:$0xff]  }
 0x7e7   : > { %26497 = vpow2.f32 %v19424_v21  ;;  %17116 = vmatpush1.bf16.msra.mxu1 %v24909_v11  ;;  %v24956_v5 = vld [vmem:[%s27319_s17 + $0x12e4] ss:$456 sps:$4 sm:$0xff]   ;;  %v24954_v11 = vld [vmem:[%s27319_s17 + $0x12e0] ss:$456 sps:$4 sm:$0xff]   ;;  %v24962_v13 = vld [vmem:[%s27319_s17 + $0x1674] ss:$456 sps:$4 sm:$0xff]  }
 0x7e8   : > { %17198 = vmatpush1.bf16.msra.mxu0 %v24912_v20  ;;  %22461 = vmatprep.subr.msk.bf16.mxu1 %vm14187_vm7, %v24915_v17  ;;  %v24959_v12 = vld [vmem:[%s27319_s17 + $0x166c] ss:$456 sps:$4 sm:$0xff]   ;;  %v24957_v14 = vld [vmem:[%s27319_s17 + $0x1668] ss:$456 sps:$4 sm:$0xff]   ;;  %v24965_v18 = vld [vmem:[%s27319_s17 + $0x19fc] ss:$456 sps:$4 sm:$0xff]  }
 0x7e9   : > { %22463 = vmatprep.subr.msk.bf16.mxu0 %vm14187_vm7, %v24918_v38  ;;  %v24960_v17 = vld [vmem:[%s27319_s17 + $0x1670] ss:$456 sps:$4 sm:$0xff]   ;;  %v24968_v19 = vld [vmem:[%s27319_s17 + $0x1a04] ss:$456 sps:$4 sm:$0xff]   ;;  %v24966_v21 = vld [vmem:[%s27319_s17 + $0x1a00] ss:$456 sps:$4 sm:$0xff]  }
 0x7ea   : > { %v24963_v20 = vld [vmem:[%s27319_s17 + $0x19f8] ss:$456 sps:$4 sm:$0xff]   ;;  %v24974_v38 = vld [vmem:[%s27319_s17 + $0x1d94] ss:$456 sps:$4 sm:$0xff]  }
 0x7eb   : > { %17118 = vmatpush1.bf16.msra.mxu1 %v14375_v28  ;;  %v24972_v28 = vld [vmem:[%s27319_s17 + $0x1d90] ss:$456 sps:$4 sm:$0xff]  }
 0x7ec   : > { %17200 = vmatpush1.bf16.msra.mxu0 %v14381_v31  ;;  %17236 = vmatprep.subr.bf16.mxu1 %v24923_v29  ;;  %v24977_v29 = vld [vmem:[%s27319_s17 + $0x211c] ss:$456 sps:$4 sm:$0xff]  }
 0x7ed   : > { %17318 = vmatprep.subr.bf16.mxu0 %v24926_v32  ;;  %v24980_v31 = vld [vmem:[%s27319_s17 + $0x2124] ss:$456 sps:$4 sm:$0xff]   ;;  %v24975_v32 = vld [vmem:[%s27319_s17 + $0x2118] ss:$456 sps:$4 sm:$0xff]  }
 0x7ee   : > { %v26492_v37 = vpop.eup %26491  ;;  %22462 = vmatmul.mubr.msk.bf16.vlgmr.msra.gmra.mrb[68].mxu1 %vm14183_vm8, %v27539_v42 }
 0x7ef   : > { %v26494_v43 = vpop.eup %26493  ;;  %v19596_v52 = vadd.f32 1.0, %v26492_v37  ;;  %22464 = vmatmul.mubr.msk.bf16.vlgmr.msra.gmra.mrb[64].mxu0 %vm14183_vm8, %v27539_v42  ;;  %17237 = vmatpush1.bf16.msra.mxu1 %v24921_v47  ;;  %v24978_v47 = vld [vmem:[%s27319_s17 + $0x2120] ss:$456 sps:$4 sm:$0xff]  }
 0x7f0   : > { %v26496_v45 = vpop.eup %26495  ;;  %v19597_v46 = vadd.f32 1.0, %v26494_v43  ;;  %17268 = vmatprep.mubr.bf16.mxu1 %v27537_v41  ;;  %17319 = vmatpush1.bf16.msra.mxu0 %v24924_v33  ;;  %v24983_v33 = vld [vmem:[%s27319_s17 + $0x24ac] ss:$456 sps:$4 sm:$0xff]   ;;  %v24981_v37 = vld [vmem:[%s27319_s17 + $0x24a8] ss:$456 sps:$4 sm:$0xff]  }
 0x7f1   : > { %v26498_v49 = vpop.eup %26497  ;;  %26499 = vrcp.f32 %v19596_v52  ;;  %v19598_v30 = vadd.f32 1.0, %v26496_v45  ;;  %17350 = vmatprep.mubr.bf16.mxu0 %v27537_v41  ;;  %17238 = vmatprep.subr.bf16.mxu1 %v24929_v35  ;;  %v24986_v35 = vld [vmem:[%s27319_s17 + $0x24b4] ss:$456 sps:$4 sm:$0xff]   ;;  %v24992_v52 = vld [vmem:[%s27319_s17 + $0x2844] ss:$456 sps:$4 sm:$0xff]  }
 0x7f2   : > { %26501 = vrcp.f32 %v19597_v46  ;;  %v19599_v51 = vadd.f32 1.0, %v26498_v49  ;;  %17320 = vmatprep.subr.bf16.mxu0 %v24932_v39  ;;  %v24984_v39 = vld [vmem:[%s27319_s17 + $0x24b0] ss:$456 sps:$4 sm:$0xff]   ;;  %v24989_v43 = vld [vmem:[%s27319_s17 + $0x283c] ss:$456 sps:$4 sm:$0xff]  }
 0x7f3   : > { %26503 = vrcp.f32 %v19598_v30  ;;  %17239 = vmatpush1.bf16.msra.mxu1 %v24927_v44  ;;  %v24987_v44 = vld [vmem:[%s27319_s17 + $0x2838] ss:$456 sps:$4 sm:$0xff]   ;;  %v24995_v46 = vld [vmem:[%s27319_s17 + $0x2bcc] ss:$456 sps:$4 sm:$0xff]   ;;  %v25001_v30 = vld [vmem:[%s27319_s17 + $0x2f5c] ss:$456 sps:$4 sm:$0xff]  }
 0x7f4   : > { %26505 = vrcp.f32 %v19599_v51  ;;  %17321 = vmatpush1.bf16.msra.mxu0 %v24930_v63  ;;  %17240 = vmatprep.subr.bf16.mxu1 %v24935_v48  ;;  %v24990_v45 = vld [vmem:[%s27319_s17 + $0x2840] ss:$456 sps:$4 sm:$0xff]   ;;  %v24998_v63 = vld [vmem:[%s27319_s17 + $0x2bd4] ss:$456 sps:$4 sm:$0xff]   ;;  %v24996_v49 = vld [vmem:[%s27319_s17 + $0x2bd0] ss:$456 sps:$4 sm:$0xff]  }
 0x7f5   : > { %17322 = vmatprep.subr.bf16.mxu0 %v24938_v50  ;;  %v24993_v48 = vld [vmem:[%s27319_s17 + $0x2bc8] ss:$456 sps:$4 sm:$0xff]   ;;  %v25004_v50 = vld [vmem:[%s27319_s17 + $0x2f64] ss:$456 sps:$4 sm:$0xff]   ;;  %v24999_v51 = vld [vmem:[%s27319_s17 + $0x2f58] ss:$456 sps:$4 sm:$0xff]  }
 0x7f7   : > { %17241 = vmatpush1.bf16.msra.mxu1 %v24933_v53  ;;  %v25002_v53 = vld [vmem:[%s27319_s17 + $0x2f60] ss:$456 sps:$4 sm:$0xff]  }
 0x7f8   : > { %17323 = vmatpush1.bf16.msra.mxu0 %v24936_v54  ;;  %17242 = vmatprep.subr.bf16.mxu1 %v24941_v55  ;;  %v25007_v54 = vld [vmem:[%s27319_s17 + $0x32ec] ss:$456 sps:$4 sm:$0xff]  }
 0x7f9   : > { %17324 = vmatprep.subr.bf16.mxu0 %v24944_v56  ;;  %v25010_v55 = vld [vmem:[%s27319_s17 + $0x32f4] ss:$456 sps:$4 sm:$0xff]   ;;  %v25005_v56 = vld [vmem:[%s27319_s17 + $0x32e8] ss:$456 sps:$4 sm:$0xff]  }
 0x7fb   : > { %v26500_v60 = vpop.eup %26499  ;;  %17243 = vmatpush1.bf16.msra.mxu1 %v24939_v57  ;;  %v25008_v57 = vld [vmem:[%s27319_s17 + $0x32f0] ss:$456 sps:$4 sm:$0xff]  }
 0x7fc   : > { %v26502_v62 = vpop.eup %26501  ;;  %17325 = vmatpush1.bf16.msra.mxu0 %v24942_v58  ;;  %17244 = vmatprep.subr.bf16.mxu1 %v24947_v59  ;;  %v29221_v58 = vld [vmem:[%s27786_s21 + $0x38] sm:$0xff] }
 0x7fd   : > { %v26504_v15 = vpop.eup %26503  ;;  %v19913_v0 = vcombine.low %v26500_v60, %v26502_v62  ;;  %17326 = vmatprep.subr.bf16.mxu0 %v24950_v9  ;;  %v25013_v59 = vld [vmem:[%s27319_s17 + $0x367c] ss:$456 sps:$4 sm:$0xff]   ;;  %v3116_v60 = vrot.slane %v29018_v24, %v27996_v34  ;;  %v3124_v62 = vrot.slane %v29221_v58, %v27453_v2 }
 0x7fe   : > { %v26506_v6 = vpop.eup %26505  ;;  %v25016_v9 = vld [vmem:[%s27319_s17 + $0x3684] ss:$456 sps:$4 sm:$0xff]  }
 0x7ff   : > { %20027 = vst [vmem:[%s27851_s14 + $0xc8] sm:$0xff] %v19913_v0  ;;  %v19914_v8 = vcombine.low %v26504_v15, %v26506_v6  ;;  %17245 = vmatpush1.bf16.msra.mxu1 %v24945_v61  ;;  %v3120_v61 = vrot.slane %v29018_v24, %v28000_v36  ;;  %v25014_v15 = vld [vmem:[%s27319_s17 + $0x3680] ss:$456 sps:$4 sm:$0xff]   ;;  %v25019_v0 = vld [vmem:[%s27319_s17 + $0x3a0c] ss:$456 sps:$4 sm:$0xff]  }
 0x800   : > { %17327 = vmatpush1.bf16.msra.mxu0 %v24948_v1  ;;  %17246 = vmatprep.subr.bf16.mxu1 %v24953_v4  ;;  %v25011_v1 = vld [vmem:[%s27319_s17 + $0x3678] ss:$456 sps:$4 sm:$0xff]   ;;  %v3128_v4 = vrot.slane %v29221_v58, %v27456_v3  ;;  %v25022_v6 = vld [vmem:[%s27319_s17 + $0x3a14] ss:$456 sps:$4 sm:$0xff]  }
 0x801   : > { %20028 = vst [vmem:[%s27851_s14 + $0xd0] sm:$0xff] %v19914_v8  ;;  %17328 = vmatprep.subr.bf16.mxu0 %v24956_v5 }
 0x803   : > { %17247 = vmatpush1.bf16.msra.mxu1 %v24951_v10 }
 0x804   : > { %17329 = vmatpush1.bf16.msra.mxu0 %v24954_v11  ;;  %17248 = vmatprep.subr.bf16.mxu1 %v24959_v12 }
 0x805   : > { %17330 = vmatprep.subr.bf16.mxu0 %v24962_v13 }
 0x807   : > { %17249 = vmatpush1.bf16.msra.mxu1 %v24957_v14 }
 0x808   : > { %17331 = vmatpush1.bf16.msra.mxu0 %v24960_v17  ;;  %17250 = vmatprep.subr.bf16.mxu1 %v24965_v18  ;;  %v25017_v17 = vld [vmem:[%s27319_s17 + $0x3a08] ss:$456 sps:$4 sm:$0xff]  }
 0x809   : > { %17332 = vmatprep.subr.bf16.mxu0 %v24968_v19  ;;  %v25020_v18 = vld [vmem:[%s27319_s17 + $0x3a10] ss:$456 sps:$4 sm:$0xff]  }
 0x80b   : > { %17251 = vmatpush1.bf16.msra.mxu1 %v24963_v20 }
 0x80c   : > { %17333 = vmatpush1.bf16.msra.mxu0 %v24966_v21  ;;  %17252 = vmatprep.subr.bf16.mxu1 %v24971_v26 }
 0x80d   : > { %17334 = vmatprep.subr.bf16.mxu0 %v24974_v38  ;;  %v25025_v38 = vld [vmem:[%s27319_s17 + $0x3d9c] ss:$456 sps:$4 sm:$0xff]  }
 0x80f   : > { %17253 = vmatpush1.bf16.msra.mxu1 %v24969_v27 }
 0x810   : > { %17335 = vmatpush1.bf16.msra.mxu0 %v24972_v28  ;;  %17254 = vmatprep.subr.bf16.mxu1 %v24977_v29 }
 0x811   : > { %17336 = vmatprep.subr.bf16.mxu0 %v24980_v31  ;;  %v25023_v31 = vld [vmem:[%s27319_s17 + $0x3d98] ss:$456 sps:$4 sm:$0xff]  }
 0x813   : > { %17255 = vmatpush1.bf16.msra.mxu1 %v24975_v32  ;;  %v25028_v32 = vld [vmem:[%s27319_s17 + $0x3da4] ss:$456 sps:$4 sm:$0xff]  }
 0x814   : > { %17337 = vmatpush1.bf16.msra.mxu0 %v24978_v47  ;;  %17256 = vmatprep.subr.bf16.mxu1 %v24983_v33 }
 0x815   : > { %17338 = vmatprep.subr.bf16.mxu0 %v24986_v35  ;;  %v25029_v35 = vld [vmem:[%s27319_s17 + $0x412c] ss:$456 sps:$4 sm:$0x3f]  }
 0x817   : > { %17257 = vmatpush1.bf16.msra.mxu1 %v24981_v37 }
 0x818   : > { %17339 = vmatpush1.bf16.msra.mxu0 %v24984_v39  ;;  %17258 = vmatprep.subr.bf16.mxu1 %v24989_v43  ;;  %v25026_v43 = vld [vmem:[%s27319_s17 + $0x3da0] ss:$456 sps:$4 sm:$0xff]  }
 0x819   : > { %17340 = vmatprep.subr.bf16.mxu0 %v24992_v52 }
 0x81b   : > { %17259 = vmatpush1.bf16.msra.mxu1 %v24987_v44  ;;  %v25031_v44 = vld [vmem:[%s27319_s17 + $0x4128] ss:$456 sps:$4 sm:$0x3f]  }
 0x81c   : > { %17341 = vmatpush1.bf16.msra.mxu0 %v24990_v45  ;;  %17260 = vmatprep.subr.bf16.mxu1 %v24995_v46  ;;  %v25032_v45 = vld [vmem:[%s27319_s17 + $0x4134] ss:$456 sps:$4 sm:$0x3f]   ;;  %v25034_v46 = vld [vmem:[%s27319_s17 + $0x4130] ss:$456 sps:$4 sm:$0x3f]  }
 0x81d   : > { %17342 = vmatprep.subr.bf16.mxu0 %v24998_v63  ;;  %v14387_v63 = vsel %vm14187_vm7, %v25031_v44, 0  ;;  %v25085_v44 = vld [vmem:[%s27319_s17 + $0x1d9c] ss:$456 sps:$4 sm:$0xff]  }
 0x81f   : > { %17261 = vmatpush1.bf16.msra.mxu1 %v24993_v48  ;;  %v25037_v48 = vld [vmem:[%s27319_s17 + $0x11c] ss:$456 sps:$4 sm:$0xff]  }
 0x820   : > { %17343 = vmatpush1.bf16.msra.mxu0 %v24996_v49  ;;  %17262 = vmatprep.subr.bf16.mxu1 %v25001_v30  ;;  %v14393_v49 = vsel %vm14187_vm7, %v25034_v46, 0  ;;  %v25040_v30 = vld [vmem:[%s27319_s17 + $0x124] ss:$456 sps:$4 sm:$0xff]   ;;  %v25083_v46 = vld [vmem:[%s27319_s17 + $0x1d98] ss:$456 sps:$4 sm:$0xff]  }
 0x821   : > { %17344 = vmatprep.subr.bf16.mxu0 %v25004_v50  ;;  %v25035_v50 = vld [vmem:[%s27319_s17 + $0x118] ss:$456 sps:$4 sm:$0xff]  }
 0x823   : > { %17263 = vmatpush1.bf16.msra.mxu1 %v24999_v51  ;;  %v25038_v51 = vld [vmem:[%s27319_s17 + $0x120] ss:$456 sps:$4 sm:$0xff]  }
 0x824   : > { %17345 = vmatpush1.bf16.msra.mxu0 %v25002_v53  ;;  %17264 = vmatprep.subr.bf16.mxu1 %v25007_v54  ;;  %v25043_v53 = vld [vmem:[%s27319_s17 + $0x4ac] ss:$456 sps:$4 sm:$0xff]  }
 0x825   : > { %17346 = vmatprep.subr.bf16.mxu0 %v25010_v55  ;;  %v25046_v55 = vld [vmem:[%s27319_s17 + $0x4b4] ss:$456 sps:$4 sm:$0xff]  }
 0x827   : > { %17265 = vmatpush1.bf16.msra.mxu1 %v25005_v56 }
 0x828   : > { %17347 = vmatpush1.bf16.msra.mxu0 %v25008_v57  ;;  %17266 = vmatprep.subr.bf16.mxu1 %v25013_v59  ;;  %v25041_v59 = vld [vmem:[%s27319_s17 + $0x4a8] ss:$456 sps:$4 sm:$0xff]  }
 0x829   : > { %v16819_v5 = vpop.f32.mrb[60].mxu1  ;;  %17348 = vmatprep.subr.bf16.mxu0 %v25016_v9 }
 0x82a   : > { %v22664_v8 = vadd.f32 %v16819_v5, %v3116_v60  ;;  %v16821_v10 = vpop.f32.mrb[61].mxu1  ;;  %v16901_v24 = vpop.f32.mrb[56].mxu0  ;;  %v25047_v5 = vld [vmem:[%s27319_s17 + $0x838] ss:$456 sps:$4 sm:$0xff]  }
 0x82b   : > { %v22665_v11 = vadd.f32 %v16821_v10, %v3120_v61  ;;  %v22666_v12 = vadd.f32 %v16901_v24, %v3124_v62  ;;  %v16823_v13 = vpop.f32.mrb[62].mxu1  ;;  %v16903_v14 = vpop.f32.mrb[57].mxu0  ;;  %17267 = vmatpush1.bf16.msra.mxu1 %v25011_v1  ;;  %v25044_v61 = vld [vmem:[%s27319_s17 + $0x4b0] ss:$456 sps:$4 sm:$0xff]   ;;  %v25049_v62 = vld [vmem:[%s27319_s17 + $0x83c] ss:$456 sps:$4 sm:$0xff]  }
 0x82c   : > { %v19258_v19 = vsub.f32 0.0, %v22664_v8  ;;  %v22667_v20 = vadd.f32 %v16903_v14, %v3128_v4  ;;  %v16824_v21 = vpop.f32.mrb[63].mxu1  ;;  %v16905_v26 = vpop.f32.mrb[58].mxu0  ;;  %17349 = vmatpush1.bf16.msra.mxu0 %v25014_v15  ;;  %17277 = vmatprep.subr.bf16.mxu1 %v25019_v0  ;;  %v25052_v15 = vld [vmem:[%s27319_s17 + $0x844] ss:$456 sps:$4 sm:$0xff]  }
 0x82d   : > { %v19259_v27 = vsub.f32 0.0, %v22665_v11  ;;  %v19260_v28 = vsub.f32 0.0, %v22666_v12  ;;  %v16906_v29 = vpop.f32.mrb[59].mxu0  ;;  %17359 = vmatprep.subr.bf16.mxu0 %v25022_v6  ;;  %v25050_v6 = vld [vmem:[%s27319_s17 + $0x840] ss:$456 sps:$4 sm:$0xff]  }
 0x82e   : > { %v19426_v47 = vmul.f32 1.442695, %v19258_v19  ;;  %v19261_v33 = vsub.f32 0.0, %v22667_v20  ;;  %17269 = vmatmul.mubr.bf16.vlgmr.msra.gmra.mrb[72].mxu1 %v27535_v40  ;;  %v25055_v8 = vld [vmem:[%s27319_s17 + $0xbcc] ss:$456 sps:$4 sm:$0xff]  }
 0x82f   : > { %v19428_v37 = vmul.f32 1.442695, %v19259_v27  ;;  %v19430_v39 = vmul.f32 1.442695, %v19260_v28  ;;  %17278 = vmatpush1.bf16.msra.mxu1 %v25017_v17  ;;  %17351 = vmatmul.mubr.bf16.vlgmr.msra.gmra.mrb[68].mxu0 %v27535_v40  ;;  %v25058_v10 = vld [vmem:[%s27319_s17 + $0xbd4] ss:$456 sps:$4 sm:$0xff]  }
 0x830   : > { %26507 = vpow2.f32 %v19426_v47  ;;  %v19432_v52 = vmul.f32 1.442695, %v19261_v33  ;;  %17360 = vmatpush1.bf16.msra.mxu0 %v25020_v18  ;;  %17279 = vmatprep.subr.bf16.mxu1 %v25025_v38  ;;  %v25053_v24 = vld [vmem:[%s27319_s17 + $0xbc8] ss:$456 sps:$4 sm:$0xff]   ;;  %v25061_v12 = vld [vmem:[%s27319_s17 + $0xf5c] ss:$456 sps:$4 sm:$0xff]  }
 0x831   : > { %26509 = vpow2.f32 %v19428_v37  ;;  %17361 = vmatprep.subr.bf16.mxu0 %v25028_v32  ;;  %17309 = vmatprep.mubr.bf16.mxu1 %v27007_v16  ;;  %v25056_v11 = vld [vmem:[%s27319_s17 + $0xbd0] ss:$456 sps:$4 sm:$0xff]   ;;  %v25064_v13 = vld [vmem:[%s27319_s17 + $0xf64] ss:$456 sps:$4 sm:$0xff]   ;;  %v25062_v19 = vld [vmem:[%s27319_s17 + $0xf60] ss:$456 sps:$4 sm:$0xff]  }
 0x832   : > { %26511 = vpow2.f32 %v19430_v39  ;;  %17391 = vmatprep.mubr.bf16.mxu0 %v27007_v16  ;;  %v25059_v17 = vld [vmem:[%s27319_s17 + $0xf58] ss:$456 sps:$4 sm:$0xff]   ;;  %v25067_v20 = vld [vmem:[%s27319_s17 + $0x12ec] ss:$456 sps:$4 sm:$0xff]   ;;  %v25065_v29 = vld [vmem:[%s27319_s17 + $0x12e8] ss:$456 sps:$4 sm:$0xff]  }
 0x833   : > { %26513 = vpow2.f32 %v19432_v52  ;;  %17280 = vmatpush1.bf16.msra.mxu1 %v25023_v31  ;;  %v25070_v38 = vld [vmem:[%s27319_s17 + $0x12f4] ss:$456 sps:$4 sm:$0xff]   ;;  %v25068_v31 = vld [vmem:[%s27319_s17 + $0x12f0] ss:$456 sps:$4 sm:$0xff]   ;;  %v25076_v47 = vld [vmem:[%s27319_s17 + $0x1684] ss:$456 sps:$4 sm:$0xff]  }
 0x834   : > { %17362 = vmatpush1.bf16.msra.mxu0 %v25026_v43  ;;  %22465 = vmatprep.subr.msk.bf16.mxu1 %vm14187_vm7, %v25029_v35  ;;  %v25073_v32 = vld [vmem:[%s27319_s17 + $0x167c] ss:$456 sps:$4 sm:$0xff]   ;;  %v25071_v33 = vld [vmem:[%s27319_s17 + $0x1678] ss:$456 sps:$4 sm:$0xff]   ;;  %v25079_v37 = vld [vmem:[%s27319_s17 + $0x1a0c] ss:$456 sps:$4 sm:$0xff]  }
 0x835   : > { %22467 = vmatprep.subr.msk.bf16.mxu0 %vm14187_vm7, %v25032_v45  ;;  %v25074_v35 = vld [vmem:[%s27319_s17 + $0x1680] ss:$456 sps:$4 sm:$0xff]   ;;  %v25082_v39 = vld [vmem:[%s27319_s17 + $0x1a14] ss:$456 sps:$4 sm:$0xff]   ;;  %v25080_v52 = vld [vmem:[%s27319_s17 + $0x1a10] ss:$456 sps:$4 sm:$0xff]  }
 0x836   : > { %v25077_v43 = vld [vmem:[%s27319_s17 + $0x1a08] ss:$456 sps:$4 sm:$0xff]   ;;  %v25088_v45 = vld [vmem:[%s27319_s17 + $0x1da4] ss:$456 sps:$4 sm:$0xff]  }
 0x837   : > { %17282 = vmatpush1.bf16.msra.mxu1 %v14387_v63  ;;  %v25086_v63 = vld [vmem:[%s27319_s17 + $0x1da0] ss:$456 sps:$4 sm:$0xff]  }
 0x838   : > { %17364 = vmatpush1.bf16.msra.mxu0 %v14393_v49  ;;  %17400 = vmatprep.subr.bf16.mxu1 %v25037_v48  ;;  %v25091_v48 = vld [vmem:[%s27319_s17 + $0x212c] ss:$456 sps:$4 sm:$0xff]  }
 0x839   : > { %17482 = vmatprep.subr.bf16.mxu0 %v25040_v30  ;;  %v25094_v49 = vld [vmem:[%s27319_s17 + $0x2134] ss:$456 sps:$4 sm:$0xff]   ;;  %v25089_v30 = vld [vmem:[%s27319_s17 + $0x2128] ss:$456 sps:$4 sm:$0xff]  }
 0x83a   : > { %v26508_v54 = vpop.eup %26507  ;;  %22466 = vmatmul.mubr.msk.bf16.vlgmr.msra.gmra.mrb[72].mxu1 %vm14183_vm8, %v27539_v42 }
 0x83b   : > { %v26510_v56 = vpop.eup %26509  ;;  %v19600_v57 = vadd.f32 1.0, %v26508_v54  ;;  %22468 = vmatmul.mubr.msk.bf16.vlgmr.msra.gmra.mrb[68].mxu0 %vm14183_vm8, %v27539_v42  ;;  %17401 = vmatpush1.bf16.msra.mxu1 %v25035_v50  ;;  %v25092_v50 = vld [vmem:[%s27319_s17 + $0x2130] ss:$456 sps:$4 sm:$0xff]  }
 0x83c   : > { %v26512_v9 = vpop.eup %26511  ;;  %v19601_v60 = vadd.f32 1.0, %v26510_v56  ;;  %17432 = vmatprep.mubr.bf16.mxu1 %v27537_v41  ;;  %17483 = vmatpush1.bf16.msra.mxu0 %v25038_v51  ;;  %v25097_v51 = vld [vmem:[%s27319_s17 + $0x24bc] ss:$456 sps:$4 sm:$0xff]   ;;  %v25095_v54 = vld [vmem:[%s27319_s17 + $0x24b8] ss:$456 sps:$4 sm:$0xff]  }
 0x83d   : > { %v26514_v1 = vpop.eup %26513  ;;  %26515 = vrcp.f32 %v19600_v57  ;;  %v19602_v4 = vadd.f32 1.0, %v26512_v9  ;;  %17514 = vmatprep.mubr.bf16.mxu0 %v27537_v41  ;;  %17402 = vmatprep.subr.bf16.mxu1 %v25043_v53  ;;  %v25100_v53 = vld [vmem:[%s27319_s17 + $0x24c4] ss:$456 sps:$4 sm:$0xff]   ;;  %v25106_v57 = vld [vmem:[%s27319_s17 + $0x2854] ss:$456 sps:$4 sm:$0xff]  }
 0x83e   : > { %26517 = vrcp.f32 %v19601_v60  ;;  %v19603_v0 = vadd.f32 1.0, %v26514_v1  ;;  %17484 = vmatprep.subr.bf16.mxu0 %v25046_v55  ;;  %v25098_v55 = vld [vmem:[%s27319_s17 + $0x24c0] ss:$456 sps:$4 sm:$0xff]   ;;  %v25103_v56 = vld [vmem:[%s27319_s17 + $0x284c] ss:$456 sps:$4 sm:$0xff]  }
 0x83f   : > { %26519 = vrcp.f32 %v19602_v4  ;;  %17403 = vmatpush1.bf16.msra.mxu1 %v25041_v59  ;;  %v25101_v59 = vld [vmem:[%s27319_s17 + $0x2848] ss:$456 sps:$4 sm:$0xff]   ;;  %v25109_v60 = vld [vmem:[%s27319_s17 + $0x2bdc] ss:$456 sps:$4 sm:$0xff]   ;;  %v25115_v4 = vld [vmem:[%s27319_s17 + $0x2f6c] ss:$456 sps:$4 sm:$0xff]  }
 0x840   : > { %26521 = vrcp.f32 %v19603_v0  ;;  %17485 = vmatpush1.bf16.msra.mxu0 %v25044_v61  ;;  %17404 = vmatprep.subr.bf16.mxu1 %v25049_v62  ;;  %v25104_v9 = vld [vmem:[%s27319_s17 + $0x2850] ss:$456 sps:$4 sm:$0xff]   ;;  %v25112_v61 = vld [vmem:[%s27319_s17 + $0x2be4] ss:$456 sps:$4 sm:$0xff]   ;;  %v25110_v1 = vld [vmem:[%s27319_s17 + $0x2be0] ss:$456 sps:$4 sm:$0xff]  }
 0x841   : > { %17486 = vmatprep.subr.bf16.mxu0 %v25052_v15  ;;  %v25107_v62 = vld [vmem:[%s27319_s17 + $0x2bd8] ss:$456 sps:$4 sm:$0xff]   ;;  %v25118_v15 = vld [vmem:[%s27319_s17 + $0x2f74] ss:$456 sps:$4 sm:$0xff]   ;;  %v25113_v0 = vld [vmem:[%s27319_s17 + $0x2f68] ss:$456 sps:$4 sm:$0xff]  }
 0x843   : > { %17405 = vmatpush1.bf16.msra.mxu1 %v25047_v5  ;;  %v25116_v5 = vld [vmem:[%s27319_s17 + $0x2f70] ss:$456 sps:$4 sm:$0xff]  }
 0x844   : > { %17487 = vmatpush1.bf16.msra.mxu0 %v25050_v6  ;;  %17406 = vmatprep.subr.bf16.mxu1 %v25055_v8  ;;  %v25121_v6 = vld [vmem:[%s27319_s17 + $0x32fc] ss:$456 sps:$4 sm:$0xff]  }
 0x845   : > { %17488 = vmatprep.subr.bf16.mxu0 %v25058_v10  ;;  %v25124_v8 = vld [vmem:[%s27319_s17 + $0x3304] ss:$456 sps:$4 sm:$0xff]   ;;  %v25119_v10 = vld [vmem:[%s27319_s17 + $0x32f8] ss:$456 sps:$4 sm:$0xff]  }
 0x847   : > { %v26516_v14 = vpop.eup %26515  ;;  %17407 = vmatpush1.bf16.msra.mxu1 %v25053_v24  ;;  %v25122_v24 = vld [vmem:[%s27319_s17 + $0x3300] ss:$456 sps:$4 sm:$0xff]  }
 0x848   : > { %v26518_v18 = vpop.eup %26517  ;;  %17489 = vmatpush1.bf16.msra.mxu0 %v25056_v11  ;;  %17408 = vmatprep.subr.bf16.mxu1 %v25061_v12  ;;  %v25127_v11 = vld [vmem:[%s27319_s17 + $0x368c] ss:$456 sps:$4 sm:$0xff]  }
 0x849   : > { %v26520_v21 = vpop.eup %26519  ;;  %v19915_v26 = vcombine.low %v26516_v14, %v26518_v18  ;;  %17490 = vmatprep.subr.bf16.mxu0 %v25064_v13  ;;  %v25130_v12 = vld [vmem:[%s27319_s17 + $0x3694] ss:$456 sps:$4 sm:$0xff]   ;;  %v3132_v13 = vrot.slane %v29221_v58, %v27461_v7  ;;  %v3136_v14 = vrot.slane %v29221_v58, %v27889_v22  ;;  %v25125_v18 = vld [vmem:[%s27319_s17 + $0x3688] ss:$456 sps:$4 sm:$0xff]  }
 0x84a   : > { %v26522_v27 = vpop.eup %26521 }
 0x84b   : > { %20029 = vst [vmem:[%s27851_s14 + $0xd8] sm:$0xff] %v19915_v26  ;;  %v19916_v28 = vcombine.low %v26520_v21, %v26522_v27  ;;  %17409 = vmatpush1.bf16.msra.mxu1 %v25059_v17  ;;  %v3140_v17 = vrot.slane %v29221_v58, %v27892_v23  ;;  %v25133_v21 = vld [vmem:[%s27319_s17 + $0x3a1c] ss:$456 sps:$4 sm:$0xff]  }
 0x84c   : > { %17491 = vmatpush1.bf16.msra.mxu0 %v25062_v19  ;;  %17410 = vmatprep.subr.bf16.mxu1 %v25067_v20  ;;  %v3144_v19 = vrot.slane %v29221_v58, %v27896_v25  ;;  %v25128_v20 = vld [vmem:[%s27319_s17 + $0x3690] ss:$456 sps:$4 sm:$0xff]  }
 0x84d   : > { %20030 = vst [vmem:[%s27851_s14 + $0xe0] sm:$0xff] %v19916_v28  ;;  %17492 = vmatprep.subr.bf16.mxu0 %v25070_v38  ;;  %v25136_v38 = vld [vmem:[%s27319_s17 + $0x3a24] ss:$456 sps:$4 sm:$0xff]  }
 0x84f   : > { %17411 = vmatpush1.bf16.msra.mxu1 %v25065_v29 }
 0x850   : > { %17493 = vmatpush1.bf16.msra.mxu0 %v25068_v31  ;;  %17412 = vmatprep.subr.bf16.mxu1 %v25073_v32 }
 0x851   : > { %17494 = vmatprep.subr.bf16.mxu0 %v25076_v47 }
 0x853   : > { %17413 = vmatpush1.bf16.msra.mxu1 %v25071_v33 }
 0x854   : > { %17495 = vmatpush1.bf16.msra.mxu0 %v25074_v35  ;;  %17414 = vmatprep.subr.bf16.mxu1 %v25079_v37  ;;  %v25131_v35 = vld [vmem:[%s27319_s17 + $0x3a18] ss:$456 sps:$4 sm:$0xff]  }
 0x855   : > { %17496 = vmatprep.subr.bf16.mxu0 %v25082_v39  ;;  %v25134_v37 = vld [vmem:[%s27319_s17 + $0x3a20] ss:$456 sps:$4 sm:$0xff]  }
 0x857   : > { %17415 = vmatpush1.bf16.msra.mxu1 %v25077_v43 }
 0x858   : > { %17497 = vmatpush1.bf16.msra.mxu0 %v25080_v52  ;;  %17416 = vmatprep.subr.bf16.mxu1 %v25085_v44 }
 0x859   : > { %17498 = vmatprep.subr.bf16.mxu0 %v25088_v45  ;;  %v25139_v45 = vld [vmem:[%s27319_s17 + $0x3dac] ss:$456 sps:$4 sm:$0xff]  }
 0x85b   : > { %17417 = vmatpush1.bf16.msra.mxu1 %v25083_v46 }
 0x85c   : > { %17499 = vmatpush1.bf16.msra.mxu0 %v25086_v63  ;;  %17418 = vmatprep.subr.bf16.mxu1 %v25091_v48 }
 0x85d   : > { %17500 = vmatprep.subr.bf16.mxu0 %v25094_v49  ;;  %v25137_v49 = vld [vmem:[%s27319_s17 + $0x3da8] ss:$456 sps:$4 sm:$0xff]  }
 0x85f   : > { %17419 = vmatpush1.bf16.msra.mxu1 %v25089_v30  ;;  %v25142_v30 = vld [vmem:[%s27319_s17 + $0x3db4] ss:$456 sps:$4 sm:$0xff]  }
 0x860   : > { %17501 = vmatpush1.bf16.msra.mxu0 %v25092_v50  ;;  %17420 = vmatprep.subr.bf16.mxu1 %v25097_v51 }
 0x861   : > { %17502 = vmatprep.subr.bf16.mxu0 %v25100_v53  ;;  %v25143_v53 = vld [vmem:[%s27319_s17 + $0x413c] ss:$456 sps:$4 sm:$0x3f]  }
 0x863   : > { %17421 = vmatpush1.bf16.msra.mxu1 %v25095_v54 }
 0x864   : > { %17503 = vmatpush1.bf16.msra.mxu0 %v25098_v55  ;;  %17422 = vmatprep.subr.bf16.mxu1 %v25103_v56  ;;  %v25140_v56 = vld [vmem:[%s27319_s17 + $0x3db0] ss:$456 sps:$4 sm:$0xff]  }
 0x865   : > { %17504 = vmatprep.subr.bf16.mxu0 %v25106_v57 }
 0x867   : > { %17423 = vmatpush1.bf16.msra.mxu1 %v25101_v59  ;;  %v25145_v59 = vld [vmem:[%s27319_s17 + $0x4138] ss:$456 sps:$4 sm:$0x3f]  }
 0x868   : > { %17505 = vmatpush1.bf16.msra.mxu0 %v25104_v9  ;;  %17424 = vmatprep.subr.bf16.mxu1 %v25109_v60  ;;  %v25146_v9 = vld [vmem:[%s27319_s17 + $0x4144] ss:$456 sps:$4 sm:$0x3f]   ;;  %v25148_v60 = vld [vmem:[%s27319_s17 + $0x4140] ss:$456 sps:$4 sm:$0x3f]  }
 0x869   : > { %17506 = vmatprep.subr.bf16.mxu0 %v25112_v61  ;;  %v14399_v61 = vsel %vm14187_vm7, %v25145_v59, 0  ;;  %v25199_v59 = vld [vmem:[%s27319_s17 + $0x1dac] ss:$456 sps:$4 sm:$0xff]  }
 0x86b   : > { %17425 = vmatpush1.bf16.msra.mxu1 %v25107_v62  ;;  %v25151_v62 = vld [vmem:[%s27319_s17 + $0x12c] ss:$456 sps:$4 sm:$0xff]  }
 0x86c   : > { %17507 = vmatpush1.bf16.msra.mxu0 %v25110_v1  ;;  %17426 = vmatprep.subr.bf16.mxu1 %v25115_v4  ;;  %v14405_v1 = vsel %vm14187_vm7, %v25148_v60, 0  ;;  %v25154_v4 = vld [vmem:[%s27319_s17 + $0x134] ss:$456 sps:$4 sm:$0xff]   ;;  %v25197_v60 = vld [vmem:[%s27319_s17 + $0x1da8] ss:$456 sps:$4 sm:$0xff]  }
 0x86d   : > { %17508 = vmatprep.subr.bf16.mxu0 %v25118_v15  ;;  %v25149_v15 = vld [vmem:[%s27319_s17 + $0x128] ss:$456 sps:$4 sm:$0xff]  }
 0x86f   : > { %17427 = vmatpush1.bf16.msra.mxu1 %v25113_v0  ;;  %v25152_v0 = vld [vmem:[%s27319_s17 + $0x130] ss:$456 sps:$4 sm:$0xff]  }
 0x870   : > { %17509 = vmatpush1.bf16.msra.mxu0 %v25116_v5  ;;  %17428 = vmatprep.subr.bf16.mxu1 %v25121_v6  ;;  %v25157_v5 = vld [vmem:[%s27319_s17 + $0x4bc] ss:$456 sps:$4 sm:$0xff]  }
 0x871   : > { %17510 = vmatprep.subr.bf16.mxu0 %v25124_v8  ;;  %v25160_v8 = vld [vmem:[%s27319_s17 + $0x4c4] ss:$456 sps:$4 sm:$0xff]  }
 0x873   : > { %17429 = vmatpush1.bf16.msra.mxu1 %v25119_v10 }
 0x874   : > { %17511 = vmatpush1.bf16.msra.mxu0 %v25122_v24  ;;  %17430 = vmatprep.subr.bf16.mxu1 %v25127_v11  ;;  %v25155_v11 = vld [vmem:[%s27319_s17 + $0x4b8] ss:$456 sps:$4 sm:$0xff]  }
 0x875   : > { %v16983_v26 = vpop.f32.mrb[64].mxu1  ;;  %17512 = vmatprep.subr.bf16.mxu0 %v25130_v12 }
 0x876   : > { %v22668_v27 = vadd.f32 %v16983_v26, %v3132_v13  ;;  %v16985_v28 = vpop.f32.mrb[65].mxu1  ;;  %v17065_v29 = vpop.f32.mrb[60].mxu0  ;;  %v25161_v26 = vld [vmem:[%s27319_s17 + $0x848] ss:$456 sps:$4 sm:$0xff]  }
 0x877   : > { %v22669_v31 = vadd.f32 %v16985_v28, %v3136_v14  ;;  %v22670_v32 = vadd.f32 %v17065_v29, %v3140_v17  ;;  %v16987_v47 = vpop.f32.mrb[66].mxu1  ;;  %v17067_v33 = vpop.f32.mrb[61].mxu0  ;;  %17431 = vmatpush1.bf16.msra.mxu1 %v25125_v18  ;;  %v25158_v14 = vld [vmem:[%s27319_s17 + $0x4c0] ss:$456 sps:$4 sm:$0xff]   ;;  %v25163_v17 = vld [vmem:[%s27319_s17 + $0x84c] ss:$456 sps:$4 sm:$0xff]  }
 0x878   : > { %v19262_v39 = vsub.f32 0.0, %v22668_v27  ;;  %v22671_v43 = vadd.f32 %v17067_v33, %v3144_v19  ;;  %v16988_v52 = vpop.f32.mrb[67].mxu1  ;;  %v17069_v44 = vpop.f32.mrb[62].mxu0  ;;  %17513 = vmatpush1.bf16.msra.mxu0 %v25128_v20  ;;  %17441 = vmatprep.subr.bf16.mxu1 %v25133_v21  ;;  %v25166_v20 = vld [vmem:[%s27319_s17 + $0x854] ss:$456 sps:$4 sm:$0xff]  }
 0x879   : > { %v19263_v46 = vsub.f32 0.0, %v22669_v31  ;;  %v19264_v63 = vsub.f32 0.0, %v22670_v32  ;;  %v17070_v48 = vpop.f32.mrb[63].mxu0  ;;  %17523 = vmatprep.subr.bf16.mxu0 %v25136_v38  ;;  %v25164_v38 = vld [vmem:[%s27319_s17 + $0x850] ss:$456 sps:$4 sm:$0xff]  }
 0x87a   : > { %v19434_v50 = vmul.f32 1.442695, %v19262_v39  ;;  %v19265_v51 = vsub.f32 0.0, %v22671_v43  ;;  %17433 = vmatmul.mubr.bf16.vlgmr.msra.gmra.mrb[76].mxu1 %v27535_v40  ;;  %v25169_v27 = vld [vmem:[%s27319_s17 + $0xbdc] ss:$456 sps:$4 sm:$0xff]  }
 0x87b   : > { %v19436_v54 = vmul.f32 1.442695, %v19263_v46  ;;  %v19438_v55 = vmul.f32 1.442695, %v19264_v63  ;;  %17442 = vmatpush1.bf16.msra.mxu1 %v25131_v35  ;;  %17515 = vmatmul.mubr.bf16.vlgmr.msra.gmra.mrb[72].mxu0 %v27535_v40  ;;  %v25172_v28 = vld [vmem:[%s27319_s17 + $0xbe4] ss:$456 sps:$4 sm:$0xff]  }
 0x87c   : > { %26523 = vpow2.f32 %v19434_v50  ;;  %v19440_v57 = vmul.f32 1.442695, %v19265_v51  ;;  %17524 = vmatpush1.bf16.msra.mxu0 %v25134_v37  ;;  %17443 = vmatprep.subr.bf16.mxu1 %v25139_v45  ;;  %v25167_v29 = vld [vmem:[%s27319_s17 + $0xbd8] ss:$456 sps:$4 sm:$0xff]   ;;  %v25175_v32 = vld [vmem:[%s27319_s17 + $0xf6c] ss:$456 sps:$4 sm:$0xff]  }
 0x87d   : > { %26525 = vpow2.f32 %v19436_v54  ;;  %17525 = vmatprep.subr.bf16.mxu0 %v25142_v30  ;;  %17473 = vmatprep.mubr.bf16.mxu1 %v27007_v16  ;;  %v25170_v31 = vld [vmem:[%s27319_s17 + $0xbe0] ss:$456 sps:$4 sm:$0xff]   ;;  %v25178_v47 = vld [vmem:[%s27319_s17 + $0xf74] ss:$456 sps:$4 sm:$0xff]   ;;  %v25176_v39 = vld [vmem:[%s27319_s17 + $0xf70] ss:$456 sps:$4 sm:$0xff]  }
 0x87e   : > { %26527 = vpow2.f32 %v19438_v55  ;;  %17555 = vmatprep.mubr.bf16.mxu0 %v27007_v16  ;;  %v25173_v35 = vld [vmem:[%s27319_s17 + $0xf68] ss:$456 sps:$4 sm:$0xff]   ;;  %v25181_v43 = vld [vmem:[%s27319_s17 + $0x12fc] ss:$456 sps:$4 sm:$0xff]   ;;  %v25179_v48 = vld [vmem:[%s27319_s17 + $0x12f8] ss:$456 sps:$4 sm:$0xff]  }
 0x87f   : > { %26529 = vpow2.f32 %v19440_v57  ;;  %17444 = vmatpush1.bf16.msra.mxu1 %v25137_v49  ;;  %v25184_v45 = vld [vmem:[%s27319_s17 + $0x1304] ss:$456 sps:$4 sm:$0xff]   ;;  %v25182_v49 = vld [vmem:[%s27319_s17 + $0x1300] ss:$456 sps:$4 sm:$0xff]   ;;  %v25190_v50 = vld [vmem:[%s27319_s17 + $0x1694] ss:$456 sps:$4 sm:$0xff]  }
 0x880   : > { %17526 = vmatpush1.bf16.msra.mxu0 %v25140_v56  ;;  %22469 = vmatprep.subr.msk.bf16.mxu1 %vm14187_vm7, %v25143_v53  ;;  %v25187_v30 = vld [vmem:[%s27319_s17 + $0x168c] ss:$456 sps:$4 sm:$0xff]   ;;  %v25185_v51 = vld [vmem:[%s27319_s17 + $0x1688] ss:$456 sps:$4 sm:$0xff]   ;;  %v25193_v54 = vld [vmem:[%s27319_s17 + $0x1a1c] ss:$456 sps:$4 sm:$0xff]  }
 0x881   : > { %22471 = vmatprep.subr.msk.bf16.mxu0 %vm14187_vm7, %v25146_v9  ;;  %v25188_v53 = vld [vmem:[%s27319_s17 + $0x1690] ss:$456 sps:$4 sm:$0xff]   ;;  %v25196_v55 = vld [vmem:[%s27319_s17 + $0x1a24] ss:$456 sps:$4 sm:$0xff]   ;;  %v25194_v57 = vld [vmem:[%s27319_s17 + $0x1a20] ss:$456 sps:$4 sm:$0xff]  }
 0x882   : > { %v25191_v56 = vld [vmem:[%s27319_s17 + $0x1a18] ss:$456 sps:$4 sm:$0xff]   ;;  %v25202_v9 = vld [vmem:[%s27319_s17 + $0x1db4] ss:$456 sps:$4 sm:$0xff]  }
 0x883   : > { %17446 = vmatpush1.bf16.msra.mxu1 %v14399_v61  ;;  %v25200_v61 = vld [vmem:[%s27319_s17 + $0x1db0] ss:$456 sps:$4 sm:$0xff]  }
 0x884   : > { %17528 = vmatpush1.bf16.msra.mxu0 %v14405_v1  ;;  %17564 = vmatprep.subr.bf16.mxu1 %v25151_v62  ;;  %v25205_v62 = vld [vmem:[%s27319_s17 + $0x213c] ss:$456 sps:$4 sm:$0xff]  }
 0x885   : > { %17646 = vmatprep.subr.bf16.mxu0 %v25154_v4  ;;  %v25208_v1 = vld [vmem:[%s27319_s17 + $0x2144] ss:$456 sps:$4 sm:$0xff]   ;;  %v25203_v4 = vld [vmem:[%s27319_s17 + $0x2138] ss:$456 sps:$4 sm:$0xff]  }
 0x886   : > { %v26524_v6 = vpop.eup %26523  ;;  %22470 = vmatmul.mubr.msk.bf16.vlgmr.msra.gmra.mrb[76].mxu1 %vm14183_vm8, %v27539_v42 }
 0x887   : > { %v26526_v10 = vpop.eup %26525  ;;  %v19604_v24 = vadd.f32 1.0, %v26524_v6  ;;  %22472 = vmatmul.mubr.msk.bf16.vlgmr.msra.gmra.mrb[72].mxu0 %vm14183_vm8, %v27539_v42  ;;  %17565 = vmatpush1.bf16.msra.mxu1 %v25149_v15  ;;  %v25206_v15 = vld [vmem:[%s27319_s17 + $0x2140] ss:$456 sps:$4 sm:$0xff]  }
 0x888   : > { %v26528_v12 = vpop.eup %26527  ;;  %v19605_v13 = vadd.f32 1.0, %v26526_v10  ;;  %17596 = vmatprep.mubr.bf16.mxu1 %v27537_v41  ;;  %17647 = vmatpush1.bf16.msra.mxu0 %v25152_v0  ;;  %v25211_v0 = vld [vmem:[%s27319_s17 + $0x24cc] ss:$456 sps:$4 sm:$0xff]   ;;  %v25209_v6 = vld [vmem:[%s27319_s17 + $0x24c8] ss:$456 sps:$4 sm:$0xff]  }
 0x889   : > { %v26530_v18 = vpop.eup %26529  ;;  %26531 = vrcp.f32 %v19604_v24  ;;  %v19606_v19 = vadd.f32 1.0, %v26528_v12  ;;  %17678 = vmatprep.mubr.bf16.mxu0 %v27537_v41  ;;  %17566 = vmatprep.subr.bf16.mxu1 %v25157_v5  ;;  %v25214_v5 = vld [vmem:[%s27319_s17 + $0x24d4] ss:$456 sps:$4 sm:$0xff]   ;;  %v25220_v24 = vld [vmem:[%s27319_s17 + $0x2864] ss:$456 sps:$4 sm:$0xff]  }
 0x88a   : > { %26533 = vrcp.f32 %v19605_v13  ;;  %v19607_v21 = vadd.f32 1.0, %v26530_v18  ;;  %17648 = vmatprep.subr.bf16.mxu0 %v25160_v8  ;;  %v25212_v8 = vld [vmem:[%s27319_s17 + $0x24d0] ss:$456 sps:$4 sm:$0xff]   ;;  %v25217_v10 = vld [vmem:[%s27319_s17 + $0x285c] ss:$456 sps:$4 sm:$0xff]  }
 0x88b   : > { %26535 = vrcp.f32 %v19606_v19  ;;  %17567 = vmatpush1.bf16.msra.mxu1 %v25155_v11  ;;  %v25215_v11 = vld [vmem:[%s27319_s17 + $0x2858] ss:$456 sps:$4 sm:$0xff]   ;;  %v25223_v13 = vld [vmem:[%s27319_s17 + $0x2bec] ss:$456 sps:$4 sm:$0xff]   ;;  %v25229_v19 = vld [vmem:[%s27319_s17 + $0x2f7c] ss:$456 sps:$4 sm:$0xff]  }
 0x88c   : > { %26537 = vrcp.f32 %v19607_v21  ;;  %17649 = vmatpush1.bf16.msra.mxu0 %v25158_v14  ;;  %17568 = vmatprep.subr.bf16.mxu1 %v25163_v17  ;;  %v25218_v12 = vld [vmem:[%s27319_s17 + $0x2860] ss:$456 sps:$4 sm:$0xff]   ;;  %v25226_v14 = vld [vmem:[%s27319_s17 + $0x2bf4] ss:$456 sps:$4 sm:$0xff]   ;;  %v25224_v18 = vld [vmem:[%s27319_s17 + $0x2bf0] ss:$456 sps:$4 sm:$0xff]  }
 0x88d   : > { %17650 = vmatprep.subr.bf16.mxu0 %v25166_v20  ;;  %v25221_v17 = vld [vmem:[%s27319_s17 + $0x2be8] ss:$456 sps:$4 sm:$0xff]   ;;  %v25232_v20 = vld [vmem:[%s27319_s17 + $0x2f84] ss:$456 sps:$4 sm:$0xff]   ;;  %v25227_v21 = vld [vmem:[%s27319_s17 + $0x2f78] ss:$456 sps:$4 sm:$0xff]  }
 0x88f   : > { %17569 = vmatpush1.bf16.msra.mxu1 %v25161_v26  ;;  %v25230_v26 = vld [vmem:[%s27319_s17 + $0x2f80] ss:$456 sps:$4 sm:$0xff]  }
 0x890   : > { %17651 = vmatpush1.bf16.msra.mxu0 %v25164_v38  ;;  %17570 = vmatprep.subr.bf16.mxu1 %v25169_v27  ;;  %v25235_v38 = vld [vmem:[%s27319_s17 + $0x330c] ss:$456 sps:$4 sm:$0xff]  }
 0x891   : > { %17652 = vmatprep.subr.bf16.mxu0 %v25172_v28  ;;  %v25238_v27 = vld [vmem:[%s27319_s17 + $0x3314] ss:$456 sps:$4 sm:$0xff]   ;;  %v25233_v28 = vld [vmem:[%s27319_s17 + $0x3308] ss:$456 sps:$4 sm:$0xff]  }
 0x893   : > { %v26532_v33 = vpop.eup %26531  ;;  %17571 = vmatpush1.bf16.msra.mxu1 %v25167_v29  ;;  %v25236_v29 = vld [vmem:[%s27319_s17 + $0x3310] ss:$456 sps:$4 sm:$0xff]  }
 0x894   : > { %v26534_v37 = vpop.eup %26533  ;;  %17653 = vmatpush1.bf16.msra.mxu0 %v25170_v31  ;;  %17572 = vmatprep.subr.bf16.mxu1 %v25175_v32  ;;  %v29424_v31 = vld [vmem:[%s27786_s21 + $0x40] sm:$0xff] }
 0x895   : > { %v26536_v52 = vpop.eup %26535  ;;  %v19917_v44 = vcombine.low %v26532_v33, %v26534_v37  ;;  %17654 = vmatprep.subr.bf16.mxu0 %v25178_v47  ;;  %v25241_v32 = vld [vmem:[%s27319_s17 + $0x369c] ss:$456 sps:$4 sm:$0xff]   ;;  %v3148_v33 = vrot.slane %v29221_v58, %v27996_v34  ;;  %v3156_v37 = vrot.slane %v29424_v31, %v27453_v2 }
 0x896   : > { %v26538_v46 = vpop.eup %26537  ;;  %v25244_v47 = vld [vmem:[%s27319_s17 + $0x36a4] ss:$456 sps:$4 sm:$0xff]  }
 0x897   : > { %20031 = vst [vmem:[%s27851_s14 + $0xe8] sm:$0xff] %v19917_v44  ;;  %v19918_v63 = vcombine.low %v26536_v52, %v26538_v46  ;;  %17573 = vmatpush1.bf16.msra.mxu1 %v25173_v35  ;;  %v3152_v35 = vrot.slane %v29221_v58, %v28000_v36  ;;  %v25242_v52 = vld [vmem:[%s27319_s17 + $0x36a0] ss:$456 sps:$4 sm:$0xff]   ;;  %v25247_v44 = vld [vmem:[%s27319_s17 + $0x3a2c] ss:$456 sps:$4 sm:$0xff]  }
 0x898   : > { %17655 = vmatpush1.bf16.msra.mxu0 %v25176_v39  ;;  %17574 = vmatprep.subr.bf16.mxu1 %v25181_v43  ;;  %v25239_v39 = vld [vmem:[%s27319_s17 + $0x3698] ss:$456 sps:$4 sm:$0xff]   ;;  %v3160_v43 = vrot.slane %v29424_v31, %v27456_v3  ;;  %v25250_v46 = vld [vmem:[%s27319_s17 + $0x3a34] ss:$456 sps:$4 sm:$0xff]  }
 0x899   : > { %20032 = vst [vmem:[%s27851_s14 + $0xf0] sm:$0xff] %v19918_v63  ;;  %17656 = vmatprep.subr.bf16.mxu0 %v25184_v45 }
 0x89b   : > { %17575 = vmatpush1.bf16.msra.mxu1 %v25179_v48 }
 0x89c   : > { %17657 = vmatpush1.bf16.msra.mxu0 %v25182_v49  ;;  %17576 = vmatprep.subr.bf16.mxu1 %v25187_v30 }
 0x89d   : > { %17658 = vmatprep.subr.bf16.mxu0 %v25190_v50 }
 0x89f   : > { %17577 = vmatpush1.bf16.msra.mxu1 %v25185_v51 }
 0x8a0   : > { %17659 = vmatpush1.bf16.msra.mxu0 %v25188_v53  ;;  %17578 = vmatprep.subr.bf16.mxu1 %v25193_v54  ;;  %v25245_v53 = vld [vmem:[%s27319_s17 + $0x3a28] ss:$456 sps:$4 sm:$0xff]  }
 0x8a1   : > { %17660 = vmatprep.subr.bf16.mxu0 %v25196_v55  ;;  %v25248_v54 = vld [vmem:[%s27319_s17 + $0x3a30] ss:$456 sps:$4 sm:$0xff]  }
 0x8a3   : > { %17579 = vmatpush1.bf16.msra.mxu1 %v25191_v56 }
 0x8a4   : > { %17661 = vmatpush1.bf16.msra.mxu0 %v25194_v57  ;;  %17580 = vmatprep.subr.bf16.mxu1 %v25199_v59 }
 0x8a5   : > { %17662 = vmatprep.subr.bf16.mxu0 %v25202_v9  ;;  %v25253_v9 = vld [vmem:[%s27319_s17 + $0x3dbc] ss:$456 sps:$4 sm:$0xff]  }
 0x8a7   : > { %17581 = vmatpush1.bf16.msra.mxu1 %v25197_v60 }
 0x8a8   : > { %17663 = vmatpush1.bf16.msra.mxu0 %v25200_v61  ;;  %17582 = vmatprep.subr.bf16.mxu1 %v25205_v62 }
 0x8a9   : > { %17664 = vmatprep.subr.bf16.mxu0 %v25208_v1  ;;  %v25251_v1 = vld [vmem:[%s27319_s17 + $0x3db8] ss:$456 sps:$4 sm:$0xff]  }
 0x8ab   : > { %17583 = vmatpush1.bf16.msra.mxu1 %v25203_v4  ;;  %v25256_v4 = vld [vmem:[%s27319_s17 + $0x3dc4] ss:$456 sps:$4 sm:$0xff]  }
 0x8ac   : > { %17665 = vmatpush1.bf16.msra.mxu0 %v25206_v15  ;;  %17584 = vmatprep.subr.bf16.mxu1 %v25211_v0 }
 0x8ad   : > { %17666 = vmatprep.subr.bf16.mxu0 %v25214_v5  ;;  %v25257_v5 = vld [vmem:[%s27319_s17 + $0x414c] ss:$456 sps:$4 sm:$0x3f]  }
 0x8af   : > { %17585 = vmatpush1.bf16.msra.mxu1 %v25209_v6 }
 0x8b0   : > { %17667 = vmatpush1.bf16.msra.mxu0 %v25212_v8  ;;  %17586 = vmatprep.subr.bf16.mxu1 %v25217_v10  ;;  %v25254_v10 = vld [vmem:[%s27319_s17 + $0x3dc0] ss:$456 sps:$4 sm:$0xff]  }
 0x8b1   : > { %17668 = vmatprep.subr.bf16.mxu0 %v25220_v24 }
 0x8b3   : > { %17587 = vmatpush1.bf16.msra.mxu1 %v25215_v11  ;;  %v25259_v11 = vld [vmem:[%s27319_s17 + $0x4148] ss:$456 sps:$4 sm:$0x3f]  }
 0x8b4   : > { %17669 = vmatpush1.bf16.msra.mxu0 %v25218_v12  ;;  %17588 = vmatprep.subr.bf16.mxu1 %v25223_v13  ;;  %v25260_v12 = vld [vmem:[%s27319_s17 + $0x4154] ss:$456 sps:$4 sm:$0x3f]   ;;  %v25262_v13 = vld [vmem:[%s27319_s17 + $0x4150] ss:$456 sps:$4 sm:$0x3f]  }
 0x8b5   : > { %17670 = vmatprep.subr.bf16.mxu0 %v25226_v14  ;;  %v14411_v14 = vsel %vm14187_vm7, %v25259_v11, 0  ;;  %v25313_v11 = vld [vmem:[%s27319_s17 + $0x1dbc] ss:$456 sps:$4 sm:$0xff]  }
 0x8b7   : > { %17589 = vmatpush1.bf16.msra.mxu1 %v25221_v17  ;;  %v25265_v17 = vld [vmem:[%s27319_s17 + $0x13c] ss:$456 sps:$4 sm:$0xff]  }
 0x8b8   : > { %17671 = vmatpush1.bf16.msra.mxu0 %v25224_v18  ;;  %17590 = vmatprep.subr.bf16.mxu1 %v25229_v19  ;;  %v14417_v18 = vsel %vm14187_vm7, %v25262_v13, 0  ;;  %v25268_v19 = vld [vmem:[%s27319_s17 + $0x144] ss:$456 sps:$4 sm:$0xff]   ;;  %v25311_v13 = vld [vmem:[%s27319_s17 + $0x1db8] ss:$456 sps:$4 sm:$0xff]  }
 0x8b9   : > { %17672 = vmatprep.subr.bf16.mxu0 %v25232_v20  ;;  %v25263_v20 = vld [vmem:[%s27319_s17 + $0x138] ss:$456 sps:$4 sm:$0xff]  }
 0x8bb   : > { %17591 = vmatpush1.bf16.msra.mxu1 %v25227_v21  ;;  %v25266_v21 = vld [vmem:[%s27319_s17 + $0x140] ss:$456 sps:$4 sm:$0xff]  }
 0x8bc   : > { %17673 = vmatpush1.bf16.msra.mxu0 %v25230_v26  ;;  %17592 = vmatprep.subr.bf16.mxu1 %v25235_v38  ;;  %v25271_v26 = vld [vmem:[%s27319_s17 + $0x4cc] ss:$456 sps:$4 sm:$0xff]  }
 0x8bd   : > { %17674 = vmatprep.subr.bf16.mxu0 %v25238_v27  ;;  %v25274_v27 = vld [vmem:[%s27319_s17 + $0x4d4] ss:$456 sps:$4 sm:$0xff]  }
 0x8bf   : > { %17593 = vmatpush1.bf16.msra.mxu1 %v25233_v28 }
 0x8c0   : > { %17675 = vmatpush1.bf16.msra.mxu0 %v25236_v29  ;;  %17594 = vmatprep.subr.bf16.mxu1 %v25241_v32  ;;  %v25269_v32 = vld [vmem:[%s27319_s17 + $0x4c8] ss:$456 sps:$4 sm:$0xff]  }
 0x8c1   : > { %v17147_v45 = vpop.f32.mrb[68].mxu1  ;;  %17676 = vmatprep.subr.bf16.mxu0 %v25244_v47 }
 0x8c2   : > { %v22672_v63 = vadd.f32 %v17147_v45, %v3148_v33  ;;  %v17149_v48 = vpop.f32.mrb[69].mxu1  ;;  %v17229_v58 = vpop.f32.mrb[64].mxu0  ;;  %v25275_v45 = vld [vmem:[%s27319_s17 + $0x858] ss:$456 sps:$4 sm:$0xff]  }
 0x8c3   : > { %v22673_v49 = vadd.f32 %v17149_v48, %v3152_v35  ;;  %v22674_v30 = vadd.f32 %v17229_v58, %v3156_v37  ;;  %v17151_v50 = vpop.f32.mrb[70].mxu1  ;;  %v17231_v51 = vpop.f32.mrb[65].mxu0  ;;  %17595 = vmatpush1.bf16.msra.mxu1 %v25239_v39  ;;  %v25272_v35 = vld [vmem:[%s27319_s17 + $0x4d0] ss:$456 sps:$4 sm:$0xff]   ;;  %v25277_v37 = vld [vmem:[%s27319_s17 + $0x85c] ss:$456 sps:$4 sm:$0xff]  }
 0x8c4   : > { %v19266_v55 = vsub.f32 0.0, %v22672_v63  ;;  %v22675_v56 = vadd.f32 %v17231_v51, %v3160_v43  ;;  %v17152_v57 = vpop.f32.mrb[71].mxu1  ;;  %v17233_v59 = vpop.f32.mrb[66].mxu0  ;;  %17677 = vmatpush1.bf16.msra.mxu0 %v25242_v52  ;;  %17605 = vmatprep.subr.bf16.mxu1 %v25247_v44  ;;  %v25280_v52 = vld [vmem:[%s27319_s17 + $0x864] ss:$456 sps:$4 sm:$0xff]  }
 0x8c5   : > { %v19267_v60 = vsub.f32 0.0, %v22673_v49  ;;  %v19268_v61 = vsub.f32 0.0, %v22674_v30  ;;  %v17234_v62 = vpop.f32.mrb[67].mxu0  ;;  %17687 = vmatprep.subr.bf16.mxu0 %v25250_v46  ;;  %v25278_v46 = vld [vmem:[%s27319_s17 + $0x860] ss:$456 sps:$4 sm:$0xff]  }
 0x8c6   : > { %v19442_v15 = vmul.f32 1.442695, %v19266_v55  ;;  %v19269_v0 = vsub.f32 0.0, %v22675_v56  ;;  %17597 = vmatmul.mubr.bf16.vlgmr.msra.gmra.mrb[80].mxu1 %v27535_v40  ;;  %v25283_v63 = vld [vmem:[%s27319_s17 + $0xbec] ss:$456 sps:$4 sm:$0xff]  }
 0x8c7   : > { %v19444_v6 = vmul.f32 1.442695, %v19267_v60  ;;  %v19446_v8 = vmul.f32 1.442695, %v19268_v61  ;;  %17606 = vmatpush1.bf16.msra.mxu1 %v25245_v53  ;;  %17679 = vmatmul.mubr.bf16.vlgmr.msra.gmra.mrb[76].mxu0 %v27535_v40  ;;  %v25286_v48 = vld [vmem:[%s27319_s17 + $0xbf4] ss:$456 sps:$4 sm:$0xff]  }
 0x8c8   : > { %26539 = vpow2.f32 %v19442_v15  ;;  %v19448_v24 = vmul.f32 1.442695, %v19269_v0  ;;  %17688 = vmatpush1.bf16.msra.mxu0 %v25248_v54  ;;  %17607 = vmatprep.subr.bf16.mxu1 %v25253_v9  ;;  %v25281_v58 = vld [vmem:[%s27319_s17 + $0xbe8] ss:$456 sps:$4 sm:$0xff]   ;;  %v25289_v30 = vld [vmem:[%s27319_s17 + $0xf7c] ss:$456 sps:$4 sm:$0xff]  }
 0x8c9   : > { %26541 = vpow2.f32 %v19444_v6  ;;  %17689 = vmatprep.subr.bf16.mxu0 %v25256_v4  ;;  %17637 = vmatprep.mubr.bf16.mxu1 %v27007_v16  ;;  %v25284_v49 = vld [vmem:[%s27319_s17 + $0xbf0] ss:$456 sps:$4 sm:$0xff]   ;;  %v25292_v50 = vld [vmem:[%s27319_s17 + $0xf84] ss:$456 sps:$4 sm:$0xff]   ;;  %v25290_v55 = vld [vmem:[%s27319_s17 + $0xf80] ss:$456 sps:$4 sm:$0xff]  }
 0x8ca   : > { %26543 = vpow2.f32 %v19446_v8  ;;  %17719 = vmatprep.mubr.bf16.mxu0 %v27007_v16  ;;  %v25287_v53 = vld [vmem:[%s27319_s17 + $0xf78] ss:$456 sps:$4 sm:$0xff]   ;;  %v25295_v56 = vld [vmem:[%s27319_s17 + $0x130c] ss:$456 sps:$4 sm:$0xff]   ;;  %v25293_v62 = vld [vmem:[%s27319_s17 + $0x1308] ss:$456 sps:$4 sm:$0xff]  }
 0x8cb   : > { %26545 = vpow2.f32 %v19448_v24  ;;  %17608 = vmatpush1.bf16.msra.mxu1 %v25251_v1  ;;  %v25298_v9 = vld [vmem:[%s27319_s17 + $0x1314] ss:$456 sps:$4 sm:$0xff]   ;;  %v25296_v1 = vld [vmem:[%s27319_s17 + $0x1310] ss:$456 sps:$4 sm:$0xff]   ;;  %v25304_v15 = vld [vmem:[%s27319_s17 + $0x16a4] ss:$456 sps:$4 sm:$0xff]  }
 0x8cc   : > { %17690 = vmatpush1.bf16.msra.mxu0 %v25254_v10  ;;  %22473 = vmatprep.subr.msk.bf16.mxu1 %vm14187_vm7, %v25257_v5  ;;  %v25301_v4 = vld [vmem:[%s27319_s17 + $0x169c] ss:$456 sps:$4 sm:$0xff]   ;;  %v25299_v0 = vld [vmem:[%s27319_s17 + $0x1698] ss:$456 sps:$4 sm:$0xff]   ;;  %v25307_v6 = vld [vmem:[%s27319_s17 + $0x1a2c] ss:$456 sps:$4 sm:$0xff]  }
 0x8cd   : > { %22475 = vmatprep.subr.msk.bf16.mxu0 %vm14187_vm7, %v25260_v12  ;;  %v25302_v5 = vld [vmem:[%s27319_s17 + $0x16a0] ss:$456 sps:$4 sm:$0xff]   ;;  %v25310_v8 = vld [vmem:[%s27319_s17 + $0x1a34] ss:$456 sps:$4 sm:$0xff]   ;;  %v25308_v24 = vld [vmem:[%s27319_s17 + $0x1a30] ss:$456 sps:$4 sm:$0xff]  }
 0x8ce   : > { %v25305_v10 = vld [vmem:[%s27319_s17 + $0x1a28] ss:$456 sps:$4 sm:$0xff]   ;;  %v25316_v12 = vld [vmem:[%s27319_s17 + $0x1dc4] ss:$456 sps:$4 sm:$0xff]  }
 0x8cf   : > { %17610 = vmatpush1.bf16.msra.mxu1 %v14411_v14  ;;  %v25314_v14 = vld [vmem:[%s27319_s17 + $0x1dc0] ss:$456 sps:$4 sm:$0xff]  }
 0x8d0   : > { %17692 = vmatpush1.bf16.msra.mxu0 %v14417_v18  ;;  %17728 = vmatprep.subr.bf16.mxu1 %v25265_v17  ;;  %v25319_v17 = vld [vmem:[%s27319_s17 + $0x214c] ss:$456 sps:$4 sm:$0xff]  }
 0x8d1   : > { %17810 = vmatprep.subr.bf16.mxu0 %v25268_v19  ;;  %v25322_v18 = vld [vmem:[%s27319_s17 + $0x2154] ss:$456 sps:$4 sm:$0xff]   ;;  %v25317_v19 = vld [vmem:[%s27319_s17 + $0x2148] ss:$456 sps:$4 sm:$0xff]  }
 0x8d2   : > { %v26540_v38 = vpop.eup %26539  ;;  %22474 = vmatmul.mubr.msk.bf16.vlgmr.msra.gmra.mrb[80].mxu1 %vm14183_vm8, %v27539_v42 }
 0x8d3   : > { %v26542_v28 = vpop.eup %26541  ;;  %v19608_v29 = vadd.f32 1.0, %v26540_v38  ;;  %22476 = vmatmul.mubr.msk.bf16.vlgmr.msra.gmra.mrb[76].mxu0 %vm14183_vm8, %v27539_v42  ;;  %17729 = vmatpush1.bf16.msra.mxu1 %v25263_v20  ;;  %v25320_v20 = vld [vmem:[%s27319_s17 + $0x2150] ss:$456 sps:$4 sm:$0xff]  }
 0x8d4   : > { %v26544_v47 = vpop.eup %26543  ;;  %v19609_v33 = vadd.f32 1.0, %v26542_v28  ;;  %17760 = vmatprep.mubr.bf16.mxu1 %v27537_v41  ;;  %17811 = vmatpush1.bf16.msra.mxu0 %v25266_v21  ;;  %v25325_v21 = vld [vmem:[%s27319_s17 + $0x24dc] ss:$456 sps:$4 sm:$0xff]   ;;  %v25323_v38 = vld [vmem:[%s27319_s17 + $0x24d8] ss:$456 sps:$4 sm:$0xff]  }
 0x8d5   : > { %v26546_v39 = vpop.eup %26545  ;;  %26547 = vrcp.f32 %v19608_v29  ;;  %v19610_v43 = vadd.f32 1.0, %v26544_v47  ;;  %17842 = vmatprep.mubr.bf16.mxu0 %v27537_v41  ;;  %17730 = vmatprep.subr.bf16.mxu1 %v25271_v26  ;;  %v25328_v26 = vld [vmem:[%s27319_s17 + $0x24e4] ss:$456 sps:$4 sm:$0xff]   ;;  %v25334_v29 = vld [vmem:[%s27319_s17 + $0x2874] ss:$456 sps:$4 sm:$0xff]  }
 0x8d6   : > { %26549 = vrcp.f32 %v19609_v33  ;;  %v19611_v44 = vadd.f32 1.0, %v26546_v39  ;;  %17812 = vmatprep.subr.bf16.mxu0 %v25274_v27  ;;  %v25326_v27 = vld [vmem:[%s27319_s17 + $0x24e0] ss:$456 sps:$4 sm:$0xff]   ;;  %v25331_v28 = vld [vmem:[%s27319_s17 + $0x286c] ss:$456 sps:$4 sm:$0xff]  }
 0x8d7   : > { %26551 = vrcp.f32 %v19610_v43  ;;  %17731 = vmatpush1.bf16.msra.mxu1 %v25269_v32  ;;  %v25329_v32 = vld [vmem:[%s27319_s17 + $0x2868] ss:$456 sps:$4 sm:$0xff]   ;;  %v25337_v33 = vld [vmem:[%s27319_s17 + $0x2bfc] ss:$456 sps:$4 sm:$0xff]   ;;  %v25343_v43 = vld [vmem:[%s27319_s17 + $0x2f8c] ss:$456 sps:$4 sm:$0xff]  }
 0x8d8   : > { %26553 = vrcp.f32 %v19611_v44  ;;  %17813 = vmatpush1.bf16.msra.mxu0 %v25272_v35  ;;  %17732 = vmatprep.subr.bf16.mxu1 %v25277_v37  ;;  %v25332_v47 = vld [vmem:[%s27319_s17 + $0x2870] ss:$456 sps:$4 sm:$0xff]   ;;  %v25340_v35 = vld [vmem:[%s27319_s17 + $0x2c04] ss:$456 sps:$4 sm:$0xff]   ;;  %v25338_v39 = vld [vmem:[%s27319_s17 + $0x2c00] ss:$456 sps:$4 sm:$0xff]  }
 0x8d9   : > { %17814 = vmatprep.subr.bf16.mxu0 %v25280_v52  ;;  %v25335_v37 = vld [vmem:[%s27319_s17 + $0x2bf8] ss:$456 sps:$4 sm:$0xff]   ;;  %v25346_v52 = vld [vmem:[%s27319_s17 + $0x2f94] ss:$456 sps:$4 sm:$0xff]   ;;  %v25341_v44 = vld [vmem:[%s27319_s17 + $0x2f88] ss:$456 sps:$4 sm:$0xff]  }
 0x8db   : > { %17733 = vmatpush1.bf16.msra.mxu1 %v25275_v45  ;;  %v25344_v45 = vld [vmem:[%s27319_s17 + $0x2f90] ss:$456 sps:$4 sm:$0xff]  }
 0x8dc   : > { %17815 = vmatpush1.bf16.msra.mxu0 %v25278_v46  ;;  %17734 = vmatprep.subr.bf16.mxu1 %v25283_v63  ;;  %v25349_v46 = vld [vmem:[%s27319_s17 + $0x331c] ss:$456 sps:$4 sm:$0xff]  }
 0x8dd   : > { %17816 = vmatprep.subr.bf16.mxu0 %v25286_v48  ;;  %v25352_v63 = vld [vmem:[%s27319_s17 + $0x3324] ss:$456 sps:$4 sm:$0xff]   ;;  %v25347_v48 = vld [vmem:[%s27319_s17 + $0x3318] ss:$456 sps:$4 sm:$0xff]  }
 0x8df   : > { %v26548_v51 = vpop.eup %26547  ;;  %17735 = vmatpush1.bf16.msra.mxu1 %v25281_v58  ;;  %v25350_v58 = vld [vmem:[%s27319_s17 + $0x3320] ss:$456 sps:$4 sm:$0xff]  }
 0x8e0   : > { %v26550_v54 = vpop.eup %26549  ;;  %17817 = vmatpush1.bf16.msra.mxu0 %v25284_v49  ;;  %17736 = vmatprep.subr.bf16.mxu1 %v25289_v30  ;;  %v25355_v49 = vld [vmem:[%s27319_s17 + $0x36ac] ss:$456 sps:$4 sm:$0xff]  }
 0x8e1   : > { %v26552_v57 = vpop.eup %26551  ;;  %v19919_v59 = vcombine.low %v26548_v51, %v26550_v54  ;;  %17818 = vmatprep.subr.bf16.mxu0 %v25292_v50  ;;  %v25358_v30 = vld [vmem:[%s27319_s17 + $0x36b4] ss:$456 sps:$4 sm:$0xff]   ;;  %v3164_v50 = vrot.slane %v29424_v31, %v27461_v7  ;;  %v3168_v51 = vrot.slane %v29424_v31, %v27889_v22  ;;  %v25353_v54 = vld [vmem:[%s27319_s17 + $0x36a8] ss:$456 sps:$4 sm:$0xff]  }
 0x8e2   : > { %v26554_v60 = vpop.eup %26553 }
 0x8e3   : > { %20033 = vst [vmem:[%s27851_s14 + $0xf8] sm:$0xff] %v19919_v59  ;;  %v19920_v61 = vcombine.low %v26552_v57, %v26554_v60  ;;  %17737 = vmatpush1.bf16.msra.mxu1 %v25287_v53  ;;  %v3172_v53 = vrot.slane %v29424_v31, %v27892_v23  ;;  %v25361_v57 = vld [vmem:[%s27319_s17 + $0x3a3c] ss:$456 sps:$4 sm:$0xff]  }
 0x8e4   : > { %17819 = vmatpush1.bf16.msra.mxu0 %v25290_v55  ;;  %17738 = vmatprep.subr.bf16.mxu1 %v25295_v56  ;;  %v3176_v55 = vrot.slane %v29424_v31, %v27896_v25  ;;  %v25356_v56 = vld [vmem:[%s27319_s17 + $0x36b0] ss:$456 sps:$4 sm:$0xff]  }
 0x8e5   : > { %20034 = vst [vmem:[%s27851_s14 + $0x100] sm:$0xff] %v19920_v61  ;;  %17820 = vmatprep.subr.bf16.mxu0 %v25298_v9  ;;  %v25364_v9 = vld [vmem:[%s27319_s17 + $0x3a44] ss:$456 sps:$4 sm:$0xff]  }
 0x8e7   : > { %17739 = vmatpush1.bf16.msra.mxu1 %v25293_v62 }
 0x8e8   : > { %17821 = vmatpush1.bf16.msra.mxu0 %v25296_v1  ;;  %17740 = vmatprep.subr.bf16.mxu1 %v25301_v4 }
 0x8e9   : > { %17822 = vmatprep.subr.bf16.mxu0 %v25304_v15 }
 0x8eb   : > { %17741 = vmatpush1.bf16.msra.mxu1 %v25299_v0 }
 0x8ec   : > { %17823 = vmatpush1.bf16.msra.mxu0 %v25302_v5  ;;  %17742 = vmatprep.subr.bf16.mxu1 %v25307_v6  ;;  %v25359_v5 = vld [vmem:[%s27319_s17 + $0x3a38] ss:$456 sps:$4 sm:$0xff]  }
 0x8ed   : > { %17824 = vmatprep.subr.bf16.mxu0 %v25310_v8  ;;  %v25362_v6 = vld [vmem:[%s27319_s17 + $0x3a40] ss:$456 sps:$4 sm:$0xff]  }
 0x8ef   : > { %17743 = vmatpush1.bf16.msra.mxu1 %v25305_v10 }
 0x8f0   : > { %17825 = vmatpush1.bf16.msra.mxu0 %v25308_v24  ;;  %17744 = vmatprep.subr.bf16.mxu1 %v25313_v11 }
 0x8f1   : > { %17826 = vmatprep.subr.bf16.mxu0 %v25316_v12  ;;  %v25367_v12 = vld [vmem:[%s27319_s17 + $0x3dcc] ss:$456 sps:$4 sm:$0xff]  }
 0x8f3   : > { %17745 = vmatpush1.bf16.msra.mxu1 %v25311_v13 }
 0x8f4   : > { %17827 = vmatpush1.bf16.msra.mxu0 %v25314_v14  ;;  %17746 = vmatprep.subr.bf16.mxu1 %v25319_v17 }
 0x8f5   : > { %17828 = vmatprep.subr.bf16.mxu0 %v25322_v18  ;;  %v25365_v18 = vld [vmem:[%s27319_s17 + $0x3dc8] ss:$456 sps:$4 sm:$0xff]  }
 0x8f7   : > { %17747 = vmatpush1.bf16.msra.mxu1 %v25317_v19  ;;  %v25370_v19 = vld [vmem:[%s27319_s17 + $0x3dd4] ss:$456 sps:$4 sm:$0xff]  }
 0x8f8   : > { %17829 = vmatpush1.bf16.msra.mxu0 %v25320_v20  ;;  %17748 = vmatprep.subr.bf16.mxu1 %v25325_v21 }
 0x8f9   : > { %17830 = vmatprep.subr.bf16.mxu0 %v25328_v26  ;;  %v25371_v26 = vld [vmem:[%s27319_s17 + $0x415c] ss:$456 sps:$4 sm:$0x3f]  }
 0x8fb   : > { %17749 = vmatpush1.bf16.msra.mxu1 %v25323_v38 }
 0x8fc   : > { %17831 = vmatpush1.bf16.msra.mxu0 %v25326_v27  ;;  %17750 = vmatprep.subr.bf16.mxu1 %v25331_v28  ;;  %v25368_v28 = vld [vmem:[%s27319_s17 + $0x3dd0] ss:$456 sps:$4 sm:$0xff]  }
 0x8fd   : > { %17832 = vmatprep.subr.bf16.mxu0 %v25334_v29 }
 0x8ff   : > { %17751 = vmatpush1.bf16.msra.mxu1 %v25329_v32  ;;  %v25373_v32 = vld [vmem:[%s27319_s17 + $0x4158] ss:$456 sps:$4 sm:$0x3f]  }
 0x900   : > { %17833 = vmatpush1.bf16.msra.mxu0 %v25332_v47  ;;  %17752 = vmatprep.subr.bf16.mxu1 %v25337_v33  ;;  %v25374_v47 = vld [vmem:[%s27319_s17 + $0x4164] ss:$456 sps:$4 sm:$0x3f]   ;;  %v25376_v33 = vld [vmem:[%s27319_s17 + $0x4160] ss:$456 sps:$4 sm:$0x3f]  }
 0x901   : > { %17834 = vmatprep.subr.bf16.mxu0 %v25340_v35  ;;  %v14423_v35 = vsel %vm14187_vm7, %v25373_v32, 0  ;;  %v25427_v32 = vld [vmem:[%s27319_s17 + $0x1dcc] ss:$456 sps:$4 sm:$0xff]  }
 0x903   : > { %17753 = vmatpush1.bf16.msra.mxu1 %v25335_v37  ;;  %v25379_v37 = vld [vmem:[%s27319_s17 + $0x14c] ss:$456 sps:$4 sm:$0xff]  }
 0x904   : > { %17835 = vmatpush1.bf16.msra.mxu0 %v25338_v39  ;;  %17754 = vmatprep.subr.bf16.mxu1 %v25343_v43  ;;  %v14429_v39 = vsel %vm14187_vm7, %v25376_v33, 0  ;;  %v25382_v43 = vld [vmem:[%s27319_s17 + $0x154] ss:$456 sps:$4 sm:$0xff]   ;;  %v25425_v33 = vld [vmem:[%s27319_s17 + $0x1dc8] ss:$456 sps:$4 sm:$0xff]  }
 0x905   : > { %17836 = vmatprep.subr.bf16.mxu0 %v25346_v52  ;;  %v25377_v52 = vld [vmem:[%s27319_s17 + $0x148] ss:$456 sps:$4 sm:$0xff]  }
 0x907   : > { %17755 = vmatpush1.bf16.msra.mxu1 %v25341_v44  ;;  %v25380_v44 = vld [vmem:[%s27319_s17 + $0x150] ss:$456 sps:$4 sm:$0xff]  }
 0x908   : > { %17837 = vmatpush1.bf16.msra.mxu0 %v25344_v45  ;;  %17756 = vmatprep.subr.bf16.mxu1 %v25349_v46  ;;  %v25385_v45 = vld [vmem:[%s27319_s17 + $0x4dc] ss:$456 sps:$4 sm:$0xff]  }
 0x909   : > { %17838 = vmatprep.subr.bf16.mxu0 %v25352_v63  ;;  %v25388_v63 = vld [vmem:[%s27319_s17 + $0x4e4] ss:$456 sps:$4 sm:$0xff]  }
 0x90b   : > { %17757 = vmatpush1.bf16.msra.mxu1 %v25347_v48 }
 0x90c   : > { %17839 = vmatpush1.bf16.msra.mxu0 %v25350_v58  ;;  %17758 = vmatprep.subr.bf16.mxu1 %v25355_v49  ;;  %v25383_v49 = vld [vmem:[%s27319_s17 + $0x4d8] ss:$456 sps:$4 sm:$0xff]  }
 0x90d   : > { %v17311_v59 = vpop.f32.mrb[72].mxu1  ;;  %17840 = vmatprep.subr.bf16.mxu0 %v25358_v30 }
 0x90e   : > { %v22676_v60 = vadd.f32 %v17311_v59, %v3164_v50  ;;  %v17313_v61 = vpop.f32.mrb[73].mxu1  ;;  %v17393_v62 = vpop.f32.mrb[68].mxu0  ;;  %v25389_v59 = vld [vmem:[%s27319_s17 + $0x868] ss:$456 sps:$4 sm:$0xff]  }
 0x90f   : > { %v22677_v1 = vadd.f32 %v17313_v61, %v3168_v51  ;;  %v22678_v4 = vadd.f32 %v17393_v62, %v3172_v53  ;;  %v17315_v15 = vpop.f32.mrb[74].mxu1  ;;  %v17395_v0 = vpop.f32.mrb[69].mxu0  ;;  %17759 = vmatpush1.bf16.msra.mxu1 %v25353_v54  ;;  %v25386_v51 = vld [vmem:[%s27319_s17 + $0x4e0] ss:$456 sps:$4 sm:$0xff]   ;;  %v25391_v53 = vld [vmem:[%s27319_s17 + $0x86c] ss:$456 sps:$4 sm:$0xff]  }
 0x910   : > { %v19270_v8 = vsub.f32 0.0, %v22676_v60  ;;  %v22679_v10 = vadd.f32 %v17395_v0, %v3176_v55  ;;  %v17316_v24 = vpop.f32.mrb[75].mxu1  ;;  %v17397_v11 = vpop.f32.mrb[70].mxu0  ;;  %17841 = vmatpush1.bf16.msra.mxu0 %v25356_v56  ;;  %17769 = vmatprep.subr.bf16.mxu1 %v25361_v57  ;;  %v25394_v56 = vld [vmem:[%s27319_s17 + $0x874] ss:$456 sps:$4 sm:$0xff]  }
 0x911   : > { %v19271_v13 = vsub.f32 0.0, %v22677_v1  ;;  %v19272_v14 = vsub.f32 0.0, %v22678_v4  ;;  %v17398_v17 = vpop.f32.mrb[71].mxu0  ;;  %17851 = vmatprep.subr.bf16.mxu0 %v25364_v9  ;;  %v25392_v9 = vld [vmem:[%s27319_s17 + $0x870] ss:$456 sps:$4 sm:$0xff]  }
 0x912   : > { %v19450_v20 = vmul.f32 1.442695, %v19270_v8  ;;  %v19273_v21 = vsub.f32 0.0, %v22679_v10  ;;  %17761 = vmatmul.mubr.bf16.vlgmr.msra.gmra.mrb[84].mxu1 %v27535_v40  ;;  %v25397_v60 = vld [vmem:[%s27319_s17 + $0xbfc] ss:$456 sps:$4 sm:$0xff]  }
 0x913   : > { %v19452_v38 = vmul.f32 1.442695, %v19271_v13  ;;  %v19454_v27 = vmul.f32 1.442695, %v19272_v14  ;;  %17770 = vmatpush1.bf16.msra.mxu1 %v25359_v5  ;;  %17843 = vmatmul.mubr.bf16.vlgmr.msra.gmra.mrb[80].mxu0 %v27535_v40  ;;  %v25400_v61 = vld [vmem:[%s27319_s17 + $0xc04] ss:$456 sps:$4 sm:$0xff]  }
 0x914   : > { %26555 = vpow2.f32 %v19450_v20  ;;  %v19456_v29 = vmul.f32 1.442695, %v19273_v21  ;;  %17852 = vmatpush1.bf16.msra.mxu0 %v25362_v6  ;;  %17771 = vmatprep.subr.bf16.mxu1 %v25367_v12  ;;  %v25395_v62 = vld [vmem:[%s27319_s17 + $0xbf8] ss:$456 sps:$4 sm:$0xff]   ;;  %v25403_v4 = vld [vmem:[%s27319_s17 + $0xf8c] ss:$456 sps:$4 sm:$0xff]  }
 0x915   : > { %26557 = vpow2.f32 %v19452_v38  ;;  %17853 = vmatprep.subr.bf16.mxu0 %v25370_v19  ;;  %17801 = vmatprep.mubr.bf16.mxu1 %v27007_v16  ;;  %v25398_v1 = vld [vmem:[%s27319_s17 + $0xc00] ss:$456 sps:$4 sm:$0xff]   ;;  %v25406_v15 = vld [vmem:[%s27319_s17 + $0xf94] ss:$456 sps:$4 sm:$0xff]   ;;  %v25404_v8 = vld [vmem:[%s27319_s17 + $0xf90] ss:$456 sps:$4 sm:$0xff]  }
 0x916   : > { %26559 = vpow2.f32 %v19454_v27  ;;  %17883 = vmatprep.mubr.bf16.mxu0 %v27007_v16  ;;  %v25401_v5 = vld [vmem:[%s27319_s17 + $0xf88] ss:$456 sps:$4 sm:$0xff]   ;;  %v25409_v10 = vld [vmem:[%s27319_s17 + $0x131c] ss:$456 sps:$4 sm:$0xff]   ;;  %v25407_v17 = vld [vmem:[%s27319_s17 + $0x1318] ss:$456 sps:$4 sm:$0xff]  }
 0x917   : > { %26561 = vpow2.f32 %v19456_v29  ;;  %17772 = vmatpush1.bf16.msra.mxu1 %v25365_v18  ;;  %v25412_v12 = vld [vmem:[%s27319_s17 + $0x1324] ss:$456 sps:$4 sm:$0xff]   ;;  %v25410_v18 = vld [vmem:[%s27319_s17 + $0x1320] ss:$456 sps:$4 sm:$0xff]   ;;  %v25418_v20 = vld [vmem:[%s27319_s17 + $0x16b4] ss:$456 sps:$4 sm:$0xff]  }
 0x918   : > { %17854 = vmatpush1.bf16.msra.mxu0 %v25368_v28  ;;  %22477 = vmatprep.subr.msk.bf16.mxu1 %vm14187_vm7, %v25371_v26  ;;  %v25415_v19 = vld [vmem:[%s27319_s17 + $0x16ac] ss:$456 sps:$4 sm:$0xff]   ;;  %v25413_v21 = vld [vmem:[%s27319_s17 + $0x16a8] ss:$456 sps:$4 sm:$0xff]   ;;  %v25421_v38 = vld [vmem:[%s27319_s17 + $0x1a3c] ss:$456 sps:$4 sm:$0xff]  }
 0x919   : > { %22479 = vmatprep.subr.msk.bf16.mxu0 %vm14187_vm7, %v25374_v47  ;;  %v25416_v26 = vld [vmem:[%s27319_s17 + $0x16b0] ss:$456 sps:$4 sm:$0xff]   ;;  %v25424_v27 = vld [vmem:[%s27319_s17 + $0x1a44] ss:$456 sps:$4 sm:$0xff]   ;;  %v25422_v29 = vld [vmem:[%s27319_s17 + $0x1a40] ss:$456 sps:$4 sm:$0xff]  }
 0x91a   : > { %v25419_v28 = vld [vmem:[%s27319_s17 + $0x1a38] ss:$456 sps:$4 sm:$0xff]   ;;  %v25430_v47 = vld [vmem:[%s27319_s17 + $0x1dd4] ss:$456 sps:$4 sm:$0xff]  }
 0x91b   : > { %17774 = vmatpush1.bf16.msra.mxu1 %v14423_v35  ;;  %v25428_v35 = vld [vmem:[%s27319_s17 + $0x1dd0] ss:$456 sps:$4 sm:$0xff]  }
 0x91c   : > { %17856 = vmatpush1.bf16.msra.mxu0 %v14429_v39  ;;  %17892 = vmatprep.subr.bf16.mxu1 %v25379_v37  ;;  %v25433_v37 = vld [vmem:[%s27319_s17 + $0x215c] ss:$456 sps:$4 sm:$0xff]  }
 0x91d   : > { %17974 = vmatprep.subr.bf16.mxu0 %v25382_v43  ;;  %v25436_v39 = vld [vmem:[%s27319_s17 + $0x2164] ss:$456 sps:$4 sm:$0xff]   ;;  %v25431_v43 = vld [vmem:[%s27319_s17 + $0x2158] ss:$456 sps:$4 sm:$0xff]  }
 0x91e   : > { %v26556_v46 = vpop.eup %26555  ;;  %22478 = vmatmul.mubr.msk.bf16.vlgmr.msra.gmra.mrb[84].mxu1 %vm14183_vm8, %v27539_v42 }
 0x91f   : > { %v26558_v48 = vpop.eup %26557  ;;  %v19612_v58 = vadd.f32 1.0, %v26556_v46  ;;  %22480 = vmatmul.mubr.msk.bf16.vlgmr.msra.gmra.mrb[80].mxu0 %vm14183_vm8, %v27539_v42  ;;  %17893 = vmatpush1.bf16.msra.mxu1 %v25377_v52  ;;  %v25434_v52 = vld [vmem:[%s27319_s17 + $0x2160] ss:$456 sps:$4 sm:$0xff]  }
 0x920   : > { %v26560_v30 = vpop.eup %26559  ;;  %v19613_v50 = vadd.f32 1.0, %v26558_v48  ;;  %17924 = vmatprep.mubr.bf16.mxu1 %v27537_v41  ;;  %17975 = vmatpush1.bf16.msra.mxu0 %v25380_v44  ;;  %v25439_v44 = vld [vmem:[%s27319_s17 + $0x24ec] ss:$456 sps:$4 sm:$0xff]   ;;  %v25437_v46 = vld [vmem:[%s27319_s17 + $0x24e8] ss:$456 sps:$4 sm:$0xff]  }
 0x921   : > { %v26562_v54 = vpop.eup %26561  ;;  %26563 = vrcp.f32 %v19612_v58  ;;  %v19614_v55 = vadd.f32 1.0, %v26560_v30  ;;  %18006 = vmatprep.mubr.bf16.mxu0 %v27537_v41  ;;  %17894 = vmatprep.subr.bf16.mxu1 %v25385_v45  ;;  %v25442_v45 = vld [vmem:[%s27319_s17 + $0x24f4] ss:$456 sps:$4 sm:$0xff]   ;;  %v25448_v58 = vld [vmem:[%s27319_s17 + $0x2884] ss:$456 sps:$4 sm:$0xff]  }
 0x922   : > { %26565 = vrcp.f32 %v19613_v50  ;;  %v19615_v57 = vadd.f32 1.0, %v26562_v54  ;;  %17976 = vmatprep.subr.bf16.mxu0 %v25388_v63  ;;  %v25440_v63 = vld [vmem:[%s27319_s17 + $0x24f0] ss:$456 sps:$4 sm:$0xff]   ;;  %v25445_v48 = vld [vmem:[%s27319_s17 + $0x287c] ss:$456 sps:$4 sm:$0xff]  }
 0x923   : > { %26567 = vrcp.f32 %v19614_v55  ;;  %17895 = vmatpush1.bf16.msra.mxu1 %v25383_v49  ;;  %v25443_v49 = vld [vmem:[%s27319_s17 + $0x2878] ss:$456 sps:$4 sm:$0xff]   ;;  %v25451_v50 = vld [vmem:[%s27319_s17 + $0x2c0c] ss:$456 sps:$4 sm:$0xff]   ;;  %v25457_v55 = vld [vmem:[%s27319_s17 + $0x2f9c] ss:$456 sps:$4 sm:$0xff]  }
 0x924   : > { %26569 = vrcp.f32 %v19615_v57  ;;  %17977 = vmatpush1.bf16.msra.mxu0 %v25386_v51  ;;  %17896 = vmatprep.subr.bf16.mxu1 %v25391_v53  ;;  %v25446_v30 = vld [vmem:[%s27319_s17 + $0x2880] ss:$456 sps:$4 sm:$0xff]   ;;  %v25454_v51 = vld [vmem:[%s27319_s17 + $0x2c14] ss:$456 sps:$4 sm:$0xff]   ;;  %v25452_v54 = vld [vmem:[%s27319_s17 + $0x2c10] ss:$456 sps:$4 sm:$0xff]  }
 0x925   : > { %17978 = vmatprep.subr.bf16.mxu0 %v25394_v56  ;;  %v25449_v53 = vld [vmem:[%s27319_s17 + $0x2c08] ss:$456 sps:$4 sm:$0xff]   ;;  %v25460_v56 = vld [vmem:[%s27319_s17 + $0x2fa4] ss:$456 sps:$4 sm:$0xff]   ;;  %v25455_v57 = vld [vmem:[%s27319_s17 + $0x2f98] ss:$456 sps:$4 sm:$0xff]  }
 0x927   : > { %17897 = vmatpush1.bf16.msra.mxu1 %v25389_v59  ;;  %v25458_v59 = vld [vmem:[%s27319_s17 + $0x2fa0] ss:$456 sps:$4 sm:$0xff]  }
 0x928   : > { %17979 = vmatpush1.bf16.msra.mxu0 %v25392_v9  ;;  %17898 = vmatprep.subr.bf16.mxu1 %v25397_v60  ;;  %v25463_v9 = vld [vmem:[%s27319_s17 + $0x332c] ss:$456 sps:$4 sm:$0xff]  }
 0x929   : > { %17980 = vmatprep.subr.bf16.mxu0 %v25400_v61  ;;  %v25466_v60 = vld [vmem:[%s27319_s17 + $0x3334] ss:$456 sps:$4 sm:$0xff]   ;;  %v25461_v61 = vld [vmem:[%s27319_s17 + $0x3328] ss:$456 sps:$4 sm:$0xff]  }
 0x92b   : > { %v26564_v0 = vpop.eup %26563  ;;  %17899 = vmatpush1.bf16.msra.mxu1 %v25395_v62  ;;  %v25464_v62 = vld [vmem:[%s27319_s17 + $0x3330] ss:$456 sps:$4 sm:$0xff]  }
 0x92c   : > { %v26566_v6 = vpop.eup %26565  ;;  %17981 = vmatpush1.bf16.msra.mxu0 %v25398_v1  ;;  %17900 = vmatprep.subr.bf16.mxu1 %v25403_v4  ;;  %v29627_v1 = vld [vmem:[%s27786_s21 + $0x48] sm:$0xff]  ;;  %v25469_v4 = vld [vmem:[%s27319_s17 + $0x36bc] ss:$456 sps:$4 sm:$0xff]  }
 0x92d   : > { %v26568_v24 = vpop.eup %26567  ;;  %v19921_v11 = vcombine.low %v26564_v0, %v26566_v6  ;;  %17982 = vmatprep.subr.bf16.mxu0 %v25406_v15  ;;  %v25472_v15 = vld [vmem:[%s27319_s17 + $0x36c4] ss:$456 sps:$4 sm:$0xff]   ;;  %v3180_v0 = vrot.slane %v29424_v31, %v27996_v34  ;;  %v3188_v6 = vrot.slane %v29627_v1, %v27453_v2 }
 0x92e   : > { %v26570_v13 = vpop.eup %26569 }
 0x92f   : > { %20035 = vst [vmem:[%s27851_s14 + $0x108] sm:$0xff] %v19921_v11  ;;  %v19922_v14 = vcombine.low %v26568_v24, %v26570_v13  ;;  %17901 = vmatpush1.bf16.msra.mxu1 %v25401_v5  ;;  %v3184_v5 = vrot.slane %v29424_v31, %v28000_v36  ;;  %v25470_v24 = vld [vmem:[%s27319_s17 + $0x36c0] ss:$456 sps:$4 sm:$0xff]   ;;  %v25475_v11 = vld [vmem:[%s27319_s17 + $0x3a4c] ss:$456 sps:$4 sm:$0xff]  }
 0x930   : > { %17983 = vmatpush1.bf16.msra.mxu0 %v25404_v8  ;;  %17902 = vmatprep.subr.bf16.mxu1 %v25409_v10  ;;  %v25467_v8 = vld [vmem:[%s27319_s17 + $0x36b8] ss:$456 sps:$4 sm:$0xff]   ;;  %v3192_v10 = vrot.slane %v29627_v1, %v27456_v3  ;;  %v25478_v13 = vld [vmem:[%s27319_s17 + $0x3a54] ss:$456 sps:$4 sm:$0xff]  }
 0x931   : > { %20036 = vst [vmem:[%s27851_s14 + $0x110] sm:$0xff] %v19922_v14  ;;  %17984 = vmatprep.subr.bf16.mxu0 %v25412_v12 }
 0x933   : > { %17903 = vmatpush1.bf16.msra.mxu1 %v25407_v17 }
 0x934   : > { %17985 = vmatpush1.bf16.msra.mxu0 %v25410_v18  ;;  %17904 = vmatprep.subr.bf16.mxu1 %v25415_v19 }
 0x935   : > { %17986 = vmatprep.subr.bf16.mxu0 %v25418_v20 }
 0x937   : > { %17905 = vmatpush1.bf16.msra.mxu1 %v25413_v21 }
 0x938   : > { %17987 = vmatpush1.bf16.msra.mxu0 %v25416_v26  ;;  %17906 = vmatprep.subr.bf16.mxu1 %v25421_v38  ;;  %v25473_v26 = vld [vmem:[%s27319_s17 + $0x3a48] ss:$456 sps:$4 sm:$0xff]  }
 0x939   : > { %17988 = vmatprep.subr.bf16.mxu0 %v25424_v27  ;;  %v25476_v38 = vld [vmem:[%s27319_s17 + $0x3a50] ss:$456 sps:$4 sm:$0xff]  }
 0x93b   : > { %17907 = vmatpush1.bf16.msra.mxu1 %v25419_v28 }
 0x93c   : > { %17989 = vmatpush1.bf16.msra.mxu0 %v25422_v29  ;;  %17908 = vmatprep.subr.bf16.mxu1 %v25427_v32 }
 0x93d   : > { %17990 = vmatprep.subr.bf16.mxu0 %v25430_v47  ;;  %v25481_v47 = vld [vmem:[%s27319_s17 + $0x3ddc] ss:$456 sps:$4 sm:$0xff]  }
 0x93f   : > { %17909 = vmatpush1.bf16.msra.mxu1 %v25425_v33 }
 0x940   : > { %17991 = vmatpush1.bf16.msra.mxu0 %v25428_v35  ;;  %17910 = vmatprep.subr.bf16.mxu1 %v25433_v37 }
 0x941   : > { %17992 = vmatprep.subr.bf16.mxu0 %v25436_v39  ;;  %v25479_v39 = vld [vmem:[%s27319_s17 + $0x3dd8] ss:$456 sps:$4 sm:$0xff]  }
 0x943   : > { %17911 = vmatpush1.bf16.msra.mxu1 %v25431_v43  ;;  %v25484_v43 = vld [vmem:[%s27319_s17 + $0x3de4] ss:$456 sps:$4 sm:$0xff]  }
 0x944   : > { %17993 = vmatpush1.bf16.msra.mxu0 %v25434_v52  ;;  %17912 = vmatprep.subr.bf16.mxu1 %v25439_v44 }
 0x945   : > { %17994 = vmatprep.subr.bf16.mxu0 %v25442_v45  ;;  %v25485_v45 = vld [vmem:[%s27319_s17 + $0x416c] ss:$456 sps:$4 sm:$0x3f]  }
 0x947   : > { %17913 = vmatpush1.bf16.msra.mxu1 %v25437_v46 }
 0x948   : > { %17995 = vmatpush1.bf16.msra.mxu0 %v25440_v63  ;;  %17914 = vmatprep.subr.bf16.mxu1 %v25445_v48  ;;  %v25482_v48 = vld [vmem:[%s27319_s17 + $0x3de0] ss:$456 sps:$4 sm:$0xff]  }
 0x949   : > { %17996 = vmatprep.subr.bf16.mxu0 %v25448_v58 }
 0x94b   : > { %17915 = vmatpush1.bf16.msra.mxu1 %v25443_v49  ;;  %v25487_v49 = vld [vmem:[%s27319_s17 + $0x4168] ss:$456 sps:$4 sm:$0x3f]  }
 0x94c   : > { %17997 = vmatpush1.bf16.msra.mxu0 %v25446_v30  ;;  %17916 = vmatprep.subr.bf16.mxu1 %v25451_v50  ;;  %v25488_v30 = vld [vmem:[%s27319_s17 + $0x4174] ss:$456 sps:$4 sm:$0x3f]   ;;  %v25490_v50 = vld [vmem:[%s27319_s17 + $0x4170] ss:$456 sps:$4 sm:$0x3f]  }
 0x94d   : > { %17998 = vmatprep.subr.bf16.mxu0 %v25454_v51  ;;  %v14435_v51 = vsel %vm14187_vm7, %v25487_v49, 0  ;;  %v25541_v49 = vld [vmem:[%s27319_s17 + $0x1ddc] ss:$456 sps:$4 sm:$0xff]  }
 0x94f   : > { %17917 = vmatpush1.bf16.msra.mxu1 %v25449_v53  ;;  %v25493_v53 = vld [vmem:[%s27319_s17 + $0x15c] ss:$456 sps:$4 sm:$0xff]  }
 0x950   : > { %17999 = vmatpush1.bf16.msra.mxu0 %v25452_v54  ;;  %17918 = vmatprep.subr.bf16.mxu1 %v25457_v55  ;;  %v14441_v54 = vsel %vm14187_vm7, %v25490_v50, 0  ;;  %v25496_v55 = vld [vmem:[%s27319_s17 + $0x164] ss:$456 sps:$4 sm:$0xff]   ;;  %v25539_v50 = vld [vmem:[%s27319_s17 + $0x1dd8] ss:$456 sps:$4 sm:$0xff]  }
 0x951   : > { %18000 = vmatprep.subr.bf16.mxu0 %v25460_v56  ;;  %v25491_v56 = vld [vmem:[%s27319_s17 + $0x158] ss:$456 sps:$4 sm:$0xff]  }
 0x953   : > { %17919 = vmatpush1.bf16.msra.mxu1 %v25455_v57  ;;  %v25494_v57 = vld [vmem:[%s27319_s17 + $0x160] ss:$456 sps:$4 sm:$0xff]  }
 0x954   : > { %18001 = vmatpush1.bf16.msra.mxu0 %v25458_v59  ;;  %17920 = vmatprep.subr.bf16.mxu1 %v25463_v9  ;;  %v25499_v59 = vld [vmem:[%s27319_s17 + $0x4ec] ss:$456 sps:$4 sm:$0xff]  }
 0x955   : > { %18002 = vmatprep.subr.bf16.mxu0 %v25466_v60  ;;  %v25502_v60 = vld [vmem:[%s27319_s17 + $0x4f4] ss:$456 sps:$4 sm:$0xff]  }
 0x957   : > { %17921 = vmatpush1.bf16.msra.mxu1 %v25461_v61 }
 0x958   : > { %18003 = vmatpush1.bf16.msra.mxu0 %v25464_v62  ;;  %17922 = vmatprep.subr.bf16.mxu1 %v25469_v4  ;;  %v25497_v4 = vld [vmem:[%s27319_s17 + $0x4e8] ss:$456 sps:$4 sm:$0xff]  }
 0x959   : > { %v17475_v12 = vpop.f32.mrb[76].mxu1  ;;  %18004 = vmatprep.subr.bf16.mxu0 %v25472_v15 }
 0x95a   : > { %v22680_v14 = vadd.f32 %v17475_v12, %v3180_v0  ;;  %v17477_v17 = vpop.f32.mrb[77].mxu1  ;;  %v17557_v31 = vpop.f32.mrb[72].mxu0  ;;  %v25503_v12 = vld [vmem:[%s27319_s17 + $0x878] ss:$456 sps:$4 sm:$0xff]  }
 0x95b   : > { %v22681_v18 = vadd.f32 %v17477_v17, %v3184_v5  ;;  %v22682_v19 = vadd.f32 %v17557_v31, %v3188_v6  ;;  %v17479_v20 = vpop.f32.mrb[78].mxu1  ;;  %v17559_v21 = vpop.f32.mrb[73].mxu0  ;;  %17923 = vmatpush1.bf16.msra.mxu1 %v25467_v8  ;;  %v25500_v5 = vld [vmem:[%s27319_s17 + $0x4f0] ss:$456 sps:$4 sm:$0xff]   ;;  %v25505_v6 = vld [vmem:[%s27319_s17 + $0x87c] ss:$456 sps:$4 sm:$0xff]  }
 0x95c   : > { %v19274_v27 = vsub.f32 0.0, %v22680_v14  ;;  %v22683_v28 = vadd.f32 %v17559_v21, %v3192_v10  ;;  %v17480_v29 = vpop.f32.mrb[79].mxu1  ;;  %v17561_v32 = vpop.f32.mrb[74].mxu0  ;;  %18005 = vmatpush1.bf16.msra.mxu0 %v25470_v24  ;;  %17933 = vmatprep.subr.bf16.mxu1 %v25475_v11  ;;  %v25508_v24 = vld [vmem:[%s27319_s17 + $0x884] ss:$456 sps:$4 sm:$0xff]  }
 0x95d   : > { %v19275_v33 = vsub.f32 0.0, %v22681_v18  ;;  %v19276_v35 = vsub.f32 0.0, %v22682_v19  ;;  %v17562_v37 = vpop.f32.mrb[75].mxu0  ;;  %18015 = vmatprep.subr.bf16.mxu0 %v25478_v13  ;;  %v25506_v13 = vld [vmem:[%s27319_s17 + $0x880] ss:$456 sps:$4 sm:$0xff]  }
 0x95e   : > { %v19458_v52 = vmul.f32 1.442695, %v19274_v27  ;;  %v19277_v44 = vsub.f32 0.0, %v22683_v28  ;;  %17925 = vmatmul.mubr.bf16.vlgmr.msra.gmra.mrb[88].mxu1 %v27535_v40  ;;  %v25511_v14 = vld [vmem:[%s27319_s17 + $0xc0c] ss:$456 sps:$4 sm:$0xff]  }
 0x95f   : > { %v19460_v46 = vmul.f32 1.442695, %v19275_v33  ;;  %v19462_v63 = vmul.f32 1.442695, %v19276_v35  ;;  %17934 = vmatpush1.bf16.msra.mxu1 %v25473_v26  ;;  %18007 = vmatmul.mubr.bf16.vlgmr.msra.gmra.mrb[84].mxu0 %v27535_v40  ;;  %v25514_v17 = vld [vmem:[%s27319_s17 + $0xc14] ss:$456 sps:$4 sm:$0xff]  }
 0x960   : > { %26571 = vpow2.f32 %v19458_v52  ;;  %v19464_v58 = vmul.f32 1.442695, %v19277_v44  ;;  %18016 = vmatpush1.bf16.msra.mxu0 %v25476_v38  ;;  %17935 = vmatprep.subr.bf16.mxu1 %v25481_v47  ;;  %v25509_v31 = vld [vmem:[%s27319_s17 + $0xc08] ss:$456 sps:$4 sm:$0xff]   ;;  %v25517_v19 = vld [vmem:[%s27319_s17 + $0xf9c] ss:$456 sps:$4 sm:$0xff]  }
 0x961   : > { %26573 = vpow2.f32 %v19460_v46  ;;  %18017 = vmatprep.subr.bf16.mxu0 %v25484_v43  ;;  %17965 = vmatprep.mubr.bf16.mxu1 %v27007_v16  ;;  %v25512_v18 = vld [vmem:[%s27319_s17 + $0xc10] ss:$456 sps:$4 sm:$0xff]   ;;  %v25520_v20 = vld [vmem:[%s27319_s17 + $0xfa4] ss:$456 sps:$4 sm:$0xff]   ;;  %v25518_v27 = vld [vmem:[%s27319_s17 + $0xfa0] ss:$456 sps:$4 sm:$0xff]  }
 0x962   : > { %26575 = vpow2.f32 %v19462_v63  ;;  %18047 = vmatprep.mubr.bf16.mxu0 %v27007_v16  ;;  %v25515_v26 = vld [vmem:[%s27319_s17 + $0xf98] ss:$456 sps:$4 sm:$0xff]   ;;  %v25523_v28 = vld [vmem:[%s27319_s17 + $0x132c] ss:$456 sps:$4 sm:$0xff]   ;;  %v25521_v37 = vld [vmem:[%s27319_s17 + $0x1328] ss:$456 sps:$4 sm:$0xff]  }
 0x963   : > { %26577 = vpow2.f32 %v19464_v58  ;;  %17936 = vmatpush1.bf16.msra.mxu1 %v25479_v39  ;;  %v25526_v47 = vld [vmem:[%s27319_s17 + $0x1334] ss:$456 sps:$4 sm:$0xff]   ;;  %v25524_v39 = vld [vmem:[%s27319_s17 + $0x1330] ss:$456 sps:$4 sm:$0xff]   ;;  %v25532_v52 = vld [vmem:[%s27319_s17 + $0x16c4] ss:$456 sps:$4 sm:$0xff]  }
 0x964   : > { %18018 = vmatpush1.bf16.msra.mxu0 %v25482_v48  ;;  %22481 = vmatprep.subr.msk.bf16.mxu1 %vm14187_vm7, %v25485_v45  ;;  %v25529_v43 = vld [vmem:[%s27319_s17 + $0x16bc] ss:$456 sps:$4 sm:$0xff]   ;;  %v25527_v44 = vld [vmem:[%s27319_s17 + $0x16b8] ss:$456 sps:$4 sm:$0xff]   ;;  %v25535_v46 = vld [vmem:[%s27319_s17 + $0x1a4c] ss:$456 sps:$4 sm:$0xff]  }
 0x965   : > { %22483 = vmatprep.subr.msk.bf16.mxu0 %vm14187_vm7, %v25488_v30  ;;  %v25530_v45 = vld [vmem:[%s27319_s17 + $0x16c0] ss:$456 sps:$4 sm:$0xff]   ;;  %v25538_v63 = vld [vmem:[%s27319_s17 + $0x1a54] ss:$456 sps:$4 sm:$0xff]   ;;  %v25536_v58 = vld [vmem:[%s27319_s17 + $0x1a50] ss:$456 sps:$4 sm:$0xff]  }
 0x966   : > { %v25533_v48 = vld [vmem:[%s27319_s17 + $0x1a48] ss:$456 sps:$4 sm:$0xff]   ;;  %v25544_v30 = vld [vmem:[%s27319_s17 + $0x1de4] ss:$456 sps:$4 sm:$0xff]  }
 0x967   : > { %17938 = vmatpush1.bf16.msra.mxu1 %v14435_v51  ;;  %v25542_v51 = vld [vmem:[%s27319_s17 + $0x1de0] ss:$456 sps:$4 sm:$0xff]  }
 0x968   : > { %18020 = vmatpush1.bf16.msra.mxu0 %v14441_v54  ;;  %18056 = vmatprep.subr.bf16.mxu1 %v25493_v53  ;;  %v25547_v53 = vld [vmem:[%s27319_s17 + $0x216c] ss:$456 sps:$4 sm:$0xff]  }
 0x969   : > { %18138 = vmatprep.subr.bf16.mxu0 %v25496_v55  ;;  %v25550_v54 = vld [vmem:[%s27319_s17 + $0x2174] ss:$456 sps:$4 sm:$0xff]   ;;  %v25545_v55 = vld [vmem:[%s27319_s17 + $0x2168] ss:$456 sps:$4 sm:$0xff]  }
 0x96a   : > { %v26572_v9 = vpop.eup %26571  ;;  %22482 = vmatmul.mubr.msk.bf16.vlgmr.msra.gmra.mrb[88].mxu1 %vm14183_vm8, %v27539_v42 }
 0x96b   : > { %v26574_v61 = vpop.eup %26573  ;;  %v19616_v62 = vadd.f32 1.0, %v26572_v9  ;;  %22484 = vmatmul.mubr.msk.bf16.vlgmr.msra.gmra.mrb[84].mxu0 %vm14183_vm8, %v27539_v42  ;;  %18057 = vmatpush1.bf16.msra.mxu1 %v25491_v56  ;;  %v25548_v56 = vld [vmem:[%s27319_s17 + $0x2170] ss:$456 sps:$4 sm:$0xff]  }
 0x96c   : > { %v26576_v15 = vpop.eup %26575  ;;  %v19617_v0 = vadd.f32 1.0, %v26574_v61  ;;  %18088 = vmatprep.mubr.bf16.mxu1 %v27537_v41  ;;  %18139 = vmatpush1.bf16.msra.mxu0 %v25494_v57  ;;  %v25553_v57 = vld [vmem:[%s27319_s17 + $0x24fc] ss:$456 sps:$4 sm:$0xff]   ;;  %v25551_v9 = vld [vmem:[%s27319_s17 + $0x24f8] ss:$456 sps:$4 sm:$0xff]  }
 0x96d   : > { %v26578_v8 = vpop.eup %26577  ;;  %26579 = vrcp.f32 %v19616_v62  ;;  %v19618_v10 = vadd.f32 1.0, %v26576_v15  ;;  %18170 = vmatprep.mubr.bf16.mxu0 %v27537_v41  ;;  %18058 = vmatprep.subr.bf16.mxu1 %v25499_v59  ;;  %v25556_v59 = vld [vmem:[%s27319_s17 + $0x2504] ss:$456 sps:$4 sm:$0xff]   ;;  %v25562_v62 = vld [vmem:[%s27319_s17 + $0x2894] ss:$456 sps:$4 sm:$0xff]  }
 0x96e   : > { %26581 = vrcp.f32 %v19617_v0  ;;  %v19619_v11 = vadd.f32 1.0, %v26578_v8  ;;  %18140 = vmatprep.subr.bf16.mxu0 %v25502_v60  ;;  %v25554_v60 = vld [vmem:[%s27319_s17 + $0x2500] ss:$456 sps:$4 sm:$0xff]   ;;  %v25559_v61 = vld [vmem:[%s27319_s17 + $0x288c] ss:$456 sps:$4 sm:$0xff]  }
 0x96f   : > { %26583 = vrcp.f32 %v19618_v10  ;;  %18059 = vmatpush1.bf16.msra.mxu1 %v25497_v4  ;;  %v25557_v4 = vld [vmem:[%s27319_s17 + $0x2888] ss:$456 sps:$4 sm:$0xff]   ;;  %v25565_v0 = vld [vmem:[%s27319_s17 + $0x2c1c] ss:$456 sps:$4 sm:$0xff]   ;;  %v25571_v10 = vld [vmem:[%s27319_s17 + $0x2fac] ss:$456 sps:$4 sm:$0xff]  }
 0x970   : > { %26585 = vrcp.f32 %v19619_v11  ;;  %18141 = vmatpush1.bf16.msra.mxu0 %v25500_v5  ;;  %18060 = vmatprep.subr.bf16.mxu1 %v25505_v6  ;;  %v25560_v15 = vld [vmem:[%s27319_s17 + $0x2890] ss:$456 sps:$4 sm:$0xff]   ;;  %v25568_v5 = vld [vmem:[%s27319_s17 + $0x2c24] ss:$456 sps:$4 sm:$0xff]   ;;  %v25566_v8 = vld [vmem:[%s27319_s17 + $0x2c20] ss:$456 sps:$4 sm:$0xff]  }
 0x971   : > { %18142 = vmatprep.subr.bf16.mxu0 %v25508_v24  ;;  %v25563_v6 = vld [vmem:[%s27319_s17 + $0x2c18] ss:$456 sps:$4 sm:$0xff]   ;;  %v25574_v24 = vld [vmem:[%s27319_s17 + $0x2fb4] ss:$456 sps:$4 sm:$0xff]   ;;  %v25569_v11 = vld [vmem:[%s27319_s17 + $0x2fa8] ss:$456 sps:$4 sm:$0xff]  }
 0x973   : > { %18061 = vmatpush1.bf16.msra.mxu1 %v25503_v12  ;;  %v25572_v12 = vld [vmem:[%s27319_s17 + $0x2fb0] ss:$456 sps:$4 sm:$0xff]  }
 0x974   : > { %18143 = vmatpush1.bf16.msra.mxu0 %v25506_v13  ;;  %18062 = vmatprep.subr.bf16.mxu1 %v25511_v14  ;;  %v25577_v13 = vld [vmem:[%s27319_s17 + $0x333c] ss:$456 sps:$4 sm:$0xff]  }
 0x975   : > { %18144 = vmatprep.subr.bf16.mxu0 %v25514_v17  ;;  %v25580_v14 = vld [vmem:[%s27319_s17 + $0x3344] ss:$456 sps:$4 sm:$0xff]   ;;  %v25575_v17 = vld [vmem:[%s27319_s17 + $0x3338] ss:$456 sps:$4 sm:$0xff]  }
 0x977   : > { %v26580_v21 = vpop.eup %26579  ;;  %18063 = vmatpush1.bf16.msra.mxu1 %v25509_v31  ;;  %v25578_v31 = vld [vmem:[%s27319_s17 + $0x3340] ss:$456 sps:$4 sm:$0xff]  }
 0x978   : > { %v26582_v38 = vpop.eup %26581  ;;  %18145 = vmatpush1.bf16.msra.mxu0 %v25512_v18  ;;  %18064 = vmatprep.subr.bf16.mxu1 %v25517_v19  ;;  %v25583_v18 = vld [vmem:[%s27319_s17 + $0x36cc] ss:$456 sps:$4 sm:$0xff]  }
 0x979   : > { %v26584_v29 = vpop.eup %26583  ;;  %v19923_v32 = vcombine.low %v26580_v21, %v26582_v38  ;;  %18146 = vmatprep.subr.bf16.mxu0 %v25520_v20  ;;  %v25586_v19 = vld [vmem:[%s27319_s17 + $0x36d4] ss:$456 sps:$4 sm:$0xff]   ;;  %v3196_v20 = vrot.slane %v29627_v1, %v27461_v7  ;;  %v3200_v21 = vrot.slane %v29627_v1, %v27889_v22  ;;  %v25581_v38 = vld [vmem:[%s27319_s17 + $0x36c8] ss:$456 sps:$4 sm:$0xff]  }
 0x97a   : > { %v26586_v33 = vpop.eup %26585 }
 0x97b   : > { %20037 = vst [vmem:[%s27851_s14 + $0x118] sm:$0xff] %v19923_v32  ;;  %v19924_v35 = vcombine.low %v26584_v29, %v26586_v33  ;;  %18065 = vmatpush1.bf16.msra.mxu1 %v25515_v26  ;;  %v3204_v26 = vrot.slane %v29627_v1, %v27892_v23  ;;  %v25589_v29 = vld [vmem:[%s27319_s17 + $0x3a5c] ss:$456 sps:$4 sm:$0xff]  }
 0x97c   : > { %18147 = vmatpush1.bf16.msra.mxu0 %v25518_v27  ;;  %18066 = vmatprep.subr.bf16.mxu1 %v25523_v28  ;;  %v3208_v27 = vrot.slane %v29627_v1, %v27896_v25  ;;  %v25584_v28 = vld [vmem:[%s27319_s17 + $0x36d0] ss:$456 sps:$4 sm:$0xff]  }
 0x97d   : > { %20038 = vst [vmem:[%s27851_s14 + $0x120] sm:$0xff] %v19924_v35  ;;  %18148 = vmatprep.subr.bf16.mxu0 %v25526_v47  ;;  %v25592_v47 = vld [vmem:[%s27319_s17 + $0x3a64] ss:$456 sps:$4 sm:$0xff]  }
 0x97f   : > { %18067 = vmatpush1.bf16.msra.mxu1 %v25521_v37 }
 0x980   : > { %18149 = vmatpush1.bf16.msra.mxu0 %v25524_v39  ;;  %18068 = vmatprep.subr.bf16.mxu1 %v25529_v43 }
 0x981   : > { %18150 = vmatprep.subr.bf16.mxu0 %v25532_v52 }
 0x983   : > { %18069 = vmatpush1.bf16.msra.mxu1 %v25527_v44 }
 0x984   : > { %18151 = vmatpush1.bf16.msra.mxu0 %v25530_v45  ;;  %18070 = vmatprep.subr.bf16.mxu1 %v25535_v46  ;;  %v25587_v45 = vld [vmem:[%s27319_s17 + $0x3a58] ss:$456 sps:$4 sm:$0xff]  }
 0x985   : > { %18152 = vmatprep.subr.bf16.mxu0 %v25538_v63  ;;  %v25590_v46 = vld [vmem:[%s27319_s17 + $0x3a60] ss:$456 sps:$4 sm:$0xff]  }
 0x987   : > { %18071 = vmatpush1.bf16.msra.mxu1 %v25533_v48 }
 0x988   : > { %18153 = vmatpush1.bf16.msra.mxu0 %v25536_v58  ;;  %18072 = vmatprep.subr.bf16.mxu1 %v25541_v49 }
 0x989   : > { %18154 = vmatprep.subr.bf16.mxu0 %v25544_v30  ;;  %v25595_v30 = vld [vmem:[%s27319_s17 + $0x3dec] ss:$456 sps:$4 sm:$0xff]  }
 0x98b   : > { %18073 = vmatpush1.bf16.msra.mxu1 %v25539_v50 }
 0x98c   : > { %18155 = vmatpush1.bf16.msra.mxu0 %v25542_v51  ;;  %18074 = vmatprep.subr.bf16.mxu1 %v25547_v53 }
 0x98d   : > { %18156 = vmatprep.subr.bf16.mxu0 %v25550_v54  ;;  %v25593_v54 = vld [vmem:[%s27319_s17 + $0x3de8] ss:$456 sps:$4 sm:$0xff]  }
 0x98f   : > { %18075 = vmatpush1.bf16.msra.mxu1 %v25545_v55  ;;  %v25598_v55 = vld [vmem:[%s27319_s17 + $0x3df4] ss:$456 sps:$4 sm:$0xff]  }
 0x990   : > { %18157 = vmatpush1.bf16.msra.mxu0 %v25548_v56  ;;  %18076 = vmatprep.subr.bf16.mxu1 %v25553_v57 }
 0x991   : > { %18158 = vmatprep.subr.bf16.mxu0 %v25556_v59  ;;  %v25599_v59 = vld [vmem:[%s27319_s17 + $0x417c] ss:$456 sps:$4 sm:$0x3f]  }
 0x993   : > { %18077 = vmatpush1.bf16.msra.mxu1 %v25551_v9 }
 0x994   : > { %18159 = vmatpush1.bf16.msra.mxu0 %v25554_v60  ;;  %18078 = vmatprep.subr.bf16.mxu1 %v25559_v61  ;;  %v25596_v61 = vld [vmem:[%s27319_s17 + $0x3df0] ss:$456 sps:$4 sm:$0xff]  }
 0x995   : > { %18160 = vmatprep.subr.bf16.mxu0 %v25562_v62 }
 0x997   : > { %18079 = vmatpush1.bf16.msra.mxu1 %v25557_v4  ;;  %v25601_v4 = vld [vmem:[%s27319_s17 + $0x4178] ss:$456 sps:$4 sm:$0x3f]  }
 0x998   : > { %18161 = vmatpush1.bf16.msra.mxu0 %v25560_v15  ;;  %18080 = vmatprep.subr.bf16.mxu1 %v25565_v0  ;;  %v25602_v15 = vld [vmem:[%s27319_s17 + $0x4184] ss:$456 sps:$4 sm:$0x3f]   ;;  %v25604_v0 = vld [vmem:[%s27319_s17 + $0x4180] ss:$456 sps:$4 sm:$0x3f]  }
 0x999   : > { %18162 = vmatprep.subr.bf16.mxu0 %v25568_v5  ;;  %v14447_v5 = vsel %vm14187_vm7, %v25601_v4, 0  ;;  %v25655_v4 = vld [vmem:[%s27319_s17 + $0x1dec] ss:$456 sps:$4 sm:$0xff]  }
 0x99b   : > { %18081 = vmatpush1.bf16.msra.mxu1 %v25563_v6  ;;  %v25607_v6 = vld [vmem:[%s27319_s17 + $0x16c] ss:$456 sps:$4 sm:$0xff]  }
 0x99c   : > { %18163 = vmatpush1.bf16.msra.mxu0 %v25566_v8  ;;  %18082 = vmatprep.subr.bf16.mxu1 %v25571_v10  ;;  %v14453_v8 = vsel %vm14187_vm7, %v25604_v0, 0  ;;  %v25610_v10 = vld [vmem:[%s27319_s17 + $0x174] ss:$456 sps:$4 sm:$0xff]   ;;  %v25653_v0 = vld [vmem:[%s27319_s17 + $0x1de8] ss:$456 sps:$4 sm:$0xff]  }
 0x99d   : > { %18164 = vmatprep.subr.bf16.mxu0 %v25574_v24  ;;  %v25605_v24 = vld [vmem:[%s27319_s17 + $0x168] ss:$456 sps:$4 sm:$0xff]  }
 0x99f   : > { %18083 = vmatpush1.bf16.msra.mxu1 %v25569_v11  ;;  %v25608_v11 = vld [vmem:[%s27319_s17 + $0x170] ss:$456 sps:$4 sm:$0xff]  }
 0x9a0   : > { %18165 = vmatpush1.bf16.msra.mxu0 %v25572_v12  ;;  %18084 = vmatprep.subr.bf16.mxu1 %v25577_v13  ;;  %v25613_v12 = vld [vmem:[%s27319_s17 + $0x4fc] ss:$456 sps:$4 sm:$0xff]  }
 0x9a1   : > { %18166 = vmatprep.subr.bf16.mxu0 %v25580_v14  ;;  %v25616_v14 = vld [vmem:[%s27319_s17 + $0x504] ss:$456 sps:$4 sm:$0xff]  }
 0x9a3   : > { %18085 = vmatpush1.bf16.msra.mxu1 %v25575_v17 }
 0x9a4   : > { %18167 = vmatpush1.bf16.msra.mxu0 %v25578_v31  ;;  %18086 = vmatprep.subr.bf16.mxu1 %v25583_v18  ;;  %v25611_v18 = vld [vmem:[%s27319_s17 + $0x4f8] ss:$456 sps:$4 sm:$0xff]  }
 0x9a5   : > { %v17639_v32 = vpop.f32.mrb[80].mxu1  ;;  %18168 = vmatprep.subr.bf16.mxu0 %v25586_v19 }
 0x9a6   : > { %v22684_v33 = vadd.f32 %v17639_v32, %v3196_v20  ;;  %v17641_v35 = vpop.f32.mrb[81].mxu1  ;;  %v17721_v37 = vpop.f32.mrb[76].mxu0  ;;  %v25617_v32 = vld [vmem:[%s27319_s17 + $0x888] ss:$456 sps:$4 sm:$0xff]  }
 0x9a7   : > { %v22685_v39 = vadd.f32 %v17641_v35, %v3200_v21  ;;  %v22686_v43 = vadd.f32 %v17721_v37, %v3204_v26  ;;  %v17643_v52 = vpop.f32.mrb[82].mxu1  ;;  %v17723_v44 = vpop.f32.mrb[77].mxu0  ;;  %18087 = vmatpush1.bf16.msra.mxu1 %v25581_v38  ;;  %v25614_v21 = vld [vmem:[%s27319_s17 + $0x500] ss:$456 sps:$4 sm:$0xff]   ;;  %v25619_v26 = vld [vmem:[%s27319_s17 + $0x88c] ss:$456 sps:$4 sm:$0xff]  }
 0x9a8   : > { %v19278_v63 = vsub.f32 0.0, %v22684_v33  ;;  %v22687_v48 = vadd.f32 %v17723_v44, %v3208_v27  ;;  %v17644_v58 = vpop.f32.mrb[83].mxu1  ;;  %v17725_v49 = vpop.f32.mrb[78].mxu0  ;;  %18169 = vmatpush1.bf16.msra.mxu0 %v25584_v28  ;;  %18097 = vmatprep.subr.bf16.mxu1 %v25589_v29  ;;  %v25622_v28 = vld [vmem:[%s27319_s17 + $0x894] ss:$456 sps:$4 sm:$0xff]  }
 0x9a9   : > { %v19279_v50 = vsub.f32 0.0, %v22685_v39  ;;  %v19280_v51 = vsub.f32 0.0, %v22686_v43  ;;  %v17726_v53 = vpop.f32.mrb[79].mxu0  ;;  %18179 = vmatprep.subr.bf16.mxu0 %v25592_v47  ;;  %v25620_v47 = vld [vmem:[%s27319_s17 + $0x890] ss:$456 sps:$4 sm:$0xff]  }
 0x9aa   : > { %v19466_v56 = vmul.f32 1.442695, %v19278_v63  ;;  %v19281_v57 = vsub.f32 0.0, %v22687_v48  ;;  %18089 = vmatmul.mubr.bf16.vlgmr.msra.gmra.mrb[92].mxu1 %v27535_v40  ;;  %v25625_v33 = vld [vmem:[%s27319_s17 + $0xc1c] ss:$456 sps:$4 sm:$0xff]  }
 0x9ab   : > { %v19468_v9 = vmul.f32 1.442695, %v19279_v50  ;;  %v19470_v60 = vmul.f32 1.442695, %v19280_v51  ;;  %18098 = vmatpush1.bf16.msra.mxu1 %v25587_v45  ;;  %18171 = vmatmul.mubr.bf16.vlgmr.msra.gmra.mrb[88].mxu0 %v27535_v40  ;;  %v25628_v35 = vld [vmem:[%s27319_s17 + $0xc24] ss:$456 sps:$4 sm:$0xff]  }
 0x9ac   : > { %26587 = vpow2.f32 %v19466_v56  ;;  %v19472_v62 = vmul.f32 1.442695, %v19281_v57  ;;  %18180 = vmatpush1.bf16.msra.mxu0 %v25590_v46  ;;  %18099 = vmatprep.subr.bf16.mxu1 %v25595_v30  ;;  %v25623_v37 = vld [vmem:[%s27319_s17 + $0xc18] ss:$456 sps:$4 sm:$0xff]   ;;  %v25631_v43 = vld [vmem:[%s27319_s17 + $0xfac] ss:$456 sps:$4 sm:$0xff]  }
 0x9ad   : > { %26589 = vpow2.f32 %v19468_v9  ;;  %18181 = vmatprep.subr.bf16.mxu0 %v25598_v55  ;;  %18129 = vmatprep.mubr.bf16.mxu1 %v27007_v16  ;;  %v25626_v39 = vld [vmem:[%s27319_s17 + $0xc20] ss:$456 sps:$4 sm:$0xff]   ;;  %v25634_v52 = vld [vmem:[%s27319_s17 + $0xfb4] ss:$456 sps:$4 sm:$0xff]   ;;  %v25632_v63 = vld [vmem:[%s27319_s17 + $0xfb0] ss:$456 sps:$4 sm:$0xff]  }
 0x9ae   : > { %26591 = vpow2.f32 %v19470_v60  ;;  %18211 = vmatprep.mubr.bf16.mxu0 %v27007_v16  ;;  %v25629_v45 = vld [vmem:[%s27319_s17 + $0xfa8] ss:$456 sps:$4 sm:$0xff]   ;;  %v25637_v48 = vld [vmem:[%s27319_s17 + $0x133c] ss:$456 sps:$4 sm:$0xff]   ;;  %v25635_v53 = vld [vmem:[%s27319_s17 + $0x1338] ss:$456 sps:$4 sm:$0xff]  }
 0x9af   : > { %26593 = vpow2.f32 %v19472_v62  ;;  %18100 = vmatpush1.bf16.msra.mxu1 %v25593_v54  ;;  %v25640_v30 = vld [vmem:[%s27319_s17 + $0x1344] ss:$456 sps:$4 sm:$0xff]   ;;  %v25638_v54 = vld [vmem:[%s27319_s17 + $0x1340] ss:$456 sps:$4 sm:$0xff]   ;;  %v25646_v56 = vld [vmem:[%s27319_s17 + $0x16d4] ss:$456 sps:$4 sm:$0xff]  }
 0x9b0   : > { %18182 = vmatpush1.bf16.msra.mxu0 %v25596_v61  ;;  %22485 = vmatprep.subr.msk.bf16.mxu1 %vm14187_vm7, %v25599_v59  ;;  %v25643_v55 = vld [vmem:[%s27319_s17 + $0x16cc] ss:$456 sps:$4 sm:$0xff]   ;;  %v25641_v57 = vld [vmem:[%s27319_s17 + $0x16c8] ss:$456 sps:$4 sm:$0xff]   ;;  %v25649_v9 = vld [vmem:[%s27319_s17 + $0x1a5c] ss:$456 sps:$4 sm:$0xff]  }
 0x9b1   : > { %22487 = vmatprep.subr.msk.bf16.mxu0 %vm14187_vm7, %v25602_v15  ;;  %v25644_v59 = vld [vmem:[%s27319_s17 + $0x16d0] ss:$456 sps:$4 sm:$0xff]   ;;  %v25652_v60 = vld [vmem:[%s27319_s17 + $0x1a64] ss:$456 sps:$4 sm:$0xff]   ;;  %v25650_v62 = vld [vmem:[%s27319_s17 + $0x1a60] ss:$456 sps:$4 sm:$0xff]  }
 0x9b2   : > { %v25647_v61 = vld [vmem:[%s27319_s17 + $0x1a58] ss:$456 sps:$4 sm:$0xff]   ;;  %v25658_v15 = vld [vmem:[%s27319_s17 + $0x1df4] ss:$456 sps:$4 sm:$0xff]  }
 0x9b3   : > { %18102 = vmatpush1.bf16.msra.mxu1 %v14447_v5  ;;  %v25656_v5 = vld [vmem:[%s27319_s17 + $0x1df0] ss:$456 sps:$4 sm:$0xff]  }
 0x9b4   : > { %18184 = vmatpush1.bf16.msra.mxu0 %v14453_v8  ;;  %18220 = vmatprep.subr.bf16.mxu1 %v25607_v6  ;;  %v25661_v6 = vld [vmem:[%s27319_s17 + $0x217c] ss:$456 sps:$4 sm:$0xff]  }
 0x9b5   : > { %18302 = vmatprep.subr.bf16.mxu0 %v25610_v10  ;;  %v25664_v8 = vld [vmem:[%s27319_s17 + $0x2184] ss:$456 sps:$4 sm:$0xff]   ;;  %v25659_v10 = vld [vmem:[%s27319_s17 + $0x2178] ss:$456 sps:$4 sm:$0xff]  }
 0x9b6   : > { %v26588_v13 = vpop.eup %26587  ;;  %22486 = vmatmul.mubr.msk.bf16.vlgmr.msra.gmra.mrb[92].mxu1 %vm14183_vm8, %v27539_v42 }
 0x9b7   : > { %v26590_v17 = vpop.eup %26589  ;;  %v19620_v31 = vadd.f32 1.0, %v26588_v13  ;;  %22488 = vmatmul.mubr.msk.bf16.vlgmr.msra.gmra.mrb[88].mxu0 %vm14183_vm8, %v27539_v42  ;;  %18221 = vmatpush1.bf16.msra.mxu1 %v25605_v24  ;;  %v25662_v24 = vld [vmem:[%s27319_s17 + $0x2180] ss:$456 sps:$4 sm:$0xff]  }
 0x9b8   : > { %v26592_v19 = vpop.eup %26591  ;;  %v19621_v20 = vadd.f32 1.0, %v26590_v17  ;;  %18252 = vmatprep.mubr.bf16.mxu1 %v27537_v41  ;;  %18303 = vmatpush1.bf16.msra.mxu0 %v25608_v11  ;;  %v25667_v11 = vld [vmem:[%s27319_s17 + $0x250c] ss:$456 sps:$4 sm:$0xff]   ;;  %v25665_v13 = vld [vmem:[%s27319_s17 + $0x2508] ss:$456 sps:$4 sm:$0xff]  }
 0x9b9   : > { %v26594_v38 = vpop.eup %26593  ;;  %26595 = vrcp.f32 %v19620_v31  ;;  %v19622_v27 = vadd.f32 1.0, %v26592_v19  ;;  %18334 = vmatprep.mubr.bf16.mxu0 %v27537_v41  ;;  %18222 = vmatprep.subr.bf16.mxu1 %v25613_v12  ;;  %v25670_v12 = vld [vmem:[%s27319_s17 + $0x2514] ss:$456 sps:$4 sm:$0xff]   ;;  %v25676_v31 = vld [vmem:[%s27319_s17 + $0x28a4] ss:$456 sps:$4 sm:$0xff]  }
 0x9ba   : > { %26597 = vrcp.f32 %v19621_v20  ;;  %v19623_v29 = vadd.f32 1.0, %v26594_v38  ;;  %18304 = vmatprep.subr.bf16.mxu0 %v25616_v14  ;;  %v25668_v14 = vld [vmem:[%s27319_s17 + $0x2510] ss:$456 sps:$4 sm:$0xff]   ;;  %v25673_v17 = vld [vmem:[%s27319_s17 + $0x289c] ss:$456 sps:$4 sm:$0xff]  }
 0x9bb   : > { %26599 = vrcp.f32 %v19622_v27  ;;  %18223 = vmatpush1.bf16.msra.mxu1 %v25611_v18  ;;  %v25671_v18 = vld [vmem:[%s27319_s17 + $0x2898] ss:$456 sps:$4 sm:$0xff]   ;;  %v25679_v20 = vld [vmem:[%s27319_s17 + $0x2c2c] ss:$456 sps:$4 sm:$0xff]   ;;  %v25685_v27 = vld [vmem:[%s27319_s17 + $0x2fbc] ss:$456 sps:$4 sm:$0xff]  }
 0x9bc   : > { %26601 = vrcp.f32 %v19623_v29  ;;  %18305 = vmatpush1.bf16.msra.mxu0 %v25614_v21  ;;  %18224 = vmatprep.subr.bf16.mxu1 %v25619_v26  ;;  %v25674_v19 = vld [vmem:[%s27319_s17 + $0x28a0] ss:$456 sps:$4 sm:$0xff]   ;;  %v25682_v21 = vld [vmem:[%s27319_s17 + $0x2c34] ss:$456 sps:$4 sm:$0xff]   ;;  %v25680_v38 = vld [vmem:[%s27319_s17 + $0x2c30] ss:$456 sps:$4 sm:$0xff]  }
 0x9bd   : > { %18306 = vmatprep.subr.bf16.mxu0 %v25622_v28  ;;  %v25677_v26 = vld [vmem:[%s27319_s17 + $0x2c28] ss:$456 sps:$4 sm:$0xff]   ;;  %v25688_v28 = vld [vmem:[%s27319_s17 + $0x2fc4] ss:$456 sps:$4 sm:$0xff]   ;;  %v25683_v29 = vld [vmem:[%s27319_s17 + $0x2fb8] ss:$456 sps:$4 sm:$0xff]  }
 0x9bf   : > { %18225 = vmatpush1.bf16.msra.mxu1 %v25617_v32  ;;  %v25686_v32 = vld [vmem:[%s27319_s17 + $0x2fc0] ss:$456 sps:$4 sm:$0xff]  }
 0x9c0   : > { %18307 = vmatpush1.bf16.msra.mxu0 %v25620_v47  ;;  %18226 = vmatprep.subr.bf16.mxu1 %v25625_v33  ;;  %v25691_v47 = vld [vmem:[%s27319_s17 + $0x334c] ss:$456 sps:$4 sm:$0xff]  }
 0x9c1   : > { %18308 = vmatprep.subr.bf16.mxu0 %v25628_v35  ;;  %v25694_v33 = vld [vmem:[%s27319_s17 + $0x3354] ss:$456 sps:$4 sm:$0xff]   ;;  %v25689_v35 = vld [vmem:[%s27319_s17 + $0x3348] ss:$456 sps:$4 sm:$0xff]  }
 0x9c3   : > { %v26596_v44 = vpop.eup %26595  ;;  %18227 = vmatpush1.bf16.msra.mxu1 %v25623_v37  ;;  %v25692_v37 = vld [vmem:[%s27319_s17 + $0x3350] ss:$456 sps:$4 sm:$0xff]  }
 0x9c4   : > { %v26598_v46 = vpop.eup %26597  ;;  %18309 = vmatpush1.bf16.msra.mxu0 %v25626_v39  ;;  %18228 = vmatprep.subr.bf16.mxu1 %v25631_v43  ;;  %v29830_v39 = vld [vmem:[%s27786_s21 + $0x50] sm:$0xff]  ;;  %v25697_v43 = vld [vmem:[%s27319_s17 + $0x36dc] ss:$456 sps:$4 sm:$0xff]  }
 0x9c5   : > { %v26600_v58 = vpop.eup %26599  ;;  %v19925_v49 = vcombine.low %v26596_v44, %v26598_v46  ;;  %18310 = vmatprep.subr.bf16.mxu0 %v25634_v52  ;;  %v25700_v52 = vld [vmem:[%s27319_s17 + $0x36e4] ss:$456 sps:$4 sm:$0xff]   ;;  %v3212_v44 = vrot.slane %v29627_v1, %v27996_v34  ;;  %v3220_v46 = vrot.slane %v29830_v39, %v27453_v2 }
 0x9c6   : > { %v26602_v50 = vpop.eup %26601 }
 0x9c7   : > { %20039 = vst [vmem:[%s27851_s14 + $0x128] sm:$0xff] %v19925_v49  ;;  %v19926_v51 = vcombine.low %v26600_v58, %v26602_v50  ;;  %18229 = vmatpush1.bf16.msra.mxu1 %v25629_v45  ;;  %v3216_v45 = vrot.slane %v29627_v1, %v28000_v36  ;;  %v25698_v58 = vld [vmem:[%s27319_s17 + $0x36e0] ss:$456 sps:$4 sm:$0xff]   ;;  %v25703_v49 = vld [vmem:[%s27319_s17 + $0x3a6c] ss:$456 sps:$4 sm:$0xff]  }
 0x9c8   : > { %18311 = vmatpush1.bf16.msra.mxu0 %v25632_v63  ;;  %18230 = vmatprep.subr.bf16.mxu1 %v25637_v48  ;;  %v25695_v63 = vld [vmem:[%s27319_s17 + $0x36d8] ss:$456 sps:$4 sm:$0xff]   ;;  %v3224_v48 = vrot.slane %v29830_v39, %v27456_v3  ;;  %v25706_v50 = vld [vmem:[%s27319_s17 + $0x3a74] ss:$456 sps:$4 sm:$0xff]  }
 0x9c9   : > { %20040 = vst [vmem:[%s27851_s14 + $0x130] sm:$0xff] %v19926_v51  ;;  %18312 = vmatprep.subr.bf16.mxu0 %v25640_v30 }
 0x9cb   : > { %18231 = vmatpush1.bf16.msra.mxu1 %v25635_v53 }
 0x9cc   : > { %18313 = vmatpush1.bf16.msra.mxu0 %v25638_v54  ;;  %18232 = vmatprep.subr.bf16.mxu1 %v25643_v55 }
 0x9cd   : > { %18314 = vmatprep.subr.bf16.mxu0 %v25646_v56 }
 0x9cf   : > { %18233 = vmatpush1.bf16.msra.mxu1 %v25641_v57 }
 0x9d0   : > { %18315 = vmatpush1.bf16.msra.mxu0 %v25644_v59  ;;  %18234 = vmatprep.subr.bf16.mxu1 %v25649_v9  ;;  %v25701_v59 = vld [vmem:[%s27319_s17 + $0x3a68] ss:$456 sps:$4 sm:$0xff]  }
 0x9d1   : > { %18316 = vmatprep.subr.bf16.mxu0 %v25652_v60  ;;  %v25704_v9 = vld [vmem:[%s27319_s17 + $0x3a70] ss:$456 sps:$4 sm:$0xff]  }
 0x9d3   : > { %18235 = vmatpush1.bf16.msra.mxu1 %v25647_v61 }
 0x9d4   : > { %18317 = vmatpush1.bf16.msra.mxu0 %v25650_v62  ;;  %18236 = vmatprep.subr.bf16.mxu1 %v25655_v4 }
 0x9d5   : > { %18318 = vmatprep.subr.bf16.mxu0 %v25658_v15  ;;  %v25709_v15 = vld [vmem:[%s27319_s17 + $0x3dfc] ss:$456 sps:$4 sm:$0xff]  }
 0x9d7   : > { %18237 = vmatpush1.bf16.msra.mxu1 %v25653_v0 }
 0x9d8   : > { %18319 = vmatpush1.bf16.msra.mxu0 %v25656_v5  ;;  %18238 = vmatprep.subr.bf16.mxu1 %v25661_v6 }
 0x9d9   : > { %18320 = vmatprep.subr.bf16.mxu0 %v25664_v8  ;;  %v25707_v8 = vld [vmem:[%s27319_s17 + $0x3df8] ss:$456 sps:$4 sm:$0xff]  }
 0x9db   : > { %18239 = vmatpush1.bf16.msra.mxu1 %v25659_v10  ;;  %v25712_v10 = vld [vmem:[%s27319_s17 + $0x3e04] ss:$456 sps:$4 sm:$0xff]  }
 0x9dc   : > { %18321 = vmatpush1.bf16.msra.mxu0 %v25662_v24  ;;  %18240 = vmatprep.subr.bf16.mxu1 %v25667_v11 }
 0x9dd   : > { %18322 = vmatprep.subr.bf16.mxu0 %v25670_v12  ;;  %v25713_v12 = vld [vmem:[%s27319_s17 + $0x418c] ss:$456 sps:$4 sm:$0x3f]  }
 0x9df   : > { %18241 = vmatpush1.bf16.msra.mxu1 %v25665_v13 }
 0x9e0   : > { %18323 = vmatpush1.bf16.msra.mxu0 %v25668_v14  ;;  %18242 = vmatprep.subr.bf16.mxu1 %v25673_v17  ;;  %v25710_v17 = vld [vmem:[%s27319_s17 + $0x3e00] ss:$456 sps:$4 sm:$0xff]  }
 0x9e1   : > { %18324 = vmatprep.subr.bf16.mxu0 %v25676_v31 }
 0x9e3   : > { %18243 = vmatpush1.bf16.msra.mxu1 %v25671_v18  ;;  %v25715_v18 = vld [vmem:[%s27319_s17 + $0x4188] ss:$456 sps:$4 sm:$0x3f]  }
 0x9e4   : > { %18325 = vmatpush1.bf16.msra.mxu0 %v25674_v19  ;;  %18244 = vmatprep.subr.bf16.mxu1 %v25679_v20  ;;  %v25716_v19 = vld [vmem:[%s27319_s17 + $0x4194] ss:$456 sps:$4 sm:$0x3f]   ;;  %v25718_v20 = vld [vmem:[%s27319_s17 + $0x4190] ss:$456 sps:$4 sm:$0x3f]  }
 0x9e5   : > { %18326 = vmatprep.subr.bf16.mxu0 %v25682_v21  ;;  %v14459_v21 = vsel %vm14187_vm7, %v25715_v18, 0  ;;  %v25769_v18 = vld [vmem:[%s27319_s17 + $0x1dfc] ss:$456 sps:$4 sm:$0xff]  }
 0x9e7   : > { %18245 = vmatpush1.bf16.msra.mxu1 %v25677_v26  ;;  %v25721_v26 = vld [vmem:[%s27319_s17 + $0x17c] ss:$456 sps:$4 sm:$0xff]  }
 0x9e8   : > { %18327 = vmatpush1.bf16.msra.mxu0 %v25680_v38  ;;  %18246 = vmatprep.subr.bf16.mxu1 %v25685_v27  ;;  %v14465_v38 = vsel %vm14187_vm7, %v25718_v20, 0  ;;  %v25724_v27 = vld [vmem:[%s27319_s17 + $0x184] ss:$456 sps:$4 sm:$0xff]   ;;  %v25767_v20 = vld [vmem:[%s27319_s17 + $0x1df8] ss:$456 sps:$4 sm:$0xff]  }
 0x9e9   : > { %18328 = vmatprep.subr.bf16.mxu0 %v25688_v28  ;;  %v25719_v28 = vld [vmem:[%s27319_s17 + $0x178] ss:$456 sps:$4 sm:$0xff]  }
 0x9eb   : > { %18247 = vmatpush1.bf16.msra.mxu1 %v25683_v29  ;;  %v25722_v29 = vld [vmem:[%s27319_s17 + $0x180] ss:$456 sps:$4 sm:$0xff]  }
 0x9ec   : > { %18329 = vmatpush1.bf16.msra.mxu0 %v25686_v32  ;;  %18248 = vmatprep.subr.bf16.mxu1 %v25691_v47  ;;  %v25727_v32 = vld [vmem:[%s27319_s17 + $0x50c] ss:$456 sps:$4 sm:$0xff]  }
 0x9ed   : > { %18330 = vmatprep.subr.bf16.mxu0 %v25694_v33  ;;  %v25730_v33 = vld [vmem:[%s27319_s17 + $0x514] ss:$456 sps:$4 sm:$0xff]  }
 0x9ef   : > { %18249 = vmatpush1.bf16.msra.mxu1 %v25689_v35 }
 0x9f0   : > { %18331 = vmatpush1.bf16.msra.mxu0 %v25692_v37  ;;  %18250 = vmatprep.subr.bf16.mxu1 %v25697_v43  ;;  %v25725_v43 = vld [vmem:[%s27319_s17 + $0x508] ss:$456 sps:$4 sm:$0xff]  }
 0x9f1   : > { %v17803_v30 = vpop.f32.mrb[84].mxu1  ;;  %18332 = vmatprep.subr.bf16.mxu0 %v25700_v52 }
 0x9f2   : > { %v22688_v51 = vadd.f32 %v17803_v30, %v3212_v44  ;;  %v17805_v53 = vpop.f32.mrb[85].mxu1  ;;  %v17885_v1 = vpop.f32.mrb[80].mxu0  ;;  %v25731_v30 = vld [vmem:[%s27319_s17 + $0x898] ss:$456 sps:$4 sm:$0xff]  }
 0x9f3   : > { %v22689_v54 = vadd.f32 %v17805_v53, %v3216_v45  ;;  %v22690_v55 = vadd.f32 %v17885_v1, %v3220_v46  ;;  %v17807_v56 = vpop.f32.mrb[86].mxu1  ;;  %v17887_v57 = vpop.f32.mrb[81].mxu0  ;;  %18251 = vmatpush1.bf16.msra.mxu1 %v25695_v63  ;;  %v25728_v45 = vld [vmem:[%s27319_s17 + $0x510] ss:$456 sps:$4 sm:$0xff]   ;;  %v25733_v46 = vld [vmem:[%s27319_s17 + $0x89c] ss:$456 sps:$4 sm:$0xff]  }
 0x9f4   : > { %v19282_v60 = vsub.f32 0.0, %v22688_v51  ;;  %v22691_v61 = vadd.f32 %v17887_v57, %v3224_v48  ;;  %v17808_v62 = vpop.f32.mrb[87].mxu1  ;;  %v17889_v4 = vpop.f32.mrb[82].mxu0  ;;  %18333 = vmatpush1.bf16.msra.mxu0 %v25698_v58  ;;  %18261 = vmatprep.subr.bf16.mxu1 %v25703_v49  ;;  %v25736_v58 = vld [vmem:[%s27319_s17 + $0x8a4] ss:$456 sps:$4 sm:$0xff]  }
 0x9f5   : > { %v19283_v0 = vsub.f32 0.0, %v22689_v54  ;;  %v19284_v5 = vsub.f32 0.0, %v22690_v55  ;;  %v17890_v6 = vpop.f32.mrb[83].mxu0  ;;  %18343 = vmatprep.subr.bf16.mxu0 %v25706_v50  ;;  %v25734_v50 = vld [vmem:[%s27319_s17 + $0x8a0] ss:$456 sps:$4 sm:$0xff]  }
 0x9f6   : > { %v19474_v24 = vmul.f32 1.442695, %v19282_v60  ;;  %v19285_v11 = vsub.f32 0.0, %v22691_v61  ;;  %18253 = vmatmul.mubr.bf16.vlgmr.msra.gmra.mrb[96].mxu1 %v27535_v40  ;;  %v25739_v51 = vld [vmem:[%s27319_s17 + $0xc2c] ss:$456 sps:$4 sm:$0xff]  }
 0x9f7   : > { %v19476_v13 = vmul.f32 1.442695, %v19283_v0  ;;  %v19478_v14 = vmul.f32 1.442695, %v19284_v5  ;;  %18262 = vmatpush1.bf16.msra.mxu1 %v25701_v59  ;;  %18335 = vmatmul.mubr.bf16.vlgmr.msra.gmra.mrb[92].mxu0 %v27535_v40  ;;  %v25742_v53 = vld [vmem:[%s27319_s17 + $0xc34] ss:$456 sps:$4 sm:$0xff]  }
 0x9f8   : > { %26603 = vpow2.f32 %v19474_v24  ;;  %v19480_v31 = vmul.f32 1.442695, %v19285_v11  ;;  %18344 = vmatpush1.bf16.msra.mxu0 %v25704_v9  ;;  %18263 = vmatprep.subr.bf16.mxu1 %v25709_v15  ;;  %v25737_v1 = vld [vmem:[%s27319_s17 + $0xc28] ss:$456 sps:$4 sm:$0xff]   ;;  %v25745_v55 = vld [vmem:[%s27319_s17 + $0xfbc] ss:$456 sps:$4 sm:$0xff]  }
 0x9f9   : > { %26605 = vpow2.f32 %v19476_v13  ;;  %18345 = vmatprep.subr.bf16.mxu0 %v25712_v10  ;;  %18293 = vmatprep.mubr.bf16.mxu1 %v27007_v16  ;;  %v25740_v54 = vld [vmem:[%s27319_s17 + $0xc30] ss:$456 sps:$4 sm:$0xff]   ;;  %v25748_v56 = vld [vmem:[%s27319_s17 + $0xfc4] ss:$456 sps:$4 sm:$0xff]   ;;  %v25746_v60 = vld [vmem:[%s27319_s17 + $0xfc0] ss:$456 sps:$4 sm:$0xff]  }
 0x9fa   : > { %26607 = vpow2.f32 %v19478_v14  ;;  %18375 = vmatprep.mubr.bf16.mxu0 %v27007_v16  ;;  %v25743_v59 = vld [vmem:[%s27319_s17 + $0xfb8] ss:$456 sps:$4 sm:$0xff]   ;;  %v25751_v61 = vld [vmem:[%s27319_s17 + $0x134c] ss:$456 sps:$4 sm:$0xff]   ;;  %v25749_v6 = vld [vmem:[%s27319_s17 + $0x1348] ss:$456 sps:$4 sm:$0xff]  }
 0x9fb   : > { %26609 = vpow2.f32 %v19480_v31  ;;  %18264 = vmatpush1.bf16.msra.mxu1 %v25707_v8  ;;  %v25754_v15 = vld [vmem:[%s27319_s17 + $0x1354] ss:$456 sps:$4 sm:$0xff]   ;;  %v25752_v8 = vld [vmem:[%s27319_s17 + $0x1350] ss:$456 sps:$4 sm:$0xff]   ;;  %v25760_v24 = vld [vmem:[%s27319_s17 + $0x16e4] ss:$456 sps:$4 sm:$0xff]  }
 0x9fc   : > { %18346 = vmatpush1.bf16.msra.mxu0 %v25710_v17  ;;  %22489 = vmatprep.subr.msk.bf16.mxu1 %vm14187_vm7, %v25713_v12  ;;  %v25757_v10 = vld [vmem:[%s27319_s17 + $0x16dc] ss:$456 sps:$4 sm:$0xff]   ;;  %v25755_v11 = vld [vmem:[%s27319_s17 + $0x16d8] ss:$456 sps:$4 sm:$0xff]   ;;  %v25763_v13 = vld [vmem:[%s27319_s17 + $0x1a6c] ss:$456 sps:$4 sm:$0xff]  }
 0x9fd   : > { %22491 = vmatprep.subr.msk.bf16.mxu0 %vm14187_vm7, %v25716_v19  ;;  %v25758_v12 = vld [vmem:[%s27319_s17 + $0x16e0] ss:$456 sps:$4 sm:$0xff]   ;;  %v25766_v14 = vld [vmem:[%s27319_s17 + $0x1a74] ss:$456 sps:$4 sm:$0xff]   ;;  %v25764_v31 = vld [vmem:[%s27319_s17 + $0x1a70] ss:$456 sps:$4 sm:$0xff]  }
 0x9fe   : > { %v25761_v17 = vld [vmem:[%s27319_s17 + $0x1a68] ss:$456 sps:$4 sm:$0xff]   ;;  %v25772_v19 = vld [vmem:[%s27319_s17 + $0x1e04] ss:$456 sps:$4 sm:$0xff]  }
 0x9ff   : > { %18266 = vmatpush1.bf16.msra.mxu1 %v14459_v21  ;;  %v25770_v21 = vld [vmem:[%s27319_s17 + $0x1e00] ss:$456 sps:$4 sm:$0xff]  }
 0xa00   : > { %18348 = vmatpush1.bf16.msra.mxu0 %v14465_v38  ;;  %18384 = vmatprep.subr.bf16.mxu1 %v25721_v26  ;;  %v25775_v26 = vld [vmem:[%s27319_s17 + $0x218c] ss:$456 sps:$4 sm:$0xff]  }
 0xa01   : > { %18466 = vmatprep.subr.bf16.mxu0 %v25724_v27  ;;  %v25778_v38 = vld [vmem:[%s27319_s17 + $0x2194] ss:$456 sps:$4 sm:$0xff]   ;;  %v25773_v27 = vld [vmem:[%s27319_s17 + $0x2188] ss:$456 sps:$4 sm:$0xff]  }
 0xa02   : > { %v26604_v47 = vpop.eup %26603  ;;  %22490 = vmatmul.mubr.msk.bf16.vlgmr.msra.gmra.mrb[96].mxu1 %vm14183_vm8, %v27539_v42 }
 0xa03   : > { %v26606_v35 = vpop.eup %26605  ;;  %v19624_v37 = vadd.f32 1.0, %v26604_v47  ;;  %22492 = vmatmul.mubr.msk.bf16.vlgmr.msra.gmra.mrb[92].mxu0 %vm14183_vm8, %v27539_v42  ;;  %18385 = vmatpush1.bf16.msra.mxu1 %v25719_v28  ;;  %v25776_v28 = vld [vmem:[%s27319_s17 + $0x2190] ss:$456 sps:$4 sm:$0xff]  }
 0xa04   : > { %v26608_v52 = vpop.eup %26607  ;;  %v19625_v44 = vadd.f32 1.0, %v26606_v35  ;;  %18416 = vmatprep.mubr.bf16.mxu1 %v27537_v41  ;;  %18467 = vmatpush1.bf16.msra.mxu0 %v25722_v29  ;;  %v25781_v29 = vld [vmem:[%s27319_s17 + $0x251c] ss:$456 sps:$4 sm:$0xff]   ;;  %v25779_v47 = vld [vmem:[%s27319_s17 + $0x2518] ss:$456 sps:$4 sm:$0xff]  }
 0xa05   : > { %v26610_v63 = vpop.eup %26609  ;;  %26611 = vrcp.f32 %v19624_v37  ;;  %v19626_v48 = vadd.f32 1.0, %v26608_v52  ;;  %18498 = vmatprep.mubr.bf16.mxu0 %v27537_v41  ;;  %18386 = vmatprep.subr.bf16.mxu1 %v25727_v32  ;;  %v25784_v32 = vld [vmem:[%s27319_s17 + $0x2524] ss:$456 sps:$4 sm:$0xff]   ;;  %v25790_v37 = vld [vmem:[%s27319_s17 + $0x28b4] ss:$456 sps:$4 sm:$0xff]  }
 0xa06   : > { %26613 = vrcp.f32 %v19625_v44  ;;  %v19627_v49 = vadd.f32 1.0, %v26610_v63  ;;  %18468 = vmatprep.subr.bf16.mxu0 %v25730_v33  ;;  %v25782_v33 = vld [vmem:[%s27319_s17 + $0x2520] ss:$456 sps:$4 sm:$0xff]   ;;  %v25787_v35 = vld [vmem:[%s27319_s17 + $0x28ac] ss:$456 sps:$4 sm:$0xff]  }
 0xa07   : > { %26615 = vrcp.f32 %v19626_v48  ;;  %18387 = vmatpush1.bf16.msra.mxu1 %v25725_v43  ;;  %v25785_v43 = vld [vmem:[%s27319_s17 + $0x28a8] ss:$456 sps:$4 sm:$0xff]   ;;  %v25793_v44 = vld [vmem:[%s27319_s17 + $0x2c3c] ss:$456 sps:$4 sm:$0xff]   ;;  %v25799_v48 = vld [vmem:[%s27319_s17 + $0x2fcc] ss:$456 sps:$4 sm:$0xff]  }
 0xa08   : > { %26617 = vrcp.f32 %v19627_v49  ;;  %18469 = vmatpush1.bf16.msra.mxu0 %v25728_v45  ;;  %18388 = vmatprep.subr.bf16.mxu1 %v25733_v46  ;;  %v25788_v52 = vld [vmem:[%s27319_s17 + $0x28b0] ss:$456 sps:$4 sm:$0xff]   ;;  %v25796_v45 = vld [vmem:[%s27319_s17 + $0x2c44] ss:$456 sps:$4 sm:$0xff]   ;;  %v25794_v63 = vld [vmem:[%s27319_s17 + $0x2c40] ss:$456 sps:$4 sm:$0xff]  }
 0xa09   : > { %18470 = vmatprep.subr.bf16.mxu0 %v25736_v58  ;;  %v25791_v46 = vld [vmem:[%s27319_s17 + $0x2c38] ss:$456 sps:$4 sm:$0xff]   ;;  %v25802_v58 = vld [vmem:[%s27319_s17 + $0x2fd4] ss:$456 sps:$4 sm:$0xff]   ;;  %v25797_v49 = vld [vmem:[%s27319_s17 + $0x2fc8] ss:$456 sps:$4 sm:$0xff]  }
 0xa0b   : > { %18389 = vmatpush1.bf16.msra.mxu1 %v25731_v30  ;;  %v25800_v30 = vld [vmem:[%s27319_s17 + $0x2fd0] ss:$456 sps:$4 sm:$0xff]  }
 0xa0c   : > { %18471 = vmatpush1.bf16.msra.mxu0 %v25734_v50  ;;  %18390 = vmatprep.subr.bf16.mxu1 %v25739_v51  ;;  %v25805_v50 = vld [vmem:[%s27319_s17 + $0x335c] ss:$456 sps:$4 sm:$0xff]  }
 0xa0d   : > { %18472 = vmatprep.subr.bf16.mxu0 %v25742_v53  ;;  %v25808_v51 = vld [vmem:[%s27319_s17 + $0x3364] ss:$456 sps:$4 sm:$0xff]   ;;  %v25803_v53 = vld [vmem:[%s27319_s17 + $0x3358] ss:$456 sps:$4 sm:$0xff]  }
 0xa0f   : > { %v26612_v57 = vpop.eup %26611  ;;  %18391 = vmatpush1.bf16.msra.mxu1 %v25737_v1  ;;  %v25806_v1 = vld [vmem:[%s27319_s17 + $0x3360] ss:$456 sps:$4 sm:$0xff]  }
 0xa10   : > { %v26614_v9 = vpop.eup %26613  ;;  %18473 = vmatpush1.bf16.msra.mxu0 %v25740_v54  ;;  %18392 = vmatprep.subr.bf16.mxu1 %v25745_v55  ;;  %v25811_v54 = vld [vmem:[%s27319_s17 + $0x36ec] ss:$456 sps:$4 sm:$0xff]  }
 0xa11   : > { %v26616_v62 = vpop.eup %26615  ;;  %v19927_v4 = vcombine.low %v26612_v57, %v26614_v9  ;;  %18474 = vmatprep.subr.bf16.mxu0 %v25748_v56  ;;  %v25814_v55 = vld [vmem:[%s27319_s17 + $0x36f4] ss:$456 sps:$4 sm:$0xff]   ;;  %v3228_v56 = vrot.slane %v29830_v39, %v27461_v7  ;;  %v3232_v57 = vrot.slane %v29830_v39, %v27889_v22  ;;  %v25809_v9 = vld [vmem:[%s27319_s17 + $0x36e8] ss:$456 sps:$4 sm:$0xff]  }
 0xa12   : > { %v26618_v0 = vpop.eup %26617 }
 0xa13   : > { %20041 = vst [vmem:[%s27851_s14 + $0x138] sm:$0xff] %v19927_v4  ;;  %v19928_v5 = vcombine.low %v26616_v62, %v26618_v0  ;;  %18393 = vmatpush1.bf16.msra.mxu1 %v25743_v59  ;;  %v3236_v59 = vrot.slane %v29830_v39, %v27892_v23  ;;  %v25817_v62 = vld [vmem:[%s27319_s17 + $0x3a7c] ss:$456 sps:$4 sm:$0xff]  }
 0xa14   : > { %18475 = vmatpush1.bf16.msra.mxu0 %v25746_v60  ;;  %18394 = vmatprep.subr.bf16.mxu1 %v25751_v61  ;;  %v3240_v60 = vrot.slane %v29830_v39, %v27896_v25  ;;  %v25812_v61 = vld [vmem:[%s27319_s17 + $0x36f0] ss:$456 sps:$4 sm:$0xff]  }
 0xa15   : > { %20042 = vst [vmem:[%s27851_s14 + $0x140] sm:$0xff] %v19928_v5  ;;  %18476 = vmatprep.subr.bf16.mxu0 %v25754_v15  ;;  %v25820_v15 = vld [vmem:[%s27319_s17 + $0x3a84] ss:$456 sps:$4 sm:$0xff]  }
 0xa17   : > { %18395 = vmatpush1.bf16.msra.mxu1 %v25749_v6 }
 0xa18   : > { %18477 = vmatpush1.bf16.msra.mxu0 %v25752_v8  ;;  %18396 = vmatprep.subr.bf16.mxu1 %v25757_v10 }
 0xa19   : > { %18478 = vmatprep.subr.bf16.mxu0 %v25760_v24 }
 0xa1b   : > { %18397 = vmatpush1.bf16.msra.mxu1 %v25755_v11 }
 0xa1c   : > { %18479 = vmatpush1.bf16.msra.mxu0 %v25758_v12  ;;  %18398 = vmatprep.subr.bf16.mxu1 %v25763_v13  ;;  %v25815_v12 = vld [vmem:[%s27319_s17 + $0x3a78] ss:$456 sps:$4 sm:$0xff]  }
 0xa1d   : > { %18480 = vmatprep.subr.bf16.mxu0 %v25766_v14  ;;  %v25818_v13 = vld [vmem:[%s27319_s17 + $0x3a80] ss:$456 sps:$4 sm:$0xff]  }
 0xa1f   : > { %18399 = vmatpush1.bf16.msra.mxu1 %v25761_v17 }
 0xa20   : > { %18481 = vmatpush1.bf16.msra.mxu0 %v25764_v31  ;;  %18400 = vmatprep.subr.bf16.mxu1 %v25769_v18 }
 0xa21   : > { %18482 = vmatprep.subr.bf16.mxu0 %v25772_v19  ;;  %v25823_v19 = vld [vmem:[%s27319_s17 + $0x3e0c] ss:$456 sps:$4 sm:$0xff]  }
 0xa23   : > { %18401 = vmatpush1.bf16.msra.mxu1 %v25767_v20 }
 0xa24   : > { %18483 = vmatpush1.bf16.msra.mxu0 %v25770_v21  ;;  %18402 = vmatprep.subr.bf16.mxu1 %v25775_v26 }
 0xa25   : > { %18484 = vmatprep.subr.bf16.mxu0 %v25778_v38  ;;  %v25821_v38 = vld [vmem:[%s27319_s17 + $0x3e08] ss:$456 sps:$4 sm:$0xff]  }
 0xa27   : > { %18403 = vmatpush1.bf16.msra.mxu1 %v25773_v27  ;;  %v25826_v27 = vld [vmem:[%s27319_s17 + $0x3e14] ss:$456 sps:$4 sm:$0xff]  }
 0xa28   : > { %18485 = vmatpush1.bf16.msra.mxu0 %v25776_v28  ;;  %18404 = vmatprep.subr.bf16.mxu1 %v25781_v29 }
 0xa29   : > { %18486 = vmatprep.subr.bf16.mxu0 %v25784_v32  ;;  %v25827_v32 = vld [vmem:[%s27319_s17 + $0x419c] ss:$456 sps:$4 sm:$0x3f]  }
 0xa2b   : > { %18405 = vmatpush1.bf16.msra.mxu1 %v25779_v47 }
 0xa2c   : > { %18487 = vmatpush1.bf16.msra.mxu0 %v25782_v33  ;;  %18406 = vmatprep.subr.bf16.mxu1 %v25787_v35  ;;  %v25824_v35 = vld [vmem:[%s27319_s17 + $0x3e10] ss:$456 sps:$4 sm:$0xff]  }
 0xa2d   : > { %18488 = vmatprep.subr.bf16.mxu0 %v25790_v37 }
 0xa2f   : > { %18407 = vmatpush1.bf16.msra.mxu1 %v25785_v43  ;;  %v25829_v43 = vld [vmem:[%s27319_s17 + $0x4198] ss:$456 sps:$4 sm:$0x3f]  }
 0xa30   : > { %18489 = vmatpush1.bf16.msra.mxu0 %v25788_v52  ;;  %18408 = vmatprep.subr.bf16.mxu1 %v25793_v44  ;;  %v25830_v52 = vld [vmem:[%s27319_s17 + $0x41a4] ss:$456 sps:$4 sm:$0x3f]   ;;  %v25832_v44 = vld [vmem:[%s27319_s17 + $0x41a0] ss:$456 sps:$4 sm:$0x3f]  }
 0xa31   : > { %18490 = vmatprep.subr.bf16.mxu0 %v25796_v45  ;;  %v14471_v45 = vsel %vm14187_vm7, %v25829_v43, 0  ;;  %v25883_v43 = vld [vmem:[%s27319_s17 + $0x1e0c] ss:$456 sps:$4 sm:$0xff]  }
 0xa33   : > { %18409 = vmatpush1.bf16.msra.mxu1 %v25791_v46  ;;  %v25835_v46 = vld [vmem:[%s27319_s17 + $0x18c] ss:$456 sps:$4 sm:$0xff]  }
 0xa34   : > { %18491 = vmatpush1.bf16.msra.mxu0 %v25794_v63  ;;  %18410 = vmatprep.subr.bf16.mxu1 %v25799_v48  ;;  %v14477_v63 = vsel %vm14187_vm7, %v25832_v44, 0  ;;  %v25838_v48 = vld [vmem:[%s27319_s17 + $0x194] ss:$456 sps:$4 sm:$0xff]   ;;  %v25881_v44 = vld [vmem:[%s27319_s17 + $0x1e08] ss:$456 sps:$4 sm:$0xff]  }
 0xa35   : > { %18492 = vmatprep.subr.bf16.mxu0 %v25802_v58  ;;  %v25833_v58 = vld [vmem:[%s27319_s17 + $0x188] ss:$456 sps:$4 sm:$0xff]  }
 0xa37   : > { %18411 = vmatpush1.bf16.msra.mxu1 %v25797_v49  ;;  %v25836_v49 = vld [vmem:[%s27319_s17 + $0x190] ss:$456 sps:$4 sm:$0xff]  }
 0xa38   : > { %18493 = vmatpush1.bf16.msra.mxu0 %v25800_v30  ;;  %18412 = vmatprep.subr.bf16.mxu1 %v25805_v50  ;;  %v25841_v30 = vld [vmem:[%s27319_s17 + $0x51c] ss:$456 sps:$4 sm:$0xff]  }
 0xa39   : > { %18494 = vmatprep.subr.bf16.mxu0 %v25808_v51  ;;  %v25844_v51 = vld [vmem:[%s27319_s17 + $0x524] ss:$456 sps:$4 sm:$0xff]  }
 0xa3b   : > { %18413 = vmatpush1.bf16.msra.mxu1 %v25803_v53 }
 0xa3c   : > { %18495 = vmatpush1.bf16.msra.mxu0 %v25806_v1  ;;  %18414 = vmatprep.subr.bf16.mxu1 %v25811_v54  ;;  %v25839_v54 = vld [vmem:[%s27319_s17 + $0x518] ss:$456 sps:$4 sm:$0xff]  }
 0xa3d   : > { %v17967_v4 = vpop.f32.mrb[88].mxu1  ;;  %18496 = vmatprep.subr.bf16.mxu0 %v25814_v55 }
 0xa3e   : > { %v22692_v0 = vadd.f32 %v17967_v4, %v3228_v56  ;;  %v17969_v5 = vpop.f32.mrb[89].mxu1  ;;  %v18049_v6 = vpop.f32.mrb[84].mxu0  ;;  %v25845_v4 = vld [vmem:[%s27319_s17 + $0x8a8] ss:$456 sps:$4 sm:$0xff]  }
 0xa3f   : > { %v22693_v8 = vadd.f32 %v17969_v5, %v3232_v57  ;;  %v22694_v10 = vadd.f32 %v18049_v6, %v3236_v59  ;;  %v17971_v24 = vpop.f32.mrb[90].mxu1  ;;  %v18051_v11 = vpop.f32.mrb[85].mxu0  ;;  %18415 = vmatpush1.bf16.msra.mxu1 %v25809_v9  ;;  %v25842_v57 = vld [vmem:[%s27319_s17 + $0x520] ss:$456 sps:$4 sm:$0xff]   ;;  %v25847_v59 = vld [vmem:[%s27319_s17 + $0x8ac] ss:$456 sps:$4 sm:$0xff]  }
 0xa40   : > { %v19286_v14 = vsub.f32 0.0, %v22692_v0  ;;  %v22695_v17 = vadd.f32 %v18051_v11, %v3240_v60  ;;  %v17972_v31 = vpop.f32.mrb[91].mxu1  ;;  %v18053_v18 = vpop.f32.mrb[86].mxu0  ;;  %18497 = vmatpush1.bf16.msra.mxu0 %v25812_v61  ;;  %18425 = vmatprep.subr.bf16.mxu1 %v25817_v62  ;;  %v25850_v61 = vld [vmem:[%s27319_s17 + $0x8b4] ss:$456 sps:$4 sm:$0xff]  }
 0xa41   : > { %v19287_v20 = vsub.f32 0.0, %v22693_v8  ;;  %v19288_v21 = vsub.f32 0.0, %v22694_v10  ;;  %v18054_v26 = vpop.f32.mrb[87].mxu0  ;;  %18507 = vmatprep.subr.bf16.mxu0 %v25820_v15  ;;  %v25848_v15 = vld [vmem:[%s27319_s17 + $0x8b0] ss:$456 sps:$4 sm:$0xff]  }
 0xa42   : > { %v19482_v28 = vmul.f32 1.442695, %v19286_v14  ;;  %v19289_v29 = vsub.f32 0.0, %v22695_v17  ;;  %18417 = vmatmul.mubr.bf16.vlgmr.msra.gmra.mrb[100].mxu1 %v27535_v40  ;;  %v25853_v0 = vld [vmem:[%s27319_s17 + $0xc3c] ss:$456 sps:$4 sm:$0xff]  }
 0xa43   : > { %v19484_v47 = vmul.f32 1.442695, %v19287_v20  ;;  %v19486_v33 = vmul.f32 1.442695, %v19288_v21  ;;  %18426 = vmatpush1.bf16.msra.mxu1 %v25815_v12  ;;  %18499 = vmatmul.mubr.bf16.vlgmr.msra.gmra.mrb[96].mxu0 %v27535_v40  ;;  %v25856_v5 = vld [vmem:[%s27319_s17 + $0xc44] ss:$456 sps:$4 sm:$0xff]  }
 0xa44   : > { %26619 = vpow2.f32 %v19482_v28  ;;  %v19488_v37 = vmul.f32 1.442695, %v19289_v29  ;;  %18508 = vmatpush1.bf16.msra.mxu0 %v25818_v13  ;;  %18427 = vmatprep.subr.bf16.mxu1 %v25823_v19  ;;  %v25851_v6 = vld [vmem:[%s27319_s17 + $0xc38] ss:$456 sps:$4 sm:$0xff]   ;;  %v25859_v10 = vld [vmem:[%s27319_s17 + $0xfcc] ss:$456 sps:$4 sm:$0xff]  }
 0xa45   : > { %26621 = vpow2.f32 %v19484_v47  ;;  %18509 = vmatprep.subr.bf16.mxu0 %v25826_v27  ;;  %18457 = vmatprep.mubr.bf16.mxu1 %v27007_v16  ;;  %v25854_v8 = vld [vmem:[%s27319_s17 + $0xc40] ss:$456 sps:$4 sm:$0xff]   ;;  %v25862_v24 = vld [vmem:[%s27319_s17 + $0xfd4] ss:$456 sps:$4 sm:$0xff]   ;;  %v25860_v14 = vld [vmem:[%s27319_s17 + $0xfd0] ss:$456 sps:$4 sm:$0xff]  }
 0xa46   : > { %26623 = vpow2.f32 %v19486_v33  ;;  %18539 = vmatprep.mubr.bf16.mxu0 %v27007_v16  ;;  %v25857_v12 = vld [vmem:[%s27319_s17 + $0xfc8] ss:$456 sps:$4 sm:$0xff]   ;;  %v25865_v17 = vld [vmem:[%s27319_s17 + $0x135c] ss:$456 sps:$4 sm:$0xff]   ;;  %v25863_v26 = vld [vmem:[%s27319_s17 + $0x1358] ss:$456 sps:$4 sm:$0xff]  }
 0xa47   : > { %26625 = vpow2.f32 %v19488_v37  ;;  %18428 = vmatpush1.bf16.msra.mxu1 %v25821_v38  ;;  %v25868_v19 = vld [vmem:[%s27319_s17 + $0x1364] ss:$456 sps:$4 sm:$0xff]   ;;  %v25866_v38 = vld [vmem:[%s27319_s17 + $0x1360] ss:$456 sps:$4 sm:$0xff]   ;;  %v25874_v28 = vld [vmem:[%s27319_s17 + $0x16f4] ss:$456 sps:$4 sm:$0xff]  }
 0xa48   : > { %18510 = vmatpush1.bf16.msra.mxu0 %v25824_v35  ;;  %22493 = vmatprep.subr.msk.bf16.mxu1 %vm14187_vm7, %v25827_v32  ;;  %v25871_v27 = vld [vmem:[%s27319_s17 + $0x16ec] ss:$456 sps:$4 sm:$0xff]   ;;  %v25869_v29 = vld [vmem:[%s27319_s17 + $0x16e8] ss:$456 sps:$4 sm:$0xff]   ;;  %v25877_v47 = vld [vmem:[%s27319_s17 + $0x1a7c] ss:$456 sps:$4 sm:$0xff]  }
 0xa49   : > { %22495 = vmatprep.subr.msk.bf16.mxu0 %vm14187_vm7, %v25830_v52  ;;  %v25872_v32 = vld [vmem:[%s27319_s17 + $0x16f0] ss:$456 sps:$4 sm:$0xff]   ;;  %v25880_v33 = vld [vmem:[%s27319_s17 + $0x1a84] ss:$456 sps:$4 sm:$0xff]   ;;  %v25878_v37 = vld [vmem:[%s27319_s17 + $0x1a80] ss:$456 sps:$4 sm:$0xff]  }
 0xa4a   : > { %v25875_v35 = vld [vmem:[%s27319_s17 + $0x1a78] ss:$456 sps:$4 sm:$0xff]   ;;  %v25886_v52 = vld [vmem:[%s27319_s17 + $0x1e14] ss:$456 sps:$4 sm:$0xff]  }
 0xa4b   : > { %18430 = vmatpush1.bf16.msra.mxu1 %v14471_v45  ;;  %v25884_v45 = vld [vmem:[%s27319_s17 + $0x1e10] ss:$456 sps:$4 sm:$0xff]  }
 0xa4c   : > { %18512 = vmatpush1.bf16.msra.mxu0 %v14477_v63  ;;  %18548 = vmatprep.subr.bf16.mxu1 %v25835_v46  ;;  %v25889_v46 = vld [vmem:[%s27319_s17 + $0x219c] ss:$456 sps:$4 sm:$0xff]  }
 0xa4d   : > { %18630 = vmatprep.subr.bf16.mxu0 %v25838_v48  ;;  %v25892_v63 = vld [vmem:[%s27319_s17 + $0x21a4] ss:$456 sps:$4 sm:$0xff]   ;;  %v25887_v48 = vld [vmem:[%s27319_s17 + $0x2198] ss:$456 sps:$4 sm:$0xff]  }
 0xa4e   : > { %v26620_v50 = vpop.eup %26619  ;;  %22494 = vmatmul.mubr.msk.bf16.vlgmr.msra.gmra.mrb[100].mxu1 %vm14183_vm8, %v27539_v42 }
 0xa4f   : > { %v26622_v53 = vpop.eup %26621  ;;  %v19628_v1 = vadd.f32 1.0, %v26620_v50  ;;  %22496 = vmatmul.mubr.msk.bf16.vlgmr.msra.gmra.mrb[96].mxu0 %vm14183_vm8, %v27539_v42  ;;  %18549 = vmatpush1.bf16.msra.mxu1 %v25833_v58  ;;  %v25890_v58 = vld [vmem:[%s27319_s17 + $0x21a0] ss:$456 sps:$4 sm:$0xff]  }
 0xa50   : > { %v26624_v55 = vpop.eup %26623  ;;  %v19629_v56 = vadd.f32 1.0, %v26622_v53  ;;  %18580 = vmatprep.mubr.bf16.mxu1 %v27537_v41  ;;  %18631 = vmatpush1.bf16.msra.mxu0 %v25836_v49  ;;  %v25895_v49 = vld [vmem:[%s27319_s17 + $0x252c] ss:$456 sps:$4 sm:$0xff]   ;;  %v25893_v50 = vld [vmem:[%s27319_s17 + $0x2528] ss:$456 sps:$4 sm:$0xff]  }
 0xa51   : > { %v26626_v9 = vpop.eup %26625  ;;  %26627 = vrcp.f32 %v19628_v1  ;;  %v19630_v60 = vadd.f32 1.0, %v26624_v55  ;;  %18662 = vmatprep.mubr.bf16.mxu0 %v27537_v41  ;;  %18550 = vmatprep.subr.bf16.mxu1 %v25841_v30  ;;  %v25898_v30 = vld [vmem:[%s27319_s17 + $0x2534] ss:$456 sps:$4 sm:$0xff]   ;;  %v25904_v1 = vld [vmem:[%s27319_s17 + $0x28c4] ss:$456 sps:$4 sm:$0xff]  }
 0xa52   : > { %26629 = vrcp.f32 %v19629_v56  ;;  %v19631_v62 = vadd.f32 1.0, %v26626_v9  ;;  %18632 = vmatprep.subr.bf16.mxu0 %v25844_v51  ;;  %v25896_v51 = vld [vmem:[%s27319_s17 + $0x2530] ss:$456 sps:$4 sm:$0xff]   ;;  %v25901_v53 = vld [vmem:[%s27319_s17 + $0x28bc] ss:$456 sps:$4 sm:$0xff]  }
 0xa53   : > { %26631 = vrcp.f32 %v19630_v60  ;;  %18551 = vmatpush1.bf16.msra.mxu1 %v25839_v54  ;;  %v25899_v54 = vld [vmem:[%s27319_s17 + $0x28b8] ss:$456 sps:$4 sm:$0xff]   ;;  %v25907_v56 = vld [vmem:[%s27319_s17 + $0x2c4c] ss:$456 sps:$4 sm:$0xff]   ;;  %v25913_v60 = vld [vmem:[%s27319_s17 + $0x2fdc] ss:$456 sps:$4 sm:$0xff]  }
 0xa54   : > { %26633 = vrcp.f32 %v19631_v62  ;;  %18633 = vmatpush1.bf16.msra.mxu0 %v25842_v57  ;;  %18552 = vmatprep.subr.bf16.mxu1 %v25847_v59  ;;  %v25902_v55 = vld [vmem:[%s27319_s17 + $0x28c0] ss:$456 sps:$4 sm:$0xff]   ;;  %v25910_v57 = vld [vmem:[%s27319_s17 + $0x2c54] ss:$456 sps:$4 sm:$0xff]   ;;  %v25908_v9 = vld [vmem:[%s27319_s17 + $0x2c50] ss:$456 sps:$4 sm:$0xff]  }
 0xa55   : > { %18634 = vmatprep.subr.bf16.mxu0 %v25850_v61  ;;  %v25905_v59 = vld [vmem:[%s27319_s17 + $0x2c48] ss:$456 sps:$4 sm:$0xff]   ;;  %v25916_v61 = vld [vmem:[%s27319_s17 + $0x2fe4] ss:$456 sps:$4 sm:$0xff]   ;;  %v25911_v62 = vld [vmem:[%s27319_s17 + $0x2fd8] ss:$456 sps:$4 sm:$0xff]  }
 0xa57   : > { %18553 = vmatpush1.bf16.msra.mxu1 %v25845_v4  ;;  %v25914_v4 = vld [vmem:[%s27319_s17 + $0x2fe0] ss:$456 sps:$4 sm:$0xff]  }
 0xa58   : > { %18635 = vmatpush1.bf16.msra.mxu0 %v25848_v15  ;;  %18554 = vmatprep.subr.bf16.mxu1 %v25853_v0  ;;  %v25919_v15 = vld [vmem:[%s27319_s17 + $0x336c] ss:$456 sps:$4 sm:$0xff]  }
 0xa59   : > { %18636 = vmatprep.subr.bf16.mxu0 %v25856_v5  ;;  %v25922_v0 = vld [vmem:[%s27319_s17 + $0x3374] ss:$456 sps:$4 sm:$0xff]   ;;  %v25917_v5 = vld [vmem:[%s27319_s17 + $0x3368] ss:$456 sps:$4 sm:$0xff]  }
 0xa5b   : > { %v26628_v11 = vpop.eup %26627  ;;  %18555 = vmatpush1.bf16.msra.mxu1 %v25851_v6  ;;  %v25920_v6 = vld [vmem:[%s27319_s17 + $0x3370] ss:$456 sps:$4 sm:$0xff]  }
 0xa5c   : > { %v26630_v13 = vpop.eup %26629  ;;  %18637 = vmatpush1.bf16.msra.mxu0 %v25854_v8  ;;  %18556 = vmatprep.subr.bf16.mxu1 %v25859_v10  ;;  %v30033_v8 = vld [vmem:[%s27786_s21 + $0x58] sm:$0xff] }
 0xa5d   : > { %v26632_v31 = vpop.eup %26631  ;;  %v19929_v18 = vcombine.low %v26628_v11, %v26630_v13  ;;  %18638 = vmatprep.subr.bf16.mxu0 %v25862_v24  ;;  %v25925_v10 = vld [vmem:[%s27319_s17 + $0x36fc] ss:$456 sps:$4 sm:$0xff]   ;;  %v3244_v11 = vrot.slane %v29830_v39, %v27996_v34  ;;  %v3252_v13 = vrot.slane %v30033_v8, %v27453_v2 }
 0xa5e   : > { %v26634_v20 = vpop.eup %26633  ;;  %v25928_v24 = vld [vmem:[%s27319_s17 + $0x3704] ss:$456 sps:$4 sm:$0xff]  }
 0xa5f   : > { %20043 = vst [vmem:[%s27851_s14 + $0x148] sm:$0xff] %v19929_v18  ;;  %v19930_v21 = vcombine.low %v26632_v31, %v26634_v20  ;;  %18557 = vmatpush1.bf16.msra.mxu1 %v25857_v12  ;;  %v3248_v12 = vrot.slane %v29830_v39, %v28000_v36  ;;  %v25926_v31 = vld [vmem:[%s27319_s17 + $0x3700] ss:$456 sps:$4 sm:$0xff]   ;;  %v25931_v18 = vld [vmem:[%s27319_s17 + $0x3a8c] ss:$456 sps:$4 sm:$0xff]  }
 0xa60   : > { %18639 = vmatpush1.bf16.msra.mxu0 %v25860_v14  ;;  %18558 = vmatprep.subr.bf16.mxu1 %v25865_v17  ;;  %v25923_v14 = vld [vmem:[%s27319_s17 + $0x36f8] ss:$456 sps:$4 sm:$0xff]   ;;  %v3256_v17 = vrot.slane %v30033_v8, %v27456_v3  ;;  %v25934_v20 = vld [vmem:[%s27319_s17 + $0x3a94] ss:$456 sps:$4 sm:$0xff]  }
 0xa61   : > { %20044 = vst [vmem:[%s27851_s14 + $0x150] sm:$0xff] %v19930_v21  ;;  %18640 = vmatprep.subr.bf16.mxu0 %v25868_v19 }
 0xa63   : > { %18559 = vmatpush1.bf16.msra.mxu1 %v25863_v26 }
 0xa64   : > { %18641 = vmatpush1.bf16.msra.mxu0 %v25866_v38  ;;  %18560 = vmatprep.subr.bf16.mxu1 %v25871_v27 }
 0xa65   : > { %18642 = vmatprep.subr.bf16.mxu0 %v25874_v28 }
 0xa67   : > { %18561 = vmatpush1.bf16.msra.mxu1 %v25869_v29 }
 0xa68   : > { %18643 = vmatpush1.bf16.msra.mxu0 %v25872_v32  ;;  %18562 = vmatprep.subr.bf16.mxu1 %v25877_v47  ;;  %v25929_v32 = vld [vmem:[%s27319_s17 + $0x3a88] ss:$456 sps:$4 sm:$0xff]  }
 0xa69   : > { %18644 = vmatprep.subr.bf16.mxu0 %v25880_v33  ;;  %v25932_v47 = vld [vmem:[%s27319_s17 + $0x3a90] ss:$456 sps:$4 sm:$0xff]  }
 0xa6b   : > { %18563 = vmatpush1.bf16.msra.mxu1 %v25875_v35 }
 0xa6c   : > { %18645 = vmatpush1.bf16.msra.mxu0 %v25878_v37  ;;  %18564 = vmatprep.subr.bf16.mxu1 %v25883_v43 }
 0xa6d   : > { %18646 = vmatprep.subr.bf16.mxu0 %v25886_v52  ;;  %v25937_v52 = vld [vmem:[%s27319_s17 + $0x3e1c] ss:$456 sps:$4 sm:$0xff]  }
 0xa6f   : > { %18565 = vmatpush1.bf16.msra.mxu1 %v25881_v44 }
 0xa70   : > { %18647 = vmatpush1.bf16.msra.mxu0 %v25884_v45  ;;  %18566 = vmatprep.subr.bf16.mxu1 %v25889_v46 }
 0xa71   : > { %18648 = vmatprep.subr.bf16.mxu0 %v25892_v63  ;;  %v25935_v63 = vld [vmem:[%s27319_s17 + $0x3e18] ss:$456 sps:$4 sm:$0xff]  }
 0xa73   : > { %18567 = vmatpush1.bf16.msra.mxu1 %v25887_v48  ;;  %v25940_v48 = vld [vmem:[%s27319_s17 + $0x3e24] ss:$456 sps:$4 sm:$0xff]  }
 0xa74   : > { %18649 = vmatpush1.bf16.msra.mxu0 %v25890_v58  ;;  %18568 = vmatprep.subr.bf16.mxu1 %v25895_v49 }
 0xa75   : > { %18650 = vmatprep.subr.bf16.mxu0 %v25898_v30  ;;  %v25941_v30 = vld [vmem:[%s27319_s17 + $0x41ac] ss:$456 sps:$4 sm:$0x3f]  }
 0xa77   : > { %18569 = vmatpush1.bf16.msra.mxu1 %v25893_v50 }
 0xa78   : > { %18651 = vmatpush1.bf16.msra.mxu0 %v25896_v51  ;;  %18570 = vmatprep.subr.bf16.mxu1 %v25901_v53  ;;  %v25938_v53 = vld [vmem:[%s27319_s17 + $0x3e20] ss:$456 sps:$4 sm:$0xff]  }
 0xa79   : > { %18652 = vmatprep.subr.bf16.mxu0 %v25904_v1 }
 0xa7b   : > { %18571 = vmatpush1.bf16.msra.mxu1 %v25899_v54  ;;  %v25943_v54 = vld [vmem:[%s27319_s17 + $0x41a8] ss:$456 sps:$4 sm:$0x3f]  }
 0xa7c   : > { %18653 = vmatpush1.bf16.msra.mxu0 %v25902_v55  ;;  %18572 = vmatprep.subr.bf16.mxu1 %v25907_v56  ;;  %v25944_v55 = vld [vmem:[%s27319_s17 + $0x41b4] ss:$456 sps:$4 sm:$0x3f]   ;;  %v25946_v56 = vld [vmem:[%s27319_s17 + $0x41b0] ss:$456 sps:$4 sm:$0x3f]  }
 0xa7d   : > { %18654 = vmatprep.subr.bf16.mxu0 %v25910_v57  ;;  %v14483_v57 = vsel %vm14187_vm7, %v25943_v54, 0  ;;  %v25997_v54 = vld [vmem:[%s27319_s17 + $0x1e1c] ss:$456 sps:$4 sm:$0xff]  }
 0xa7f   : > { %18573 = vmatpush1.bf16.msra.mxu1 %v25905_v59  ;;  %v25949_v59 = vld [vmem:[%s27319_s17 + $0x19c] ss:$456 sps:$4 sm:$0xff]  }
 0xa80   : > { %18655 = vmatpush1.bf16.msra.mxu0 %v25908_v9  ;;  %18574 = vmatprep.subr.bf16.mxu1 %v25913_v60  ;;  %v14489_v9 = vsel %vm14187_vm7, %v25946_v56, 0  ;;  %v25952_v60 = vld [vmem:[%s27319_s17 + $0x1a4] ss:$456 sps:$4 sm:$0xff]   ;;  %v25995_v56 = vld [vmem:[%s27319_s17 + $0x1e18] ss:$456 sps:$4 sm:$0xff]  }
 0xa81   : > { %18656 = vmatprep.subr.bf16.mxu0 %v25916_v61  ;;  %v25947_v61 = vld [vmem:[%s27319_s17 + $0x198] ss:$456 sps:$4 sm:$0xff]  }
 0xa83   : > { %18575 = vmatpush1.bf16.msra.mxu1 %v25911_v62  ;;  %v25950_v62 = vld [vmem:[%s27319_s17 + $0x1a0] ss:$456 sps:$4 sm:$0xff]  }
 0xa84   : > { %18657 = vmatpush1.bf16.msra.mxu0 %v25914_v4  ;;  %18576 = vmatprep.subr.bf16.mxu1 %v25919_v15  ;;  %v25955_v4 = vld [vmem:[%s27319_s17 + $0x52c] ss:$456 sps:$4 sm:$0xff]  }
 0xa85   : > { %18658 = vmatprep.subr.bf16.mxu0 %v25922_v0  ;;  %v25958_v0 = vld [vmem:[%s27319_s17 + $0x534] ss:$456 sps:$4 sm:$0xff]  }
 0xa87   : > { %18577 = vmatpush1.bf16.msra.mxu1 %v25917_v5 }
 0xa88   : > { %18659 = vmatpush1.bf16.msra.mxu0 %v25920_v6  ;;  %18578 = vmatprep.subr.bf16.mxu1 %v25925_v10  ;;  %v25953_v10 = vld [vmem:[%s27319_s17 + $0x528] ss:$456 sps:$4 sm:$0xff]  }
 0xa89   : > { %v18131_v19 = vpop.f32.mrb[92].mxu1  ;;  %18660 = vmatprep.subr.bf16.mxu0 %v25928_v24 }
 0xa8a   : > { %v22696_v21 = vadd.f32 %v18131_v19, %v3244_v11  ;;  %v18133_v26 = vpop.f32.mrb[93].mxu1  ;;  %v18213_v39 = vpop.f32.mrb[88].mxu0  ;;  %v25959_v19 = vld [vmem:[%s27319_s17 + $0x8b8] ss:$456 sps:$4 sm:$0xff]  }
 0xa8b   : > { %v22697_v38 = vadd.f32 %v18133_v26, %v3248_v12  ;;  %v22698_v27 = vadd.f32 %v18213_v39, %v3252_v13  ;;  %v18135_v28 = vpop.f32.mrb[94].mxu1  ;;  %v18215_v29 = vpop.f32.mrb[89].mxu0  ;;  %18579 = vmatpush1.bf16.msra.mxu1 %v25923_v14  ;;  %v25956_v12 = vld [vmem:[%s27319_s17 + $0x530] ss:$456 sps:$4 sm:$0xff]   ;;  %v25961_v13 = vld [vmem:[%s27319_s17 + $0x8bc] ss:$456 sps:$4 sm:$0xff]  }
 0xa8c   : > { %v19290_v33 = vsub.f32 0.0, %v22696_v21  ;;  %v22699_v35 = vadd.f32 %v18215_v29, %v3256_v17  ;;  %v18136_v37 = vpop.f32.mrb[95].mxu1  ;;  %v18217_v43 = vpop.f32.mrb[90].mxu0  ;;  %18661 = vmatpush1.bf16.msra.mxu0 %v25926_v31  ;;  %18589 = vmatprep.subr.bf16.mxu1 %v25931_v18  ;;  %v25964_v31 = vld [vmem:[%s27319_s17 + $0x8c4] ss:$456 sps:$4 sm:$0xff]  }
 0xa8d   : > { %v19291_v44 = vsub.f32 0.0, %v22697_v38  ;;  %v19292_v45 = vsub.f32 0.0, %v22698_v27  ;;  %v18218_v46 = vpop.f32.mrb[91].mxu0  ;;  %18671 = vmatprep.subr.bf16.mxu0 %v25934_v20  ;;  %v25962_v20 = vld [vmem:[%s27319_s17 + $0x8c0] ss:$456 sps:$4 sm:$0xff]  }
 0xa8e   : > { %v19490_v58 = vmul.f32 1.442695, %v19290_v33  ;;  %v19293_v49 = vsub.f32 0.0, %v22699_v35  ;;  %18581 = vmatmul.mubr.bf16.vlgmr.msra.gmra.mrb[104].mxu1 %v27535_v40  ;;  %v25967_v21 = vld [vmem:[%s27319_s17 + $0xc4c] ss:$456 sps:$4 sm:$0xff]  }
 0xa8f   : > { %v19492_v50 = vmul.f32 1.442695, %v19291_v44  ;;  %v19494_v51 = vmul.f32 1.442695, %v19292_v45  ;;  %18590 = vmatpush1.bf16.msra.mxu1 %v25929_v32  ;;  %18663 = vmatmul.mubr.bf16.vlgmr.msra.gmra.mrb[100].mxu0 %v27535_v40  ;;  %v25970_v26 = vld [vmem:[%s27319_s17 + $0xc54] ss:$456 sps:$4 sm:$0xff]  }
 0xa90   : > { %26635 = vpow2.f32 %v19490_v58  ;;  %v19496_v1 = vmul.f32 1.442695, %v19293_v49  ;;  %18672 = vmatpush1.bf16.msra.mxu0 %v25932_v47  ;;  %18591 = vmatprep.subr.bf16.mxu1 %v25937_v52  ;;  %v25965_v39 = vld [vmem:[%s27319_s17 + $0xc48] ss:$456 sps:$4 sm:$0xff]   ;;  %v25973_v27 = vld [vmem:[%s27319_s17 + $0xfdc] ss:$456 sps:$4 sm:$0xff]  }
 0xa91   : > { %26637 = vpow2.f32 %v19492_v50  ;;  %18673 = vmatprep.subr.bf16.mxu0 %v25940_v48  ;;  %18621 = vmatprep.mubr.bf16.mxu1 %v27007_v16  ;;  %v25968_v38 = vld [vmem:[%s27319_s17 + $0xc50] ss:$456 sps:$4 sm:$0xff]   ;;  %v25976_v28 = vld [vmem:[%s27319_s17 + $0xfe4] ss:$456 sps:$4 sm:$0xff]   ;;  %v25974_v33 = vld [vmem:[%s27319_s17 + $0xfe0] ss:$456 sps:$4 sm:$0xff]  }
 0xa92   : > { %26639 = vpow2.f32 %v19494_v51  ;;  %18703 = vmatprep.mubr.bf16.mxu0 %v27007_v16  ;;  %v25971_v32 = vld [vmem:[%s27319_s17 + $0xfd8] ss:$456 sps:$4 sm:$0xff]   ;;  %v25979_v35 = vld [vmem:[%s27319_s17 + $0x136c] ss:$456 sps:$4 sm:$0xff]   ;;  %v25977_v46 = vld [vmem:[%s27319_s17 + $0x1368] ss:$456 sps:$4 sm:$0xff]  }
 0xa93   : > { %26641 = vpow2.f32 %v19496_v1  ;;  %18592 = vmatpush1.bf16.msra.mxu1 %v25935_v63  ;;  %v25982_v52 = vld [vmem:[%s27319_s17 + $0x1374] ss:$456 sps:$4 sm:$0xff]   ;;  %v25980_v63 = vld [vmem:[%s27319_s17 + $0x1370] ss:$456 sps:$4 sm:$0xff]   ;;  %v25988_v58 = vld [vmem:[%s27319_s17 + $0x1704] ss:$456 sps:$4 sm:$0xff]  }
 0xa94   : > { %18674 = vmatpush1.bf16.msra.mxu0 %v25938_v53  ;;  %22497 = vmatprep.subr.msk.bf16.mxu1 %vm14187_vm7, %v25941_v30  ;;  %v25985_v48 = vld [vmem:[%s27319_s17 + $0x16fc] ss:$456 sps:$4 sm:$0xff]   ;;  %v25983_v49 = vld [vmem:[%s27319_s17 + $0x16f8] ss:$456 sps:$4 sm:$0xff]   ;;  %v25991_v50 = vld [vmem:[%s27319_s17 + $0x1a8c] ss:$456 sps:$4 sm:$0xff]  }
 0xa95   : > { %22499 = vmatprep.subr.msk.bf16.mxu0 %vm14187_vm7, %v25944_v55  ;;  %v25986_v30 = vld [vmem:[%s27319_s17 + $0x1700] ss:$456 sps:$4 sm:$0xff]   ;;  %v25994_v51 = vld [vmem:[%s27319_s17 + $0x1a94] ss:$456 sps:$4 sm:$0xff]   ;;  %v25992_v1 = vld [vmem:[%s27319_s17 + $0x1a90] ss:$456 sps:$4 sm:$0xff]  }
 0xa96   : > { %v25989_v53 = vld [vmem:[%s27319_s17 + $0x1a88] ss:$456 sps:$4 sm:$0xff]   ;;  %v26000_v55 = vld [vmem:[%s27319_s17 + $0x1e24] ss:$456 sps:$4 sm:$0xff]  }
 0xa97   : > { %18594 = vmatpush1.bf16.msra.mxu1 %v14483_v57  ;;  %v25998_v57 = vld [vmem:[%s27319_s17 + $0x1e20] ss:$456 sps:$4 sm:$0xff]  }
 0xa98   : > { %18676 = vmatpush1.bf16.msra.mxu0 %v14489_v9  ;;  %18712 = vmatprep.subr.bf16.mxu1 %v25949_v59  ;;  %v26003_v59 = vld [vmem:[%s27319_s17 + $0x21ac] ss:$456 sps:$4 sm:$0xff]  }
 0xa99   : > { %18794 = vmatprep.subr.bf16.mxu0 %v25952_v60  ;;  %v26006_v9 = vld [vmem:[%s27319_s17 + $0x21b4] ss:$456 sps:$4 sm:$0xff]   ;;  %v26001_v60 = vld [vmem:[%s27319_s17 + $0x21a8] ss:$456 sps:$4 sm:$0xff]  }
 0xa9a   : > { %v26636_v15 = vpop.eup %26635  ;;  %22498 = vmatmul.mubr.msk.bf16.vlgmr.msra.gmra.mrb[104].mxu1 %vm14183_vm8, %v27539_v42 }
 0xa9b   : > { %v26638_v5 = vpop.eup %26637  ;;  %v19632_v6 = vadd.f32 1.0, %v26636_v15  ;;  %22500 = vmatmul.mubr.msk.bf16.vlgmr.msra.gmra.mrb[100].mxu0 %vm14183_vm8, %v27539_v42  ;;  %18713 = vmatpush1.bf16.msra.mxu1 %v25947_v61  ;;  %v26004_v61 = vld [vmem:[%s27319_s17 + $0x21b0] ss:$456 sps:$4 sm:$0xff]  }
 0xa9c   : > { %v26640_v24 = vpop.eup %26639  ;;  %v19633_v11 = vadd.f32 1.0, %v26638_v5  ;;  %18744 = vmatprep.mubr.bf16.mxu1 %v27537_v41  ;;  %18795 = vmatpush1.bf16.msra.mxu0 %v25950_v62  ;;  %v26009_v62 = vld [vmem:[%s27319_s17 + $0x253c] ss:$456 sps:$4 sm:$0xff]   ;;  %v26007_v15 = vld [vmem:[%s27319_s17 + $0x2538] ss:$456 sps:$4 sm:$0xff]  }
 0xa9d   : > { %v26642_v14 = vpop.eup %26641  ;;  %26643 = vrcp.f32 %v19632_v6  ;;  %v19634_v17 = vadd.f32 1.0, %v26640_v24  ;;  %18826 = vmatprep.mubr.bf16.mxu0 %v27537_v41  ;;  %18714 = vmatprep.subr.bf16.mxu1 %v25955_v4  ;;  %v26012_v4 = vld [vmem:[%s27319_s17 + $0x2544] ss:$456 sps:$4 sm:$0xff]   ;;  %v26018_v6 = vld [vmem:[%s27319_s17 + $0x28d4] ss:$456 sps:$4 sm:$0xff]  }
 0xa9e   : > { %26645 = vrcp.f32 %v19633_v11  ;;  %v19635_v18 = vadd.f32 1.0, %v26642_v14  ;;  %18796 = vmatprep.subr.bf16.mxu0 %v25958_v0  ;;  %v26010_v0 = vld [vmem:[%s27319_s17 + $0x2540] ss:$456 sps:$4 sm:$0xff]   ;;  %v26015_v5 = vld [vmem:[%s27319_s17 + $0x28cc] ss:$456 sps:$4 sm:$0xff]  }
 0xa9f   : > { %26647 = vrcp.f32 %v19634_v17  ;;  %18715 = vmatpush1.bf16.msra.mxu1 %v25953_v10  ;;  %v26013_v10 = vld [vmem:[%s27319_s17 + $0x28c8] ss:$456 sps:$4 sm:$0xff]   ;;  %v26021_v11 = vld [vmem:[%s27319_s17 + $0x2c5c] ss:$456 sps:$4 sm:$0xff]   ;;  %v26027_v17 = vld [vmem:[%s27319_s17 + $0x2fec] ss:$456 sps:$4 sm:$0xff]  }
 0xaa0   : > { %26649 = vrcp.f32 %v19635_v18  ;;  %18797 = vmatpush1.bf16.msra.mxu0 %v25956_v12  ;;  %18716 = vmatprep.subr.bf16.mxu1 %v25961_v13  ;;  %v26016_v24 = vld [vmem:[%s27319_s17 + $0x28d0] ss:$456 sps:$4 sm:$0xff]   ;;  %v26024_v12 = vld [vmem:[%s27319_s17 + $0x2c64] ss:$456 sps:$4 sm:$0xff]   ;;  %v26022_v14 = vld [vmem:[%s27319_s17 + $0x2c60] ss:$456 sps:$4 sm:$0xff]  }
 0xaa1   : > { %18798 = vmatprep.subr.bf16.mxu0 %v25964_v31  ;;  %v26019_v13 = vld [vmem:[%s27319_s17 + $0x2c58] ss:$456 sps:$4 sm:$0xff]   ;;  %v26030_v31 = vld [vmem:[%s27319_s17 + $0x2ff4] ss:$456 sps:$4 sm:$0xff]   ;;  %v26025_v18 = vld [vmem:[%s27319_s17 + $0x2fe8] ss:$456 sps:$4 sm:$0xff]  }
 0xaa3   : > { %18717 = vmatpush1.bf16.msra.mxu1 %v25959_v19  ;;  %v26028_v19 = vld [vmem:[%s27319_s17 + $0x2ff0] ss:$456 sps:$4 sm:$0xff]  }
 0xaa4   : > { %18799 = vmatpush1.bf16.msra.mxu0 %v25962_v20  ;;  %18718 = vmatprep.subr.bf16.mxu1 %v25967_v21  ;;  %v26033_v20 = vld [vmem:[%s27319_s17 + $0x337c] ss:$456 sps:$4 sm:$0xff]  }
 0xaa5   : > { %18800 = vmatprep.subr.bf16.mxu0 %v25970_v26  ;;  %v26036_v21 = vld [vmem:[%s27319_s17 + $0x3384] ss:$456 sps:$4 sm:$0xff]   ;;  %v26031_v26 = vld [vmem:[%s27319_s17 + $0x3378] ss:$456 sps:$4 sm:$0xff]  }
 0xaa7   : > { %v26644_v29 = vpop.eup %26643  ;;  %18719 = vmatpush1.bf16.msra.mxu1 %v25965_v39  ;;  %v26034_v39 = vld [vmem:[%s27319_s17 + $0x3380] ss:$456 sps:$4 sm:$0xff]  }
 0xaa8   : > { %v26646_v47 = vpop.eup %26645  ;;  %18801 = vmatpush1.bf16.msra.mxu0 %v25968_v38  ;;  %18720 = vmatprep.subr.bf16.mxu1 %v25973_v27  ;;  %v26039_v38 = vld [vmem:[%s27319_s17 + $0x370c] ss:$456 sps:$4 sm:$0xff]  }
 0xaa9   : > { %v26648_v37 = vpop.eup %26647  ;;  %v19931_v43 = vcombine.low %v26644_v29, %v26646_v47  ;;  %18802 = vmatprep.subr.bf16.mxu0 %v25976_v28  ;;  %v26042_v27 = vld [vmem:[%s27319_s17 + $0x3714] ss:$456 sps:$4 sm:$0xff]   ;;  %v3260_v28 = vrot.slane %v30033_v8, %v27461_v7  ;;  %v3264_v29 = vrot.slane %v30033_v8, %v27889_v22  ;;  %v26037_v47 = vld [vmem:[%s27319_s17 + $0x3708] ss:$456 sps:$4 sm:$0xff]  }
 0xaaa   : > { %v26650_v44 = vpop.eup %26649 }
 0xaab   : > { %20045 = vst [vmem:[%s27851_s14 + $0x158] sm:$0xff] %v19931_v43  ;;  %v19932_v45 = vcombine.low %v26648_v37, %v26650_v44  ;;  %18721 = vmatpush1.bf16.msra.mxu1 %v25971_v32  ;;  %v3268_v32 = vrot.slane %v30033_v8, %v27892_v23  ;;  %v26045_v37 = vld [vmem:[%s27319_s17 + $0x3a9c] ss:$456 sps:$4 sm:$0xff]  }
 0xaac   : > { %18803 = vmatpush1.bf16.msra.mxu0 %v25974_v33  ;;  %18722 = vmatprep.subr.bf16.mxu1 %v25979_v35  ;;  %v3272_v33 = vrot.slane %v30033_v8, %v27896_v25  ;;  %v26040_v35 = vld [vmem:[%s27319_s17 + $0x3710] ss:$456 sps:$4 sm:$0xff]  }
 0xaad   : > { %20046 = vst [vmem:[%s27851_s14 + $0x160] sm:$0xff] %v19932_v45  ;;  %18804 = vmatprep.subr.bf16.mxu0 %v25982_v52  ;;  %v26048_v52 = vld [vmem:[%s27319_s17 + $0x3aa4] ss:$456 sps:$4 sm:$0xff]  }
 0xaaf   : > { %18723 = vmatpush1.bf16.msra.mxu1 %v25977_v46 }
 0xab0   : > { %18805 = vmatpush1.bf16.msra.mxu0 %v25980_v63  ;;  %18724 = vmatprep.subr.bf16.mxu1 %v25985_v48 }
 0xab1   : > { %18806 = vmatprep.subr.bf16.mxu0 %v25988_v58 }
 0xab3   : > { %18725 = vmatpush1.bf16.msra.mxu1 %v25983_v49 }
 0xab4   : > { %18807 = vmatpush1.bf16.msra.mxu0 %v25986_v30  ;;  %18726 = vmatprep.subr.bf16.mxu1 %v25991_v50  ;;  %v26043_v30 = vld [vmem:[%s27319_s17 + $0x3a98] ss:$456 sps:$4 sm:$0xff]  }
 0xab5   : > { %18808 = vmatprep.subr.bf16.mxu0 %v25994_v51  ;;  %v26046_v50 = vld [vmem:[%s27319_s17 + $0x3aa0] ss:$456 sps:$4 sm:$0xff]  }
 0xab7   : > { %18727 = vmatpush1.bf16.msra.mxu1 %v25989_v53 }
 0xab8   : > { %18809 = vmatpush1.bf16.msra.mxu0 %v25992_v1  ;;  %18728 = vmatprep.subr.bf16.mxu1 %v25997_v54 }
 0xab9   : > { %18810 = vmatprep.subr.bf16.mxu0 %v26000_v55  ;;  %v26051_v55 = vld [vmem:[%s27319_s17 + $0x3e2c] ss:$456 sps:$4 sm:$0xff]  }
 0xabb   : > { %18729 = vmatpush1.bf16.msra.mxu1 %v25995_v56 }
 0xabc   : > { %18811 = vmatpush1.bf16.msra.mxu0 %v25998_v57  ;;  %18730 = vmatprep.subr.bf16.mxu1 %v26003_v59 }
 0xabd   : > { %18812 = vmatprep.subr.bf16.mxu0 %v26006_v9  ;;  %v26049_v9 = vld [vmem:[%s27319_s17 + $0x3e28] ss:$456 sps:$4 sm:$0xff]  }
 0xabf   : > { %18731 = vmatpush1.bf16.msra.mxu1 %v26001_v60  ;;  %v26054_v60 = vld [vmem:[%s27319_s17 + $0x3e34] ss:$456 sps:$4 sm:$0xff]  }
 0xac0   : > { %18813 = vmatpush1.bf16.msra.mxu0 %v26004_v61  ;;  %18732 = vmatprep.subr.bf16.mxu1 %v26009_v62 }
 0xac1   : > { %18814 = vmatprep.subr.bf16.mxu0 %v26012_v4  ;;  %v26055_v4 = vld [vmem:[%s27319_s17 + $0x41bc] ss:$456 sps:$4 sm:$0x3f]  }
 0xac3   : > { %18733 = vmatpush1.bf16.msra.mxu1 %v26007_v15 }
 0xac4   : > { %18815 = vmatpush1.bf16.msra.mxu0 %v26010_v0  ;;  %18734 = vmatprep.subr.bf16.mxu1 %v26015_v5  ;;  %v26052_v5 = vld [vmem:[%s27319_s17 + $0x3e30] ss:$456 sps:$4 sm:$0xff]  }
 0xac5   : > { %18816 = vmatprep.subr.bf16.mxu0 %v26018_v6 }
 0xac7   : > { %18735 = vmatpush1.bf16.msra.mxu1 %v26013_v10  ;;  %v26057_v10 = vld [vmem:[%s27319_s17 + $0x41b8] ss:$456 sps:$4 sm:$0x3f]  }
 0xac8   : > { %18817 = vmatpush1.bf16.msra.mxu0 %v26016_v24  ;;  %18736 = vmatprep.subr.bf16.mxu1 %v26021_v11  ;;  %v26058_v24 = vld [vmem:[%s27319_s17 + $0x41c4] ss:$456 sps:$4 sm:$0x3f]   ;;  %v26060_v11 = vld [vmem:[%s27319_s17 + $0x41c0] ss:$456 sps:$4 sm:$0x3f]  }
 0xac9   : > { %18818 = vmatprep.subr.bf16.mxu0 %v26024_v12  ;;  %v14495_v12 = vsel %vm14187_vm7, %v26057_v10, 0  ;;  %v26111_v10 = vld [vmem:[%s27319_s17 + $0x1e2c] ss:$456 sps:$4 sm:$0xff]  }
 0xacb   : > { %18737 = vmatpush1.bf16.msra.mxu1 %v26019_v13  ;;  %v26063_v13 = vld [vmem:[%s27319_s17 + $0x1ac] ss:$456 sps:$4 sm:$0xff]  }
 0xacc   : > { %18819 = vmatpush1.bf16.msra.mxu0 %v26022_v14  ;;  %18738 = vmatprep.subr.bf16.mxu1 %v26027_v17  ;;  %v14501_v14 = vsel %vm14187_vm7, %v26060_v11, 0  ;;  %v26066_v17 = vld [vmem:[%s27319_s17 + $0x1b4] ss:$456 sps:$4 sm:$0xff]   ;;  %v26109_v11 = vld [vmem:[%s27319_s17 + $0x1e28] ss:$456 sps:$4 sm:$0xff]  }
 0xacd   : > { %18820 = vmatprep.subr.bf16.mxu0 %v26030_v31  ;;  %v26061_v31 = vld [vmem:[%s27319_s17 + $0x1a8] ss:$456 sps:$4 sm:$0xff]  }
 0xacf   : > { %18739 = vmatpush1.bf16.msra.mxu1 %v26025_v18  ;;  %v26064_v18 = vld [vmem:[%s27319_s17 + $0x1b0] ss:$456 sps:$4 sm:$0xff]  }
 0xad0   : > { %18821 = vmatpush1.bf16.msra.mxu0 %v26028_v19  ;;  %18740 = vmatprep.subr.bf16.mxu1 %v26033_v20  ;;  %v26069_v19 = vld [vmem:[%s27319_s17 + $0x53c] ss:$456 sps:$4 sm:$0xff]  }
 0xad1   : > { %18822 = vmatprep.subr.bf16.mxu0 %v26036_v21  ;;  %v26072_v21 = vld [vmem:[%s27319_s17 + $0x544] ss:$456 sps:$4 sm:$0xff]  }
 0xad3   : > { %18741 = vmatpush1.bf16.msra.mxu1 %v26031_v26 }
 0xad4   : > { %18823 = vmatpush1.bf16.msra.mxu0 %v26034_v39  ;;  %18742 = vmatprep.subr.bf16.mxu1 %v26039_v38  ;;  %v26067_v38 = vld [vmem:[%s27319_s17 + $0x538] ss:$456 sps:$4 sm:$0xff]  }
 0xad5   : > { %v18295_v43 = vpop.f32.mrb[96].mxu1  ;;  %18824 = vmatprep.subr.bf16.mxu0 %v26042_v27 }
 0xad6   : > { %v22700_v44 = vadd.f32 %v18295_v43, %v3260_v28  ;;  %v18297_v45 = vpop.f32.mrb[97].mxu1  ;;  %v18377_v46 = vpop.f32.mrb[92].mxu0  ;;  %v26073_v43 = vld [vmem:[%s27319_s17 + $0x8c8] ss:$456 sps:$4 sm:$0xff]  }
 0xad7   : > { %v22701_v63 = vadd.f32 %v18297_v45, %v3264_v29  ;;  %v22702_v48 = vadd.f32 %v18377_v46, %v3268_v32  ;;  %v18299_v58 = vpop.f32.mrb[98].mxu1  ;;  %v18379_v49 = vpop.f32.mrb[93].mxu0  ;;  %18743 = vmatpush1.bf16.msra.mxu1 %v26037_v47  ;;  %v26070_v29 = vld [vmem:[%s27319_s17 + $0x540] ss:$456 sps:$4 sm:$0xff]   ;;  %v26075_v32 = vld [vmem:[%s27319_s17 + $0x8cc] ss:$456 sps:$4 sm:$0xff]  }
 0xad8   : > { %v19294_v51 = vsub.f32 0.0, %v22700_v44  ;;  %v22703_v53 = vadd.f32 %v18379_v49, %v3272_v33  ;;  %v18300_v1 = vpop.f32.mrb[99].mxu1  ;;  %v18381_v54 = vpop.f32.mrb[94].mxu0  ;;  %18825 = vmatpush1.bf16.msra.mxu0 %v26040_v35  ;;  %18753 = vmatprep.subr.bf16.mxu1 %v26045_v37  ;;  %v26078_v35 = vld [vmem:[%s27319_s17 + $0x8d4] ss:$456 sps:$4 sm:$0xff]  }
 0xad9   : > { %v19295_v56 = vsub.f32 0.0, %v22701_v63  ;;  %v19296_v57 = vsub.f32 0.0, %v22702_v48  ;;  %v18382_v59 = vpop.f32.mrb[95].mxu0  ;;  %18835 = vmatprep.subr.bf16.mxu0 %v26048_v52  ;;  %v26076_v52 = vld [vmem:[%s27319_s17 + $0x8d0] ss:$456 sps:$4 sm:$0xff]  }
 0xada   : > { %v19498_v61 = vmul.f32 1.442695, %v19294_v51  ;;  %v19297_v62 = vsub.f32 0.0, %v22703_v53  ;;  %18745 = vmatmul.mubr.bf16.vlgmr.msra.gmra.mrb[108].mxu1 %v27535_v40  ;;  %v26081_v44 = vld [vmem:[%s27319_s17 + $0xc5c] ss:$456 sps:$4 sm:$0xff]  }
 0xadb   : > { %v19500_v15 = vmul.f32 1.442695, %v19295_v56  ;;  %v19502_v0 = vmul.f32 1.442695, %v19296_v57  ;;  %18754 = vmatpush1.bf16.msra.mxu1 %v26043_v30  ;;  %18827 = vmatmul.mubr.bf16.vlgmr.msra.gmra.mrb[104].mxu0 %v27535_v40  ;;  %v26084_v45 = vld [vmem:[%s27319_s17 + $0xc64] ss:$456 sps:$4 sm:$0xff]  }
 0xadc   : > { %26651 = vpow2.f32 %v19498_v61  ;;  %v19504_v6 = vmul.f32 1.442695, %v19297_v62  ;;  %18836 = vmatpush1.bf16.msra.mxu0 %v26046_v50  ;;  %18755 = vmatprep.subr.bf16.mxu1 %v26051_v55  ;;  %v26079_v46 = vld [vmem:[%s27319_s17 + $0xc58] ss:$456 sps:$4 sm:$0xff]   ;;  %v26087_v48 = vld [vmem:[%s27319_s17 + $0xfec] ss:$456 sps:$4 sm:$0xff]  }
 0xadd   : > { %26653 = vpow2.f32 %v19500_v15  ;;  %18837 = vmatprep.subr.bf16.mxu0 %v26054_v60  ;;  %18785 = vmatprep.mubr.bf16.mxu1 %v27007_v16  ;;  %v26082_v63 = vld [vmem:[%s27319_s17 + $0xc60] ss:$456 sps:$4 sm:$0xff]   ;;  %v26090_v58 = vld [vmem:[%s27319_s17 + $0xff4] ss:$456 sps:$4 sm:$0xff]   ;;  %v26088_v51 = vld [vmem:[%s27319_s17 + $0xff0] ss:$456 sps:$4 sm:$0xff]  }
 0xade   : > { %26655 = vpow2.f32 %v19502_v0  ;;  %18867 = vmatprep.mubr.bf16.mxu0 %v27007_v16  ;;  %v26085_v30 = vld [vmem:[%s27319_s17 + $0xfe8] ss:$456 sps:$4 sm:$0xff]   ;;  %v26093_v53 = vld [vmem:[%s27319_s17 + $0x137c] ss:$456 sps:$4 sm:$0xff]   ;;  %v26091_v59 = vld [vmem:[%s27319_s17 + $0x1378] ss:$456 sps:$4 sm:$0xff]  }
 0xadf   : > { %26657 = vpow2.f32 %v19504_v6  ;;  %18756 = vmatpush1.bf16.msra.mxu1 %v26049_v9  ;;  %v26096_v55 = vld [vmem:[%s27319_s17 + $0x1384] ss:$456 sps:$4 sm:$0xff]   ;;  %v26094_v9 = vld [vmem:[%s27319_s17 + $0x1380] ss:$456 sps:$4 sm:$0xff]   ;;  %v26102_v61 = vld [vmem:[%s27319_s17 + $0x1714] ss:$456 sps:$4 sm:$0xff]  }
 0xae0   : > { %18838 = vmatpush1.bf16.msra.mxu0 %v26052_v5  ;;  %22501 = vmatprep.subr.msk.bf16.mxu1 %vm14187_vm7, %v26055_v4  ;;  %v26099_v60 = vld [vmem:[%s27319_s17 + $0x170c] ss:$456 sps:$4 sm:$0xff]   ;;  %v26097_v62 = vld [vmem:[%s27319_s17 + $0x1708] ss:$456 sps:$4 sm:$0xff]   ;;  %v26105_v15 = vld [vmem:[%s27319_s17 + $0x1a9c] ss:$456 sps:$4 sm:$0xff]  }
 0xae1   : > { %22503 = vmatprep.subr.msk.bf16.mxu0 %vm14187_vm7, %v26058_v24  ;;  %v26100_v4 = vld [vmem:[%s27319_s17 + $0x1710] ss:$456 sps:$4 sm:$0xff]   ;;  %v26108_v0 = vld [vmem:[%s27319_s17 + $0x1aa4] ss:$456 sps:$4 sm:$0xff]   ;;  %v26106_v6 = vld [vmem:[%s27319_s17 + $0x1aa0] ss:$456 sps:$4 sm:$0xff]  }
 0xae2   : > { %v26103_v5 = vld [vmem:[%s27319_s17 + $0x1a98] ss:$456 sps:$4 sm:$0xff]   ;;  %v26114_v24 = vld [vmem:[%s27319_s17 + $0x1e34] ss:$456 sps:$4 sm:$0xff]  }
 0xae3   : > { %18758 = vmatpush1.bf16.msra.mxu1 %v14495_v12  ;;  %v26112_v12 = vld [vmem:[%s27319_s17 + $0x1e30] ss:$456 sps:$4 sm:$0xff]  }
 0xae4   : > { %18840 = vmatpush1.bf16.msra.mxu0 %v14501_v14  ;;  %18876 = vmatprep.subr.bf16.mxu1 %v26063_v13  ;;  %v26117_v13 = vld [vmem:[%s27319_s17 + $0x21bc] ss:$456 sps:$4 sm:$0xff]  }
 0xae5   : > { %18958 = vmatprep.subr.bf16.mxu0 %v26066_v17  ;;  %v26120_v14 = vld [vmem:[%s27319_s17 + $0x21c4] ss:$456 sps:$4 sm:$0xff]   ;;  %v26115_v17 = vld [vmem:[%s27319_s17 + $0x21b8] ss:$456 sps:$4 sm:$0xff]  }
 0xae6   : > { %v26652_v20 = vpop.eup %26651  ;;  %22502 = vmatmul.mubr.msk.bf16.vlgmr.msra.gmra.mrb[108].mxu1 %vm14183_vm8, %v27539_v42 }
 0xae7   : > { %v26654_v26 = vpop.eup %26653  ;;  %v19636_v39 = vadd.f32 1.0, %v26652_v20  ;;  %22504 = vmatmul.mubr.msk.bf16.vlgmr.msra.gmra.mrb[104].mxu0 %vm14183_vm8, %v27539_v42  ;;  %18877 = vmatpush1.bf16.msra.mxu1 %v26061_v31  ;;  %v26118_v31 = vld [vmem:[%s27319_s17 + $0x21c0] ss:$456 sps:$4 sm:$0xff]  }
 0xae8   : > { %v26656_v27 = vpop.eup %26655  ;;  %v19637_v28 = vadd.f32 1.0, %v26654_v26  ;;  %18908 = vmatprep.mubr.bf16.mxu1 %v27537_v41  ;;  %18959 = vmatpush1.bf16.msra.mxu0 %v26064_v18  ;;  %v26123_v18 = vld [vmem:[%s27319_s17 + $0x254c] ss:$456 sps:$4 sm:$0xff]   ;;  %v26121_v20 = vld [vmem:[%s27319_s17 + $0x2548] ss:$456 sps:$4 sm:$0xff]  }
 0xae9   : > { %v26658_v47 = vpop.eup %26657  ;;  %26659 = vrcp.f32 %v19636_v39  ;;  %v19638_v33 = vadd.f32 1.0, %v26656_v27  ;;  %18990 = vmatprep.mubr.bf16.mxu0 %v27537_v41  ;;  %18878 = vmatprep.subr.bf16.mxu1 %v26069_v19  ;;  %v26126_v19 = vld [vmem:[%s27319_s17 + $0x2554] ss:$456 sps:$4 sm:$0xff]   ;;  %v26132_v39 = vld [vmem:[%s27319_s17 + $0x28e4] ss:$456 sps:$4 sm:$0xff]  }
 0xaea   : > { %26661 = vrcp.f32 %v19637_v28  ;;  %v19639_v37 = vadd.f32 1.0, %v26658_v47  ;;  %18960 = vmatprep.subr.bf16.mxu0 %v26072_v21  ;;  %v26124_v21 = vld [vmem:[%s27319_s17 + $0x2550] ss:$456 sps:$4 sm:$0xff]   ;;  %v26129_v26 = vld [vmem:[%s27319_s17 + $0x28dc] ss:$456 sps:$4 sm:$0xff]  }
 0xaeb   : > { %26663 = vrcp.f32 %v19638_v33  ;;  %18879 = vmatpush1.bf16.msra.mxu1 %v26067_v38  ;;  %v26127_v38 = vld [vmem:[%s27319_s17 + $0x28d8] ss:$456 sps:$4 sm:$0xff]   ;;  %v26135_v28 = vld [vmem:[%s27319_s17 + $0x2c6c] ss:$456 sps:$4 sm:$0xff]   ;;  %v26141_v33 = vld [vmem:[%s27319_s17 + $0x2ffc] ss:$456 sps:$4 sm:$0xff]  }
 0xaec   : > { %26665 = vrcp.f32 %v19639_v37  ;;  %18961 = vmatpush1.bf16.msra.mxu0 %v26070_v29  ;;  %18880 = vmatprep.subr.bf16.mxu1 %v26075_v32  ;;  %v26130_v27 = vld [vmem:[%s27319_s17 + $0x28e0] ss:$456 sps:$4 sm:$0xff]   ;;  %v26138_v29 = vld [vmem:[%s27319_s17 + $0x2c74] ss:$456 sps:$4 sm:$0xff]   ;;  %v26136_v47 = vld [vmem:[%s27319_s17 + $0x2c70] ss:$456 sps:$4 sm:$0xff]  }
 0xaed   : > { %18962 = vmatprep.subr.bf16.mxu0 %v26078_v35  ;;  %v26133_v32 = vld [vmem:[%s27319_s17 + $0x2c68] ss:$456 sps:$4 sm:$0xff]   ;;  %v26144_v35 = vld [vmem:[%s27319_s17 + $0x3004] ss:$456 sps:$4 sm:$0xff]   ;;  %v26139_v37 = vld [vmem:[%s27319_s17 + $0x2ff8] ss:$456 sps:$4 sm:$0xff]  }
 0xaef   : > { %18881 = vmatpush1.bf16.msra.mxu1 %v26073_v43  ;;  %v26142_v43 = vld [vmem:[%s27319_s17 + $0x3000] ss:$456 sps:$4 sm:$0xff]  }
 0xaf0   : > { %18963 = vmatpush1.bf16.msra.mxu0 %v26076_v52  ;;  %18882 = vmatprep.subr.bf16.mxu1 %v26081_v44  ;;  %v26147_v52 = vld [vmem:[%s27319_s17 + $0x338c] ss:$456 sps:$4 sm:$0xff]  }
 0xaf1   : > { %18964 = vmatprep.subr.bf16.mxu0 %v26084_v45  ;;  %v26150_v44 = vld [vmem:[%s27319_s17 + $0x3394] ss:$456 sps:$4 sm:$0xff]   ;;  %v26145_v45 = vld [vmem:[%s27319_s17 + $0x3388] ss:$456 sps:$4 sm:$0xff]  }
 0xaf3   : > { %v26660_v49 = vpop.eup %26659  ;;  %18883 = vmatpush1.bf16.msra.mxu1 %v26079_v46  ;;  %v26148_v46 = vld [vmem:[%s27319_s17 + $0x3390] ss:$456 sps:$4 sm:$0xff]  }
 0xaf4   : > { %v26662_v50 = vpop.eup %26661  ;;  %18965 = vmatpush1.bf16.msra.mxu0 %v26082_v63  ;;  %18884 = vmatprep.subr.bf16.mxu1 %v26087_v48  ;;  %v30236_v63 = vld [vmem:[%s27786_s21 + $0x60] sm:$0xff] }
 0xaf5   : > { %v26664_v1 = vpop.eup %26663  ;;  %v19933_v54 = vcombine.low %v26660_v49, %v26662_v50  ;;  %18966 = vmatprep.subr.bf16.mxu0 %v26090_v58  ;;  %v26153_v48 = vld [vmem:[%s27319_s17 + $0x371c] ss:$456 sps:$4 sm:$0xff]   ;;  %v3276_v49 = vrot.slane %v30033_v8, %v27996_v34  ;;  %v3284_v50 = vrot.slane %v30236_v63, %v27453_v2 }
 0xaf6   : > { %v26666_v56 = vpop.eup %26665  ;;  %v26156_v58 = vld [vmem:[%s27319_s17 + $0x3724] ss:$456 sps:$4 sm:$0xff]  }
 0xaf7   : > { %20047 = vst [vmem:[%s27851_s14 + $0x168] sm:$0xff] %v19933_v54  ;;  %v19934_v57 = vcombine.low %v26664_v1, %v26666_v56  ;;  %18885 = vmatpush1.bf16.msra.mxu1 %v26085_v30  ;;  %v3280_v30 = vrot.slane %v30033_v8, %v28000_v36  ;;  %v26154_v1 = vld [vmem:[%s27319_s17 + $0x3720] ss:$456 sps:$4 sm:$0xff]   ;;  %v26159_v54 = vld [vmem:[%s27319_s17 + $0x3aac] ss:$456 sps:$4 sm:$0xff]  }
 0xaf8   : > { %18967 = vmatpush1.bf16.msra.mxu0 %v26088_v51  ;;  %18886 = vmatprep.subr.bf16.mxu1 %v26093_v53  ;;  %v26151_v51 = vld [vmem:[%s27319_s17 + $0x3718] ss:$456 sps:$4 sm:$0xff]   ;;  %v3288_v53 = vrot.slane %v30236_v63, %v27456_v3  ;;  %v26162_v56 = vld [vmem:[%s27319_s17 + $0x3ab4] ss:$456 sps:$4 sm:$0xff]  }
 0xaf9   : > { %20048 = vst [vmem:[%s27851_s14 + $0x170] sm:$0xff] %v19934_v57  ;;  %18968 = vmatprep.subr.bf16.mxu0 %v26096_v55 }
 0xafb   : > { %18887 = vmatpush1.bf16.msra.mxu1 %v26091_v59 }
 0xafc   : > { %18969 = vmatpush1.bf16.msra.mxu0 %v26094_v9  ;;  %18888 = vmatprep.subr.bf16.mxu1 %v26099_v60 }
 0xafd   : > { %18970 = vmatprep.subr.bf16.mxu0 %v26102_v61 }
 0xaff   : > { %18889 = vmatpush1.bf16.msra.mxu1 %v26097_v62 }
 0xb00   : > { %18971 = vmatpush1.bf16.msra.mxu0 %v26100_v4  ;;  %18890 = vmatprep.subr.bf16.mxu1 %v26105_v15  ;;  %v26157_v4 = vld [vmem:[%s27319_s17 + $0x3aa8] ss:$456 sps:$4 sm:$0xff]  }
 0xb01   : > { %18972 = vmatprep.subr.bf16.mxu0 %v26108_v0  ;;  %v26160_v15 = vld [vmem:[%s27319_s17 + $0x3ab0] ss:$456 sps:$4 sm:$0xff]  }
 0xb03   : > { %18891 = vmatpush1.bf16.msra.mxu1 %v26103_v5 }
 0xb04   : > { %18973 = vmatpush1.bf16.msra.mxu0 %v26106_v6  ;;  %18892 = vmatprep.subr.bf16.mxu1 %v26111_v10 }
 0xb05   : > { %18974 = vmatprep.subr.bf16.mxu0 %v26114_v24  ;;  %v26165_v24 = vld [vmem:[%s27319_s17 + $0x3e3c] ss:$456 sps:$4 sm:$0xff]  }
 0xb07   : > { %18893 = vmatpush1.bf16.msra.mxu1 %v26109_v11 }
 0xb08   : > { %18975 = vmatpush1.bf16.msra.mxu0 %v26112_v12  ;;  %18894 = vmatprep.subr.bf16.mxu1 %v26117_v13 }
 0xb09   : > { %18976 = vmatprep.subr.bf16.mxu0 %v26120_v14  ;;  %v26163_v14 = vld [vmem:[%s27319_s17 + $0x3e38] ss:$456 sps:$4 sm:$0xff]  }
 0xb0b   : > { %18895 = vmatpush1.bf16.msra.mxu1 %v26115_v17  ;;  %v26168_v17 = vld [vmem:[%s27319_s17 + $0x3e44] ss:$456 sps:$4 sm:$0xff]  }
 0xb0c   : > { %18977 = vmatpush1.bf16.msra.mxu0 %v26118_v31  ;;  %18896 = vmatprep.subr.bf16.mxu1 %v26123_v18 }
 0xb0d   : > { %18978 = vmatprep.subr.bf16.mxu0 %v26126_v19  ;;  %v26169_v19 = vld [vmem:[%s27319_s17 + $0x41cc] ss:$456 sps:$4 sm:$0x3f]  }
 0xb0f   : > { %18897 = vmatpush1.bf16.msra.mxu1 %v26121_v20 }
 0xb10   : > { %18979 = vmatpush1.bf16.msra.mxu0 %v26124_v21  ;;  %18898 = vmatprep.subr.bf16.mxu1 %v26129_v26  ;;  %v26166_v26 = vld [vmem:[%s27319_s17 + $0x3e40] ss:$456 sps:$4 sm:$0xff]  }
 0xb11   : > { %18980 = vmatprep.subr.bf16.mxu0 %v26132_v39 }
 0xb13   : > { %18899 = vmatpush1.bf16.msra.mxu1 %v26127_v38  ;;  %v26171_v38 = vld [vmem:[%s27319_s17 + $0x41c8] ss:$456 sps:$4 sm:$0x3f]  }
 0xb14   : > { %18981 = vmatpush1.bf16.msra.mxu0 %v26130_v27  ;;  %18900 = vmatprep.subr.bf16.mxu1 %v26135_v28  ;;  %v26172_v27 = vld [vmem:[%s27319_s17 + $0x41d4] ss:$456 sps:$4 sm:$0x3f]   ;;  %v26174_v28 = vld [vmem:[%s27319_s17 + $0x41d0] ss:$456 sps:$4 sm:$0x3f]  }
 0xb15   : > { %18982 = vmatprep.subr.bf16.mxu0 %v26138_v29  ;;  %v14507_v29 = vsel %vm14187_vm7, %v26171_v38, 0  ;;  %v26228_v38 = vld [vmem:[%s27319_s17 + $0x1e44] ss:$456 sps:$4 sm:$0xff]  }
 0xb17   : > { %18901 = vmatpush1.bf16.msra.mxu1 %v26133_v32  ;;  %v26177_v32 = vld [vmem:[%s27319_s17 + $0x1bc] ss:$456 sps:$4 sm:$0xff]  }
 0xb18   : > { %18983 = vmatpush1.bf16.msra.mxu0 %v26136_v47  ;;  %18902 = vmatprep.subr.bf16.mxu1 %v26141_v33  ;;  %v14513_v47 = vsel %vm14187_vm7, %v26174_v28, 0  ;;  %v26180_v33 = vld [vmem:[%s27319_s17 + $0x1c4] ss:$456 sps:$4 sm:$0xff]   ;;  %v26226_v28 = vld [vmem:[%s27319_s17 + $0x1e40] ss:$456 sps:$4 sm:$0xff]  }
 0xb19   : > { %18984 = vmatprep.subr.bf16.mxu0 %v26144_v35  ;;  %v26175_v35 = vld [vmem:[%s27319_s17 + $0x1b8] ss:$456 sps:$4 sm:$0xff]  }
 0xb1b   : > { %18903 = vmatpush1.bf16.msra.mxu1 %v26139_v37  ;;  %v26178_v37 = vld [vmem:[%s27319_s17 + $0x1c0] ss:$456 sps:$4 sm:$0xff]  }
 0xb1c   : > { %18985 = vmatpush1.bf16.msra.mxu0 %v26142_v43  ;;  %18904 = vmatprep.subr.bf16.mxu1 %v26147_v52  ;;  %v26183_v43 = vld [vmem:[%s27319_s17 + $0x54c] ss:$456 sps:$4 sm:$0xff]  }
 0xb1d   : > { %18986 = vmatprep.subr.bf16.mxu0 %v26150_v44  ;;  %v26186_v44 = vld [vmem:[%s27319_s17 + $0x554] ss:$456 sps:$4 sm:$0xff]  }
 0xb1f   : > { %18905 = vmatpush1.bf16.msra.mxu1 %v26145_v45 }
 0xb20   : > { %18987 = vmatpush1.bf16.msra.mxu0 %v26148_v46  ;;  %18906 = vmatprep.subr.bf16.mxu1 %v26153_v48  ;;  %v26181_v48 = vld [vmem:[%s27319_s17 + $0x548] ss:$456 sps:$4 sm:$0xff]  }
 0xb21   : > { %v18459_v55 = vpop.f32.mrb[100].mxu1  ;;  %18988 = vmatprep.subr.bf16.mxu0 %v26156_v58 }
 0xb22   : > { %v22704_v57 = vadd.f32 %v18459_v55, %v3276_v49  ;;  %v18461_v59 = vpop.f32.mrb[101].mxu1  ;;  %v18541_v8 = vpop.f32.mrb[96].mxu0  ;;  %v26187_v55 = vld [vmem:[%s27319_s17 + $0x8d8] ss:$456 sps:$4 sm:$0xff]  }
 0xb23   : > { %v22705_v9 = vadd.f32 %v18461_v59, %v3280_v30  ;;  %v22706_v60 = vadd.f32 %v18541_v8, %v3284_v50  ;;  %v18463_v61 = vpop.f32.mrb[102].mxu1  ;;  %v18543_v62 = vpop.f32.mrb[97].mxu0  ;;  %18907 = vmatpush1.bf16.msra.mxu1 %v26151_v51  ;;  %v26184_v30 = vld [vmem:[%s27319_s17 + $0x550] ss:$456 sps:$4 sm:$0xff]   ;;  %v26189_v50 = vld [vmem:[%s27319_s17 + $0x8dc] ss:$456 sps:$4 sm:$0xff]  }
 0xb24   : > { %v19298_v0 = vsub.f32 0.0, %v22704_v57  ;;  %v22707_v5 = vadd.f32 %v18543_v62, %v3288_v53  ;;  %v18464_v6 = vpop.f32.mrb[103].mxu1  ;;  %v18545_v10 = vpop.f32.mrb[98].mxu0  ;;  %18989 = vmatpush1.bf16.msra.mxu0 %v26154_v1  ;;  %18917 = vmatprep.subr.bf16.mxu1 %v26159_v54  ;;  %v26192_v1 = vld [vmem:[%s27319_s17 + $0x8e4] ss:$456 sps:$4 sm:$0xff]  }
 0xb25   : > { %v19299_v11 = vsub.f32 0.0, %v22705_v9  ;;  %v19300_v12 = vsub.f32 0.0, %v22706_v60  ;;  %v18546_v13 = vpop.f32.mrb[99].mxu0  ;;  %18999 = vmatprep.subr.bf16.mxu0 %v26162_v56  ;;  %v26190_v56 = vld [vmem:[%s27319_s17 + $0x8e0] ss:$456 sps:$4 sm:$0xff]  }
 0xb26   : > { %v19506_v31 = vmul.f32 1.442695, %v19298_v0  ;;  %v19301_v18 = vsub.f32 0.0, %v22707_v5  ;;  %18909 = vmatmul.mubr.bf16.vlgmr.msra.gmra.mrb[112].mxu1 %v27535_v40  ;;  %v26195_v57 = vld [vmem:[%s27319_s17 + $0xc6c] ss:$456 sps:$4 sm:$0xff]  }
 0xb27   : > { %v19508_v20 = vmul.f32 1.442695, %v19299_v11  ;;  %v19510_v21 = vmul.f32 1.442695, %v19300_v12  ;;  %18918 = vmatpush1.bf16.msra.mxu1 %v26157_v4  ;;  %18991 = vmatmul.mubr.bf16.vlgmr.msra.gmra.mrb[108].mxu0 %v27535_v40  ;;  %v26193_v59 = vld [vmem:[%s27319_s17 + $0xc68] ss:$456 sps:$4 sm:$0xff]  }
 0xb28   : > { %26667 = vpow2.f32 %v19506_v31  ;;  %v19512_v39 = vmul.f32 1.442695, %v19301_v18  ;;  %19000 = vmatpush1.bf16.msra.mxu0 %v26160_v15  ;;  %18919 = vmatprep.subr.bf16.mxu1 %v26165_v24  ;;  %v26196_v8 = vld [vmem:[%s27319_s17 + $0xc70] ss:$456 sps:$4 sm:$0xff]   ;;  %v26201_v9 = vld [vmem:[%s27319_s17 + $0xffc] ss:$456 sps:$4 sm:$0xff]  }
 0xb29   : > { %26669 = vpow2.f32 %v19508_v20  ;;  %19001 = vmatprep.subr.bf16.mxu0 %v26168_v17  ;;  %18949 = vmatprep.mubr.bf16.mxu1 %v27007_v16  ;;  %v26204_v60 = vld [vmem:[%s27319_s17 + $0x1004] ss:$456 sps:$4 sm:$0xff]   ;;  %v26199_v62 = vld [vmem:[%s27319_s17 + $0xff8] ss:$456 sps:$4 sm:$0xff]   ;;  %v26210_v10 = vld [vmem:[%s27319_s17 + $0x1394] ss:$456 sps:$4 sm:$0xff]  }
 0xb2a   : > { %26671 = vpow2.f32 %v19510_v21  ;;  %19031 = vmatprep.mubr.bf16.mxu0 %v27007_v16  ;;  %v26202_v15 = vld [vmem:[%s27319_s17 + $0x1000] ss:$456 sps:$4 sm:$0xff]   ;;  %v26207_v0 = vld [vmem:[%s27319_s17 + $0x138c] ss:$456 sps:$4 sm:$0xff]   ;;  %v26208_v13 = vld [vmem:[%s27319_s17 + $0x1390] ss:$456 sps:$4 sm:$0xff]  }
 0xb2b   : > { %26673 = vpow2.f32 %v19512_v39  ;;  %18920 = vmatpush1.bf16.msra.mxu1 %v26163_v14  ;;  %v26205_v12 = vld [vmem:[%s27319_s17 + $0x1388] ss:$456 sps:$4 sm:$0xff]   ;;  %v26213_v14 = vld [vmem:[%s27319_s17 + $0x171c] ss:$456 sps:$4 sm:$0xff]   ;;  %v26211_v31 = vld [vmem:[%s27319_s17 + $0x1718] ss:$456 sps:$4 sm:$0xff]  }
 0xb2c   : > { %19002 = vmatpush1.bf16.msra.mxu0 %v26166_v26  ;;  %22505 = vmatprep.subr.msk.bf16.mxu1 %vm14187_vm7, %v26169_v19  ;;  %v26216_v17 = vld [vmem:[%s27319_s17 + $0x1724] ss:$456 sps:$4 sm:$0xff]   ;;  %v26214_v18 = vld [vmem:[%s27319_s17 + $0x1720] ss:$456 sps:$4 sm:$0xff]   ;;  %v26222_v20 = vld [vmem:[%s27319_s17 + $0x1ab4] ss:$456 sps:$4 sm:$0xff]  }
 0xb2d   : > { %22507 = vmatprep.subr.msk.bf16.mxu0 %vm14187_vm7, %v26172_v27  ;;  %v26219_v19 = vld [vmem:[%s27319_s17 + $0x1aac] ss:$456 sps:$4 sm:$0xff]   ;;  %v26217_v21 = vld [vmem:[%s27319_s17 + $0x1aa8] ss:$456 sps:$4 sm:$0xff]   ;;  %v26225_v39 = vld [vmem:[%s27319_s17 + $0x1e3c] ss:$456 sps:$4 sm:$0xff]  }
 0xb2e   : > { %v26220_v26 = vld [vmem:[%s27319_s17 + $0x1ab0] ss:$456 sps:$4 sm:$0xff]  }
 0xb2f   : > { %18922 = vmatpush1.bf16.msra.mxu1 %v14507_v29  ;;  %v26223_v27 = vld [vmem:[%s27319_s17 + $0x1e38] ss:$456 sps:$4 sm:$0xff]   ;;  %v26231_v29 = vld [vmem:[%s27319_s17 + $0x21cc] ss:$456 sps:$4 sm:$0xff]  }
 0xb30   : > { %19004 = vmatpush1.bf16.msra.mxu0 %v14513_v47  ;;  %19040 = vmatprep.subr.bf16.mxu1 %v26177_v32  ;;  %v26234_v32 = vld [vmem:[%s27319_s17 + $0x21d4] ss:$456 sps:$4 sm:$0xff]   ;;  %v26229_v47 = vld [vmem:[%s27319_s17 + $0x21c8] ss:$456 sps:$4 sm:$0xff]  }
 0xb31   : > { %19122 = vmatprep.subr.bf16.mxu0 %v26180_v33  ;;  %v26232_v33 = vld [vmem:[%s27319_s17 + $0x21d0] ss:$456 sps:$4 sm:$0xff]  }
 0xb32   : > { %v26668_v52 = vpop.eup %26667  ;;  %22506 = vmatmul.mubr.msk.bf16.vlgmr.msra.gmra.mrb[112].mxu1 %vm14183_vm8, %v27539_v42 }
 0xb33   : > { %v26670_v45 = vpop.eup %26669  ;;  %v19640_v46 = vadd.f32 1.0, %v26668_v52  ;;  %22508 = vmatmul.mubr.msk.bf16.vlgmr.msra.gmra.mrb[108].mxu0 %vm14183_vm8, %v27539_v42  ;;  %19041 = vmatpush1.bf16.msra.mxu1 %v26175_v35  ;;  %v26237_v35 = vld [vmem:[%s27319_s17 + $0x255c] ss:$456 sps:$4 sm:$0xff]   ;;  %v26238_v52 = vld [vmem:[%s27319_s17 + $0x2560] ss:$456 sps:$4 sm:$0xff]  }
 0xb34   : > { %v26672_v58 = vpop.eup %26671  ;;  %v19641_v49 = vadd.f32 1.0, %v26670_v45  ;;  %19072 = vmatprep.mubr.bf16.mxu1 %v27537_v41  ;;  %19123 = vmatpush1.bf16.msra.mxu0 %v26178_v37  ;;  %v26240_v37 = vld [vmem:[%s27319_s17 + $0x2564] ss:$456 sps:$4 sm:$0xff]   ;;  %v26246_v45 = vld [vmem:[%s27319_s17 + $0x28f4] ss:$456 sps:$4 sm:$0xff]  }
 0xb35   : > { %v26674_v51 = vpop.eup %26673  ;;  %26675 = vrcp.f32 %v19640_v46  ;;  %v19642_v53 = vadd.f32 1.0, %v26672_v58  ;;  %19154 = vmatprep.mubr.bf16.mxu0 %v27537_v41  ;;  %19042 = vmatprep.subr.bf16.mxu1 %v26183_v43  ;;  %v26198_v41 = vld [vmem:[%s27319_s17 + $0xc74] ss:$456 sps:$4 sm:$0xff]   ;;  %v26235_v43 = vld [vmem:[%s27319_s17 + $0x2558] ss:$456 sps:$4 sm:$0xff]  }
 0xb36   : > { %26677 = vrcp.f32 %v19641_v49  ;;  %v19643_v54 = vadd.f32 1.0, %v26674_v51  ;;  %19124 = vmatprep.subr.bf16.mxu0 %v26186_v44  ;;  %v26243_v44 = vld [vmem:[%s27319_s17 + $0x28ec] ss:$456 sps:$4 sm:$0xff]   ;;  %v26241_v46 = vld [vmem:[%s27319_s17 + $0x28e8] ss:$456 sps:$4 sm:$0xff]  }
 0xb37   : > { %26679 = vrcp.f32 %v19642_v53  ;;  %19043 = vmatpush1.bf16.msra.mxu1 %v26181_v48  ;;  %v26244_v48 = vld [vmem:[%s27319_s17 + $0x28f0] ss:$456 sps:$4 sm:$0xff]   ;;  %v26249_v58 = vld [vmem:[%s27319_s17 + $0x2c7c] ss:$456 sps:$4 sm:$0xff]   ;;  %v26255_v51 = vld [vmem:[%s27319_s17 + $0x300c] ss:$456 sps:$4 sm:$0xff]  }
 0xb38   : > { %26681 = vrcp.f32 %v19643_v54  ;;  %19125 = vmatpush1.bf16.msra.mxu0 %v26184_v30  ;;  %19044 = vmatprep.subr.bf16.mxu1 %v26189_v50  ;;  %v26252_v49 = vld [vmem:[%s27319_s17 + $0x2c84] ss:$456 sps:$4 sm:$0xff]   ;;  %v26247_v30 = vld [vmem:[%s27319_s17 + $0x2c78] ss:$456 sps:$4 sm:$0xff]   ;;  %v26258_v53 = vld [vmem:[%s27319_s17 + $0x3014] ss:$456 sps:$4 sm:$0xff]  }
 0xb39   : > { %19126 = vmatprep.subr.bf16.mxu0 %v26192_v1  ;;  %v26250_v50 = vld [vmem:[%s27319_s17 + $0x2c80] ss:$456 sps:$4 sm:$0xff]   ;;  %v26256_v54 = vld [vmem:[%s27319_s17 + $0x3010] ss:$456 sps:$4 sm:$0xff]  }
 0xb3a   : > { %v26253_v1 = vld [vmem:[%s27319_s17 + $0x3008] ss:$456 sps:$4 sm:$0xff]  }
 0xb3b   : > { %19045 = vmatpush1.bf16.msra.mxu1 %v26187_v55  ;;  %v26261_v55 = vld [vmem:[%s27319_s17 + $0x339c] ss:$456 sps:$4 sm:$0xff]  }
 0xb3c   : > { %19127 = vmatpush1.bf16.msra.mxu0 %v26190_v56  ;;  %19046 = vmatprep.subr.bf16.mxu1 %v26195_v57  ;;  %v26264_v56 = vld [vmem:[%s27319_s17 + $0x33a4] ss:$456 sps:$4 sm:$0xff]   ;;  %v26259_v57 = vld [vmem:[%s27319_s17 + $0x3398] ss:$456 sps:$4 sm:$0xff]  }
 0xb3d   : > { %19128 = vmatprep.subr.bf16.mxu0 %v26198_v41  ;;  %v26262_v41 = vld [vmem:[%s27319_s17 + $0x33a0] ss:$456 sps:$4 sm:$0xff]  }
 0xb3f   : > { %v26676_v61 = vpop.eup %26675  ;;  %19047 = vmatpush1.bf16.msra.mxu1 %v26193_v59  ;;  %v26267_v59 = vld [vmem:[%s27319_s17 + $0x372c] ss:$456 sps:$4 sm:$0xff]  }
 0xb40   : > { %v26678_v4 = vpop.eup %26677  ;;  %19129 = vmatpush1.bf16.msra.mxu0 %v26196_v8  ;;  %19048 = vmatprep.subr.bf16.mxu1 %v26201_v9  ;;  %v26270_v8 = vld [vmem:[%s27319_s17 + $0x3734] ss:$456 sps:$4 sm:$0xff]   ;;  %v3292_v9 = vrot.slane %v30236_v63, %v27461_v7 }
 0xb41   : > { %v26680_v5 = vpop.eup %26679  ;;  %v19935_v6 = vcombine.low %v26676_v61, %v26678_v4  ;;  %19130 = vmatprep.subr.bf16.mxu0 %v26204_v60  ;;  %v3296_v60 = vrot.slane %v30236_v63, %v27889_v22  ;;  %v3300_v61 = vrot.slane %v30236_v63, %v27892_v23  ;;  %v3304_v4 = vrot.slane %v30236_v63, %v27896_v25 }
 0xb42   : > { %v26682_v24 = vpop.eup %26681 }
 0xb43   : > { %20049 = vst [vmem:[%s27851_s14 + $0x178] sm:$0xff] %v19935_v6  ;;  %v19936_v11 = vcombine.low %v26680_v5, %v26682_v24  ;;  %19049 = vmatpush1.bf16.msra.mxu1 %v26199_v62  ;;  %v26265_v62 = vld [vmem:[%s27319_s17 + $0x3728] ss:$456 sps:$4 sm:$0xff]   ;;  %v26276_v6 = vld [vmem:[%s27319_s17 + $0x3ac4] ss:$456 sps:$4 sm:$0xff]  }
 0xb44   : > { %19131 = vmatpush1.bf16.msra.mxu0 %v26202_v15  ;;  %19050 = vmatprep.subr.bf16.mxu1 %v26207_v0  ;;  %v26268_v15 = vld [vmem:[%s27319_s17 + $0x3730] ss:$456 sps:$4 sm:$0xff]   ;;  %v26273_v0 = vld [vmem:[%s27319_s17 + $0x3abc] ss:$456 sps:$4 sm:$0xff]  }
 0xb45   : > { %20050 = vst [vmem:[%s27851_s14 + $0x180] sm:$0xff] %v19936_v11  ;;  %19132 = vmatprep.subr.bf16.mxu0 %v26210_v10 }
 0xb47   : > { %19051 = vmatpush1.bf16.msra.mxu1 %v26205_v12 }
 0xb48   : > { %19133 = vmatpush1.bf16.msra.mxu0 %v26208_v13  ;;  %19052 = vmatprep.subr.bf16.mxu1 %v26213_v14 }
 0xb49   : > { %19134 = vmatprep.subr.bf16.mxu0 %v26216_v17 }
 0xb4b   : > { %19053 = vmatpush1.bf16.msra.mxu1 %v26211_v31  ;;  %v26271_v31 = vld [vmem:[%s27319_s17 + $0x3ab8] ss:$456 sps:$4 sm:$0xff]  }
 0xb4c   : > { %19135 = vmatpush1.bf16.msra.mxu0 %v26214_v18  ;;  %19054 = vmatprep.subr.bf16.mxu1 %v26219_v19  ;;  %v26274_v18 = vld [vmem:[%s27319_s17 + $0x3ac0] ss:$456 sps:$4 sm:$0xff]  }
 0xb4d   : > { %19136 = vmatprep.subr.bf16.mxu0 %v26222_v20 }
 0xb4f   : > { %19055 = vmatpush1.bf16.msra.mxu1 %v26217_v21 }
 0xb50   : > { %19137 = vmatpush1.bf16.msra.mxu0 %v26220_v26  ;;  %19056 = vmatprep.subr.bf16.mxu1 %v26225_v39  ;;  %v26279_v39 = vld [vmem:[%s27319_s17 + $0x3e4c] ss:$456 sps:$4 sm:$0xff]  }
 0xb51   : > { %19138 = vmatprep.subr.bf16.mxu0 %v26228_v38 }
 0xb53   : > { %19057 = vmatpush1.bf16.msra.mxu1 %v26223_v27 }
 0xb54   : > { %19139 = vmatpush1.bf16.msra.mxu0 %v26226_v28  ;;  %19058 = vmatprep.subr.bf16.mxu1 %v26231_v29  ;;  %v26277_v29 = vld [vmem:[%s27319_s17 + $0x3e48] ss:$456 sps:$4 sm:$0xff]  }
 0xb55   : > { %19140 = vmatprep.subr.bf16.mxu0 %v26234_v32  ;;  %v26282_v32 = vld [vmem:[%s27319_s17 + $0x3e54] ss:$456 sps:$4 sm:$0xff]  }
 0xb57   : > { %19059 = vmatpush1.bf16.msra.mxu1 %v26229_v47 }
 0xb58   : > { %19141 = vmatpush1.bf16.msra.mxu0 %v26232_v33  ;;  %19060 = vmatprep.subr.bf16.mxu1 %v26237_v35  ;;  %v26283_v35 = vld [vmem:[%s27319_s17 + $0x41dc] ss:$456 sps:$4 sm:$0x3f]  }
 0xb59   : > { %19142 = vmatprep.subr.bf16.mxu0 %v26240_v37 }
 0xb5b   : > { %19061 = vmatpush1.bf16.msra.mxu1 %v26235_v43 }
 0xb5c   : > { %19143 = vmatpush1.bf16.msra.mxu0 %v26238_v52  ;;  %19062 = vmatprep.subr.bf16.mxu1 %v26243_v44  ;;  %v26280_v52 = vld [vmem:[%s27319_s17 + $0x3e50] ss:$456 sps:$4 sm:$0xff]  }
 0xb5d   : > { %19144 = vmatprep.subr.bf16.mxu0 %v26246_v45  ;;  %v26285_v45 = vld [vmem:[%s27319_s17 + $0x41d8] ss:$456 sps:$4 sm:$0x3f]  }
 0xb5f   : > { %19063 = vmatpush1.bf16.msra.mxu1 %v26241_v46  ;;  %v26286_v46 = vld [vmem:[%s27319_s17 + $0x41e4] ss:$456 sps:$4 sm:$0x3f]  }
 0xb60   : > { %19145 = vmatpush1.bf16.msra.mxu0 %v26244_v48  ;;  %19064 = vmatprep.subr.bf16.mxu1 %v26249_v58  ;;  %v26288_v48 = vld [vmem:[%s27319_s17 + $0x41e0] ss:$456 sps:$4 sm:$0x3f]   ;;  %s20060_s17 = scalar_lea.sflag [#allocation4], %s27316_s30 }
 0xb61   : > { %19146 = vmatprep.subr.bf16.mxu0 %v26252_v49  ;;  %v14525_v58 = vsel %vm14187_vm7, %v26288_v48, 0 }
 0xb63   : > { %19065 = vmatpush1.bf16.msra.mxu1 %v26247_v30 }
 0xb64   : > { %19147 = vmatpush1.bf16.msra.mxu0 %v26250_v50  ;;  %19066 = vmatprep.subr.bf16.mxu1 %v26255_v51 }
 0xb65   : > { %19148 = vmatprep.subr.bf16.mxu0 %v26258_v53 }
 0xb67   : > { %19067 = vmatpush1.bf16.msra.mxu1 %v26253_v1 }
 0xb68   : > { %19149 = vmatpush1.bf16.msra.mxu0 %v26256_v54  ;;  %19068 = vmatprep.subr.bf16.mxu1 %v26261_v55 }
 0xb69   : > { %19150 = vmatprep.subr.bf16.mxu0 %v26264_v56 }
 0xb6b   : > { %19069 = vmatpush1.bf16.msra.mxu1 %v26259_v57 }
 0xb6c   : > { %19151 = vmatpush1.bf16.msra.mxu0 %v26262_v41  ;;  %19070 = vmatprep.subr.bf16.mxu1 %v26267_v59 }
 0xb6d   : > { %v18623_v5 = vpop.f32.mrb[104].mxu1  ;;  %19152 = vmatprep.subr.bf16.mxu0 %v26270_v8 }
 0xb6e   : > { %v22708_v10 = vadd.f32 %v18623_v5, %v3292_v9  ;;  %v18625_v24 = vpop.f32.mrb[105].mxu1  ;;  %v18705_v11 = vpop.f32.mrb[100].mxu0  ;;  %v3308_v9 = vrot.slane %v30236_v63, %v27996_v34 }
 0xb6f   : > { %v22709_v12 = vadd.f32 %v18625_v24, %v3296_v60  ;;  %v22710_v13 = vadd.f32 %v18705_v11, %v3300_v61  ;;  %v18627_v14 = vpop.f32.mrb[106].mxu1  ;;  %v18707_v17 = vpop.f32.mrb[101].mxu0  ;;  %19071 = vmatpush1.bf16.msra.mxu1 %v26265_v62  ;;  %v3312_v60 = vrot.slane %v30236_v63, %v28000_v36 }
 0xb70   : > { %v19302_v19 = vsub.f32 0.0, %v22708_v10  ;;  %v22711_v20 = vadd.f32 %v18707_v17, %v3304_v4  ;;  %v18628_v21 = vpop.f32.mrb[107].mxu1  ;;  %v18709_v26 = vpop.f32.mrb[102].mxu0  ;;  %19153 = vmatpush1.bf16.msra.mxu0 %v26268_v15  ;;  %19081 = vmatprep.subr.bf16.mxu1 %v26273_v0 }
 0xb71   : > { %v19303_v38 = vsub.f32 0.0, %v22709_v12  ;;  %v19304_v27 = vsub.f32 0.0, %v22710_v13  ;;  %v18710_v28 = vpop.f32.mrb[103].mxu0  ;;  %19163 = vmatprep.subr.bf16.mxu0 %v26276_v6 }
 0xb72   : > { %v19514_v47 = vmul.f32 1.442695, %v19302_v19  ;;  %v19305_v33 = vsub.f32 0.0, %v22711_v20  ;;  %19073 = vmatmul.mubr.bf16.vlgmr.msra.gmra.mrb[116].mxu1 %v27535_v40 }
 0xb73   : > { %v19516_v37 = vmul.f32 1.442695, %v19303_v38  ;;  %v19518_v43 = vmul.f32 1.442695, %v19304_v27  ;;  %19082 = vmatpush1.bf16.msra.mxu1 %v26271_v31  ;;  %19155 = vmatmul.mubr.bf16.vlgmr.msra.gmra.mrb[112].mxu0 %v27535_v40  ;;  %v14519_v40 = vsel %vm14187_vm7, %v26285_v45, 0 }
 0xb74   : > { %26683 = vpow2.f32 %v19514_v47  ;;  %v19520_v44 = vmul.f32 1.442695, %v19305_v33  ;;  %19164 = vmatpush1.bf16.msra.mxu0 %v26274_v18  ;;  %19083 = vmatprep.subr.bf16.mxu1 %v26279_v39 }
 0xb75   : > { %26685 = vpow2.f32 %v19516_v37  ;;  %19165 = vmatprep.subr.bf16.mxu0 %v26282_v32  ;;  %19113 = vmatprep.mubr.bf16.mxu1 %v27007_v16 }
 0xb76   : > { %26687 = vpow2.f32 %v19518_v43  ;;  %19195 = vmatprep.mubr.bf16.mxu0 %v27007_v16 }
 0xb77   : > { %26689 = vpow2.f32 %v19520_v44  ;;  %19084 = vmatpush1.bf16.msra.mxu1 %v26277_v29 }
 0xb78   : > { %19166 = vmatpush1.bf16.msra.mxu0 %v26280_v52  ;;  %22509 = vmatprep.subr.msk.bf16.mxu1 %vm14187_vm7, %v26283_v35 }
 0xb79   : > { %22511 = vmatprep.subr.msk.bf16.mxu0 %vm14187_vm7, %v26286_v46 }
 0xb7b   : > { %19086 = vmatpush1.bf16.msra.mxu1 %v14519_v40 }
 0xb7c   : > { %19168 = vmatpush1.bf16.msra.mxu0 %v14525_v58 }
 0xb7e   : > { %v26684_v49 = vpop.eup %26683  ;;  %22510 = vmatmul.mubr.msk.bf16.vlgmr.msra.gmra.mrb[116].mxu1 %vm14183_vm8, %v27539_v42 }
 0xb7f   : > { %v26686_v30 = vpop.eup %26685  ;;  %v19644_v50 = vadd.f32 1.0, %v26684_v49  ;;  %22512 = vmatmul.mubr.msk.bf16.vlgmr.msra.gmra.mrb[112].mxu0 %vm14183_vm8, %v27539_v42  ;;  %v30377_v42 = vld [vmem:[%s27786_s21 + $0x68] sm:$0xff] }
 0xb80   : > { %v26688_v16 = vpop.eup %26687  ;;  %v19645_v51 = vadd.f32 1.0, %v26686_v30  ;;  %v3316_v61 = vrot.slane %v30377_v42, %v27453_v2  ;;  %v3320_v62 = vrot.slane %v30377_v42, %v27456_v3  ;;  %v3324_v48 = vrot.slane %v30377_v42, %v27461_v7 }
 0xb81   : > { %v26690_v53 = vpop.eup %26689  ;;  %26691 = vrcp.f32 %v19644_v50  ;;  %v19646_v1 = vadd.f32 1.0, %v26688_v16  ;;  %v3328_v40 = vrot.slane %v30377_v42, %v27889_v22  ;;  %v3332_v58 = vrot.slane %v30377_v42, %v27892_v23 }
 0xb82   : > { %26693 = vrcp.f32 %v19645_v51  ;;  %v19647_v54 = vadd.f32 1.0, %v26690_v53  ;;  %v3336_v49 = vrot.slane %v30377_v42, %v27896_v25 }
 0xb83   : > { %26695 = vrcp.f32 %v19646_v1 }
 0xb84   : > { %26697 = vrcp.f32 %v19647_v54 }
 0xb8b   : > { %v26692_v55 = vpop.eup %26691 }
 0xb8c   : > { %v26694_v56 = vpop.eup %26693 }
 0xb8d   : > { %v26696_v57 = vpop.eup %26695  ;;  %v19937_v41 = vcombine.low %v26692_v55, %v26694_v56 }
 0xb8e   : > { %v26698_v59 = vpop.eup %26697 }
 0xb8f   : > { %20051 = vst [vmem:[%s27851_s14 + $0x188] sm:$0xff] %v19937_v41  ;;  %v19938_v8 = vcombine.low %v26696_v57, %v26698_v59 }
 0xb91   : > { %20052 = vst [vmem:[%s27851_s14 + $0x190] sm:$0xff] %v19938_v8 }
 0xbb9   : > { %v18787_v4 = vpop.f32.mrb[108].mxu1 }
 0xbba   : > { %v22712_v15 = vadd.f32 %v18787_v4, %v3308_v9  ;;  %v18789_v0 = vpop.f32.mrb[109].mxu1  ;;  %v18869_v5 = vpop.f32.mrb[104].mxu0 }
 0xbbb   : > { %v22713_v6 = vadd.f32 %v18789_v0, %v3312_v60  ;;  %v22714_v10 = vadd.f32 %v18869_v5, %v3316_v61  ;;  %v18791_v24 = vpop.f32.mrb[110].mxu1  ;;  %v18871_v11 = vpop.f32.mrb[105].mxu0 }
 0xbbc   : > { %v19306_v12 = vsub.f32 0.0, %v22712_v15  ;;  %v22715_v13 = vadd.f32 %v18871_v11, %v3320_v62  ;;  %v18792_v14 = vpop.f32.mrb[111].mxu1  ;;  %v18873_v17 = vpop.f32.mrb[106].mxu0 }
 0xbbd   : > { %v19307_v31 = vsub.f32 0.0, %v22713_v6  ;;  %v19308_v63 = vsub.f32 0.0, %v22714_v10  ;;  %v18874_v18 = vpop.f32.mrb[107].mxu0 }
 0xbbe   : > { %v19522_v19 = vmul.f32 1.442695, %v19306_v12  ;;  %v19309_v20 = vsub.f32 0.0, %v22715_v13  ;;  %v3340_v18 = vrot.slane %v30377_v42, %v27996_v34 }
 0xbbf   : > { %v19524_v21 = vmul.f32 1.442695, %v19307_v31  ;;  %v19526_v26 = vmul.f32 1.442695, %v19308_v63  ;;  %v2881_v63 = vld [vmem:[%s27786_s21 + $0x70] sm:$0x3] }
 0xbc0   : > { %26699 = vpow2.f32 %v19522_v19  ;;  %v19528_v39 = vmul.f32 1.442695, %v19309_v20  ;;  %v3344_v19 = vrot.slane %v30377_v42, %v28000_v36  ;;  %v3348_v20 = vrot.slane %v2881_v63, %v27453_v2 }
 0xbc1   : > { %26701 = vpow2.f32 %v19524_v21  ;;  %v3352_v21 = vrot.slane %v2881_v63, %v27456_v3 }
 0xbc2   : > { %26703 = vpow2.f32 %v19526_v26 }
 0xbc3   : > { %26705 = vpow2.f32 %v19528_v39 }
 0xbca   : > { %v26700_v38 = vpop.eup %26699 }
 0xbcb   : > { %v26702_v27 = vpop.eup %26701  ;;  %v19648_v28 = vadd.f32 1.0, %v26700_v38 }
 0xbcc   : > { %v26704_v29 = vpop.eup %26703  ;;  %v19649_v32 = vadd.f32 1.0, %v26702_v27 }
 0xbcd   : > { %v26706_v47 = vpop.eup %26705  ;;  %26707 = vrcp.f32 %v19648_v28  ;;  %v19650_v33 = vadd.f32 1.0, %v26704_v29 }
 0xbce   : > { %26709 = vrcp.f32 %v19649_v32  ;;  %v19651_v35 = vadd.f32 1.0, %v26706_v47 }
 0xbcf   : > { %26711 = vrcp.f32 %v19650_v33 }
 0xbd0   : > { %26713 = vrcp.f32 %v19651_v35 }
 0xbd7   : > { %v26708_v37 = vpop.eup %26707 }
 0xbd8   : > { %v26710_v43 = vpop.eup %26709 }
 0xbd9   : > { %v26712_v52 = vpop.eup %26711  ;;  %v19939_v44 = vcombine.low %v26708_v37, %v26710_v43 }
 0xbda   : > { %v26714_v45 = vpop.eup %26713 }
 0xbdb   : > { %20053 = vst [vmem:[%s27851_s14 + $0x198] sm:$0xff] %v19939_v44  ;;  %v19940_v46 = vcombine.low %v26712_v52, %v26714_v45 }
 0xbdd   : > { %20054 = vst [vmem:[%s27851_s14 + $0x1a0] sm:$0xff] %v19940_v46 }
 0xc05   : > { %v18951_v30 = vpop.f32.mrb[112].mxu1 }
 0xc06   : > { %v22716_v50 = vadd.f32 %v18951_v30, %v3324_v48  ;;  %v18953_v16 = vpop.f32.mrb[113].mxu1  ;;  %v19033_v51 = vpop.f32.mrb[108].mxu0 }
 0xc07   : > { %v22717_v53 = vadd.f32 %v18953_v16, %v3328_v40  ;;  %v22718_v1 = vadd.f32 %v19033_v51, %v3332_v58  ;;  %v18955_v54 = vpop.f32.mrb[114].mxu1  ;;  %v19035_v55 = vpop.f32.mrb[109].mxu0 }
 0xc08   : > { %v19310_v56 = vsub.f32 0.0, %v22716_v50  ;;  %v22719_v57 = vadd.f32 %v19035_v55, %v3336_v49  ;;  %v18956_v7 = vpop.f32.mrb[115].mxu1  ;;  %v19037_v41 = vpop.f32.mrb[110].mxu0 }
 0xc09   : > { %v19311_v59 = vsub.f32 0.0, %v22717_v53  ;;  %v19312_v22 = vsub.f32 0.0, %v22718_v1  ;;  %v19038_v8 = vpop.f32.mrb[111].mxu0 }
 0xc0a   : > { %v19530_v9 = vmul.f32 1.442695, %v19310_v56  ;;  %v19313_v23 = vsub.f32 0.0, %v22719_v57 }
 0xc0b   : > { %v19532_v60 = vmul.f32 1.442695, %v19311_v59  ;;  %v19534_v61 = vmul.f32 1.442695, %v19312_v22 }
 0xc0c   : > { %26715 = vpow2.f32 %v19530_v9  ;;  %v19536_v25 = vmul.f32 1.442695, %v19313_v23 }
 0xc0d   : > { %26717 = vpow2.f32 %v19532_v60 }
 0xc0e   : > { %26719 = vpow2.f32 %v19534_v61 }
 0xc0f   : > { %26721 = vpow2.f32 %v19536_v25 }
 0xc16   : > { %v26716_v62 = vpop.eup %26715 }
 0xc17   : > { %v26718_v4 = vpop.eup %26717  ;;  %v19652_v15 = vadd.f32 1.0, %v26716_v62 }
 0xc18   : > { %v26720_v0 = vpop.eup %26719  ;;  %v19653_v5 = vadd.f32 1.0, %v26718_v4 }
 0xc19   : > { %v26722_v6 = vpop.eup %26721  ;;  %26723 = vrcp.f32 %v19652_v15  ;;  %v19654_v10 = vadd.f32 1.0, %v26720_v0 }
 0xc1a   : > { %26725 = vrcp.f32 %v19653_v5  ;;  %v19655_v24 = vadd.f32 1.0, %v26722_v6 }
 0xc1b   : > { %26727 = vrcp.f32 %v19654_v10 }
 0xc1c   : > { %26729 = vrcp.f32 %v19655_v24 }
 0xc23   : > { %v26724_v11 = vpop.eup %26723 }
 0xc24   : > { %v26726_v12 = vpop.eup %26725 }
 0xc25   : > { %v26728_v13 = vpop.eup %26727  ;;  %v19941_v14 = vcombine.low %v26724_v11, %v26726_v12 }
 0xc26   : > { %v26730_v17 = vpop.eup %26729 }
 0xc27   : > { %20055 = vst [vmem:[%s27851_s14 + $0x1a8] sm:$0xff] %v19941_v14  ;;  %v19942_v31 = vcombine.low %v26728_v13, %v26730_v17 }
 0xc29   : > { %20056 = vst [vmem:[%s27851_s14 + $0x1b0] sm:$0xff] %v19942_v31 }
 0xc51   : > { %v19115_v26 = vpop.f32.mrb[116].mxu1 }
 0xc52   : > { %v22720_v39 = vadd.f32 %v19115_v26, %v3340_v18  ;;  %v19117_v38 = vpop.f32.mrb[117].mxu1  ;;  %v19197_v27 = vpop.f32.mrb[112].mxu0 }
 0xc53   : > { %v22721_v28 = vadd.f32 %v19117_v38, %v3344_v19  ;;  %v22722_v29 = vadd.f32 %v19197_v27, %v3348_v20  ;;  %v19119_v32 = vpop.f32.mrb[118].mxu1  ;;  %v19199_v47 = vpop.f32.mrb[113].mxu0 }
 0xc54   : > { %v19314_v33 = vsub.f32 0.0, %v22720_v39  ;;  %v22723_v35 = vadd.f32 %v19199_v47, %v3352_v21  ;;  %v19120_v37 = vpop.f32.mrb[119].mxu1  ;;  %v19201_v43 = vpop.f32.mrb[114].mxu0 }
 0xc55   : > { %v19315_v34 = vsub.f32 0.0, %v22721_v28  ;;  %v19316_v52 = vsub.f32 0.0, %v22722_v29  ;;  %v19202_v44 = vpop.f32.mrb[115].mxu0 }
 0xc56   : > { %v19538_v36 = vmul.f32 1.442695, %v19314_v33  ;;  %v19317_v42 = vsub.f32 0.0, %v22723_v35 }
 0xc57   : > { %v19540_v2 = vmul.f32 1.442695, %v19315_v34  ;;  %v19542_v45 = vmul.f32 1.442695, %v19316_v52 }
 0xc58   : > { %26731 = vpow2.f32 %v19538_v36  ;;  %v19544_v3 = vmul.f32 1.442695, %v19317_v42 }
 0xc59   : > { %26733 = vpow2.f32 %v19540_v2 }
 0xc5a   : > { %26735 = vpow2.f32 %v19542_v45 }
 0xc5b   : > { %26737 = vpow2.f32 %v19544_v3 }
 0xc62   : > { %v26732_v46 = vpop.eup %26731 }
 0xc63   : > { %v26734_v48 = vpop.eup %26733  ;;  %v19656_v40 = vadd.f32 1.0, %v26732_v46 }
 0xc64   : > { %v26736_v58 = vpop.eup %26735  ;;  %v19657_v49 = vadd.f32 1.0, %v26734_v48 }
 0xc65   : > { %v26738_v30 = vpop.eup %26737  ;;  %26739 = vrcp.f32 %v19656_v40  ;;  %v19658_v50 = vadd.f32 1.0, %v26736_v58 }
 0xc66   : > { %26741 = vrcp.f32 %v19657_v49  ;;  %v19659_v16 = vadd.f32 1.0, %v26738_v30 }
 0xc67   : > { %26743 = vrcp.f32 %v19658_v50 }
 0xc68   : > { %26745 = vrcp.f32 %v19659_v16 }
 0xc6f   : > { %v26740_v51 = vpop.eup %26739  ;;  %20066 = sbr.rel (!%p30500_p12) target bundleno = 3217 (0xc91), region = 76 }
 0xc70   : > { %v26742_v53 = vpop.eup %26741 }
 0xc71   : > { %v26744_v1 = vpop.eup %26743  ;;  %v19943_v54 = vcombine.low %v26740_v51, %v26742_v53 }
 0xc72   : > { %v26746_v55 = vpop.eup %26745 }
 0xc73   : > { %20057 = vst [vmem:[%s27851_s14 + $0x1b8] sm:$0xff] %v19943_v54  ;;  %v19944_v56 = vcombine.low %v26744_v1, %v26746_v55 }
 0xc75   : > { %20058 = vst [vmem:[%s27851_s14 + $0x1c0] sm:$0xff] %v19944_v56 }
 0xc76   : > { %s30513_s2 = smov (!%p20069_p11, %s20068_s2), 114 }
 0xc77   : > { %s30412_s10 = sshll.u32 %s30513_s2, 6 }
 0xc78   : > { %s20073_s16 = ssub.s32 7296, %s30412_s10 }
 0xc79   : > { %20074 = vsyncadd %s20060_s17, %s20073_s16  ;;  %p22514_p13 = scmp.ne.s32.totalorder %s30412_s10, 0  ;;  %s22522_s13 = smul.u32 7296, %s27070_s28 }
 0xc7a   : > { %s20080_s23 = sshll.u32 %s27851_s14, 4  ;;  %s27008_s20 = smov [#allocation12]   ;;  %s20081_s23 = int_to_ptr.vmem [resolvable:$true] %s20080_s23 }
 0xc7b   : > { %s30423_s22 = scalar_lea.hbm %s30471_s7, %s22522_s13  ;;  %s26916_s9 = scalar_lea.vmem %s20081_s23, %s30412_s10 }
 0xc7c   : > { %p26917_p7 = scmp.ne.s32.totalorder %s20081_s23, %s26916_s9  ;;  %s26920_s11 = sshll.u32 %s27008_s20, 4  ;;  %s26921_s11 = int_to_ptr.vmem [resolvable:$false] %s26920_s11 }
 0xc7d   : > { %s26922_s15 = scalar_lea.vmem %s26921_s11, 14592  ;;  %p26923_p9 = scmp.lt.s32.totalorder %s20081_s23, %s26921_s11 }
 0xc7e   : > { %p26918_p8 = pnand %p26917_p7, %p22514_p13  ;;  %p26924_p10 = scmp.lt.s32.totalorder %s26922_s15, %s26916_s9 }
 0xc80   : > { %p26919_p1 = pneg %p26918_p8  ;;  %p26925_p4 = por %p26924_p10, %p26923_p9 }
 0xc82   : > { %p26926_p2 = pnand %p26925_p4, %p26919_p1 }
 0xc84   : > { %26929 = shalt.err (!%p26926_p2)
}
 0xc85   : > { %s26930_s28 = scalar_lea.hbm %s30423_s22, %s30412_s10  ;;  %s26934_s19 = scalar_lea.hbm %s30471_s7, 58240 }
 0xc86   : > { %p26931_p3 = scmp.ne.s32.totalorder %s30423_s22, %s26930_s28  ;;  %p26935_p5 = scmp.lt.u32.totalorder %s30423_s22, %s30471_s7 }
 0xc87   : > { %p26936_p12 = scmp.lt.u32.totalorder %s26934_s19, %s26930_s28  ;;  %p26938_p7 = scmp.lt.u32.totalorder %s26930_s28, %s30423_s22 }
 0xc88   : > { %p26932_p6 = pnand %p26931_p3, %p22514_p13 }
 0xc89   : > { %p26937_p11 = por %p26936_p12, %p26935_p5 }
 0xc8a   : > { %p26933_p0 = pneg %p26932_p6 }
 0xc8b   : > { %p26939_p8 = por %p26938_p7, %p26937_p11 }
 0xc8d   : > { %p26940_p1 = pnand %p26939_p8, %p26933_p0 }
 0xc8f   : > { %26943 = shalt.err (!%p26940_p1)
}
 0xc90   : > { %20083 = dma.vmem_to_hbm [thread:$0]  (%p22514_p13), %s20081_s23, %s30412_s10, %s30423_s22, %s20060_s17  }
 0xc91 PF: > { %s30501_s2 = sld [smem:[#allocation20_spill]]  ;;  %p22997_p9 = scmp.ge.s32.totalorder %s26994_s27, 2 }
 0xc92   : > { %s20092_s16 = sand.u32 1, %s26982_s24  }
 0xc93   : > { %s20093_s13 = scalar_lea.sflag [#allocation4], %s20092_s16 }
 0xc97   : > { %p30502_p10 = scmp.ne.s32.totalorder %s30501_s2, 0 }
 0xc99   : > { %p22986_p4 = pnand %p22997_p9, %p30502_p10 }
 0xc9b   : > { %26977 = dma.done.wait (!%p22986_p4), %s20093_s13, 7296  }
 0xc9c   : > { %26979 = vsyncadd (!%p22986_p4), %s20093_s13, 4294960000  ;;  %s30503_s27 = sld [smem:[#allocation18_spill]]  ;;  %s30504_s29 = sld [smem:[#allocation19_spill]] }
 0xc9d   : > { %s30505_s24 = smov %s26986_s25  ;;  %s30506_s25 = smov %s26990_s26 }
 0xca2   : > { %p20_p2 = scmp.ge.s32.totalorder %s30503_s27, 10   ;;  %s30507_s26 = smov %s30504_s29 }
 0xca4   :  { %22 = sbr.rel (!%p20_p2) target bundleno = 8 (0x8), region = 119 }
 0xcab   :  { %20098 = vsyncpa [#allocation3], 1 }
 0xcac   :  { %20100 = vsyncpa [#allocation3 + $0x1], 1 }
 0xcad   :  { %20101 = vsyncpa [#allocation6], 1 }
 0xcae   :  { %20102 = vsyncpa [#allocation9], 1 }
 0xcaf   :  { %20103 = vsyncpa [#allocation4], 1 }
 0xcb0   :  { %20105 = vsyncpa [#allocation4 + $0x1], 1 }

</bundles_post_ra>
